<compile_context>
chip_gen: v5e
topology: v5e:2x2
jax: 0.10.0
libtpu: 0.0.40
codegen_flags: <defaults>
</compile_context>

<pallas_src>
from functools import partial

import numpy as np
import jax
import jax.numpy as jnp
from jax.experimental import pallas as pl
from jax.experimental.pallas import tpu as pltpu


# --------------------------------------------------------------------------
# in-kernel helpers
# --------------------------------------------------------------------------

def _erf_approx(x):
    # Abramowitz & Stegun 7.1.26, |abs err| < 1.5e-7 (f32 noise).  Uses only
    # abs / exp / div / where, which all have guaranteed Mosaic lowerings.
    p = 0.3275911
    a1, a2, a3, a4, a5 = (0.254829592, -0.284496736, 1.421413741,
                          -1.453152027, 1.061405429)
    z = jnp.abs(x)
    t = 1.0 / (1.0 + p * z)
    poly = ((((a5 * t + a4) * t + a3) * t + a2) * t + a1) * t
    e = 1.0 - poly * jnp.exp(-z * z)
    return jnp.where(x < 0.0, -e, e)


def _gelu_exact(x):
    # nn.GELU() default (erf GELU)
    return 0.5 * x * (1.0 + _erf_approx(x * 0.7071067811865476))


# --------------------------------------------------------------------------
# the fused kernel (grid-less: the whole working set fits comfortably in VMEM)
# --------------------------------------------------------------------------

def _msastg_fused_kernel(x0_ref, affine_ref, emb_ref, ds_ref, sh0_ref, sh1_ref,
                         a0_ref, a1_ref, uw_ref, ub1_ref, ub2_ref,
                         oc1_ref, ocb_ref, oc2_ref, wp_ref, proj_ref, bias_ref,
                         out_ref, *, eps):
    """Entire Model.forward for the fixed config in one invocation.

    x0_ref  : (M, T0) raw series, row = b*N + n, time on the lane axis
    emb_ref : (M*D, 3*M) token-embedding expansion (conv taps folded in)
    ds_ref  : (T0, T1) AvgPool1d downsample matrix
    sh*_ref : (2*T, T)  [circular shift t-1 ; circular shift t+1] matrices
    a*_ref  : (T, T) edge-replicated moving-average matrices
    oc*_ref : block-diagonal out_cross weights (one d_model block per series)
    """
    f32 = jnp.float32
    M, T0 = x0_ref.shape
    T1 = ds_ref.shape[1]
    MD = emb_ref.shape[0]
    MDff = oc1_ref.shape[0]
    dot = lambda a, b: jnp.dot(a, b, preferred_element_type=f32)

    # raw multi-scale inputs: scale 0 = input, scale 1 = AvgPool1d(window)
    x0 = x0_ref[...]                                   # (M, T0)
    x1 = dot(x0, ds_ref[...])                          # (M, T1)

    aff = affine_ref[...]                              # (4M, 1)
    aw0, ab0 = aff[0:M, :], aff[M:2 * M, :]
    aw1, ab1 = aff[2 * M:3 * M, :], aff[3 * M:4 * M, :]

    # RevIN 'norm' (affine=True, unbiased=False variance)
    def revin(x, aw, ab):
        mean = jnp.mean(x, axis=1, keepdims=True)
        var = jnp.mean((x - mean) ** 2, axis=1, keepdims=True)
        std = jnp.sqrt(var + eps)
        scale = aw / std                               # (M, 1)
        shift = ab - mean * scale
        return x * scale + shift, mean, std

    xn0, mean0, std0 = revin(x0, aw0, ab0)
    xn1, _, _ = revin(x1, aw1, ab1)

    # circular conv taps [x[t-1]; x[t]; x[t+1]] built via constant shift mats
    sh0 = sh0_ref[...]
    sh1 = sh1_ref[...]
    stk0 = jnp.concatenate(
        [dot(xn0, sh0[0:T0, :]), xn0, dot(xn0, sh0[T0:, :])], axis=0)  # (3M,T0)
    stk1 = jnp.concatenate(
        [dot(xn1, sh1[0:T1, :]), xn1, dot(xn1, sh1[T1:, :])], axis=0)  # (3M,T1)

    # TokenEmbedding (circular Conv1d, k=3, no bias) as one matmul per scale;
    # rows of enc are (series, d_model) pairs, time stays on the lane axis.
    emb = emb_ref[...]
    enc0 = dot(emb, stk0)                              # (M*D, T0)
    enc1 = dot(emb, stk1)                              # (M*D, T1)

    # series_decomp: edge-replicated moving average == matmul with constant A.
    trd0 = dot(enc0, a0_ref[...])
    sea0 = enc0 - trd0
    trd1 = dot(enc1, a1_ref[...])
    sea1 = enc1 - trd1

    # Nas (target scale 0): uni_scale[0] rescales scale-1 season & trend onto
    # the scale-0 length.  Season and trend share weights -> stack them.
    # TODO(synk): Cell(configs, op_num, candidate_op_profiles) (Nas_mix) is not
    # defined in the provided source; treated as an identity mixing op.
    uw = uw_ref[...]                                   # rows [w1 (T1,T0); w2 (T0,T0)]
    st1 = jnp.concatenate([sea1, trd1], axis=0)        # (2*M*D, T1)
    h = _gelu_exact(dot(st1, uw[0:T1, :]) + ub1_ref[...])
    y = dot(h, uw[T1:, :]) + ub2_ref[...]              # (2*M*D, T0)
    # out_season0 + out_trend0  (uses sea0 + trd0 == enc0)
    out_sum0 = enc0 + y[0:MD, :] + y[MD:, :]           # (M*D, T0)

    # out_cross_layer (MLP over d_model) in the same time-last layout via
    # block-diagonal weights (one 32x32 block per series).
    ocb = ocb_ref[...]
    hc = _gelu_exact(dot(oc1_ref[...], out_sum0) + ocb[0:MDff, :])
    o2 = dot(oc2_ref[...], hc) + ocb[MDff:, :]
    out0 = enc0 + o2                                   # residual

    # predict_layers[0] (T0 -> pred_len) fused with projection_layer (D -> 1).
    g = dot(out0, wp_ref[...])                         # (M*D, P)
    dec = dot(proj_ref[...], g) + bias_ref[...]        # (M, P)

    # RevIN 'denorm' with the scale-0 statistics (affine=True).
    out_ref[...] = ((dec - ab0) / (aw0 + eps * eps)) * std0 + mean0


# --------------------------------------------------------------------------
# constant-matrix builders + parameter packing (done ONCE, outside the jit)
# --------------------------------------------------------------------------

def _moving_avg_matrix(T, k):
    """(T, T) matrix A with  trend = x @ A  for the edge-replicated moving avg."""
    pad = (k - 1) // 2
    A = np.zeros((T, T), np.float32)
    for t in range(T):
        for j in range(-pad, pad + 1):
            src = min(max(t + j, 0), T - 1)
            A[src, t] += 1.0 / k
    return jnp.asarray(A)


def _shift_matrices(T):
    """(2T, T): rows 0:T = circular shift to t-1, rows T:2T = shift to t+1."""
    Sm = np.zeros((T, T), np.float32)
    Sp = np.zeros((T, T), np.float32)
    for t in range(T):
        Sm[(t - 1) % T, t] = 1.0     # (x @ Sm)[t] = x[t-1]
        Sp[(t + 1) % T, t] = 1.0     # (x @ Sp)[t] = x[t+1]
    return jnp.asarray(np.concatenate([Sm, Sp], axis=0))


def _downsample_matrix(T, w):
    """(T, T//w): x @ D == AvgPool1d(kernel=w, stride=w) over the time axis."""
    D = np.zeros((T, T // w), np.float32)
    for j in range(T // w):
        D[j * w:(j + 1) * w, j] = 1.0 / w
    return jnp.asarray(D)


def pack_params(params, cfg):
    B = cfg['batch_size']
    N = cfg['enc_in']
    M = B * N
    D = cfg['d_model']
    Dff = cfg['d_ff']
    T0 = cfg['seq_len']
    T1 = T0 // cfg['down_sampling_window']
    P = cfg['pred_len']
    eye_m = jnp.eye(M, dtype=jnp.float32)

    blk = params['pdm_blocks'][0]
    u0w1, u0b1, u0w2, u0b2 = blk['uni_scale'][0]
    ocw1, ocb1, ocw2, ocb2 = blk['out_cross']
    wp, bp = params['predict'][0]
    wproj = params['w_proj']
    bproj = params['b_proj']

    # token-embedding expansion:  E[(m,d),(k,m')] = w_token[k,d] * delta(m,m')
    emb = jnp.einsum('kd,mq->mdkq', params['w_token'], eye_m).reshape(M * D, 3 * M)

    affine = jnp.concatenate([
        jnp.tile(params['affine_w'][0], B), jnp.tile(params['affine_b'][0], B),
        jnp.tile(params['affine_w'][1], B), jnp.tile(params['affine_b'][1], B),
    ]).reshape(4 * M, 1)

    packed = dict(
        affine=affine,
        emb=emb,
        ds=_downsample_matrix(T0, cfg['down_sampling_window']),
        sh0=_shift_matrices(T0),
        sh1=_shift_matrices(T1),
        a0=_moving_avg_matrix(T0, cfg['moving_avg']),
        a1=_moving_avg_matrix(T1, cfg['moving_avg']),
        uw=jnp.concatenate([u0w1, u0w2], axis=0),        # (T1+T0, T0)
        ub1=u0b1.reshape(1, -1), ub2=u0b2.reshape(1, -1),
        # block-diagonal out_cross weights (time-last layout)
        oc1=jnp.kron(eye_m, ocw1.T),
        ocb=jnp.concatenate([jnp.tile(ocb1, M).reshape(M * Dff, 1),
                             jnp.tile(ocb2, M).reshape(M * D, 1)], axis=0),
        oc2=jnp.kron(eye_m, ocw2.T),
        wp=wp,
        proj=jnp.kron(eye_m, wproj.T),                   # (M, M*D)
        bias=(bp * jnp.sum(wproj) + bproj[0]).reshape(1, P),
    )
    return packed


# --------------------------------------------------------------------------
# forward (one transpose in, ONE pallas_call, one transpose out)
# --------------------------------------------------------------------------

def model_forward(packed, x_enc, cfg):
    B, T0, N = x_enc.shape
    M = B * N
    P = cfg['pred_len']

    # channel-independent row layout (row = b*N + n), time on the lane axis
    x0 = x_enc.astype(jnp.float32).transpose(0, 2, 1).reshape(M, T0)

    dec = pl.pallas_call(
        partial(_msastg_fused_kernel, eps=1e-5),
        out_shape=jax.ShapeDtypeStruct((M, P), jnp.float32),
        compiler_params=pltpu.CompilerParams(vmem_limit_bytes=16 * 1024 * 1024),
    )(x0, packed['affine'], packed['emb'], packed['ds'], packed['sh0'],
      packed['sh1'], packed['a0'], packed['a1'], packed['uw'],
      packed['ub1'], packed['ub2'], packed['oc1'], packed['ocb'],
      packed['oc2'], packed['wp'], packed['proj'], packed['bias'])

    # (B*N, P) -> (B, c_out, P) -> (B, P, c_out)
    return dec.reshape(B, N, P).transpose(0, 2, 1)


# --------------------------------------------------------------------------
# pure-JAX reference (mirrors the PyTorch forward; validation only)
# --------------------------------------------------------------------------

def reference_forward(params, x_enc, cfg):
    eps = 1e-5
    B, T0, N = x_enc.shape
    dsw = cfg['down_sampling_window']
    P = cfg['pred_len']

    # multi-scale inputs (AvgPool1d)
    x_scales = [x_enc]
    cur = x_enc
    for _ in range(cfg['down_sampling_layers']):
        Bc, Tc, Nc = cur.shape
        cur = (cur.transpose(0, 2, 1).reshape(Bc, Nc, Tc // dsw, dsw)
               .mean(-1).transpose(0, 2, 1))
        x_scales.append(cur)

    # RevIN norm + channel-independent reshape
    x_list, stats = [], []
    for i, xs in enumerate(x_scales):
        mean = jnp.mean(xs, axis=1, keepdims=True)
        std = jnp.sqrt(jnp.var(xs, axis=1, keepdims=True) + eps)
        xn = (xs - mean) / std * params['affine_w'][i] + params['affine_b'][i]
        stats.append((mean, std))
        Ti = xs.shape[1]
        x_list.append(xn.transpose(0, 2, 1).reshape(B * N, Ti, 1))

    # TokenEmbedding (circular conv k=3, no bias)
    wt = params['w_token']                       # (3, d_model), taps [t-1,t,t+1]
    enc_list = []
    for x in x_list:
        xv = x[..., 0]
        win = jnp.stack([jnp.roll(xv, 1, axis=1), xv, jnp.roll(xv, -1, axis=1)],
                        axis=-1)                  # (M, T, 3)
        enc_list.append(jnp.einsum('mtk,kd->mtd', win, wt))

    def decomp(x, k):
        pad = (k - 1) // 2
        xp = jnp.concatenate([jnp.repeat(x[:, :1], pad, axis=1), x,
                              jnp.repeat(x[:, -1:], pad, axis=1)], axis=1)
        trend = sum(xp[:, j:j + x.shape[1]] for j in range(k)) / k
        return x - trend, trend

    gelu = lambda v: jax.nn.gelu(v, approximate=False)

    def mlp(x, w1, b1, w2, b2):
        return gelu(x @ w1 + b1) @ w2 + b2

    blk = params['pdm_blocks'][0]
    sea, trd = zip(*[decomp(x, cfg['moving_avg']) for x in enc_list])
    sea_p = [s.transpose(0, 2, 1) for s in sea]      # (M, D, T)
    trd_p = [t.transpose(0, 2, 1) for t in trd]
    u0 = blk['uni_scale'][0]
    # e_layers==1 & channel_independence==1: only the scale-0 target matters.
    out_season0 = (sea_p[0] + mlp(sea_p[1], *u0)).transpose(0, 2, 1)
    out_trend0 = (trd_p[0] + mlp(trd_p[1], *u0)).transpose(0, 2, 1)
    out = out_season0 + out_trend0
    enc0 = enc_list[0] + mlp(out, *blk['out_cross'])          # (M, T0, D)

    wp, bp = params['predict'][0]
    dec = jnp.einsum('mtd,tp->mpd', enc0, wp) + bp[None, :, None]
    dec = jnp.einsum('mpd,do->mpo', dec, params['w_proj']) + params['b_proj']
    dec = dec.reshape(B, N, P).transpose(0, 2, 1)             # (B, P, c_out)

    mean0, std0 = stats[0]
    dec = (dec - params['affine_b'][0]) / (params['affine_w'][0] + eps * eps)
    dec = dec * std0 + mean0
    return dec


# --------------------------------------------------------------------------
# parameter init
# --------------------------------------------------------------------------

def init_params(key, cfg):
    d_model, d_ff = cfg['d_model'], cfg['d_ff']
    seq_len, pred_len = cfg['seq_len'], cfg['pred_len']
    n_scales = cfg['down_sampling_layers'] + 1
    N = cfg['enc_in']
    keys = iter(jax.random.split(key, 512))

    def nrm(shape, scale=0.1):
        return scale * jax.random.normal(next(keys), shape, jnp.float32)

    params = {}
    # TokenEmbedding Conv1d(1, d_model, 3) weight stored as (tap, d_model),
    # taps ordered [t-1, t, t+1].
    params['w_token'] = nrm((3, d_model))

    input_sizes = [seq_len // 2 ** i for i in range(4)]
    pdm_blocks = []
    for _ in range(cfg['e_layers']):
        uni = []
        for in_size in input_sizes:
            for out_size in input_sizes:
                if out_size != in_size:
                    uni.append((nrm((out_size, in_size)), nrm((in_size,)),
                                nrm((in_size, in_size)), nrm((in_size,))))
        out_cross = (nrm((d_model, d_ff)), nrm((d_ff,)),
                     nrm((d_ff, d_model)), nrm((d_model,)))
        pdm_blocks.append({'uni_scale': uni, 'out_cross': out_cross})
    params['pdm_blocks'] = pdm_blocks

    params['predict'] = [
        (nrm((seq_len // cfg['down_sampling_window'] ** i, pred_len)),
         nrm((pred_len,))) for i in range(n_scales)]
    params['w_proj'] = nrm((d_model, 1))
    params['b_proj'] = nrm((1,))
    params['affine_w'] = [jnp.ones((N,), jnp.float32) for _ in range(n_scales)]
    params['affine_b'] = [jnp.zeros((N,), jnp.float32) for _ in range(n_scales)]
    return params


# --------------------------------------------------------------------------
# main
# --------------------------------------------------------------------------

if __name__ == "__main__":
    cfg = dict(batch_size=2, seq_len=16, pred_len=8, enc_in=4, c_out=4,
               d_model=32, d_ff=32, e_layers=1, moving_avg=5,
               down_sampling_window=2, down_sampling_layers=1,
               channel_independence=1)

    key = jax.random.PRNGKey(0)
    kx, kp = jax.random.split(key)
    x_enc = jax.random.normal(kx, (cfg['batch_size'], cfg['seq_len'],
                                   cfg['enc_in']), jnp.float32)
    params = init_params(kp, cfg)
    packed = pack_params(params, cfg)          # one-time weight folding

    fwd = jax.jit(lambda p, x: model_forward(p, x, cfg))
    out = jax.block_until_ready(fwd(packed, x_enc))

    assert out.shape == (cfg['batch_size'], cfg['pred_len'], cfg['c_out'])
    assert bool(jnp.all(jnp.isfinite(out)))

    # structural sanity check against a straightforward pure-JAX reference
    with jax.default_matmul_precision("float32"):
        ref = reference_forward(params, x_enc, cfg)
    max_err = float(jnp.max(jnp.abs(out - ref)))
    assert bool(jnp.allclose(out, ref, rtol=2e-2, atol=2e-2)), max_err

    print("KERNEL_OK")
</pallas_src>

<mosaic_0001>
module attributes {stable_mosaic.version = 11 : i64} {
  func.func @_msastg_fused_kernel(%arg0: memref<8x16xf32, #tpu.memory_space<vmem>>, %arg1: memref<32x1xf32, #tpu.memory_space<vmem>>, %arg2: memref<256x24xf32, #tpu.memory_space<vmem>>, %arg3: memref<16x8xf32, #tpu.memory_space<vmem>>, %arg4: memref<32x16xf32, #tpu.memory_space<vmem>>, %arg5: memref<16x8xf32, #tpu.memory_space<vmem>>, %arg6: memref<16x16xf32, #tpu.memory_space<vmem>>, %arg7: memref<8x8xf32, #tpu.memory_space<vmem>>, %arg8: memref<24x16xf32, #tpu.memory_space<vmem>>, %arg9: memref<1x16xf32, #tpu.memory_space<vmem>>, %arg10: memref<1x16xf32, #tpu.memory_space<vmem>>, %arg11: memref<256x256xf32, #tpu.memory_space<vmem>>, %arg12: memref<512x1xf32, #tpu.memory_space<vmem>>, %arg13: memref<256x256xf32, #tpu.memory_space<vmem>>, %arg14: memref<16x8xf32, #tpu.memory_space<vmem>>, %arg15: memref<8x256xf32, #tpu.memory_space<vmem>>, %arg16: memref<1x8xf32, #tpu.memory_space<vmem>>, %arg17: memref<8x8xf32, #tpu.memory_space<vmem>>) attributes {dimension_semantics = [], scalar_prefetch = 0 : i64, scratch_operands = 0 : i64, tpu.core_type = #tpu.core_type<tc>} {
    %c0 = arith.constant 0 : index
    %c0_0 = arith.constant 0 : index
    %0 = vector.load %arg0[%c0, %c0_0] : memref<8x16xf32, #tpu.memory_space<vmem>>, vector<8x16xf32>
    %c0_1 = arith.constant 0 : index
    %c0_2 = arith.constant 0 : index
    %1 = vector.load %arg3[%c0_1, %c0_2] : memref<16x8xf32, #tpu.memory_space<vmem>>, vector<16x8xf32>
    %cst = arith.constant dense<0.000000e+00> : vector<8x8xf32>
    %2 = tpu.matmul %0, %1, %cst {dimension_numbers = #tpu.dot_dimension_numbers<[1], [0], [0], [1], [0, 0, 1, 1], [], []>} : vector<8x16xf32>, vector<16x8xf32>, vector<8x8xf32> -> vector<8x8xf32>
    %c0_3 = arith.constant 0 : index
    %c0_4 = arith.constant 0 : index
    %3 = vector.load %arg1[%c0_3, %c0_4] : memref<32x1xf32, #tpu.memory_space<vmem>>, vector<32x1xf32>
    %4 = vector.extract_strided_slice %3 {offsets = [0, 0], sizes = [8, 1], strides = [1, 1]} : vector<32x1xf32> to vector<8x1xf32>
    %5 = vector.extract_strided_slice %3 {offsets = [8, 0], sizes = [8, 1], strides = [1, 1]} : vector<32x1xf32> to vector<8x1xf32>
    %6 = vector.extract_strided_slice %3 {offsets = [16, 0], sizes = [8, 1], strides = [1, 1]} : vector<32x1xf32> to vector<8x1xf32>
    %7 = vector.extract_strided_slice %3 {offsets = [24, 0], sizes = [8, 1], strides = [1, 1]} : vector<32x1xf32> to vector<8x1xf32>
    %cst_5 = arith.constant dense<0.000000e+00> : vector<8xf32>
    %8 = vector.multi_reduction <add>, %0, %cst_5 [1] : vector<8x16xf32> to vector<8xf32>
    %9 = vector.shape_cast %8 : vector<8xf32> to vector<8x1xf32>
    %cst_6 = arith.constant 1.600000e+01 : f32
    %10 = vector.broadcast %cst_6 : f32 to vector<8x1xf32>
    %11 = arith.divf %9, %10 : vector<8x1xf32>
    %12 = vector.broadcast %11 : vector<8x1xf32> to vector<8x16xf32>
    %13 = arith.subf %0, %12 : vector<8x16xf32>
    %14 = arith.mulf %13, %13 : vector<8x16xf32>
    %cst_7 = arith.constant dense<0.000000e+00> : vector<8xf32>
    %15 = vector.multi_reduction <add>, %14, %cst_7 [1] : vector<8x16xf32> to vector<8xf32>
    %16 = vector.shape_cast %15 : vector<8xf32> to vector<8x1xf32>
    %cst_8 = arith.constant 1.600000e+01 : f32
    %17 = vector.broadcast %cst_8 : f32 to vector<8x1xf32>
    %18 = arith.divf %16, %17 : vector<8x1xf32>
    %cst_9 = arith.constant 9.99999974E-6 : f32
    %19 = vector.broadcast %cst_9 : f32 to vector<8x1xf32>
    %20 = arith.addf %18, %19 : vector<8x1xf32>
    %21 = math.sqrt %20 : vector<8x1xf32>
    %22 = arith.divf %4, %21 : vector<8x1xf32>
    %23 = arith.mulf %11, %22 : vector<8x1xf32>
    %24 = arith.subf %5, %23 : vector<8x1xf32>
    %25 = vector.broadcast %22 : vector<8x1xf32> to vector<8x16xf32>
    %26 = arith.mulf %0, %25 : vector<8x16xf32>
    %27 = vector.broadcast %24 : vector<8x1xf32> to vector<8x16xf32>
    %28 = arith.addf %26, %27 : vector<8x16xf32>
    %cst_10 = arith.constant dense<0.000000e+00> : vector<8xf32>
    %29 = vector.multi_reduction <add>, %2, %cst_10 [1] : vector<8x8xf32> to vector<8xf32>
    %30 = vector.shape_cast %29 : vector<8xf32> to vector<8x1xf32>
    %cst_11 = arith.constant 8.000000e+00 : f32
    %31 = vector.broadcast %cst_11 : f32 to vector<8x1xf32>
    %32 = arith.divf %30, %31 : vector<8x1xf32>
    %33 = vector.broadcast %32 : vector<8x1xf32> to vector<8x8xf32>
    %34 = arith.subf %2, %33 : vector<8x8xf32>
    %35 = arith.mulf %34, %34 : vector<8x8xf32>
    %cst_12 = arith.constant dense<0.000000e+00> : vector<8xf32>
    %36 = vector.multi_reduction <add>, %35, %cst_12 [1] : vector<8x8xf32> to vector<8xf32>
    %37 = vector.shape_cast %36 : vector<8xf32> to vector<8x1xf32>
    %cst_13 = arith.constant 8.000000e+00 : f32
    %38 = vector.broadcast %cst_13 : f32 to vector<8x1xf32>
    %39 = arith.divf %37, %38 : vector<8x1xf32>
    %cst_14 = arith.constant 9.99999974E-6 : f32
    %40 = vector.broadcast %cst_14 : f32 to vector<8x1xf32>
    %41 = arith.addf %39, %40 : vector<8x1xf32>
    %42 = math.sqrt %41 : vector<8x1xf32>
    %43 = arith.divf %6, %42 : vector<8x1xf32>
    %44 = arith.mulf %32, %43 : vector<8x1xf32>
    %45 = arith.subf %7, %44 : vector<8x1xf32>
    %46 = vector.broadcast %43 : vector<8x1xf32> to vector<8x8xf32>
    %47 = arith.mulf %2, %46 : vector<8x8xf32>
    %48 = vector.broadcast %45 : vector<8x1xf32> to vector<8x8xf32>
    %49 = arith.addf %47, %48 : vector<8x8xf32>
    %c0_15 = arith.constant 0 : index
    %c0_16 = arith.constant 0 : index
    %50 = vector.load %arg4[%c0_15, %c0_16] : memref<32x16xf32, #tpu.memory_space<vmem>>, vector<32x16xf32>
    %c0_17 = arith.constant 0 : index
    %c0_18 = arith.constant 0 : index
    %51 = vector.load %arg5[%c0_17, %c0_18] : memref<16x8xf32, #tpu.memory_space<vmem>>, vector<16x8xf32>
    %52 = vector.extract_strided_slice %50 {offsets = [0, 0], sizes = [16, 16], strides = [1, 1]} : vector<32x16xf32> to vector<16x16xf32>
    %cst_19 = arith.constant dense<0.000000e+00> : vector<8x16xf32>
    %53 = tpu.matmul %28, %52, %cst_19 {dimension_numbers = #tpu.dot_dimension_numbers<[1], [0], [0], [1], [0, 0, 1, 1], [], []>} : vector<8x16xf32>, vector<16x16xf32>, vector<8x16xf32> -> vector<8x16xf32>
    %54 = vector.extract_strided_slice %50 {offsets = [16, 0], sizes = [16, 16], strides = [1, 1]} : vector<32x16xf32> to vector<16x16xf32>
    %cst_20 = arith.constant dense<0.000000e+00> : vector<8x16xf32>
    %55 = tpu.matmul %28, %54, %cst_20 {dimension_numbers = #tpu.dot_dimension_numbers<[1], [0], [0], [1], [0, 0, 1, 1], [], []>} : vector<8x16xf32>, vector<16x16xf32>, vector<8x16xf32> -> vector<8x16xf32>
    %56 = tpu.concatenate %53, %28, %55 in 0 : vector<8x16xf32>, vector<8x16xf32>, vector<8x16xf32> -> vector<24x16xf32>
    %57 = vector.extract_strided_slice %51 {offsets = [0, 0], sizes = [8, 8], strides = [1, 1]} : vector<16x8xf32> to vector<8x8xf32>
    %cst_21 = arith.constant dense<0.000000e+00> : vector<8x8xf32>
    %58 = tpu.matmul %49, %57, %cst_21 {dimension_numbers = #tpu.dot_dimension_numbers<[1], [0], [0], [1], [0, 0, 1, 1], [], []>} : vector<8x8xf32>, vector<8x8xf32>, vector<8x8xf32> -> vector<8x8xf32>
    %59 = vector.extract_strided_slice %51 {offsets = [8, 0], sizes = [8, 8], strides = [1, 1]} : vector<16x8xf32> to vector<8x8xf32>
    %cst_22 = arith.constant dense<0.000000e+00> : vector<8x8xf32>
    %60 = tpu.matmul %49, %59, %cst_22 {dimension_numbers = #tpu.dot_dimension_numbers<[1], [0], [0], [1], [0, 0, 1, 1], [], []>} : vector<8x8xf32>, vector<8x8xf32>, vector<8x8xf32> -> vector<8x8xf32>
    %61 = tpu.concatenate %58, %49, %60 in 0 : vector<8x8xf32>, vector<8x8xf32>, vector<8x8xf32> -> vector<24x8xf32>
    %c0_23 = arith.constant 0 : index
    %c0_24 = arith.constant 0 : index
    %62 = vector.load %arg2[%c0_23, %c0_24] : memref<256x24xf32, #tpu.memory_space<vmem>>, vector<256x24xf32>
    %cst_25 = arith.constant dense<0.000000e+00> : vector<256x16xf32>
    %63 = tpu.matmul %62, %56, %cst_25 {dimension_numbers = #tpu.dot_dimension_numbers<[1], [0], [0], [1], [0, 0, 1, 1], [], []>} : vector<256x24xf32>, vector<24x16xf32>, vector<256x16xf32> -> vector<256x16xf32>
    %cst_26 = arith.constant dense<0.000000e+00> : vector<256x8xf32>
    %64 = tpu.matmul %62, %61, %cst_26 {dimension_numbers = #tpu.dot_dimension_numbers<[1], [0], [0], [1], [0, 0, 1, 1], [], []>} : vector<256x24xf32>, vector<24x8xf32>, vector<256x8xf32> -> vector<256x8xf32>
    %c0_27 = arith.constant 0 : index
    %c0_28 = arith.constant 0 : index
    %65 = vector.load %arg7[%c0_27, %c0_28] : memref<8x8xf32, #tpu.memory_space<vmem>>, vector<8x8xf32>
    %cst_29 = arith.constant dense<0.000000e+00> : vector<256x8xf32>
    %66 = tpu.matmul %64, %65, %cst_29 {dimension_numbers = #tpu.dot_dimension_numbers<[1], [0], [0], [1], [0, 0, 1, 1], [], []>} : vector<256x8xf32>, vector<8x8xf32>, vector<256x8xf32> -> vector<256x8xf32>
    %67 = arith.subf %64, %66 : vector<256x8xf32>
    %c0_30 = arith.constant 0 : index
    %c0_31 = arith.constant 0 : index
    %68 = vector.load %arg8[%c0_30, %c0_31] : memref<24x16xf32, #tpu.memory_space<vmem>>, vector<24x16xf32>
    %69 = tpu.concatenate %67, %66 in 0 : vector<256x8xf32>, vector<256x8xf32> -> vector<512x8xf32>
    %70 = vector.extract_strided_slice %68 {offsets = [0, 0], sizes = [8, 16], strides = [1, 1]} : vector<24x16xf32> to vector<8x16xf32>
    %cst_32 = arith.constant dense<0.000000e+00> : vector<512x16xf32>
    %71 = tpu.matmul %69, %70, %cst_32 {dimension_numbers = #tpu.dot_dimension_numbers<[1], [0], [0], [1], [0, 0, 1, 1], [], []>} : vector<512x8xf32>, vector<8x16xf32>, vector<512x16xf32> -> vector<512x16xf32>
    %c0_33 = arith.constant 0 : index
    %c0_34 = arith.constant 0 : index
    %72 = vector.load %arg9[%c0_33, %c0_34] : memref<1x16xf32, #tpu.memory_space<vmem>>, vector<1x16xf32>
    %73 = vector.broadcast %72 : vector<1x16xf32> to vector<512x16xf32>
    %74 = arith.addf %71, %73 : vector<512x16xf32>
    %cst_35 = arith.constant 5.000000e-01 : f32
    %75 = vector.broadcast %cst_35 : f32 to vector<512x16xf32>
    %76 = arith.mulf %75, %74 : vector<512x16xf32>
    %cst_36 = arith.constant 0.707106769 : f32
    %77 = vector.broadcast %cst_36 : f32 to vector<512x16xf32>
    %78 = arith.mulf %74, %77 : vector<512x16xf32>
    %79 = math.absf %78 : vector<512x16xf32>
    %cst_37 = arith.constant 0.327591091 : f32
    %80 = vector.broadcast %cst_37 : f32 to vector<512x16xf32>
    %81 = arith.mulf %80, %79 : vector<512x16xf32>
    %cst_38 = arith.constant 1.000000e+00 : f32
    %82 = vector.broadcast %cst_38 : f32 to vector<512x16xf32>
    %83 = arith.addf %82, %81 : vector<512x16xf32>
    %cst_39 = arith.constant 1.000000e+00 : f32
    %84 = vector.broadcast %cst_39 : f32 to vector<512x16xf32>
    %85 = arith.divf %84, %83 : vector<512x16xf32>
    %cst_40 = arith.constant 1.06140542 : f32
    %86 = vector.broadcast %cst_40 : f32 to vector<512x16xf32>
    %87 = arith.mulf %86, %85 : vector<512x16xf32>
    %cst_41 = arith.constant -1.45315206 : f32
    %88 = vector.broadcast %cst_41 : f32 to vector<512x16xf32>
    %89 = arith.addf %87, %88 : vector<512x16xf32>
    %90 = arith.mulf %89, %85 : vector<512x16xf32>
    %cst_42 = arith.constant 1.42141378 : f32
    %91 = vector.broadcast %cst_42 : f32 to vector<512x16xf32>
    %92 = arith.addf %90, %91 : vector<512x16xf32>
    %93 = arith.mulf %92, %85 : vector<512x16xf32>
    %cst_43 = arith.constant -0.284496725 : f32
    %94 = vector.broadcast %cst_43 : f32 to vector<512x16xf32>
    %95 = arith.addf %93, %94 : vector<512x16xf32>
    %96 = arith.mulf %95, %85 : vector<512x16xf32>
    %cst_44 = arith.constant 0.254829586 : f32
    %97 = vector.broadcast %cst_44 : f32 to vector<512x16xf32>
    %98 = arith.addf %96, %97 : vector<512x16xf32>
    %99 = arith.mulf %98, %85 : vector<512x16xf32>
    %cst_45 = arith.constant 0.000000e+00 : f32
    %100 = vector.broadcast %cst_45 : f32 to vector<512x16xf32>
    %101 = arith.subf %100, %79 : vector<512x16xf32>
    %102 = arith.mulf %101, %79 : vector<512x16xf32>
    %103 = math.exp %102 : vector<512x16xf32>
    %104 = arith.mulf %99, %103 : vector<512x16xf32>
    %cst_46 = arith.constant 1.000000e+00 : f32
    %105 = vector.broadcast %cst_46 : f32 to vector<512x16xf32>
    %106 = arith.subf %105, %104 : vector<512x16xf32>
    %cst_47 = arith.constant 0.000000e+00 : f32
    %107 = vector.broadcast %cst_47 : f32 to vector<512x16xf32>
    %108 = arith.cmpf olt, %78, %107 : vector<512x16xf32>
    %cst_48 = arith.constant 0.000000e+00 : f32
    %109 = vector.broadcast %cst_48 : f32 to vector<512x16xf32>
    %110 = arith.subf %109, %106 : vector<512x16xf32>
    %111 = arith.select %108, %110, %106 : vector<512x16xi1>, vector<512x16xf32>
    %cst_49 = arith.constant 1.000000e+00 : f32
    %112 = vector.broadcast %cst_49 : f32 to vector<512x16xf32>
    %113 = arith.addf %112, %111 : vector<512x16xf32>
    %114 = arith.mulf %76, %113 : vector<512x16xf32>
    %115 = vector.extract_strided_slice %68 {offsets = [8, 0], sizes = [16, 16], strides = [1, 1]} : vector<24x16xf32> to vector<16x16xf32>
    %cst_50 = arith.constant dense<0.000000e+00> : vector<512x16xf32>
    %116 = tpu.matmul %114, %115, %cst_50 {dimension_numbers = #tpu.dot_dimension_numbers<[1], [0], [0], [1], [0, 0, 1, 1], [], []>} : vector<512x16xf32>, vector<16x16xf32>, vector<512x16xf32> -> vector<512x16xf32>
    %c0_51 = arith.constant 0 : index
    %c0_52 = arith.constant 0 : index
    %117 = vector.load %arg10[%c0_51, %c0_52] : memref<1x16xf32, #tpu.memory_space<vmem>>, vector<1x16xf32>
    %118 = vector.broadcast %117 : vector<1x16xf32> to vector<512x16xf32>
    %119 = arith.addf %116, %118 : vector<512x16xf32>
    %120 = vector.extract_strided_slice %119 {offsets = [0, 0], sizes = [256, 16], strides = [1, 1]} : vector<512x16xf32> to vector<256x16xf32>
    %121 = arith.addf %63, %120 : vector<256x16xf32>
    %122 = vector.extract_strided_slice %119 {offsets = [256, 0], sizes = [256, 16], strides = [1, 1]} : vector<512x16xf32> to vector<256x16xf32>
    %123 = arith.addf %121, %122 : vector<256x16xf32>
    %c0_53 = arith.constant 0 : index
    %c0_54 = arith.constant 0 : index
    %124 = vector.load %arg12[%c0_53, %c0_54] : memref<512x1xf32, #tpu.memory_space<vmem>>, vector<512x1xf32>
    %c0_55 = arith.constant 0 : index
    %c0_56 = arith.constant 0 : index
    %125 = vector.load %arg11[%c0_55, %c0_56] : memref<256x256xf32, #tpu.memory_space<vmem>>, vector<256x256xf32>
    %cst_57 = arith.constant dense<0.000000e+00> : vector<256x16xf32>
    %126 = tpu.matmul %125, %123, %cst_57 {dimension_numbers = #tpu.dot_dimension_numbers<[1], [0], [0], [1], [0, 0, 1, 1], [], []>} : vector<256x256xf32>, vector<256x16xf32>, vector<256x16xf32> -> vector<256x16xf32>
    %127 = vector.extract_strided_slice %124 {offsets = [0, 0], sizes = [256, 1], strides = [1, 1]} : vector<512x1xf32> to vector<256x1xf32>
    %128 = vector.broadcast %127 : vector<256x1xf32> to vector<256x16xf32>
    %129 = arith.addf %126, %128 : vector<256x16xf32>
    %cst_58 = arith.constant 5.000000e-01 : f32
    %130 = vector.broadcast %cst_58 : f32 to vector<256x16xf32>
    %131 = arith.mulf %130, %129 : vector<256x16xf32>
    %cst_59 = arith.constant 0.707106769 : f32
    %132 = vector.broadcast %cst_59 : f32 to vector<256x16xf32>
    %133 = arith.mulf %129, %132 : vector<256x16xf32>
    %134 = math.absf %133 : vector<256x16xf32>
    %cst_60 = arith.constant 0.327591091 : f32
    %135 = vector.broadcast %cst_60 : f32 to vector<256x16xf32>
    %136 = arith.mulf %135, %134 : vector<256x16xf32>
    %cst_61 = arith.constant 1.000000e+00 : f32
    %137 = vector.broadcast %cst_61 : f32 to vector<256x16xf32>
    %138 = arith.addf %137, %136 : vector<256x16xf32>
    %cst_62 = arith.constant 1.000000e+00 : f32
    %139 = vector.broadcast %cst_62 : f32 to vector<256x16xf32>
    %140 = arith.divf %139, %138 : vector<256x16xf32>
    %cst_63 = arith.constant 1.06140542 : f32
    %141 = vector.broadcast %cst_63 : f32 to vector<256x16xf32>
    %142 = arith.mulf %141, %140 : vector<256x16xf32>
    %cst_64 = arith.constant -1.45315206 : f32
    %143 = vector.broadcast %cst_64 : f32 to vector<256x16xf32>
    %144 = arith.addf %142, %143 : vector<256x16xf32>
    %145 = arith.mulf %144, %140 : vector<256x16xf32>
    %cst_65 = arith.constant 1.42141378 : f32
    %146 = vector.broadcast %cst_65 : f32 to vector<256x16xf32>
    %147 = arith.addf %145, %146 : vector<256x16xf32>
    %148 = arith.mulf %147, %140 : vector<256x16xf32>
    %cst_66 = arith.constant -0.284496725 : f32
    %149 = vector.broadcast %cst_66 : f32 to vector<256x16xf32>
    %150 = arith.addf %148, %149 : vector<256x16xf32>
    %151 = arith.mulf %150, %140 : vector<256x16xf32>
    %cst_67 = arith.constant 0.254829586 : f32
    %152 = vector.broadcast %cst_67 : f32 to vector<256x16xf32>
    %153 = arith.addf %151, %152 : vector<256x16xf32>
    %154 = arith.mulf %153, %140 : vector<256x16xf32>
    %cst_68 = arith.constant 0.000000e+00 : f32
    %155 = vector.broadcast %cst_68 : f32 to vector<256x16xf32>
    %156 = arith.subf %155, %134 : vector<256x16xf32>
    %157 = arith.mulf %156, %134 : vector<256x16xf32>
    %158 = math.exp %157 : vector<256x16xf32>
    %159 = arith.mulf %154, %158 : vector<256x16xf32>
    %cst_69 = arith.constant 1.000000e+00 : f32
    %160 = vector.broadcast %cst_69 : f32 to vector<256x16xf32>
    %161 = arith.subf %160, %159 : vector<256x16xf32>
    %cst_70 = arith.constant 0.000000e+00 : f32
    %162 = vector.broadcast %cst_70 : f32 to vector<256x16xf32>
    %163 = arith.cmpf olt, %133, %162 : vector<256x16xf32>
    %cst_71 = arith.constant 0.000000e+00 : f32
    %164 = vector.broadcast %cst_71 : f32 to vector<256x16xf32>
    %165 = arith.subf %164, %161 : vector<256x16xf32>
    %166 = arith.select %163, %165, %161 : vector<256x16xi1>, vector<256x16xf32>
    %cst_72 = arith.constant 1.000000e+00 : f32
    %167 = vector.broadcast %cst_72 : f32 to vector<256x16xf32>
    %168 = arith.addf %167, %166 : vector<256x16xf32>
    %169 = arith.mulf %131, %168 : vector<256x16xf32>
    %c0_73 = arith.constant 0 : index
    %c0_74 = arith.constant 0 : index
    %170 = vector.load %arg13[%c0_73, %c0_74] : memref<256x256xf32, #tpu.memory_space<vmem>>, vector<256x256xf32>
    %cst_75 = arith.constant dense<0.000000e+00> : vector<256x16xf32>
    %171 = tpu.matmul %170, %169, %cst_75 {dimension_numbers = #tpu.dot_dimension_numbers<[1], [0], [0], [1], [0, 0, 1, 1], [], []>} : vector<256x256xf32>, vector<256x16xf32>, vector<256x16xf32> -> vector<256x16xf32>
    %172 = vector.extract_strided_slice %124 {offsets = [256, 0], sizes = [256, 1], strides = [1, 1]} : vector<512x1xf32> to vector<256x1xf32>
    %173 = vector.broadcast %172 : vector<256x1xf32> to vector<256x16xf32>
    %174 = arith.addf %171, %173 : vector<256x16xf32>
    %175 = arith.addf %63, %174 : vector<256x16xf32>
    %c0_76 = arith.constant 0 : index
    %c0_77 = arith.constant 0 : index
    %176 = vector.load %arg14[%c0_76, %c0_77] : memref<16x8xf32, #tpu.memory_space<vmem>>, vector<16x8xf32>
    %cst_78 = arith.constant dense<0.000000e+00> : vector<256x8xf32>
    %177 = tpu.matmul %175, %176, %cst_78 {dimension_numbers = #tpu.dot_dimension_numbers<[1], [0], [0], [1], [0, 0, 1, 1], [], []>} : vector<256x16xf32>, vector<16x8xf32>, vector<256x8xf32> -> vector<256x8xf32>
    %c0_79 = arith.constant 0 : index
    %c0_80 = arith.constant 0 : index
    %178 = vector.load %arg15[%c0_79, %c0_80] : memref<8x256xf32, #tpu.memory_space<vmem>>, vector<8x256xf32>
    %cst_81 = arith.constant dense<0.000000e+00> : vector<8x8xf32>
    %179 = tpu.matmul %178, %177, %cst_81 {dimension_numbers = #tpu.dot_dimension_numbers<[1], [0], [0], [1], [0, 0, 1, 1], [], []>} : vector<8x256xf32>, vector<256x8xf32>, vector<8x8xf32> -> vector<8x8xf32>
    %c0_82 = arith.constant 0 : index
    %c0_83 = arith.constant 0 : index
    %180 = vector.load %arg16[%c0_82, %c0_83] : memref<1x8xf32, #tpu.memory_space<vmem>>, vector<1x8xf32>
    %181 = vector.broadcast %180 : vector<1x8xf32> to vector<8x8xf32>
    %182 = arith.addf %179, %181 : vector<8x8xf32>
    %183 = vector.broadcast %5 : vector<8x1xf32> to vector<8x8xf32>
    %184 = arith.subf %182, %183 : vector<8x8xf32>
    %cst_84 = arith.constant 1.000000e-10 : f32
    %185 = vector.broadcast %cst_84 : f32 to vector<8x1xf32>
    %186 = arith.addf %4, %185 : vector<8x1xf32>
    %187 = vector.broadcast %186 : vector<8x1xf32> to vector<8x8xf32>
    %188 = arith.divf %184, %187 : vector<8x8xf32>
    %189 = vector.broadcast %21 : vector<8x1xf32> to vector<8x8xf32>
    %190 = arith.mulf %188, %189 : vector<8x8xf32>
    %191 = vector.broadcast %11 : vector<8x1xf32> to vector<8x8xf32>
    %192 = arith.addf %190, %191 : vector<8x8xf32>
    %c0_85 = arith.constant 0 : index
    %c0_86 = arith.constant 0 : index
    %193 = vector.load %arg17[%c0_85, %c0_86] : memref<8x8xf32, #tpu.memory_space<vmem>>, vector<8x8xf32>
    tpu.vector_store %arg17[%c0_85, %c0_86], %192 {strides = array<i32>} : memref<8x8xf32, #tpu.memory_space<vmem>>, vector<8x8xf32>,
    return
  }
}

</mosaic_0001>

<bundles_post_ra>
// kernel: _lambda_.1
= control target key start
LH: loop header
LB: loop body
LE: loop exit
PB: predicated region body
PF: predicated region fallthrough
CT: control target
= control target key end

     0   :  { %s12988_s0 = inlined_call_operand.vmem [shape: f32[8,16], index: 0, kind: input, shape index: {}]   ;;  %s12989_s1 = inlined_call_operand.vmem [shape: f32[32,1], index: 1, kind: input, shape index: {}]   ;;  %s12990_s2 = inlined_call_operand.vmem [shape: f32[256,24], index: 2, kind: input, shape index: {}]   ;;  %s12991_s3 = inlined_call_operand.vmem [shape: f32[16,8], index: 3, kind: input, shape index: {}]   ;;  %s12992_s4 = inlined_call_operand.vmem [shape: f32[32,16], index: 4, kind: input, shape index: {}]   ;;  %s12993_s5 = inlined_call_operand.vmem [shape: f32[16,8], index: 5, kind: input, shape index: {}]   ;;  %s12994_s6 = inlined_call_operand.vmem [shape: f32[16,16], index: 6, kind: input, shape index: {}]   ;;  %s12995_s7 = inlined_call_operand.vmem [shape: f32[8,8], index: 7, kind: input, shape index: {}]   ;;  %s12996_s8 = inlined_call_operand.vmem [shape: f32[24,16], index: 8, kind: input, shape index: {}]   ;;  %s12997_s9 = inlined_call_operand.vmem [shape: f32[1,16], index: 9, kind: input, shape index: {}]   ;;  %s12998_s10 = inlined_call_operand.vmem [shape: f32[1,16], index: 10, kind: input, shape index: {}]   ;;  %s12999_s11 = inlined_call_operand.vmem [shape: f32[256,256], index: 11, kind: input, shape index: {}]   ;;  %s13000_s12 = inlined_call_operand.vmem [shape: f32[512,1], index: 12, kind: input, shape index: {}]   ;;  %s13001_s13 = inlined_call_operand.hbm [shape: f32[256,256], index: 13, kind: input, shape index: {}]   ;;  %s13002_s14 = inlined_call_operand.vmem [shape: f32[16,8], index: 14, kind: input, shape index: {}]   ;;  %s13003_s15 = inlined_call_operand.vmem [shape: f32[8,256], index: 15, kind: input, shape index: {}]   ;;  %s13004_s16 = inlined_call_operand.vmem [shape: f32[1,8], index: 16, kind: input, shape index: {}]   ;;  %s13005_s17 = inlined_call_operand.hbm [shape: f32[8,8], index: 17, kind: output, shape index: {}]  }
   0x1   :  { %13113 = sst [smem:[#allocation93_spill]] %s12988_s0 }
   0x2   :  { %13114 = sst [smem:[#allocation94_spill]] %s12989_s1 }
   0x3   :  { %22 = vsyncpa [#allocation3], 0 }
   0x4   :  { %23 = vsyncpa [#allocation4], 0  ;;  %s54_s25 = sshll.u32 %s13001_s13, 4  ;;  %s7658_s26 = smov [#allocation2]   ;;  %s55_s25 = int_to_ptr.hbm [resolvable:$true] %s54_s25 }
   0x5   :  { %s56_s27 = sshll.u32 %s7658_s26, 4  ;;  %s7659_s28 = smov 256   ;;  %s57_s27 = int_to_ptr.vmem [resolvable:$true] %s56_s27 }
   0x6   :  { %s7660_s29 = smov 16  }
   0x7   :  { %62 = dma.hbm_to_vmem [thread:$0]  %s55_s25, 8192, %s57_s27, [#allocation3], %s7659_s28, %s7659_s28, %s7660_s29  }
   0x8   :  { %7654 = dma.done.wait [#allocation3], 8192  }
   0x9   :  { %7655 = vsyncadd [#allocation3], 4294959104  ;;  %v75_v0 = vld [vmem:[%s12991_s3 + $0x8] sm:$0xff]  ;;  %v74_v1 = vld [vmem:[%s12991_s3] sm:$0xff]  ;;  %s13115_s13 = sld [smem:[#allocation93_spill]]  ;;  %vm76_vm0 = vcmask 130048  }
   0xa   :  { %94 = vmatpush.msra.mxu0 %v75_v0  ;;  %v7661_v4 = vmov 16.0   ;;  %vm163_vm2 = vcmask 64512   ;;  %v7662_v18 = vmov 8.0   ;;  %v7663_v46 = vmov 0   ;;  %s13118_s21 = sld [smem:[#allocation94_spill]]  ;;  %v4376_v56 = vld [vmem:[%s13000_s12 + $0xd8] sm:$0xff] }
   0xb   :  { %7203 = vrcp.f32 %v7661_v4  ;;  %7198 = vset.pattern.permute.xlu0 %v7663_v46  ;;  %7197 = vset.pattern.permute.xlu1 %v7663_v46  ;;  %v4360_v57 = vld [vmem:[%s13000_s12 + $0x58] sm:$0xff]  ;;  %v4373_v61 = vld [vmem:[%s13000_s12 + $0xc0] sm:$0xff]  ;;  %s6919_s19 = sshll.u32 %s13005_s17, 4  ;;  %s6920_s19 = int_to_ptr.hbm [resolvable:$true] %s6919_s19 }
   0xc   :  { %95 = vmatpush.msra.mxu0 %v74_v1  ;;  %7205 = vrcp.f32 %v7662_v18  ;;  %7199 = vset.pattern.permute.xlu2 %v7663_v46  ;;  %v4357_v0 = vld [vmem:[%s13000_s12 + $0x40] sm:$0xff]  ;;  %v4398_v46 = vld [vmem:[%s13000_s12 + $0x188] sm:$0xff] }
   0xf   :  { %v7767_v2 = vld [vmem:[%s13115_s13] sm:$0xff] }
  0x10   :  { %v104_v3 = vsel %vm76_vm0, %v7767_v2, 0.0  ;;  %6929 = vmatmul.msk.f32.vlgmr.msra.gmra.mxu0 %vm76_vm0, %v7767_v2  ;;  %v7797_v52 = vld [vmem:[%s13118_s21] sm:$0xff] }
  0x11   :  { %105 = vadd.xlane.f32.xlu2 %v104_v3  ;;  %v7204_v5 = vpop.eup %7203 }
  0x12   :  { %v108_v6 = vmul.f32 16.0, %v7204_v5  ;;  %vm112_vm1 = vweird.f32 %v7204_v5  ;;  %v7206_v19 = vpop.eup %7205 }
  0x13   :  { %v168_v20 = vmul.f32 8.0, %v7206_v19  ;;  %vm172_vm3 = vweird.f32 %v7206_v19 }
  0x14   :  { %v109_v7 = vsub.f32 1.0, %v108_v6  ;;  %v4370_v6 = vld [vmem:[%s13000_s12 + $0xa8] sm:$0xff] }
  0x15   :  { %v169_v21 = vsub.f32 1.0, %v168_v20  ;;  %v4367_v20 = vld [vmem:[%s13000_s12 + $0x90] sm:$0xff] }
  0x16   :  { %v110_v8 = vmul.f32 %v7204_v5, %v109_v7 }
  0x17   :  { %v170_v22 = vmul.f32 %v7206_v19, %v169_v21 }
  0x18   :  { %v111_v9 = vadd.f32 %v7204_v5, %v110_v8 }
  0x19   :  { %v171_v23 = vadd.f32 %v7206_v19, %v170_v22  ;;  %v102_v22 = vld [vmem:[%s13118_s21 + $0x10] sm:$0xff] }
  0x1a   :  { %v113_v10 = vsel %vm112_vm1, %v7204_v5, %v111_v9  ;;  %vm347_vm1 = vcmask 195584  }
  0x1b   :  { %v173_v24 = vsel %vm172_vm3, %v7206_v19, %v171_v23 }
  0x84   :  { %v106_v11 = vpop.xlane.xlu2 %105 }
  0x85   :  { %v7773_v12 = vmul.f32 %v113_v10, %v106_v11  ;;  %v4354_v11 = vld [vmem:[%s13000_s12 + $0x28] sm:$0xff] }
  0x87   :  { %13116 = vst [vmem:[#allocation8_spill] sm:$0xff] %v7773_v12  ;;  %v115_v13 = vsub.f32 %v7767_v2, %v7773_v12 }
  0x89   :  { %v116_v14 = vmul.f32 %v115_v13, %v115_v13 }
  0x8b   :  { %v117_v15 = vsel %vm76_vm0, %v116_v14, 0.0 }
  0x8c   :  { %118 = vadd.xlane.f32.xlu2 %v117_v15 }
  0x8d   :  { %v7778_v16 = vpop.f32.mrf.mxu0 }
  0x8e   :  { %v164_v17 = vsel %vm163_vm2, %v7778_v16, 0.0 }
  0x8f   :  { %165 = vadd.xlane.f32.xlu0 %v164_v17 }
  0xff   :  { %v119_v30 = vpop.xlane.xlu2 %118 }
 0x100   :  { %v120_v31 = vmul.f32 %v119_v30, %v113_v10  ;;  %v103_v30 = vld [vmem:[%s13118_s21 + $0x18] sm:$0xff] }
 0x102   :  { %v166_v25 = vpop.xlane.xlu0 %165  ;;  %v121_v32 = vadd.f32 1e-05, %v120_v31 }
 0x103   :  { %v7782_v26 = vmul.f32 %v173_v24, %v166_v25 }
 0x104   :  { %7207 = vrsqrt.f32 %v121_v32  ;;  %vm129_vm4 = vcmp.eq.f32.partialorder %v121_v32, inf  ;;  %v132_v40 = vand.u32 2147483648, %v121_v32  ;;  %vm131_vm5 = vcmp.eq.f32.partialorder %v121_v32, 0.0 }
 0x105   :  { %v175_v27 = vsub.f32 %v7778_v16, %v7782_v26 }
 0x107   :  { %v176_v28 = vmul.f32 %v175_v27, %v175_v27 }
 0x109   :  { %v177_v29 = vsel %vm163_vm2, %v176_v28, 0.0  ;;  %v4351_v28 = vld [vmem:[%s13000_s12 + $0x10] sm:$0xff] }
 0x10a   :  { %178 = vadd.xlane.f32.xlu0 %v177_v29  ;;  %v7208_v33 = vpop.eup %7207 }
 0x10b   :  { %v123_v34 = vmul.f32 %v7208_v33, %v121_v32 }
 0x10d   :  { %v124_v35 = vmul.f32 %v7208_v33, %v123_v34  ;;  %v7838_v34 = vld [vmem:[%s13118_s21 + $0x8] sm:$0xff] }
 0x10f   :  { %v125_v36 = vmul.f32 0.5, %v124_v35  ;;  %v4383_v35 = vld [vmem:[%s13000_s12 + $0x110] sm:$0xff] }
 0x111   :  { %v126_v37 = vsub.f32 1.5, %v125_v36  ;;  %v4379_v36 = vld [vmem:[%s13000_s12 + $0xf0] sm:$0xff] }
 0x113   :  { %v127_v38 = vmul.f32 %v7208_v33, %v126_v37  ;;  %v4386_v37 = vld [vmem:[%s13000_s12 + $0x128] sm:$0xff] }
 0x115   :  { %v128_v39 = vmul.f32 %v127_v38, %v121_v32  ;;  %v4364_v38 = vld [vmem:[%s13000_s12 + $0x78] sm:$0xff] }
 0x117   :  { %v130_v41 = vsel %vm129_vm4, %v121_v32, %v128_v39  ;;  %v4349_v32 = vld [vmem:[%s13000_s12] sm:$0xff] }
 0x118   :  { %v7787_v42 = vsel %vm131_vm5, %v132_v40, %v130_v41  ;;  %v4389_v39 = vld [vmem:[%s13000_s12 + $0x140] sm:$0xff]  ;;  %v4378_v40 = vld [vmem:[%s13000_s12 + $0xe8] sm:$0xff]  ;;  %v4392_v41 = vld [vmem:[%s13000_s12 + $0x158] sm:$0xff] }
 0x119   :  { %13117 = vst [vmem:[#allocation9_spill] sm:$0xff] %v7787_v42  ;;  %7209 = vrcp.f32 %v7787_v42  ;;  %vm139_vm6 = vweird.f32 %v7787_v42  ;;  %v143_v47 = vand.u32 2147483647, %v7787_v42  ;;  %v145_v48 = vand.u32 2147483648, %v7787_v42 }
 0x11b   :  { %v146_v50 = vor.u32 1.1754944e-38, %v145_v48  ;;  %vm144_vm9 = vcmp.eq.f32.partialorder %v143_v47, 8.507059e+37  ;;  %v4374_v47 = vld [vmem:[%s13000_s12 + $0xc8] sm:$0xff]  ;;  %v4401_v48 = vld [vmem:[%s13000_s12 + $0x1a0] sm:$0xff] }
 0x11f   :  { %v7210_v43 = vpop.eup %7209 }
 0x120   :  { %v135_v44 = vmul.f32 %v7210_v43, %v7787_v42  ;;  %vm140_vm7 = vweird.f32 %v7210_v43 }
 0x121   :  { %vm141_vm8 = vmor %vm139_vm6, %vm140_vm7 }
 0x122   :  { %v136_v45 = vsub.f32 1.0, %v135_v44  ;;  %v4395_v44 = vld [vmem:[%s13000_s12 + $0x170] sm:$0xff] }
 0x124   :  { %v137_v49 = vmul.f32 %v7210_v43, %v136_v45  ;;  %v4361_v45 = vld [vmem:[%s13000_s12 + $0x60] sm:$0xff] }
 0x126   :  { %v138_v51 = vadd.f32 %v7210_v43, %v137_v49  ;;  %v4358_v49 = vld [vmem:[%s13000_s12 + $0x48] sm:$0xff] }
 0x128   :  { %v142_v53 = vsel %vm141_vm8, %v7210_v43, %v138_v51  ;;  %v4377_v43 = vld [vmem:[%s13000_s12 + $0xe0] sm:$0xff]  ;;  %v4371_v51 = vld [vmem:[%s13000_s12 + $0xb0] sm:$0xff] }
 0x129   :  { %v147_v54 = vsel %vm144_vm9, %v146_v50, %v142_v53  ;;  %v4404_v50 = vld [vmem:[%s13000_s12 + $0x1b8] sm:$0xff]  ;;  %v4407_v53 = vld [vmem:[%s13000_s12 + $0x1d0] sm:$0xff] }
 0x12a   :  { %v148_v55 = vmul.f32 %v147_v54, %v7797_v52  ;;  %v4355_v54 = vld [vmem:[%s13000_s12 + $0x30] sm:$0xff] }
 0x12c   :  { %153 = vperm.xlu0 %7198, %v148_v55   ;;  %v149_v33 = vmul.f32 %v148_v55, %v7773_v12  ;;  %v4410_v55 = vld [vmem:[%s13000_s12 + $0x1e8] sm:$0xff] }
 0x134   :  { %4614 = vperm.xlu0 %7198, %v4376_v56   ;;  %v227_v56 = vld [vmem:[%s12993_s5] sm:$0xff] }
 0x135   :  { %290 = vmatpush.msra.mxu3 %v227_v56 }
 0x13c   :  { %4534 = vperm.xlu0 %7198, %v4360_v57   ;;  %v4368_v57 = vld [vmem:[%s13000_s12 + $0x98] sm:$0xff] }
 0x144   :  { %4599 = vperm.xlu0 %7198, %v4373_v61   ;;  %v223_v61 = vld [vmem:[%s12992_s4] sm:$0xff] }
 0x14c   :  { %4519 = vperm.xlu0 %7198, %v4357_v0   ;;  %v4365_v0 = vld [vmem:[%s13000_s12 + $0x80] sm:$0xff] }
 0x154   :  { %4584 = vperm.xlu0 %7198, %v4370_v6  }
 0x15c   :  { %4504 = vperm.xlu0 %7198, %v4354_v11  }
 0x164   :  { %4569 = vperm.xlu0 %7198, %v4367_v20   ;;  %v4411_v20 = vld [vmem:[%s13000_s12 + $0x1f0] sm:$0xff] }
 0x16c   :  { %4489 = vperm.xlu0 %7198, %v4351_v28   ;;  %v317_v28 = vld [vmem:[%s12990_s2 + $0x10] sm:$0xff] }
 0x174   :  { %4479 = vperm.xlu0 %7198, %v4349_v32   ;;  %v321_v32 = vld [vmem:[%s12990_s2 + $0x30] sm:$0xff] }
 0x17c   :  { %6219 = vperm.xlu0 %7198, %v4383_v35   ;;  %v325_v35 = vld [vmem:[%s12990_s2 + $0x50] sm:$0xff] }
 0x17d   :  { %v179_v58 = vpop.xlane.xlu0 %178 }
 0x17e   :  { %v180_v59 = vmul.f32 %v179_v58, %v173_v24  ;;  %v224_v58 = vld [vmem:[%s12992_s4 + $0x8] sm:$0xff] }
 0x17f   :  { %246 = vmatpush.msra.mxu1 %v224_v58 }
 0x180   :  { %v181_v60 = vadd.f32 1e-05, %v180_v59  ;;  %v226_v59 = vld [vmem:[%s12992_s4 + $0x18] sm:$0xff] }
 0x181   :  { %266 = vmatpush.msra.mxu2 %v226_v59  ;;  %247 = vmatpush.msra.mxu1 %v223_v61  ;;  %v338_v59 = vld [vmem:[%s12990_s2 + $0xb8] sm:$0xff]  ;;  %v339_v61 = vld [vmem:[%s12990_s2 + $0xc0] sm:$0xff] }
 0x182   :  { %7211 = vrsqrt.f32 %v181_v60  ;;  %vm189_vm10 = vcmp.eq.f32.partialorder %v181_v60, inf  ;;  %v192_v8 = vand.u32 2147483648, %v181_v60  ;;  %vm191_vm11 = vcmp.eq.f32.partialorder %v181_v60, 0.0 }
 0x184   :  { %6234 = vperm.xlu0 %7198, %v4386_v37   ;;  %v670_v37 = vld [vmem:[%s12995_s7] sm:$0xff] }
 0x188   :  { %v7212_v62 = vpop.eup %7211 }
 0x189   :  { %v183_v63 = vmul.f32 %v7212_v62, %v181_v60 }
 0x18b   :  { %v184_v1 = vmul.f32 %v7212_v62, %v183_v63  ;;  %v228_v63 = vld [vmem:[%s12993_s5 + $0x8] sm:$0xff] }
 0x18c   :  { %6249 = vperm.xlu0 %7198, %v4389_v39   ;;  %310 = vmatpush.msrb.mxu3 %v228_v63  ;;  %v328_v39 = vld [vmem:[%s12990_s2 + $0x68] sm:$0xff] }
 0x18d   :  { %v185_v3 = vmul.f32 0.5, %v184_v1  ;;  %v340_v63 = vld [vmem:[%s12990_s2 + $0xc8] sm:$0xff] }
 0x18f   :  { %v186_v4 = vsub.f32 1.5, %v185_v3  ;;  %v4381_v3 = vld [vmem:[%s13000_s12 + $0x100] sm:$0xff] }
 0x191   :  { %v187_v5 = vmul.f32 %v7212_v62, %v186_v4  ;;  %v225_v62 = vld [vmem:[%s12992_s4 + $0x10] sm:$0xff] }
 0x192   :  { %267 = vmatpush.msra.mxu2 %v225_v62 }
 0x193   :  { %v188_v7 = vmul.f32 %v187_v5, %v181_v60 }
 0x194   :  { %6264 = vperm.xlu0 %7198, %v4392_v41   ;;  %782 = vmatpush.msrb.mxu2 %v670_v37  ;;  %v330_v41 = vld [vmem:[%s12990_s2 + $0x78] sm:$0xff] }
 0x195   :  { %v190_v9 = vsel %vm189_vm10, %v181_v60, %v188_v7  ;;  %v6888_v60 = vadd.f32 1e-10, %v7797_v52  ;;  %v4352_v52 = vld [vmem:[%s13000_s12 + $0x18] sm:$0xff] }
 0x196   :  { %v193_v10 = vsel %vm191_vm11, %v192_v8, %v190_v9  ;;  %v4384_v7 = vld [vmem:[%s13000_s12 + $0x118] sm:$0xff] }
 0x197   :  { %7213 = vrcp.f32 %v193_v10  ;;  %v205_v17 = vand.u32 2147483648, %v193_v10  ;;  %v203_v19 = vand.u32 2147483647, %v193_v10  ;;  %vm199_vm13 = vweird.f32 %v193_v10 }
 0x199   :  { %v206_v23 = vor.u32 1.1754944e-38, %v205_v17  ;;  %vm204_vm15 = vcmp.eq.f32.partialorder %v203_v19, 8.507059e+37  ;;  %v4402_v17 = vld [vmem:[%s13000_s12 + $0x1a8] sm:$0xff]  ;;  %v4408_v19 = vld [vmem:[%s13000_s12 + $0x1d8] sm:$0xff] }
 0x19c   :  { %6279 = vperm.xlu0 %7198, %v4395_v44   ;;  %v331_v44 = vld [vmem:[%s12990_s2 + $0x80] sm:$0xff] }
 0x19d   :  { %v7214_v13 = vpop.eup %7213 }
 0x19e   :  { %v195_v14 = vmul.f32 %v7214_v13, %v193_v10  ;;  %vm200_vm12 = vweird.f32 %v7214_v13  ;;  %v154_v8 = vpop.permute.xlu0 %153 }
 0x19f   :  { %vm201_vm14 = vmor %vm199_vm13, %vm200_vm12  ;;  %v156_v9 = vmul.f32 %v154_v8, %v7767_v2  ;;  %v4393_v2 = vld [vmem:[%s13000_s12 + $0x160] sm:$0xff]  ;;  %v8175_v8 = vld [vmem:[%s12990_s2 + $0xe8] sm:$0xff] }
 0x1a0   :  { %v196_v15 = vsub.f32 1.0, %v195_v14  ;;  %v4396_v14 = vld [vmem:[%s13000_s12 + $0x178] sm:$0xff] }
 0x1a2   :  { %v197_v18 = vmul.f32 %v7214_v13, %v196_v15  ;;  %v4399_v15 = vld [vmem:[%s13000_s12 + $0x190] sm:$0xff] }
 0x1a4   :  { %v198_v21 = vadd.f32 %v7214_v13, %v197_v18  ;;  %6294 = vperm.xlu0 %7198, %v4398_v46   ;;  %v4405_v18 = vld [vmem:[%s13000_s12 + $0x1c0] sm:$0xff]  ;;  %v332_v46 = vld [vmem:[%s12990_s2 + $0x88] sm:$0xff] }
 0x1a6   :  { %v202_v24 = vsel %vm201_vm14, %v7214_v13, %v198_v21  ;;  %v4390_v13 = vld [vmem:[%s13000_s12 + $0x148] sm:$0xff] }
 0x1a7   :  { %v207_v25 = vsel %vm204_vm15, %v206_v23, %v202_v24 }
 0x1a8   :  { %v208_v27 = vmul.f32 %v207_v25, %v102_v22  ;;  %v315_v25 = vld [vmem:[%s12990_s2] sm:$0xff] }
 0x1aa   :  { %213 = vperm.xlu1 %7197, %v208_v27   ;;  %v209_v29 = vmul.f32 %v208_v27, %v7782_v26  ;;  %v150_v26 = vsub.f32 %v7838_v34, %v149_v33  ;;  %v316_v27 = vld [vmem:[%s12990_s2 + $0x8] sm:$0xff]  ;;  %v322_v33 = vld [vmem:[%s12990_s2 + $0x38] sm:$0xff] }
 0x1ac   :  { %v210_v31 = vsub.f32 %v103_v30, %v209_v29  ;;  %6309 = vperm.xlu0 %7198, %v4401_v48   ;;  %v318_v29 = vld [vmem:[%s12990_s2 + $0x18] sm:$0xff]  ;;  %v319_v30 = vld [vmem:[%s12990_s2 + $0x20] sm:$0xff]  ;;  %v333_v48 = vld [vmem:[%s12990_s2 + $0x90] sm:$0xff] }
 0x1b2   :  { %219 = vperm.xlu1 %7197, %v210_v31   ;;  %v320_v31 = vld [vmem:[%s12990_s2 + $0x28] sm:$0xff] }
 0x1b4   :  { %6324 = vperm.xlu0 %7198, %v4404_v50   ;;  %v334_v50 = vld [vmem:[%s12990_s2 + $0x98] sm:$0xff] }
 0x1ba   :  { %159 = vperm.xlu1 %7197, %v150_v26   ;;  %v324_v26 = vld [vmem:[%s12990_s2 + $0x48] sm:$0xff] }
 0x1bc   :  { %6339 = vperm.xlu0 %7198, %v4407_v53   ;;  %v335_v53 = vld [vmem:[%s12990_s2 + $0xa0] sm:$0xff] }
 0x1c2   :  { %4629 = vperm.xlu1 %7197, %v4379_v36   ;;  %v326_v36 = vld [vmem:[%s12990_s2 + $0x58] sm:$0xff] }
 0x1c4   :  { %6354 = vperm.xlu0 %7198, %v4410_v55   ;;  %v336_v55 = vld [vmem:[%s12990_s2 + $0xa8] sm:$0xff] }
 0x1ca   :  { %4554 = vperm.xlu1 %7197, %v4364_v38   ;;  %v327_v38 = vld [vmem:[%s12990_s2 + $0x60] sm:$0xff] }
 0x1cc   :  { %6891 = vperm.xlu0 %7198, %v6888_v60  }
 0x1d2   :  { %4624 = vperm.xlu1 %7197, %v4378_v40   ;;  %v329_v40 = vld [vmem:[%s12990_s2 + $0x70] sm:$0xff] }
 0x1da   :  { %4619 = vperm.xlu1 %7197, %v4377_v43  }
 0x1e2   :  { %4539 = vperm.xlu1 %7197, %v4361_v45  }
 0x1ea   :  { %4604 = vperm.xlu1 %7197, %v4374_v47  }
 0x1f2   :  { %4524 = vperm.xlu1 %7197, %v4358_v49  }
 0x1fa   :  { %4589 = vperm.xlu1 %7197, %v4371_v51  }
 0x202   :  { %4509 = vperm.xlu1 %7197, %v4355_v54  }
 0x20a   :  { %4574 = vperm.xlu1 %7197, %v4368_v57   ;;  %v337_v57 = vld [vmem:[%s12990_s2 + $0xb0] sm:$0xff] }
 0x212   :  { %4494 = vperm.xlu1 %7197, %v4352_v52  }
 0x21a   :  { %4559 = vperm.xlu1 %7197, %v4365_v0   ;;  %v341_v0 = vld [vmem:[%s12990_s2 + $0xd0] sm:$0xff] }
 0x21c   :  { %v214_v1 = vpop.permute.xlu1 %213 }
 0x21d   :  { %v216_v4 = vmul.f32 %v214_v1, %v7778_v16  ;;  %v4387_v16 = vld [vmem:[%s13000_s12 + $0x130] sm:$0xff] }
 0x222   :  { %6209 = vperm.xlu1 %7197, %v4381_v3   ;;  %v8150_v3 = vld [vmem:[%s12990_s2 + $0xd8] sm:$0xff] }
 0x224   :  { %v220_v5 = vpop.permute.xlu1 %219 }
 0x225   :  { %v222_v6 = vadd.f32 %v220_v5, %v216_v4  ;;  %v8161_v5 = vld [vmem:[%s12990_s2 + $0xe0] sm:$0xff] }
 0x227   :  { %6932 = vmatmul.msk.f32.vlgmr.msra.gmra.mxu3 %vm163_vm2, %v222_v6 }
 0x22a   :  { %6224 = vperm.xlu1 %7197, %v4384_v7  }
 0x22c   :  { %v160_v10 = vpop.permute.xlu1 %159 }
 0x22d   :  { %v162_v11 = vadd.f32 %v160_v10, %v156_v9  ;;  %v8186_v10 = vld [vmem:[%s12990_s2 + $0xf0] sm:$0xff] }
 0x22f   :  { %6930 = vmatmul.msk.f32.vlgmr.msra.gmra.mxu1 %vm76_vm0, %v162_v11  ;;  %6931 = vmatmul.msk.f32.vlgmr.msra.gmra.mxu2 %vm76_vm0, %v162_v11 }
 0x230   :  { %6933 = vmatmul.msk.f32.vlgmr.msrb.gmra.mxu3 %vm163_vm2, %v222_v6 }
 0x232   :  { %6239 = vperm.xlu1 %7197, %v4387_v16   ;;  %v8197_v16 = vld [vmem:[%s12990_s2 + $0xf8] sm:$0xff] }
 0x23a   :  { %6254 = vperm.xlu1 %7197, %v4390_v13  }
 0x242   :  { %6269 = vperm.xlu1 %7197, %v4393_v2  }
 0x24a   :  { %6284 = vperm.xlu1 %7197, %v4396_v14  }
 0x252   :  { %6299 = vperm.xlu1 %7197, %v4399_v15  }
 0x25a   :  { %6314 = vperm.xlu1 %7197, %v4402_v17  }
 0x262   :  { %6329 = vperm.xlu1 %7197, %v4405_v18  }
 0x26a   :  { %6344 = vperm.xlu1 %7197, %v4408_v19  }
 0x272   :  { %6359 = vperm.xlu1 %7197, %v4411_v20  }
 0x27a   :  { %6884 = vperm.xlu1 %7197, %v7838_v34   ;;  %v323_v34 = vld [vmem:[%s12990_s2 + $0x40] sm:$0xff] }
 0x2aa   :  { %v292_v21 = vpop.f32.mrf.mxu3 }
 0x2ac   :  { %v249_v24 = vpop.f32.mrf.mxu1 }
 0x2b2   :  { %v269_v22 = vpop.f32.mrf.mxu2 }
 0x2b3   :  { %v312_v23 = vpop.f32.mrf.mxu3  ;;  %457 = vmatpush.msrb.mxu0 %v269_v22 }
 0x2b4   :  { %570 = vmatpush.msrb.mxu1 %v312_v23 }
 0x2b5   :  { %458 = vmatpush.msrb.mxu0 %v162_v11 }
 0x2b6   :  { %571 = vmatpush.msrb.mxu1 %v222_v6  ;;  %v912_v6 = vld [vmem:[%s12996_s8] sm:$0xff] }
 0x2b7   :  { %459 = vmatpush.msrb.mxu0 %v249_v24  ;;  %1126 = vmatpush.msra.mxu3 %v912_v6 }
 0x2b8   :  { %572 = vmatpush.msrb.mxu1 %v292_v21  ;;  %6934 = vmatmul.msk.f32.vlgmr.msrb.gmra.mxu0 %vm347_vm1, %v315_v25 }
 0x2b9   :  { %6966 = vmatmul.msk.f32.vlgmr.msrb.gmra.mxu1 %vm347_vm1, %v315_v25 }
 0x2c0   :  { %6935 = vmatmul.msk.f32.gmra.mxu0 %vm347_vm1, %v316_v27 }
 0x2c1   :  { %6967 = vmatmul.msk.f32.gmra.mxu1 %vm347_vm1, %v316_v27 }
 0x2c8   :  { %6936 = vmatmul.msk.f32.gmra.mxu0 %vm347_vm1, %v317_v28 }
 0x2c9   :  { %6968 = vmatmul.msk.f32.gmra.mxu1 %vm347_vm1, %v317_v28 }
 0x2d0   :  { %6937 = vmatmul.msk.f32.gmra.mxu0 %vm347_vm1, %v318_v29 }
 0x2d1   :  { %6969 = vmatmul.msk.f32.gmra.mxu1 %vm347_vm1, %v318_v29 }
 0x2d8   :  { %6938 = vmatmul.msk.f32.gmra.mxu0 %vm347_vm1, %v319_v30 }
 0x2d9   :  { %6970 = vmatmul.msk.f32.gmra.mxu1 %vm347_vm1, %v319_v30 }
 0x2e0   :  { %6939 = vmatmul.msk.f32.gmra.mxu0 %vm347_vm1, %v320_v31 }
 0x2e1   :  { %6971 = vmatmul.msk.f32.gmra.mxu1 %vm347_vm1, %v320_v31 }
 0x2e8   :  { %6940 = vmatmul.msk.f32.gmra.mxu0 %vm347_vm1, %v321_v32 }
 0x2e9   :  { %6972 = vmatmul.msk.f32.gmra.mxu1 %vm347_vm1, %v321_v32 }
 0x2f0   :  { %6941 = vmatmul.msk.f32.gmra.mxu0 %vm347_vm1, %v322_v33 }
 0x2f1   :  { %6973 = vmatmul.msk.f32.gmra.mxu1 %vm347_vm1, %v322_v33 }
 0x2f8   :  { %6942 = vmatmul.msk.f32.gmra.mxu0 %vm347_vm1, %v323_v34 }
 0x2f9   :  { %6974 = vmatmul.msk.f32.gmra.mxu1 %vm347_vm1, %v323_v34 }
 0x300   :  { %6943 = vmatmul.msk.f32.gmra.mxu0 %vm347_vm1, %v324_v26 }
 0x301   :  { %6975 = vmatmul.msk.f32.gmra.mxu1 %vm347_vm1, %v324_v26 }
 0x308   :  { %6944 = vmatmul.msk.f32.gmra.mxu0 %vm347_vm1, %v325_v35 }
 0x309   :  { %6976 = vmatmul.msk.f32.gmra.mxu1 %vm347_vm1, %v325_v35 }
 0x310   :  { %6945 = vmatmul.msk.f32.gmra.mxu0 %vm347_vm1, %v326_v36 }
 0x311   :  { %6977 = vmatmul.msk.f32.gmra.mxu1 %vm347_vm1, %v326_v36 }
 0x318   :  { %6946 = vmatmul.msk.f32.gmra.mxu0 %vm347_vm1, %v327_v38 }
 0x319   :  { %6978 = vmatmul.msk.f32.gmra.mxu1 %vm347_vm1, %v327_v38 }
 0x320   :  { %6947 = vmatmul.msk.f32.gmra.mxu0 %vm347_vm1, %v328_v39 }
 0x321   :  { %6979 = vmatmul.msk.f32.gmra.mxu1 %vm347_vm1, %v328_v39 }
 0x328   :  { %6948 = vmatmul.msk.f32.gmra.mxu0 %vm347_vm1, %v329_v40 }
 0x329   :  { %6980 = vmatmul.msk.f32.gmra.mxu1 %vm347_vm1, %v329_v40 }
 0x330   :  { %6949 = vmatmul.msk.f32.gmra.mxu0 %vm347_vm1, %v330_v41 }
 0x331   :  { %6981 = vmatmul.msk.f32.gmra.mxu1 %vm347_vm1, %v330_v41 }
 0x335   :  { %v8239_v25 = vpop.f32.mrf.mxu0 }
 0x336   :  { %v8049_v43 = vpop.f32.mrf.mxu1  ;;  %13119 = vst [vmem:[#allocation10_spill] sm:$0xff] %v8239_v25 }
 0x337   :  { %6998 = vmatmul.msk.f32.vlgmr.msrb.gmra.mxu2 %vm163_vm2, %v8049_v43 }
 0x338   :  { %6950 = vmatmul.msk.f32.gmra.mxu0 %vm347_vm1, %v331_v44 }
 0x339   :  { %6982 = vmatmul.msk.f32.gmra.mxu1 %vm347_vm1, %v331_v44 }
 0x33d   :  { %v8251_v30 = vpop.f32.mrf.mxu0 }
 0x33e   :  { %v8058_v45 = vpop.f32.mrf.mxu1  ;;  %13120 = vst [vmem:[#allocation11_spill] sm:$0xff] %v8251_v30 }
 0x33f   :  { %6999 = vmatmul.msk.f32.gmra.mxu2 %vm163_vm2, %v8058_v45 }
 0x340   :  { %6951 = vmatmul.msk.f32.gmra.mxu0 %vm347_vm1, %v332_v46 }
 0x341   :  { %6983 = vmatmul.msk.f32.gmra.mxu1 %vm347_vm1, %v332_v46 }
 0x345   :  { %v8263_v34 = vpop.f32.mrf.mxu0 }
 0x346   :  { %v8067_v47 = vpop.f32.mrf.mxu1  ;;  %13121 = vst [vmem:[#allocation12_spill] sm:$0xff] %v8263_v34 }
 0x347   :  { %7000 = vmatmul.msk.f32.gmra.mxu2 %vm163_vm2, %v8067_v47 }
 0x348   :  { %6952 = vmatmul.msk.f32.gmra.mxu0 %vm347_vm1, %v333_v48 }
 0x349   :  { %6984 = vmatmul.msk.f32.gmra.mxu1 %vm347_vm1, %v333_v48 }
 0x34d   :  { %v8275_v37 = vpop.f32.mrf.mxu0 }
 0x34e   :  { %v8076_v49 = vpop.f32.mrf.mxu1  ;;  %13122 = vst [vmem:[#allocation13_spill] sm:$0xff] %v8275_v37 }
 0x34f   :  { %7001 = vmatmul.msk.f32.gmra.mxu2 %vm163_vm2, %v8076_v49 }
 0x350   :  { %6953 = vmatmul.msk.f32.gmra.mxu0 %vm347_vm1, %v334_v50 }
 0x351   :  { %6985 = vmatmul.msk.f32.gmra.mxu1 %vm347_vm1, %v334_v50 }
 0x355   :  { %v8288_v41 = vpop.f32.mrf.mxu0 }
 0x356   :  { %v8085_v51 = vpop.f32.mrf.mxu1  ;;  %13123 = vst [vmem:[#allocation14_spill] sm:$0xff] %v8288_v41 }
 0x357   :  { %7002 = vmatmul.msk.f32.gmra.mxu2 %vm163_vm2, %v8085_v51 }
 0x358   :  { %6954 = vmatmul.msk.f32.gmra.mxu0 %vm347_vm1, %v335_v53 }
 0x359   :  { %6986 = vmatmul.msk.f32.gmra.mxu1 %vm347_vm1, %v335_v53 }
 0x35d   :  { %v8301_v46 = vpop.f32.mrf.mxu0 }
 0x35e   :  { %v8094_v54 = vpop.f32.mrf.mxu1  ;;  %13124 = vst [vmem:[#allocation15_spill] sm:$0xff] %v8301_v46 }
 0x35f   :  { %7003 = vmatmul.msk.f32.gmra.mxu2 %vm163_vm2, %v8094_v54 }
 0x360   :  { %6955 = vmatmul.msk.f32.gmra.mxu0 %vm347_vm1, %v336_v55 }
 0x361   :  { %6987 = vmatmul.msk.f32.gmra.mxu1 %vm347_vm1, %v336_v55 }
 0x365   :  { %v8314_v50 = vpop.f32.mrf.mxu0 }
 0x366   :  { %v8103_v56 = vpop.f32.mrf.mxu1  ;;  %13125 = vst [vmem:[#allocation16_spill] sm:$0xff] %v8314_v50 }
 0x367   :  { %7004 = vmatmul.msk.f32.gmra.mxu2 %vm163_vm2, %v8103_v56 }
 0x368   :  { %6956 = vmatmul.msk.f32.gmra.mxu0 %vm347_vm1, %v337_v57 }
 0x369   :  { %6988 = vmatmul.msk.f32.gmra.mxu1 %vm347_vm1, %v337_v57 }
 0x36d   :  { %v8327_v55 = vpop.f32.mrf.mxu0 }
 0x36e   :  { %v8112_v58 = vpop.f32.mrf.mxu1  ;;  %13126 = vst [vmem:[#allocation17_spill] sm:$0xff] %v8327_v55 }
 0x36f   :  { %7005 = vmatmul.msk.f32.gmra.mxu2 %vm163_vm2, %v8112_v58 }
 0x370   :  { %6957 = vmatmul.msk.f32.gmra.mxu0 %vm347_vm1, %v338_v59 }
 0x371   :  { %6989 = vmatmul.msk.f32.gmra.mxu1 %vm347_vm1, %v338_v59 }
 0x376   :  { %v8121_v60 = vpop.f32.mrf.mxu1 }
 0x377   :  { %7006 = vmatmul.msk.f32.gmra.mxu2 %vm163_vm2, %v8121_v60 }
 0x378   :  { %6958 = vmatmul.msk.f32.gmra.mxu0 %vm347_vm1, %v339_v61 }
 0x379   :  { %6990 = vmatmul.msk.f32.gmra.mxu1 %vm347_vm1, %v339_v61 }
 0x37e   :  { %v8129_v62 = vpop.f32.mrf.mxu1 }
 0x37f   :  { %7007 = vmatmul.msk.f32.gmra.mxu2 %vm163_vm2, %v8129_v62 }
 0x380   :  { %6959 = vmatmul.msk.f32.gmra.mxu0 %vm347_vm1, %v340_v63 }
 0x381   :  { %6991 = vmatmul.msk.f32.gmra.mxu1 %vm347_vm1, %v340_v63 }
 0x386   :  { %v8137_v52 = vpop.f32.mrf.mxu1 }
 0x387   :  { %7008 = vmatmul.msk.f32.gmra.mxu2 %vm163_vm2, %v8137_v52 }
 0x388   :  { %6960 = vmatmul.msk.f32.gmra.mxu0 %vm347_vm1, %v341_v0 }
 0x389   :  { %6992 = vmatmul.msk.f32.gmra.mxu1 %vm347_vm1, %v341_v0 }
 0x38e   :  { %v8145_v1 = vpop.f32.mrf.mxu1 }
 0x38f   :  { %7009 = vmatmul.msk.f32.gmra.mxu2 %vm163_vm2, %v8145_v1 }
 0x390   :  { %6961 = vmatmul.msk.f32.gmra.mxu0 %vm347_vm1, %v8150_v3 }
 0x391   :  { %6993 = vmatmul.msk.f32.gmra.mxu1 %vm347_vm1, %v8150_v3 }
 0x396   :  { %v8156_v4 = vpop.f32.mrf.mxu1 }
 0x397   :  { %7010 = vmatmul.msk.f32.gmra.mxu2 %vm163_vm2, %v8156_v4 }
 0x398   :  { %6962 = vmatmul.msk.f32.gmra.mxu0 %vm347_vm1, %v8161_v5 }
 0x399   :  { %6994 = vmatmul.msk.f32.gmra.mxu1 %vm347_vm1, %v8161_v5 }
 0x39e   :  { %v8170_v7 = vpop.f32.mrf.mxu1 }
 0x39f   :  { %7011 = vmatmul.msk.f32.gmra.mxu2 %vm163_vm2, %v8170_v7 }
 0x3a0   :  { %6963 = vmatmul.msk.f32.gmra.mxu0 %vm347_vm1, %v8175_v8 }
 0x3a1   :  { %6995 = vmatmul.msk.f32.gmra.mxu1 %vm347_vm1, %v8175_v8 }
 0x3a6   :  { %v8181_v9 = vpop.f32.mrf.mxu1 }
 0x3a7   :  { %7012 = vmatmul.msk.f32.gmra.mxu2 %vm163_vm2, %v8181_v9 }
 0x3a8   :  { %6964 = vmatmul.msk.f32.gmra.mxu0 %vm347_vm1, %v8186_v10 }
 0x3a9   :  { %6996 = vmatmul.msk.f32.gmra.mxu1 %vm347_vm1, %v8186_v10 }
 0x3ae   :  { %v8192_v11 = vpop.f32.mrf.mxu1 }
 0x3af   :  { %7013 = vmatmul.msk.f32.gmra.mxu2 %vm163_vm2, %v8192_v11 }
 0x3b0   :  { %6965 = vmatmul.msk.f32.gmra.mxu0 %vm347_vm1, %v8197_v16 }
 0x3b1   :  { %6997 = vmatmul.msk.f32.gmra.mxu1 %vm347_vm1, %v8197_v16 }
 0x3b6   :  { %v8203_v13 = vpop.f32.mrf.mxu1 }
 0x3b7   :  { %7014 = vmatmul.msk.f32.gmra.mxu2 %vm163_vm2, %v8203_v13 }
 0x3ba   :  { %v8207_v2 = vpop.f32.mrf.mxu2 }
 0x3bb   :  { %v880_v14 = vsub.f32 %v8049_v43, %v8207_v2 }
 0x3bd   :  { %7030 = vmatmul.msk.f32.vlgmr.msra.gmra.mxu3 %vm163_vm2, %v880_v14 }
 0x3be   :  { %v8212_v15 = vpop.f32.mrf.mxu1 }
 0x3bf   :  { %7015 = vmatmul.msk.f32.gmra.mxu2 %vm163_vm2, %v8212_v15 }
 0x3c2   :  { %v8216_v17 = vpop.f32.mrf.mxu2 }
 0x3c3   :  { %v881_v18 = vsub.f32 %v8058_v45, %v8216_v17 }
 0x3c5   :  { %7031 = vmatmul.msk.f32.gmra.mxu3 %vm163_vm2, %v881_v18  ;;  %v8392_v18 = vld [vmem:[%s12997_s9] ss:$0 sm:$0xff] }
 0x3c6   :  { %v8221_v19 = vpop.f32.mrf.mxu1 }
 0x3c7   :  { %7016 = vmatmul.msk.f32.gmra.mxu2 %vm163_vm2, %v8221_v19 }
 0x3ca   :  { %v8225_v20 = vpop.f32.mrf.mxu2 }
 0x3cb   :  { %v882_v21 = vsub.f32 %v8067_v47, %v8225_v20 }
 0x3cd   :  { %7032 = vmatmul.msk.f32.gmra.mxu3 %vm163_vm2, %v882_v21 }
 0x3ce   :  { %v8230_v22 = vpop.f32.mrf.mxu1 }
 0x3cf   :  { %7017 = vmatmul.msk.f32.gmra.mxu2 %vm163_vm2, %v8230_v22 }
 0x3d2   :  { %v8234_v23 = vpop.f32.mrf.mxu2 }
 0x3d3   :  { %v883_v24 = vsub.f32 %v8076_v49, %v8234_v23 }
 0x3d5   :  { %7033 = vmatmul.msk.f32.gmra.mxu3 %vm163_vm2, %v883_v24 }
 0x3d6   :  { %v8242_v27 = vpop.f32.mrf.mxu1 }
 0x3d7   :  { %7018 = vmatmul.msk.f32.gmra.mxu2 %vm163_vm2, %v8242_v27 }
 0x3da   :  { %v8246_v28 = vpop.f32.mrf.mxu2 }
 0x3db   :  { %v884_v29 = vsub.f32 %v8085_v51, %v8246_v28 }
 0x3dd   :  { %7034 = vmatmul.msk.f32.gmra.mxu3 %vm163_vm2, %v884_v29 }
 0x3de   :  { %v8254_v31 = vpop.f32.mrf.mxu1 }
 0x3df   :  { %7019 = vmatmul.msk.f32.gmra.mxu2 %vm163_vm2, %v8254_v31 }
 0x3e2   :  { %v8258_v32 = vpop.f32.mrf.mxu2 }
 0x3e3   :  { %v885_v33 = vsub.f32 %v8094_v54, %v8258_v32 }
 0x3e5   :  { %7035 = vmatmul.msk.f32.gmra.mxu3 %vm163_vm2, %v885_v33 }
 0x3e6   :  { %v8266_v26 = vpop.f32.mrf.mxu1 }
 0x3e7   :  { %7020 = vmatmul.msk.f32.gmra.mxu2 %vm163_vm2, %v8266_v26 }
 0x3ea   :  { %v8270_v35 = vpop.f32.mrf.mxu2 }
 0x3eb   :  { %v886_v36 = vsub.f32 %v8103_v56, %v8270_v35 }
 0x3ed   :  { %7036 = vmatmul.msk.f32.gmra.mxu3 %vm163_vm2, %v886_v36 }
 0x3ee   :  { %v8279_v38 = vpop.f32.mrf.mxu1 }
 0x3ef   :  { %7021 = vmatmul.msk.f32.gmra.mxu2 %vm163_vm2, %v8279_v38 }
 0x3f2   :  { %v8283_v39 = vpop.f32.mrf.mxu2 }
 0x3f3   :  { %v887_v40 = vsub.f32 %v8112_v58, %v8283_v39 }
 0x3f5   :  { %7037 = vmatmul.msk.f32.gmra.mxu3 %vm163_vm2, %v887_v40 }
 0x3f6   :  { %v8292_v43 = vpop.f32.mrf.mxu1 }
 0x3f7   :  { %7022 = vmatmul.msk.f32.gmra.mxu2 %vm163_vm2, %v8292_v43 }
 0x3fa   :  { %v8296_v44 = vpop.f32.mrf.mxu2 }
 0x3fb   :  { %v888_v45 = vsub.f32 %v8121_v60, %v8296_v44 }
 0x3fd   :  { %7038 = vmatmul.msk.f32.gmra.mxu3 %vm163_vm2, %v888_v45 }
 0x3fe   :  { %v8305_v47 = vpop.f32.mrf.mxu1 }
 0x3ff   :  { %7023 = vmatmul.msk.f32.gmra.mxu2 %vm163_vm2, %v8305_v47 }
 0x402   :  { %v8309_v48 = vpop.f32.mrf.mxu2 }
 0x403   :  { %v889_v49 = vsub.f32 %v8129_v62, %v8309_v48  ;;  %v8348_v62 = vpop.f32.mrf.mxu0 }
 0x404   :  { %13128 = vst [vmem:[#allocation19_spill] sm:$0xff] %v8348_v62 }
 0x405   :  { %7039 = vmatmul.msk.f32.gmra.mxu3 %vm163_vm2, %v889_v49 }
 0x406   :  { %v8318_v51 = vpop.f32.mrf.mxu1 }
 0x407   :  { %7024 = vmatmul.msk.f32.gmra.mxu2 %vm163_vm2, %v8318_v51 }
 0x40a   :  { %v8322_v53 = vpop.f32.mrf.mxu2 }
 0x40b   :  { %v890_v54 = vsub.f32 %v8137_v52, %v8322_v53 }
 0x40d   :  { %7040 = vmatmul.msk.f32.gmra.mxu3 %vm163_vm2, %v890_v54 }
 0x40e   :  { %v8331_v56 = vpop.f32.mrf.mxu1 }
 0x40f   :  { %7025 = vmatmul.msk.f32.gmra.mxu2 %vm163_vm2, %v8331_v56 }
 0x412   :  { %v8335_v57 = vpop.f32.mrf.mxu2 }
 0x413   :  { %v891_v58 = vsub.f32 %v8145_v1, %v8335_v57  ;;  %v8360_v1 = vpop.f32.mrf.mxu0 }
 0x414   :  { %13130 = vst [vmem:[#allocation21_spill] sm:$0xff] %v8360_v1 }
 0x415   :  { %7041 = vmatmul.msk.f32.gmra.mxu3 %vm163_vm2, %v891_v58 }
 0x416   :  { %v8340_v59 = vpop.f32.mrf.mxu1 }
 0x417   :  { %7026 = vmatmul.msk.f32.gmra.mxu2 %vm163_vm2, %v8340_v59 }
 0x41a   :  { %v8344_v60 = vpop.f32.mrf.mxu2 }
 0x41b   :  { %13127 = vst [vmem:[#allocation18_spill] sm:$0xff] %v8344_v60  ;;  %v892_v61 = vsub.f32 %v8156_v4, %v8344_v60 }
 0x41d   :  { %7042 = vmatmul.msk.f32.gmra.mxu3 %vm163_vm2, %v892_v61 }
 0x41e   :  { %v8351_v63 = vpop.f32.mrf.mxu1 }
 0x41f   :  { %7027 = vmatmul.msk.f32.gmra.mxu2 %vm163_vm2, %v8351_v63 }
 0x422   :  { %v8355_v52 = vpop.f32.mrf.mxu2 }
 0x423   :  { %13129 = vst [vmem:[#allocation20_spill] sm:$0xff] %v8355_v52  ;;  %v893_v0 = vsub.f32 %v8170_v7, %v8355_v52  ;;  %v8375_v7 = vpop.f32.mrf.mxu0 }
 0x424   :  { %13132 = vst [vmem:[#allocation23_spill] sm:$0xff] %v8375_v7 }
 0x425   :  { %7043 = vmatmul.msk.f32.gmra.mxu3 %vm163_vm2, %v893_v0 }
 0x426   :  { %v8362_v3 = vpop.f32.mrf.mxu1 }
 0x427   :  { %7028 = vmatmul.msk.f32.gmra.mxu2 %vm163_vm2, %v8362_v3 }
 0x42a   :  { %v8366_v4 = vpop.f32.mrf.mxu2 }
 0x42b   :  { %13131 = vst [vmem:[#allocation22_spill] sm:$0xff] %v8366_v4  ;;  %v894_v5 = vsub.f32 %v8181_v9, %v8366_v4  ;;  %v8382_v16 = vpop.f32.mrf.mxu0 }
 0x42c   :  { %13134 = vst [vmem:[#allocation25_spill] sm:$0xff] %v8382_v16 }
 0x42d   :  { %7044 = vmatmul.msk.f32.gmra.mxu3 %vm163_vm2, %v894_v5 }
 0x42e   :  { %v8371_v6 = vpop.f32.mrf.mxu1 }
 0x42f   :  { %7029 = vmatmul.msk.f32.gmra.mxu2 %vm163_vm2, %v8371_v6 }
 0x432   :  { %v8377_v8 = vpop.f32.mrf.mxu2 }
 0x433   :  { %13133 = vst [vmem:[#allocation24_spill] sm:$0xff] %v8377_v8  ;;  %v895_v10 = vsub.f32 %v8192_v11, %v8377_v8 }
 0x435   :  { %7045 = vmatmul.msk.f32.gmra.mxu3 %vm163_vm2, %v895_v10 }
 0x43a   :  { %v8384_v14 = vpop.f32.mrf.mxu2 }
 0x43b   :  { %13135 = vst [vmem:[#allocation26_spill] sm:$0xff] %v8384_v14  ;;  %v896_v9 = vsub.f32 %v8203_v13, %v8384_v14  ;;  %v8404_v13 = vpop.f32.mrf.mxu0 }
 0x43c   :  { %13137 = vst [vmem:[#allocation28_spill] sm:$0xff] %v8404_v13 }
 0x43d   :  { %7046 = vmatmul.msk.f32.gmra.mxu3 %vm163_vm2, %v896_v9 }
 0x440   :  { %v1128_v21 = vpop.f32.mrf.mxu3 }
 0x441   :  { %v8395_v24 = vadd.f32 %v8392_v18, %v1128_v21 }
 0x442   :  { %v8397_v11 = vpop.f32.mrf.mxu2 }
 0x443   :  { %13136 = vst [vmem:[#allocation27_spill] sm:$0xff] %v8397_v11  ;;  %v8400_v29 = vmul.f32 0.70710677, %v8395_v24  ;;  %v897_v33 = vsub.f32 %v8212_v15, %v8397_v11  ;;  %v8418_v0 = vpop.f32.mrf.mxu0 }
 0x444   :  { %13139 = vst [vmem:[#allocation30_spill] sm:$0xff] %v8418_v0 }
 0x445   :  { %v1448_v36 = vand.u32 2147483647, %v8400_v29  ;;  %7047 = vmatmul.msk.f32.gmra.mxu3 %vm163_vm2, %v897_v33  ;;  %vm3560_vm15 = vcmp.lt.f32.partialorder %v8400_v29, 0.0 }
 0x447   :  { %v1512_v40 = vmul.f32 0.3275911, %v1448_v36 }
 0x448   :  { %v1131_v45 = vpop.f32.mrf.mxu3 }
 0x449   :  { %v1576_v49 = vadd.f32 1.0, %v1512_v40  ;;  %v8409_v54 = vadd.f32 %v8392_v18, %v1131_v45 }
 0x44a   :  { %v8411_v58 = vpop.f32.mrf.mxu2 }
 0x44b   :  { %13138 = vst [vmem:[#allocation29_spill] sm:$0xff] %v8411_v58  ;;  %7215 = vrcp.f32 %v1576_v49  ;;  %v8414_v61 = vmul.f32 0.70710677, %v8409_v54  ;;  %v898_v15 = vsub.f32 %v8221_v19, %v8411_v58  ;;  %v8440_v37 = vpop.f32.mrf.mxu0  ;;  %vm1645_vm4 = vweird.f32 %v1576_v49 }
 0x44c   :  { %13141 = vst [vmem:[#allocation32_spill] sm:$0xff] %v8440_v37 }
 0x44d   :  { %v8421_v5 = vand.u32 2147483647, %v8414_v61  ;;  %7048 = vmatmul.msk.f32.gmra.mxu3 %vm163_vm2, %v898_v15  ;;  %v1651_v15 = vand.u32 2147483648, %v1576_v49 }
 0x44f   :  { %v1513_v10 = vmul.f32 0.3275911, %v8421_v5  ;;  %v3177_v0 = vsub.f32 0.0, %v8421_v5 }
 0x450   :  { %v1134_v9 = vpop.f32.mrf.mxu3 }
 0x451   :  { %v7216_v21 = vpop.eup %7215  ;;  %v8426_v33 = vadd.f32 %v8392_v18, %v1134_v9  ;;  %v1577_v45 = vadd.f32 1.0, %v1513_v10  ;;  %v1649_v9 = vand.u32 2147483647, %v1576_v49 }
 0x452   :  { %v1641_v40 = vmul.f32 %v7216_v21, %v1576_v49  ;;  %v8428_v12 = vpop.f32.mrf.mxu2  ;;  %vm1646_vm3 = vweird.f32 %v7216_v21 }
 0x453   :  { %13140 = vst [vmem:[#allocation31_spill] sm:$0xff] %v8428_v12  ;;  %v8431_v19 = vmul.f32 0.70710677, %v8426_v33  ;;  %v899_v42 = vsub.f32 %v8230_v22, %v8428_v12  ;;  %7217 = vrcp.f32 %v1577_v45  ;;  %vm1647_vm5 = vmor %vm1645_vm4, %vm1646_vm3  ;;  %v1652_v22 = vor.u32 1.1754944e-38, %v1651_v15 }
 0x454   :  { %v1642_v25 = vsub.f32 1.0, %v1641_v40  ;;  %v3176_v40 = vsub.f32 0.0, %v1448_v36  ;;  %vm1650_vm6 = vcmp.eq.f32.partialorder %v1649_v9, 8.507059e+37  ;;  %vm1660_vm8 = vweird.f32 %v1577_v45 }
 0x455   :  { %v8436_v30 = vand.u32 2147483647, %v8431_v19  ;;  %7049 = vmatmul.msk.f32.gmra.mxu3 %vm163_vm2, %v899_v42  ;;  %v8510_v14 = vmul.f32 0.5, %v8426_v33 }
 0x456   :  { %v1643_v34 = vmul.f32 %v7216_v21, %v1642_v25  ;;  %v3240_v49 = vmul.f32 %v3176_v40, %v1448_v36 }
 0x457   :  { %v1514_v10 = vmul.f32 0.3275911, %v8436_v30 }
 0x458   :  { %v1644_v41 = vadd.f32 %v7216_v21, %v1643_v34  ;;  %v1137_v46 = vpop.f32.mrf.mxu3 }
 0x459   :  { %v8442_v50 = vadd.f32 1.0, %v1514_v10  ;;  %v8445_v55 = vadd.f32 %v8392_v18, %v1137_v46  ;;  %v7218_v25 = vpop.eup %7217  ;;  %v1666_v46 = vand.u32 2147483648, %v1577_v45 }
 0x45a   :  { %v1648_v62 = vsel %vm1647_vm5, %v7216_v21, %v1644_v41  ;;  %v8447_v1 = vpop.f32.mrf.mxu2  ;;  %v1656_v7 = vmul.f32 %v7218_v25, %v1577_v45  ;;  %vm1661_vm7 = vweird.f32 %v7218_v25 }
 0x45b   :  { %13142 = vst [vmem:[#allocation33_spill] sm:$0xff] %v8447_v1  ;;  %v8449_v42 = vsel %vm1650_vm6, %v1652_v22, %v1648_v62  ;;  %7219 = vrcp.f32 %v8442_v50  ;;  %v8454_v10 = vmul.f32 0.70710677, %v8445_v55  ;;  %v900_v41 = vsub.f32 %v8242_v27, %v8447_v1  ;;  %vm1662_vm9 = vmor %vm1660_vm8, %vm1661_vm7 }
 0x45c   :  { %v2600_v34 = vmul.f32 1.0614054, %v8449_v42  ;;  %v1657_v15 = vsub.f32 1.0, %v1656_v7  ;;  %v1664_v62 = vand.u32 2147483647, %v1577_v45  ;;  %v8463_v22 = vmul.f32 0.5, %v8395_v24 }
 0x45d   :  { %v8460_v9 = vand.u32 2147483647, %v8454_v10  ;;  %7050 = vmatmul.msk.f32.gmra.mxu3 %vm163_vm2, %v900_v41  ;;  %v914_v24 = vld [vmem:[%s12996_s8 + $0x10] sm:$0xff]  ;;  %v3304_v1 = vmul.f32 1.442695, %v3240_v49  ;;  %vm1675_vm12 = vweird.f32 %v8442_v50  ;;  %vm3561_vm6 = vcmp.lt.f32.partialorder %v8414_v61, 0.0 }
 0x45e   :  { %v2664_v16 = vadd.f32 -1.4531521, %v2600_v34  ;;  %v1658_v21 = vmul.f32 %v7218_v25, %v1657_v15  ;;  %v8471_v15 = vpop.f32.mrf.mxu0  ;;  %4090 = vmatpush.msra.mxu0 %v914_v24  ;;  %vm1665_vm10 = vcmp.eq.f32.partialorder %v1664_v62, 8.507059e+37  ;;  %v3178_v24 = vsub.f32 0.0, %v8436_v30 }
 0x45f   :  { %v1515_v37 = vmul.f32 0.3275911, %v8460_v9  ;;  %13143 = vst [vmem:[#allocation34_spill] sm:$0xff] %v8471_v15  ;;  %v913_v15 = vld [vmem:[%s12996_s8 + $0x8] sm:$0xff] }
 0x460   :  { %v2728_v7 = vmul.f32 %v2664_v16, %v8449_v42  ;;  %v1140_v36 = vpop.f32.mrf.mxu3  ;;  %v1659_v34 = vadd.f32 %v7218_v25, %v1658_v21  ;;  %v1667_v16 = vor.u32 1.1754944e-38, %v1666_v46  ;;  %4091 = vmatpush.msra.mxu0 %v913_v15 }
 0x461   :  { %v7220_v40 = vpop.eup %7219  ;;  %v8469_v27 = vadd.f32 %v8392_v18, %v1140_v36  ;;  %v3241_v36 = vmul.f32 %v3177_v0, %v8421_v5  ;;  %v8481_v12 = vadd.f32 1.0, %v1515_v37  ;;  %v1681_v37 = vand.u32 2147483648, %v8442_v50 }
 0x462   :  { %v2792_v13 = vadd.f32 1.4214138, %v2728_v7  ;;  %v1671_v41 = vmul.f32 %v7220_v40, %v8442_v50  ;;  %v8478_v21 = vpop.f32.mrf.mxu2  ;;  %v1663_v45 = vsel %vm1662_vm9, %v7218_v25, %v1659_v34  ;;  %v8493_v25 = vmul.f32 0.5, %v8409_v54 }
 0x463   :  { %13144 = vst [vmem:[#allocation35_spill] sm:$0xff] %v8478_v21  ;;  %v8487_v7 = vsel %vm1665_vm10, %v1667_v16, %v1663_v45  ;;  %v8490_v58 = vmul.f32 0.70710677, %v8469_v27  ;;  %7221 = vrcp.f32 %v8481_v12  ;;  %vm1676_vm11 = vweird.f32 %v7220_v40 }
 0x464   :  { %v2856_v49 = vmul.f32 %v2792_v13, %v8449_v42  ;;  %v1672_v46 = vsub.f32 1.0, %v1671_v41  ;;  %v2601_v0 = vmul.f32 1.0614054, %v8487_v7  ;;  %v1679_v13 = vand.u32 2147483647, %v8442_v50  ;;  %vm1677_vm13 = vmor %vm1675_vm12, %vm1676_vm11 }
 0x465   :  { %7223 = vpow2.f32 %v3304_v1  ;;  %v8501_v15 = vand.u32 2147483647, %v8490_v58  ;;  %v3306_v16 = vmul.f32 1.442695, %v3241_v36  ;;  %v901_v1 = vsub.f32 %v8254_v31, %v8478_v21 }
 0x466   :  { %v2920_v5 = vadd.f32 -0.28449672, %v2856_v49  ;;  %v1673_v62 = vmul.f32 %v7220_v40, %v1672_v46  ;;  %v2665_v34 = vadd.f32 -1.4531521, %v2601_v0  ;;  %v1682_v46 = vor.u32 1.1754944e-38, %v1681_v37  ;;  %v8521_v31 = vpop.f32.mrf.mxu0 }
 0x467   :  { %v1516_v11 = vmul.f32 0.3275911, %v8501_v15  ;;  %vm1680_vm14 = vcmp.eq.f32.partialorder %v1679_v13, 8.507059e+37  ;;  %v3242_v37 = vmul.f32 %v3178_v24, %v8436_v30  ;;  %7051 = vmatmul.msk.f32.gmra.mxu3 %vm163_vm2, %v901_v1  ;;  %13146 = vst [vmem:[#allocation37_spill] sm:$0xff] %v8521_v31  ;;  %7225 = vpow2.f32 %v3306_v16 }
 0x468   :  { %v2984_v54 = vmul.f32 %v2920_v5, %v8449_v42  ;;  %v1674_v41 = vadd.f32 %v7220_v40, %v1673_v62  ;;  %v1143_v45 = vpop.f32.mrf.mxu3  ;;  %v2729_v49 = vmul.f32 %v2665_v34, %v8487_v7  ;;  %vm1690_vm1 = vweird.f32 %v8481_v12 }
 0x469   :  { %v7222_v5 = vpop.eup %7221  ;;  %v8518_v34 = vadd.f32 1.0, %v1516_v11  ;;  %v8530_v30 = vadd.f32 %v8392_v18, %v1143_v45  ;;  %v3179_v1 = vsub.f32 0.0, %v8460_v9  ;;  %vm3562_vm9 = vcmp.lt.f32.partialorder %v8431_v19, 0.0 }
 0x46a   :  { %v3048_v0 = vadd.f32 0.2548296, %v2984_v54  ;;  %v1678_v8 = vsel %vm1677_vm13, %v7220_v40, %v1674_v41  ;;  %v8512_v36 = vpop.f32.mrf.mxu2  ;;  %v2793_v50 = vadd.f32 1.4214138, %v2729_v49  ;;  %v1686_v13 = vmul.f32 %v7222_v5, %v8481_v12 }
 0x46b   :  { %13145 = vst [vmem:[#allocation36_spill] sm:$0xff] %v8512_v36  ;;  %v8515_v62 = vsel %vm1680_vm14, %v1682_v46, %v1678_v8  ;;  %v7224_v54 = vpop.eup %7223  ;;  %v1694_v8 = vand.u32 2147483647, %v8481_v12  ;;  %7227 = vrcp.f32 %v8518_v34  ;;  %v3308_v46 = vmul.f32 1.442695, %v3242_v37 }
 0x46c   :  { %v3112_v33 = vmul.f32 %v3048_v0, %v8449_v42  ;;  %v2602_v40 = vmul.f32 1.0614054, %v8515_v62  ;;  %v2857_v41 = vmul.f32 %v2793_v50, %v8487_v7  ;;  %v1687_v49 = vsub.f32 1.0, %v1686_v13 }
 0x46d   :  { %v1696_v42 = vand.u32 2147483648, %v8481_v12  ;;  %vm1691_vm3 = vweird.f32 %v7222_v5  ;;  %vm8537_vm4 = vcmp.eq.f32.partialorder %v1694_v8, 8.507059e+37  ;;  %v902_v37 = vsub.f32 %v8266_v26, %v8512_v36  ;;  %v7226_v13 = vpop.eup %7225 }
 0x46e   :  { %v3432_v11 = vmul.f32 %v7224_v54, %v3112_v33  ;;  %v2666_v24 = vadd.f32 -1.4531521, %v2602_v40  ;;  %v2921_v16 = vadd.f32 -0.28449672, %v2857_v41  ;;  %v1688_v31 = vmul.f32 %v7222_v5, %v1687_v49  ;;  %vm1692_vm5 = vmor %vm1690_vm1, %vm1691_vm3  ;;  %v8566_v29 = vpop.f32.mrf.mxu0 }
 0x46f   :  { %v8542_v40 = vmul.f32 0.70710677, %v8530_v30  ;;  %7229 = vpow2.f32 %v3308_v46  ;;  %v1709_v8 = vand.u32 2147483647, %v8518_v34  ;;  %7052 = vmatmul.msk.f32.gmra.mxu3 %vm163_vm2, %v902_v37  ;;  %v1711_v37 = vand.u32 2147483648, %v8518_v34  ;;  %13149 = vst [vmem:[#allocation38_spill] sm:$0xff] %v8566_v29 }
 0x470   :  { %v3496_v0 = vsub.f32 1.0, %v3432_v11  ;;  %v2730_v50 = vmul.f32 %v2666_v24, %v8515_v62  ;;  %v1146_v21 = vpop.f32.mrf.mxu3  ;;  %v2985_v45 = vmul.f32 %v2921_v16, %v8487_v7  ;;  %v1689_v11 = vadd.f32 %v7222_v5, %v1688_v31 }
 0x471   :  { %v1697_v24 = vor.u32 1.1754944e-38, %v1696_v42  ;;  %v7228_v49 = vpop.eup %7227  ;;  %v8550_v16 = vand.u32 2147483647, %v8542_v40  ;;  %vm1705_vm8 = vweird.f32 %v8518_v34  ;;  %vm1710_vm11 = vcmp.eq.f32.partialorder %v1709_v8, 8.507059e+37 }
 0x472   :  { %v3624_v54 = vsub.f32 0.0, %v3496_v0  ;;  %v2794_v41 = vadd.f32 1.4214138, %v2730_v50  ;;  %v3049_v4 = vadd.f32 0.2548296, %v2985_v45  ;;  %v1693_v42 = vsel %vm1692_vm5, %v7222_v5, %v1689_v11  ;;  %v8558_v50 = vpop.f32.mrf.mxu2 }
 0x473   :  { %v1701_v46 = vmul.f32 %v7228_v49, %v8518_v34  ;;  %v8563_v36 = vsel %vm8537_vm4, %v1697_v24, %v1693_v42  ;;  %v8570_v5 = vadd.f32 %v8392_v18, %v1146_v21  ;;  %vm1706_vm7 = vweird.f32 %v7228_v49 }
 0x474   :  { %v3688_v26 = vsel %vm3560_vm15, %v3624_v54, %v3496_v0  ;;  %v2858_v31 = vmul.f32 %v2794_v41, %v8515_v62  ;;  %v3113_v45 = vmul.f32 %v3049_v4, %v8487_v7  ;;  %v2603_v54 = vmul.f32 1.0614054, %v8563_v36  ;;  %vm1707_vm10 = vmor %vm1705_vm8, %vm1706_vm7 }
 0x475   :  { %v3752_v12 = vadd.f32 1.0, %v3688_v26  ;;  %v1702_v41 = vsub.f32 1.0, %v1701_v46  ;;  %v1517_v4 = vmul.f32 0.3275911, %v8550_v16  ;;  %v903_v7 = vsub.f32 %v8279_v38, %v8558_v50  ;;  %v7230_v29 = vpop.eup %7229 }
 0x476   :  { %v2922_v0 = vadd.f32 -0.28449672, %v2858_v31  ;;  %v3433_v26 = vmul.f32 %v7226_v13, %v3113_v45  ;;  %v2667_v24 = vadd.f32 -1.4531521, %v2603_v54  ;;  %v3243_v46 = vmul.f32 %v3179_v1, %v8460_v9  ;;  %v8610_v8 = vpop.f32.mrf.mxu0 }
 0x477   :  { %v3816_v11 = vmul.f32 %v3752_v12, %v8463_v22  ;;  %v1703_v42 = vmul.f32 %v7228_v49, %v1702_v41  ;;  %v3180_v21 = vsub.f32 0.0, %v8501_v15  ;;  %v8579_v60 = vadd.f32 1.0, %v1517_v4  ;;  %7053 = vmatmul.msk.f32.gmra.mxu3 %vm163_vm2, %v903_v7  ;;  %13150 = vst [vmem:[#allocation39_spill] sm:$0xff] %v8610_v8 }
 0x478   :  { %v2986_v33 = vmul.f32 %v2922_v0, %v8515_v62  ;;  %v1149_v31 = vpop.f32.mrf.mxu3  ;;  %v3497_v52 = vsub.f32 1.0, %v3433_v26  ;;  %v2731_v13 = vmul.f32 %v2667_v24, %v8563_v36  ;;  %v1712_v45 = vor.u32 1.1754944e-38, %v1711_v37 }
 0x479   :  { %7094 = vmatmul.msk.f32.vlgmr.msra.gmra.mxu0 %vm76_vm0, %v3816_v11  ;;  %v1704_v38 = vadd.f32 %v7228_v49, %v1703_v42  ;;  %7231 = vrcp.f32 %v8579_v60  ;;  %v8587_v9 = vmul.f32 0.70710677, %v8570_v5  ;;  %v3310_v41 = vmul.f32 1.442695, %v3243_v46 }
 0x47a   :  { %v3050_v22 = vadd.f32 0.2548296, %v2986_v33  ;;  %v3625_v12 = vsub.f32 0.0, %v3497_v52  ;;  %v2795_v0 = vadd.f32 1.4214138, %v2731_v13  ;;  %v8596_v37 = vadd.f32 %v8392_v18, %v1149_v31  ;;  %v8600_v24 = vpop.f32.mrf.mxu2 }
 0x47b   :  { %v1708_v54 = vsel %vm1707_vm10, %v7228_v49, %v1704_v38  ;;  %v3244_v61 = vmul.f32 %v3180_v21, %v8501_v15  ;;  %v8608_v49 = vand.u32 2147483647, %v8587_v9  ;;  %7233 = vpow2.f32 %v3310_v41 }
 0x47c   :  { %v3114_v1 = vmul.f32 %v3050_v22, %v8515_v62  ;;  %v3689_v34 = vsel %vm3561_vm6, %v3625_v12, %v3497_v52  ;;  %v8593_v11 = vsel %vm1710_vm11, %v1712_v45, %v1708_v54  ;;  %v2859_v33 = vmul.f32 %v2795_v0, %v8563_v36 }
 0x47d   :  { %v3753_v26 = vadd.f32 1.0, %v3689_v34  ;;  %v2604_v7 = vmul.f32 1.0614054, %v8593_v11  ;;  %v8603_v62 = vmul.f32 0.5, %v8445_v55  ;;  %v3181_v52 = vsub.f32 0.0, %v8550_v16 }
 0x47e   :  { %v3434_v4 = vmul.f32 %v7230_v29, %v3114_v1  ;;  %v2923_v31 = vadd.f32 -0.28449672, %v2859_v33  ;;  %v1518_v13 = vmul.f32 0.3275911, %v8608_v49  ;;  %v8615_v55 = vmul.f32 0.70710677, %v8596_v37 }
 0x47f   :  { %v3817_v29 = vmul.f32 %v3753_v26, %v8493_v25  ;;  %v2668_v46 = vadd.f32 -1.4531521, %v2604_v7  ;;  %v7232_v22 = vpop.eup %7231  ;;  %v904_v15 = vsub.f32 %v8292_v43, %v8600_v24  ;;  %v3312_v1 = vmul.f32 1.442695, %v3244_v61 }
 0x480   :  { %v3498_v42 = vsub.f32 1.0, %v3434_v4  ;;  %v2987_v38 = vmul.f32 %v2923_v31, %v8563_v36  ;;  %v1716_v25 = vmul.f32 %v7232_v22, %v8579_v60  ;;  %v1152_v45 = vpop.f32.mrf.mxu3  ;;  %v3245_v0 = vmul.f32 %v3181_v52, %v8550_v16 }
 0x481   :  { %v2732_v12 = vmul.f32 %v2668_v46, %v8593_v11  ;;  %7095 = vmatmul.msk.f32.gmra.mxu0 %vm76_vm0, %v3817_v29  ;;  %v8624_v54 = vadd.f32 1.0, %v1518_v13  ;;  %v8627_v34 = vand.u32 2147483647, %v8615_v55  ;;  %7054 = vmatmul.msk.f32.gmra.mxu3 %vm163_vm2, %v904_v15  ;;  %vm3563_vm12 = vcmp.lt.f32.partialorder %v8454_v10, 0.0  ;;  %v7234_v19 = vpop.eup %7233 }
 0x482   :  { %v3626_v21 = vsub.f32 0.0, %v3498_v42  ;;  %v3051_v41 = vadd.f32 0.2548296, %v2987_v38  ;;  %v1717_v4 = vsub.f32 1.0, %v1716_v25  ;;  %v1724_v7 = vand.u32 2147483647, %v8579_v60  ;;  %v8644_v38 = vpop.f32.mrf.mxu2 }
 0x483   :  { %v2796_v26 = vadd.f32 1.4214138, %v2732_v12  ;;  %v1726_v16 = vand.u32 2147483648, %v8579_v60  ;;  %7235 = vrcp.f32 %v8624_v54  ;;  %vm1721_vm13 = vweird.f32 %v7232_v22 }
 0x484   :  { %v3690_v43 = vsel %vm3562_vm9, %v3626_v21, %v3498_v42  ;;  %v3115_v61 = vmul.f32 %v3051_v41, %v8563_v36  ;;  %v1718_v29 = vmul.f32 %v7232_v22, %v1717_v4  ;;  %v8640_v31 = vmul.f32 0.5, %v8469_v27 }
 0x485   :  { %v3754_v33 = vadd.f32 1.0, %v3690_v43  ;;  %v2860_v52 = vmul.f32 %v2796_v26, %v8593_v11  ;;  %7237 = vpow2.f32 %v3312_v1  ;;  %v1519_v46 = vmul.f32 0.3275911, %v8627_v34 }
 0x486   :  { %v3435_v13 = vmul.f32 %v7234_v19, %v3115_v61  ;;  %v1719_v21 = vadd.f32 %v7232_v22, %v1718_v29  ;;  %vm1720_vm14 = vweird.f32 %v8579_v60  ;;  %v1727_v36 = vor.u32 1.1754944e-38, %v1726_v16 }
 0x487   :  { %v3818_v42 = vmul.f32 %v3754_v33, %v8510_v14  ;;  %v2924_v15 = vadd.f32 -0.28449672, %v2860_v52  ;;  %vm1722_vm15 = vmor %vm1720_vm14, %vm1721_vm13  ;;  %v3314_v12 = vmul.f32 1.442695, %v3245_v0  ;;  %v3182_v25 = vsub.f32 0.0, %v8608_v49  ;;  %v8649_v14 = vpop.f32.mrf.mxu0 }
 0x488   :  { %v8647_v43 = vadd.f32 1.0, %v1519_v46  ;;  %13151 = vst [vmem:[#allocation40_spill] sm:$0xff] %v8649_v14  ;;  %v3499_v27 = vsub.f32 1.0, %v3435_v13  ;;  %v1723_v41 = vsel %vm1722_vm15, %v7232_v22, %v1719_v21  ;;  %vm1725_vm1 = vcmp.eq.f32.partialorder %v1724_v7, 8.507059e+37  ;;  %v1155_v22 = vpop.f32.mrf.mxu3 }
 0x489   :  { %v2988_v1 = vmul.f32 %v2924_v15, %v8593_v11  ;;  %7096 = vmatmul.msk.f32.gmra.mxu0 %vm76_vm0, %v3818_v42  ;;  %v7236_v26 = vpop.eup %7235  ;;  %v8653_v60 = vsel %vm1725_vm1, %v1727_v36, %v1723_v41  ;;  %v1739_v4 = vand.u32 2147483647, %v8624_v54  ;;  %v8658_v0 = vadd.f32 %v8392_v18, %v1152_v45 }
 0x48a   :  { %7239 = vrcp.f32 %v8647_v43  ;;  %v3627_v33 = vsub.f32 0.0, %v3499_v27  ;;  %v2605_v61 = vmul.f32 1.0614054, %v8653_v60  ;;  %v1731_v52 = vmul.f32 %v7236_v26, %v8624_v54 }
 0x48b   :  { %v3052_v16 = vadd.f32 0.2548296, %v2988_v1  ;;  %v7238_v7 = vpop.eup %7237  ;;  %vm3564_vm3 = vcmp.lt.f32.partialorder %v8490_v58, 0.0  ;;  %7241 = vpow2.f32 %v3314_v12  ;;  %v1741_v29 = vand.u32 2147483648, %v8624_v54 }
 0x48c   :  { %v3246_v19 = vmul.f32 %v3182_v25, %v8608_v49  ;;  %v3691_v42 = vsel %vm3563_vm12, %v3627_v33, %v3499_v27  ;;  %v2669_v46 = vadd.f32 -1.4531521, %v2605_v61  ;;  %v1732_v13 = vsub.f32 1.0, %v1731_v52  ;;  %v8684_v52 = vpop.f32.mrf.mxu2 }
 0x48d   :  { %v3116_v45 = vmul.f32 %v3052_v16, %v8593_v11  ;;  %v3755_v15 = vadd.f32 1.0, %v3691_v42  ;;  %vm1735_vm4 = vweird.f32 %v8624_v54  ;;  %vm1736_vm5 = vweird.f32 %v7236_v26 }
 0x48e   :  { %vm8669_vm6 = vcmp.eq.f32.partialorder %v1739_v4, 8.507059e+37  ;;  %v2733_v12 = vmul.f32 %v2669_v46, %v8653_v60  ;;  %v1733_v1 = vmul.f32 %v7236_v26, %v1732_v13  ;;  %v8675_v49 = vmul.f32 0.70710677, %v8658_v0  ;;  %vm1737_vm7 = vmor %vm1735_vm4, %vm1736_vm5 }
 0x48f   :  { %v3436_v36 = vmul.f32 %v7238_v7, %v3116_v45  ;;  %v3819_v11 = vmul.f32 %v3755_v15, %v8603_v62  ;;  %v1742_v25 = vor.u32 1.1754944e-38, %v1741_v29  ;;  %v905_v27 = vsub.f32 %v8305_v47, %v8644_v38  ;;  %v8697_v42 = vpop.f32.mrf.mxu0 }
 0x490   :  { %v7240_v10 = vpop.eup %7239  ;;  %v8681_v41 = vadd.f32 %v8392_v18, %v1155_v22  ;;  %v2797_v33 = vadd.f32 1.4214138, %v2733_v12  ;;  %v1734_v16 = vadd.f32 %v7236_v26, %v1733_v1  ;;  %v1754_v62 = vand.u32 2147483647, %v8647_v43  ;;  %13154 = vst [vmem:[#allocation41_spill] sm:$0xff] %v8697_v42 }
 0x491   :  { %v3500_v4 = vsub.f32 1.0, %v3436_v36  ;;  %v1746_v61 = vmul.f32 %v7240_v10, %v8647_v43  ;;  %v7242_v7 = vpop.eup %7241  ;;  %v1756_v29 = vand.u32 2147483648, %v8647_v43  ;;  %v3183_v47 = vsub.f32 0.0, %v8627_v34  ;;  %7055 = vmatmul.msk.f32.gmra.mxu3 %vm163_vm2, %v905_v27  ;;  %7097 = vmatmul.msk.f32.gmra.mxu0 %vm76_vm0, %v3819_v11 }
 0x492   :  { %v8693_v22 = vand.u32 2147483647, %v8675_v49  ;;  %v2861_v46 = vmul.f32 %v2797_v33, %v8653_v60  ;;  %v1738_v54 = vsel %vm1737_vm7, %v7236_v26, %v1734_v16  ;;  %vm1751_vm8 = vweird.f32 %v7240_v10  ;;  %v1158_v33 = vpop.f32.mrf.mxu3 }
 0x493   :  { %v3628_v45 = vsub.f32 0.0, %v3500_v4  ;;  %v1747_v13 = vsub.f32 1.0, %v1746_v61  ;;  %v8702_v15 = vsel %vm8669_vm6, %v1742_v25, %v1738_v54  ;;  %v8706_v12 = vmul.f32 0.70710677, %v8681_v41 }
 0x494   :  { %v1520_v36 = vmul.f32 0.3275911, %v8693_v22  ;;  %v2925_v11 = vadd.f32 -0.28449672, %v2861_v46  ;;  %v2606_v27 = vmul.f32 1.0614054, %v8702_v15  ;;  %vm1750_vm9 = vweird.f32 %v8647_v43 }
 0x495   :  { %v3692_v1 = vsel %vm3564_vm3, %v3628_v45, %v3500_v4  ;;  %v1748_v8 = vmul.f32 %v7240_v10, %v1747_v13  ;;  %v3316_v16 = vmul.f32 1.442695, %v3246_v19  ;;  %v8714_v21 = vand.u32 2147483647, %v8706_v12  ;;  %vm1752_vm10 = vmor %vm1750_vm9, %vm1751_vm8 }
 0x496   :  { %v3756_v26 = vadd.f32 1.0, %v3692_v1  ;;  %v8711_v61 = vadd.f32 1.0, %v1520_v36  ;;  %v2989_v25 = vmul.f32 %v2925_v11, %v8653_v60  ;;  %v2670_v54 = vadd.f32 -1.4531521, %v2606_v27 }
 0x497   :  { %v1749_v14 = vadd.f32 %v7240_v10, %v1748_v8  ;;  %v1757_v4 = vor.u32 1.1754944e-38, %v1756_v29  ;;  %v3247_v45 = vmul.f32 %v3183_v47, %v8627_v34  ;;  %vm1755_vm11 = vcmp.eq.f32.partialorder %v1754_v62, 8.507059e+37  ;;  %v8730_v47 = vpop.f32.mrf.mxu2  ;;  %v8737_v62 = vpop.f32.mrf.mxu0 }
 0x498   :  { %v3820_v58 = vmul.f32 %v3756_v26, %v8640_v31  ;;  %7243 = vrcp.f32 %v8711_v61  ;;  %v3053_v19 = vadd.f32 0.2548296, %v2989_v25  ;;  %v2734_v46 = vmul.f32 %v2670_v54, %v8702_v15  ;;  %13155 = vst [vmem:[#allocation42_spill] sm:$0xff] %v8737_v62 }
 0x499   :  { %v1753_v13 = vsel %vm1752_vm10, %v7240_v10, %v1749_v14  ;;  %v1521_v8 = vmul.f32 0.3275911, %v8714_v21  ;;  %v1325_v31 = vmul.f32 0.5, %v8530_v30  ;;  %v3318_v1 = vmul.f32 1.442695, %v3247_v45 }
 0x49a   :  { %v8723_v36 = vsel %vm1755_vm11, %v1757_v4, %v1753_v13  ;;  %7098 = vmatmul.msk.f32.gmra.mxu0 %vm76_vm0, %v3820_v58  ;;  %v3117_v43 = vmul.f32 %v3053_v19, %v8653_v60  ;;  %v2798_v29 = vadd.f32 1.4214138, %v2734_v46  ;;  %v3184_v11 = vsub.f32 0.0, %v8693_v22  ;;  %v1161_v4 = vpop.f32.mrf.mxu3 }
 0x49b   :  { %v2607_v34 = vmul.f32 1.0614054, %v8723_v36  ;;  %v8733_v14 = vadd.f32 1.0, %v1521_v8  ;;  %v906_v10 = vsub.f32 %v8318_v51, %v8684_v52  ;;  %7245 = vpow2.f32 %v3316_v16 }
 0x49c   :  { %v3437_v27 = vmul.f32 %v7242_v7, %v3117_v43  ;;  %v2862_v30 = vmul.f32 %v2798_v29, %v8702_v15  ;;  %vm3565_vm12 = vcmp.lt.f32.partialorder %v8542_v40, 0.0  ;;  %v8742_v25 = vmul.f32 0.5, %v8570_v5 }
 0x49d   :  { %v2671_v60 = vadd.f32 -1.4531521, %v2607_v34  ;;  %7247 = vrcp.f32 %v8733_v14  ;;  %7056 = vmatmul.msk.f32.gmra.mxu3 %vm163_vm2, %v906_v10  ;;  %v8747_v54 = vadd.f32 %v8392_v18, %v1158_v33  ;;  %v8752_v45 = vmul.f32 0.5, %v8596_v37 }
 0x49e   :  { %v7244_v26 = vpop.eup %7243  ;;  %v3501_v51 = vsub.f32 1.0, %v3437_v27  ;;  %v2926_v58 = vadd.f32 -0.28449672, %v2862_v30  ;;  %7249 = vpow2.f32 %v3318_v1  ;;  %v1769_v5 = vand.u32 2147483647, %v8711_v61 }
 0x49f   :  { %v2735_v7 = vmul.f32 %v2671_v60, %v8723_v36  ;;  %v1761_v16 = vmul.f32 %v7244_v26, %v8711_v61  ;;  %v3248_v19 = vmul.f32 %v3184_v11, %v8693_v22  ;;  %vm1766_vm13 = vweird.f32 %v7244_v26 }
 0x4a0   :  { %v3629_v46 = vsub.f32 0.0, %v3501_v51  ;;  %v2990_v13 = vmul.f32 %v2926_v58, %v8702_v15  ;;  %v1771_v43 = vand.u32 2147483648, %v8711_v61  ;;  %v8759_v29 = vmul.f32 0.70710677, %v8747_v54 }
 0x4a1   :  { %v2799_v33 = vadd.f32 1.4214138, %v2735_v7  ;;  %v1762_v8 = vsub.f32 1.0, %v1761_v16  ;;  %v907_v37 = vsub.f32 %v8331_v56, %v8730_v47  ;;  %v7246_v34 = vpop.eup %7245  ;;  %vm3566_vm14 = vcmp.lt.f32.partialorder %v8587_v9, 0.0  ;;  %v8777_v16 = vpop.f32.mrf.mxu2 }
 0x4a2   :  { %v3693_v1 = vsel %vm3565_vm12, %v3629_v46, %v3501_v51  ;;  %v3054_v10 = vadd.f32 0.2548296, %v2990_v13  ;;  %vm1765_vm15 = vweird.f32 %v8711_v61  ;;  %vm8768_vm1 = vcmp.eq.f32.partialorder %v1769_v5, 8.507059e+37 }
 0x4a3   :  { %v2863_v22 = vmul.f32 %v2799_v33, %v8723_v36  ;;  %v1763_v11 = vmul.f32 %v7244_v26, %v1762_v8  ;;  %v7248_v27 = vpop.eup %7247  ;;  %v3757_v30 = vadd.f32 1.0, %v3693_v1  ;;  %v8773_v56 = vand.u32 2147483647, %v8759_v29  ;;  %vm1767_vm3 = vmor %vm1765_vm15, %vm1766_vm13  ;;  %v8783_v8 = vpop.f32.mrf.mxu0 }
 0x4a4   :  { %v3118_v40 = vmul.f32 %v3054_v10, %v8702_v15  ;;  %v1776_v7 = vmul.f32 %v7248_v27, %v8733_v14  ;;  %v7250_v46 = vpop.eup %7249  ;;  %v1772_v61 = vor.u32 1.1754944e-38, %v1771_v43  ;;  %v1784_v5 = vand.u32 2147483647, %v8733_v14  ;;  %13158 = vst [vmem:[#allocation43_spill] sm:$0xff] %v8783_v8 }
 0x4a5   :  { %v2927_v51 = vadd.f32 -0.28449672, %v2863_v22  ;;  %v1764_v58 = vadd.f32 %v7244_v26, %v1763_v11  ;;  %v3821_v13 = vmul.f32 %v3757_v30, %v1325_v31  ;;  %v1522_v33 = vmul.f32 0.3275911, %v8773_v56  ;;  %7057 = vmatmul.msk.f32.gmra.mxu3 %vm163_vm2, %v907_v37 }
 0x4a6   :  { %v3438_v15 = vmul.f32 %v7246_v34, %v3118_v40  ;;  %v1777_v22 = vsub.f32 1.0, %v1776_v7  ;;  %vm1781_vm4 = vweird.f32 %v7248_v27  ;;  %v1786_v31 = vand.u32 2147483648, %v8733_v14  ;;  %v1164_v40 = vpop.f32.mrf.mxu3 }
 0x4a7   :  { %v2991_v1 = vmul.f32 %v2927_v51, %v8723_v36  ;;  %v1768_v10 = vsel %vm1767_vm3, %v7244_v26, %v1764_v58  ;;  %v8791_v43 = vadd.f32 1.0, %v1522_v33  ;;  %7099 = vmatmul.msk.f32.gmra.mxu0 %vm76_vm0, %v3821_v13  ;;  %v3320_v51 = vmul.f32 1.442695, %v3248_v19 }
 0x4a8   :  { %v8788_v11 = vsel %vm8768_vm1, %v1772_v61, %v1768_v10  ;;  %v3502_v30 = vsub.f32 1.0, %v3438_v15  ;;  %v1778_v34 = vmul.f32 %v7248_v27, %v1777_v22  ;;  %vm1780_vm5 = vweird.f32 %v8733_v14 }
 0x4a9   :  { %v3055_v37 = vadd.f32 0.2548296, %v2991_v1  ;;  %v2608_v42 = vmul.f32 1.0614054, %v8788_v11  ;;  %7251 = vrcp.f32 %v8791_v43  ;;  %v8798_v26 = vadd.f32 %v8392_v18, %v1161_v4  ;;  %vm1782_vm7 = vmor %vm1780_vm5, %vm1781_vm4  ;;  %v8815_v9 = vpop.f32.mrf.mxu2 }
 0x4aa   :  { %v3630_v60 = vsub.f32 0.0, %v3502_v30  ;;  %v1779_v61 = vadd.f32 %v7248_v27, %v1778_v34  ;;  %vm3567_vm6 = vcmp.lt.f32.partialorder %v8615_v55, 0.0  ;;  %vm1785_vm8 = vcmp.eq.f32.partialorder %v1784_v5, 8.507059e+37 }
 0x4ab   :  { %v3119_v58 = vmul.f32 %v3055_v37, %v8723_v36  ;;  %v2672_v7 = vadd.f32 -1.4531521, %v2608_v42  ;;  %v1787_v13 = vor.u32 1.1754944e-38, %v1786_v31  ;;  %v3185_v19 = vsub.f32 0.0, %v8714_v21 }
 0x4ac   :  { %v3694_v14 = vsel %vm3566_vm14, %v3630_v60, %v3502_v30  ;;  %v1783_v15 = vsel %vm1782_vm7, %v7248_v27, %v1779_v61  ;;  %7253 = vpow2.f32 %v3320_v51  ;;  %v8810_v42 = vmul.f32 0.70710677, %v8798_v26  ;;  %v8825_v51 = vpop.f32.mrf.mxu0 }
 0x4ad   :  { %v3439_v33 = vmul.f32 %v7250_v46, %v3119_v58  ;;  %v2736_v4 = vmul.f32 %v2672_v7, %v8788_v11  ;;  %v3758_v1 = vadd.f32 1.0, %v3694_v14  ;;  %v8807_v36 = vsel %vm1785_vm8, %v1787_v13, %v1783_v15  ;;  %13159 = vst [vmem:[#allocation44_spill] sm:$0xff] %v8825_v51 }
 0x4ae   :  { %v2609_v5 = vmul.f32 1.0614054, %v8807_v36  ;;  %v908_v31 = vsub.f32 %v8340_v59, %v8777_v16  ;;  %v3249_v27 = vmul.f32 %v3185_v19, %v8714_v21  ;;  %v8820_v37 = vand.u32 2147483647, %v8810_v42 }
 0x4af   :  { %v3503_v10 = vsub.f32 1.0, %v3439_v33  ;;  %v2800_v22 = vadd.f32 1.4214138, %v2736_v4  ;;  %v7252_v46 = vpop.eup %7251  ;;  %v3822_v30 = vmul.f32 %v3758_v1, %v8742_v25  ;;  %v8823_v34 = vadd.f32 %v8392_v18, %v1164_v40  ;;  %v1167_v33 = vpop.f32.mrf.mxu3 }
 0x4b0   :  { %v2673_v7 = vadd.f32 -1.4531521, %v2609_v5  ;;  %v1791_v59 = vmul.f32 %v7252_v46, %v8791_v43  ;;  %7058 = vmatmul.msk.f32.gmra.mxu3 %vm163_vm2, %v908_v31  ;;  %v1799_v25 = vand.u32 2147483647, %v8791_v43  ;;  %v1801_v21 = vand.u32 2147483648, %v8791_v43 }
 0x4b1   :  { %v3631_v60 = vsub.f32 0.0, %v3503_v10  ;;  %v2864_v58 = vmul.f32 %v2800_v22, %v8788_v11  ;;  %v3186_v61 = vsub.f32 0.0, %v8773_v56  ;;  %v1523_v13 = vmul.f32 0.3275911, %v8820_v37  ;;  %7100 = vmatmul.msk.f32.gmra.mxu0 %vm76_vm0, %v3822_v30 }
 0x4b2   :  { %v2737_v19 = vmul.f32 %v2673_v7, %v8807_v36  ;;  %v1792_v14 = vsub.f32 1.0, %v1791_v59  ;;  %v7254_v4 = vpop.eup %7253  ;;  %vm1796_vm9 = vweird.f32 %v7252_v46  ;;  %v8841_v22 = vmul.f32 0.70710677, %v8823_v34 }
 0x4b3   :  { %v3695_v18 = vsel %vm3567_vm6, %v3631_v60, %v3503_v10  ;;  %v2928_v40 = vadd.f32 -0.28449672, %v2864_v58  ;;  %v8838_v1 = vadd.f32 1.0, %v1523_v13  ;;  %v909_v55 = vsub.f32 %v8351_v63, %v8815_v9 }
 0x4b4   :  { %v3759_v15 = vadd.f32 1.0, %v3695_v18  ;;  %v2801_v31 = vadd.f32 1.4214138, %v2737_v19  ;;  %v1793_v30 = vmul.f32 %v7252_v46, %v1792_v14  ;;  %v3322_v60 = vmul.f32 1.442695, %v3249_v27  ;;  %v8858_v14 = vpop.f32.mrf.mxu2 }
 0x4b5   :  { %v2992_v5 = vmul.f32 %v2928_v40, %v8788_v11  ;;  %7255 = vrcp.f32 %v8838_v1  ;;  %vm1795_vm10 = vweird.f32 %v8791_v43  ;;  %v1328_v13 = vmul.f32 0.5, %v8658_v0 }
 0x4b6   :  { %v3823_v10 = vmul.f32 %v3759_v15, %v8752_v45  ;;  %v2865_v7 = vmul.f32 %v2801_v31, %v8807_v36  ;;  %v1794_v59 = vadd.f32 %v7252_v46, %v1793_v30  ;;  %vm1797_vm11 = vmor %vm1795_vm10, %vm1796_vm9  ;;  %v1802_v18 = vor.u32 1.1754944e-38, %v1801_v21 }
 0x4b7   :  { %v3056_v58 = vadd.f32 0.2548296, %v2992_v5  ;;  %v3250_v40 = vmul.f32 %v3186_v61, %v8773_v56  ;;  %v8854_v63 = vand.u32 2147483647, %v8841_v22  ;;  %vm1800_vm12 = vcmp.eq.f32.partialorder %v1799_v25, 8.507059e+37  ;;  %v8865_v56 = vpop.f32.mrf.mxu0 }
 0x4b8   :  { %v2929_v27 = vadd.f32 -0.28449672, %v2865_v7  ;;  %v1798_v19 = vsel %vm1797_vm11, %v7252_v46, %v1794_v59  ;;  %7059 = vmatmul.msk.f32.gmra.mxu3 %vm163_vm2, %v909_v55  ;;  %7257 = vpow2.f32 %v3322_v60  ;;  %v3187_v0 = vsub.f32 0.0, %v8820_v37  ;;  %13160 = vst [vmem:[#allocation45_spill] sm:$0xff] %v8865_v56 }
 0x4b9   :  { %v3120_v45 = vmul.f32 %v3056_v58, %v8788_v11  ;;  %v8860_v43 = vsel %vm1800_vm12, %v1802_v18, %v1798_v19  ;;  %v1524_v21 = vmul.f32 0.3275911, %v8854_v63  ;;  %7101 = vmatmul.msk.f32.gmra.mxu0 %vm76_vm0, %v3823_v10  ;;  %vm3568_vm13 = vcmp.lt.f32.partialorder %v8675_v49, 0.0  ;;  %v1170_v58 = vpop.f32.mrf.mxu3 }
 0x4ba   :  { %v2993_v11 = vmul.f32 %v2929_v27, %v8807_v36  ;;  %v2610_v46 = vmul.f32 1.0614054, %v8860_v43  ;;  %v8871_v15 = vmul.f32 0.5, %v8681_v41  ;;  %v3324_v5 = vmul.f32 1.442695, %v3250_v40 }
 0x4bb   :  { %v3440_v61 = vmul.f32 %v7254_v4, %v3120_v45  ;;  %v7256_v25 = vpop.eup %7255  ;;  %v8873_v31 = vadd.f32 1.0, %v1524_v21  ;;  %v910_v30 = vsub.f32 %v8362_v3, %v8858_v14  ;;  %vm3569_vm14 = vcmp.lt.f32.partialorder %v8706_v12, 0.0  ;;  %v8885_v41 = vld [vmem:[%s12997_s9] ss:$0 sm:$0xff] }
 0x4bc   :  { %v3057_v10 = vadd.f32 0.2548296, %v2993_v11  ;;  %v2674_v60 = vadd.f32 -1.4531521, %v2610_v46  ;;  %v1806_v4 = vmul.f32 %v7256_v25, %v8838_v1  ;;  %v1814_v7 = vand.u32 2147483647, %v8838_v1 }
 0x4bd   :  { %v3504_v55 = vsub.f32 1.0, %v3440_v61  ;;  %v3251_v59 = vmul.f32 %v3187_v0, %v8820_v37  ;;  %7259 = vrcp.f32 %v8873_v31  ;;  %v8888_v3 = vadd.f32 %v8885_v41, %v1167_v33 }
 0x4be   :  { %v3121_v40 = vmul.f32 %v3057_v10, %v8807_v36  ;;  %v2738_v45 = vmul.f32 %v2674_v60, %v8860_v43  ;;  %v1807_v27 = vsub.f32 1.0, %v1806_v4  ;;  %v7258_v19 = vpop.eup %7257  ;;  %7261 = vpow2.f32 %v3324_v5 }
 0x4bf   :  { %v3632_v18 = vsub.f32 0.0, %v3504_v55  ;;  %vm1811_vm15 = vweird.f32 %v7256_v25  ;;  %v1816_v37 = vand.u32 2147483648, %v8838_v1  ;;  %v8894_v0 = vadd.f32 %v8885_v41, %v1170_v58 }
 0x4c0   :  { %v3441_v61 = vmul.f32 %v7258_v19, %v3121_v40  ;;  %v2802_v33 = vadd.f32 1.4214138, %v2738_v45  ;;  %v1808_v11 = vmul.f32 %v7256_v25, %v1807_v27  ;;  %7060 = vmatmul.msk.f32.gmra.mxu3 %vm163_vm2, %v910_v30  ;;  %vm1810_vm1 = vweird.f32 %v8838_v1 }
 0x4c1   :  { %v3696_v21 = vsel %vm3568_vm13, %v3632_v18, %v3504_v55  ;;  %vm8900_vm3 = vcmp.eq.f32.partialorder %v1814_v7, 8.507059e+37  ;;  %v8905_v5 = vmul.f32 0.70710677, %v8888_v3  ;;  %v3326_v55 = vmul.f32 1.442695, %v3251_v59  ;;  %vm1812_vm4 = vmor %vm1810_vm1, %vm1811_vm15  ;;  %v8915_v7 = vpop.f32.mrf.mxu0 }
 0x4c2   :  { %v3760_v36 = vadd.f32 1.0, %v3696_v21  ;;  %v3505_v10 = vsub.f32 1.0, %v3441_v61  ;;  %v2866_v60 = vmul.f32 %v2802_v33, %v8860_v43  ;;  %v1809_v49 = vadd.f32 %v7256_v25, %v1808_v11  ;;  %13163 = vst [vmem:[#allocation46_spill] sm:$0xff] %v8915_v7 }
 0x4c3   :  { %v7260_v4 = vpop.eup %7259  ;;  %v1817_v30 = vor.u32 1.1754944e-38, %v1816_v37  ;;  %v8910_v18 = vand.u32 2147483647, %v8905_v5  ;;  %v8913_v1 = vmul.f32 0.70710677, %v8894_v0  ;;  %v3188_v37 = vsub.f32 0.0, %v8854_v63 }
 0x4c4   :  { %v3824_v58 = vmul.f32 %v3760_v36, %v1328_v13  ;;  %v3633_v40 = vsub.f32 0.0, %v3505_v10  ;;  %v2930_v45 = vadd.f32 -0.28449672, %v2866_v60  ;;  %v1813_v27 = vsel %vm1812_vm4, %v7256_v25, %v1809_v49  ;;  %v7262_v21 = vpop.eup %7261  ;;  %v1173_v60 = vpop.f32.mrf.mxu3 }
 0x4c5   :  { %v1821_v19 = vmul.f32 %v7260_v4, %v8873_v31  ;;  %v8920_v13 = vsel %vm8900_vm3, %v1817_v30, %v1813_v27  ;;  %v1829_v59 = vand.u32 2147483647, %v8873_v31  ;;  %v1525_v61 = vmul.f32 0.3275911, %v8910_v18 }
 0x4c6   :  { %7102 = vmatmul.msk.f32.gmra.mxu0 %vm76_vm0, %v3824_v58  ;;  %v3697_v33 = vsel %vm3569_vm14, %v3633_v40, %v3505_v10  ;;  %v2994_v25 = vmul.f32 %v2930_v45, %v8860_v43  ;;  %v2611_v11 = vmul.f32 1.0614054, %v8920_v13  ;;  %v1831_v49 = vand.u32 2147483648, %v8873_v31 }
 0x4c7   :  { %v1822_v36 = vsub.f32 1.0, %v1821_v19  ;;  %v3761_v46 = vadd.f32 1.0, %v3697_v33  ;;  %v8931_v30 = vadd.f32 1.0, %v1525_v61  ;;  %v8934_v27 = vand.u32 2147483647, %v8913_v1 }
 0x4c8   :  { %v3058_v62 = vadd.f32 0.2548296, %v2994_v25  ;;  %v2675_v8 = vadd.f32 -1.4531521, %v2611_v11  ;;  %vm1826_vm5 = vweird.f32 %v7260_v4  ;;  %v3252_v10 = vmul.f32 %v3188_v37, %v8854_v63  ;;  %v8943_v25 = vpop.f32.mrf.mxu2 }
 0x4c9   :  { %v1823_v58 = vmul.f32 %v7260_v4, %v1822_v36  ;;  %v3825_v12 = vmul.f32 %v3761_v46, %v8871_v15  ;;  %7263 = vrcp.f32 %v8931_v30  ;;  %vm1825_vm6 = vweird.f32 %v8873_v31 }
 0x4ca   :  { %v3122_v40 = vmul.f32 %v3058_v62, %v8860_v43  ;;  %v2739_v45 = vmul.f32 %v2675_v8, %v8920_v13  ;;  %7265 = vpow2.f32 %v3326_v55  ;;  %vm1827_vm7 = vmor %vm1825_vm6, %vm1826_vm5  ;;  %v1832_v61 = vor.u32 1.1754944e-38, %v1831_v49  ;;  %v8951_v43 = vpop.f32.mrf.mxu0 }
 0x4cb   :  { %v1824_v19 = vadd.f32 %v7260_v4, %v1823_v58  ;;  %v1526_v33 = vmul.f32 0.3275911, %v8934_v27  ;;  %vm1830_vm8 = vcmp.eq.f32.partialorder %v1829_v59, 8.507059e+37  ;;  %v3328_v37 = vmul.f32 1.442695, %v3252_v10  ;;  %13164 = vst [vmem:[#allocation47_spill] sm:$0xff] %v8951_v43 }
 0x4cc   :  { %v3442_v11 = vmul.f32 %v7262_v21, %v3122_v40  ;;  %v2803_v15 = vadd.f32 1.4214138, %v2739_v45  ;;  %v3189_v62 = vsub.f32 0.0, %v8910_v18  ;;  %v1330_v59 = vmul.f32 0.5, %v8747_v54  ;;  %v1176_v45 = vpop.f32.mrf.mxu3 }
 0x4cd   :  { %v1828_v36 = vsel %vm1827_vm7, %v7260_v4, %v1824_v19  ;;  %v8948_v8 = vadd.f32 1.0, %v1526_v33  ;;  %v911_v4 = vsub.f32 %v8371_v6, %v8943_v25  ;;  %vm3570_vm9 = vcmp.lt.f32.partialorder %v8759_v29, 0.0 }
 0x4ce   :  { %v8945_v63 = vsel %vm1830_vm8, %v1832_v61, %v1828_v36  ;;  %7103 = vmatmul.msk.f32.gmra.mxu0 %vm76_vm0, %v3825_v12  ;;  %v3506_v31 = vsub.f32 1.0, %v3442_v11  ;;  %v2867_v55 = vmul.f32 %v2803_v15, %v8920_v13  ;;  %v1844_v49 = vand.u32 2147483647, %v8931_v30 }
 0x4cf   :  { %v2612_v46 = vmul.f32 1.0614054, %v8945_v63  ;;  %v7264_v21 = vpop.eup %7263  ;;  %7267 = vrcp.f32 %v8948_v8  ;;  %7061 = vmatmul.msk.f32.gmra.mxu3 %vm163_vm2, %v911_v4  ;;  %vm1840_vm10 = vweird.f32 %v8931_v30  ;;  %v1846_v6 = vand.u32 2147483648, %v8931_v30 }
 0x4d0   :  { %v3634_v58 = vsub.f32 0.0, %v3506_v31  ;;  %v2931_v12 = vadd.f32 -0.28449672, %v2867_v55  ;;  %v1836_v40 = vmul.f32 %v7264_v21, %v8931_v30  ;;  %v7266_v19 = vpop.eup %7265  ;;  %7269 = vpow2.f32 %v3328_v37 }
 0x4d1   :  { %v2676_v10 = vadd.f32 -1.4531521, %v2612_v46  ;;  %v3253_v54 = vmul.f32 %v3189_v62, %v8910_v18  ;;  %vm8968_vm11 = vcmp.eq.f32.partialorder %v1844_v49, 8.507059e+37  ;;  %v8973_v55 = vadd.f32 %v8885_v41, %v1173_v60 }
 0x4d2   :  { %v3698_v29 = vsel %vm3570_vm9, %v3634_v58, %v3506_v31  ;;  %v2995_v61 = vmul.f32 %v2931_v12, %v8920_v13  ;;  %v1837_v11 = vsub.f32 1.0, %v1836_v40  ;;  %v8976_v37 = vadd.f32 %v8885_v41, %v1176_v45 }
 0x4d3   :  { %v2740_v33 = vmul.f32 %v2676_v10, %v8945_v63  ;;  %v3762_v15 = vadd.f32 1.0, %v3698_v29  ;;  %vm1841_vm12 = vweird.f32 %v7264_v21  ;;  %vm3571_vm13 = vcmp.lt.f32.partialorder %v8810_v42, 0.0 }
 0x4d4   :  { %v3059_v46 = vadd.f32 0.2548296, %v2995_v61  ;;  %v1838_v18 = vmul.f32 %v7264_v21, %v1837_v11  ;;  %v1859_v58 = vand.u32 2147483647, %v8948_v8  ;;  %v3190_v49 = vsub.f32 0.0, %v8934_v27  ;;  %vm1842_vm14 = vmor %vm1840_vm10, %vm1841_vm12 }
 0x4d5   :  { %v2804_v4 = vadd.f32 1.4214138, %v2740_v33  ;;  %v7268_v62 = vpop.eup %7267  ;;  %v3826_v31 = vmul.f32 %v3762_v15, %v1330_v59  ;;  %v8982_v12 = vmul.f32 0.70710677, %v8973_v55  ;;  %v1847_v59 = vor.u32 1.1754944e-38, %v1846_v6 }
 0x4d6   :  { %v3123_v60 = vmul.f32 %v3059_v46, %v8920_v13  ;;  %v1839_v40 = vadd.f32 %v7264_v21, %v1838_v18  ;;  %v1851_v45 = vmul.f32 %v7268_v62, %v8948_v8  ;;  %v7270_v29 = vpop.eup %7269  ;;  %v1861_v61 = vand.u32 2147483648, %v8948_v8  ;;  %v8997_v13 = vpop.f32.mrf.mxu0 }
 0x4d7   :  { %v2868_v10 = vmul.f32 %v2804_v4, %v8945_v63  ;;  %v8991_v33 = vand.u32 2147483647, %v8982_v12  ;;  %v8994_v11 = vmul.f32 0.70710677, %v8976_v37  ;;  %7104 = vmatmul.msk.f32.gmra.mxu0 %vm76_vm0, %v3826_v31  ;;  %13167 = vst [vmem:[#allocation48_spill] sm:$0xff] %v8997_v13  ;;  %7062 = vmatmul.msk.f32.gmra.mxu3 %vm163_vm2, %v8207_v2  ;;  %vm1856_vm15 = vweird.f32 %v7268_v62 }
 0x4d8   :  { %v3443_v15 = vmul.f32 %v7266_v19, %v3123_v60  ;;  %v1843_v4 = vsel %vm1842_vm14, %v7264_v21, %v1839_v40  ;;  %v1852_v18 = vsub.f32 1.0, %v1851_v45  ;;  %v1179_v60 = vpop.f32.mrf.mxu3  ;;  %vm1855_vm1 = vweird.f32 %v8948_v8 }
 0x4d9   :  { %v2932_v46 = vadd.f32 -0.28449672, %v2868_v10  ;;  %v9003_v30 = vsel %vm8968_vm11, %v1847_v59, %v1843_v4  ;;  %v1527_v6 = vmul.f32 0.3275911, %v8991_v33  ;;  %v9007_v51 = vand.u32 2147483647, %v8994_v11  ;;  %vm1857_vm3 = vmor %vm1855_vm1, %vm1856_vm15 }
 0x4da   :  { %v3507_v31 = vsub.f32 1.0, %v3443_v15  ;;  %v2613_v19 = vmul.f32 1.0614054, %v9003_v30  ;;  %v1853_v21 = vmul.f32 %v7268_v62, %v1852_v18  ;;  %v3330_v10 = vmul.f32 1.442695, %v3253_v54 }
 0x4db   :  { %v2996_v56 = vmul.f32 %v2932_v46, %v8945_v63  ;;  %v3254_v2 = vmul.f32 %v3190_v49, %v8934_v27  ;;  %v9013_v36 = vadd.f32 1.0, %v1527_v6  ;;  %vm1860_vm4 = vcmp.eq.f32.partialorder %v1859_v58, 8.507059e+37 }
 0x4dc   :  { %v3635_v40 = vsub.f32 0.0, %v3507_v31  ;;  %v2677_v59 = vadd.f32 -1.4531521, %v2613_v19  ;;  %v1854_v4 = vadd.f32 %v7268_v62, %v1853_v21  ;;  %v1862_v15 = vor.u32 1.1754944e-38, %v1861_v61 }
 0x4dd   :  { %v3060_v45 = vadd.f32 0.2548296, %v2996_v56  ;;  %7271 = vrcp.f32 %v9013_v36  ;;  %v1528_v46 = vmul.f32 0.3275911, %v9007_v51  ;;  %v1331_v56 = vmul.f32 0.5, %v8798_v26 }
 0x4de   :  { %v3699_v54 = vsel %vm3571_vm13, %v3635_v40, %v3507_v31  ;;  %v2741_v27 = vmul.f32 %v2677_v59, %v9003_v30  ;;  %v1858_v49 = vsel %vm1857_vm3, %v7268_v62, %v1854_v4  ;;  %v1332_v58 = vmul.f32 0.5, %v8823_v34  ;;  %v9032_v62 = vpop.f32.mrf.mxu0 }
 0x4df   :  { %v3124_v8 = vmul.f32 %v3060_v45, %v8945_v63  ;;  %v3763_v18 = vadd.f32 1.0, %v3699_v54  ;;  %v9023_v6 = vsel %vm1860_vm4, %v1862_v15, %v1858_v49  ;;  %7063 = vmatmul.msk.f32.gmra.mxu3 %vm163_vm2, %v8216_v17  ;;  %v3332_v31 = vmul.f32 1.442695, %v3254_v2  ;;  %13168 = vst [vmem:[#allocation49_spill] sm:$0xff] %v9032_v62 }
 0x4e0   :  { %v2805_v19 = vadd.f32 1.4214138, %v2741_v27  ;;  %v2614_v21 = vmul.f32 1.0614054, %v9023_v6  ;;  %v3191_v63 = vsub.f32 0.0, %v8991_v33  ;;  %v9030_v40 = vadd.f32 1.0, %v1528_v46  ;;  %v1182_v46 = vpop.f32.mrf.mxu3 }
 0x4e1   :  { %v3444_v61 = vmul.f32 %v7270_v29, %v3124_v8  ;;  %v3827_v42 = vmul.f32 %v3763_v18, %v1331_v56  ;;  %7273 = vpow2.f32 %v3330_v10  ;;  %vm3572_vm5 = vcmp.lt.f32.partialorder %v8841_v22, 0.0 }
 0x4e2   :  { %v2869_v45 = vmul.f32 %v2805_v19, %v9003_v30  ;;  %v2678_v34 = vadd.f32 -1.4531521, %v2614_v21  ;;  %v9037_v59 = vmul.f32 0.5, %v8888_v3  ;;  %7275 = vrcp.f32 %v9030_v40 }
 0x4e3   :  { %v3508_v26 = vsub.f32 1.0, %v3444_v61  ;;  %v7272_v29 = vpop.eup %7271  ;;  %v9041_v17 = vadd.f32 %v8885_v41, %v1179_v60  ;;  %7105 = vmatmul.msk.f32.gmra.mxu0 %vm76_vm0, %v3827_v42  ;;  %v9047_v54 = vmul.f32 0.5, %v8894_v0  ;;  %7277 = vpow2.f32 %v3332_v31 }
 0x4e4   :  { %v2933_v4 = vadd.f32 -0.28449672, %v2869_v45  ;;  %v2742_v15 = vmul.f32 %v2678_v34, %v9023_v6  ;;  %v1866_v10 = vmul.f32 %v7272_v29, %v9013_v36  ;;  %v1874_v22 = vand.u32 2147483647, %v9013_v36 }
 0x4e5   :  { %v3636_v2 = vsub.f32 0.0, %v3508_v26  ;;  %v3255_v3 = vmul.f32 %v3191_v63, %v8991_v33  ;;  %vm1870_vm6 = vweird.f32 %v9013_v36  ;;  %v1876_v18 = vand.u32 2147483648, %v9013_v36 }
 0x4e6   :  { %v2997_v60 = vmul.f32 %v2933_v4, %v9003_v30  ;;  %v2806_v27 = vadd.f32 1.4214138, %v2742_v15  ;;  %v1867_v49 = vsub.f32 1.0, %v1866_v10  ;;  %v9055_v61 = vmul.f32 0.70710677, %v9041_v17 }
 0x4e7   :  { %v3700_v8 = vsel %vm3572_vm5, %v3636_v2, %v3508_v26  ;;  %v7274_v0 = vpop.eup %7273  ;;  %vm1871_vm7 = vweird.f32 %v7272_v29  ;;  %7064 = vmatmul.msk.f32.gmra.mxu3 %vm163_vm2, %v8225_v20  ;;  %vm9060_vm8 = vcmp.eq.f32.partialorder %v1874_v22, 8.507059e+37  ;;  %v9068_v45 = vadd.f32 %v8885_v41, %v1182_v46  ;;  %v9078_v46 = vpop.f32.mrf.mxu0 }
 0x4e8   :  { %v3764_v56 = vadd.f32 1.0, %v3700_v8  ;;  %v3061_v19 = vadd.f32 0.2548296, %v2997_v60  ;;  %v2870_v21 = vmul.f32 %v2806_v27, %v9023_v6  ;;  %v1868_v42 = vmul.f32 %v7272_v29, %v1867_v49  ;;  %v7276_v33 = vpop.eup %7275  ;;  %vm1872_vm9 = vmor %vm1870_vm6, %vm1871_vm7  ;;  %13171 = vst [vmem:[#allocation50_spill] sm:$0xff] %v9078_v46 }
 0x4e9   :  { %v9065_v26 = vand.u32 2147483647, %v9055_v61  ;;  %v1881_v15 = vmul.f32 %v7276_v33, %v9030_v40  ;;  %v7278_v10 = vpop.eup %7277  ;;  %v1877_v20 = vor.u32 1.1754944e-38, %v1876_v18  ;;  %v1891_v22 = vand.u32 2147483648, %v9030_v40 }
 0x4ea   :  { %v3828_v31 = vmul.f32 %v3764_v56, %v1332_v58  ;;  %v3125_v34 = vmul.f32 %v3061_v19, %v9003_v30  ;;  %v2934_v2 = vadd.f32 -0.28449672, %v2870_v21  ;;  %v1869_v4 = vadd.f32 %v7272_v29, %v1868_v42 }
 0x4eb   :  { %v1889_v58 = vand.u32 2147483647, %v9030_v40  ;;  %v1529_v8 = vmul.f32 0.3275911, %v9065_v26  ;;  %v1882_v49 = vsub.f32 1.0, %v1881_v15  ;;  %vm1886_vm10 = vweird.f32 %v7276_v33 }
 0x4ec   :  { %7106 = vmatmul.msk.f32.gmra.mxu0 %vm76_vm0, %v3828_v31  ;;  %v3445_v30 = vmul.f32 %v7274_v0, %v3125_v34  ;;  %v2998_v60 = vmul.f32 %v2934_v2, %v9023_v6  ;;  %v1873_v27 = vsel %vm1872_vm9, %v7272_v29, %v1869_v4  ;;  %v9088_v18 = vmul.f32 0.70710677, %v9068_v45  ;;  %v1185_v0 = vpop.f32.mrf.mxu3 }
 0x4ed   :  { %v9083_v36 = vsel %vm9060_vm8, %v1877_v20, %v1873_v27  ;;  %v9085_v56 = vadd.f32 1.0, %v1529_v8  ;;  %v1883_v31 = vmul.f32 %v7276_v33, %v1882_v49  ;;  %vm3573_vm11 = vcmp.lt.f32.partialorder %v8905_v5, 0.0 }
 0x4ee   :  { %v3509_v19 = vsub.f32 1.0, %v3445_v30  ;;  %v3062_v21 = vadd.f32 0.2548296, %v2998_v60  ;;  %v2615_v42 = vmul.f32 1.0614054, %v9083_v36  ;;  %vm1885_vm12 = vweird.f32 %v9030_v40 }
 0x4ef   :  { %v3192_v29 = vsub.f32 0.0, %v9007_v51  ;;  %7279 = vrcp.f32 %v9085_v56  ;;  %v1884_v4 = vadd.f32 %v7276_v33, %v1883_v31  ;;  %7065 = vmatmul.msk.f32.gmra.mxu3 %vm163_vm2, %v8234_v23  ;;  %v3334_v15 = vmul.f32 1.442695, %v3255_v3  ;;  %vm1887_vm13 = vmor %vm1885_vm12, %vm1886_vm10 }
 0x4f0   :  { %v3637_v63 = vsub.f32 0.0, %v3509_v19  ;;  %v3126_v34 = vmul.f32 %v3062_v21, %v9023_v6  ;;  %v2679_v2 = vadd.f32 -1.4531521, %v2615_v42  ;;  %vm1890_vm14 = vcmp.eq.f32.partialorder %v1889_v58, 8.507059e+37  ;;  %v9115_v42 = vpop.f32.mrf.mxu0 }
 0x4f1   :  { %v1892_v20 = vor.u32 1.1754944e-38, %v1891_v22  ;;  %v9100_v5 = vand.u32 2147483647, %v9088_v18  ;;  %v1888_v60 = vsel %vm1887_vm13, %v7276_v33, %v1884_v4  ;;  %v3256_v49 = vmul.f32 %v3192_v29, %v9007_v51  ;;  %13172 = vst [vmem:[#allocation51_spill] sm:$0xff] %v9115_v42 }
 0x4f2   :  { %v3701_v40 = vsel %vm3573_vm11, %v3637_v63, %v3509_v19  ;;  %v3446_v8 = vmul.f32 %v7278_v10, %v3126_v34  ;;  %v2743_v30 = vmul.f32 %v2679_v2, %v9083_v36  ;;  %vm3574_vm15 = vcmp.lt.f32.partialorder %v8913_v1, 0.0 }
 0x4f3   :  { %v3765_v27 = vadd.f32 1.0, %v3701_v40  ;;  %v9103_v6 = vsel %vm1890_vm14, %v1892_v20, %v1888_v60  ;;  %v1530_v23 = vmul.f32 0.3275911, %v9100_v5  ;;  %7281 = vpow2.f32 %v3334_v15 }
 0x4f4   :  { %v3510_v3 = vsub.f32 1.0, %v3446_v8  ;;  %v2807_v58 = vadd.f32 1.4214138, %v2743_v30  ;;  %v2616_v22 = vmul.f32 1.0614054, %v9103_v6  ;;  %v9113_v33 = vadd.f32 %v8885_v41, %v1185_v0  ;;  %v1188_v40 = vpop.f32.mrf.mxu3 }
 0x4f5   :  { %v7280_v21 = vpop.eup %7279  ;;  %v3829_v19 = vmul.f32 %v3765_v27, %v9037_v59  ;;  %v9110_v10 = vadd.f32 1.0, %v1530_v23  ;;  %v9120_v34 = vmul.f32 0.5, %v8973_v55  ;;  %v3336_v2 = vmul.f32 1.442695, %v3256_v49 }
 0x4f6   :  { %v3638_v51 = vsub.f32 0.0, %v3510_v3  ;;  %v2871_v31 = vmul.f32 %v2807_v58, %v9083_v36  ;;  %v2680_v29 = vadd.f32 -1.4531521, %v2616_v22  ;;  %v1896_v63 = vmul.f32 %v7280_v21, %v9085_v56 }
 0x4f7   :  { %v3193_v59 = vsub.f32 0.0, %v9065_v26  ;;  %7283 = vrcp.f32 %v9110_v10  ;;  %7107 = vmatmul.msk.f32.gmra.mxu0 %vm76_vm0, %v3829_v19  ;;  %7066 = vmatmul.msk.f32.gmra.mxu3 %vm163_vm2, %v8246_v28  ;;  %vm1901_vm1 = vweird.f32 %v7280_v21  ;;  %v1904_v8 = vand.u32 2147483647, %v9085_v56 }
 0x4f8   :  { %v3702_v0 = vsel %vm3574_vm15, %v3638_v51, %v3510_v3  ;;  %v2935_v4 = vadd.f32 -0.28449672, %v2871_v31  ;;  %v2744_v15 = vmul.f32 %v2680_v29, %v9103_v6  ;;  %v1897_v20 = vsub.f32 1.0, %v1896_v63 }
 0x4f9   :  { %v3766_v55 = vadd.f32 1.0, %v3702_v0  ;;  %v1906_v30 = vand.u32 2147483648, %v9085_v56  ;;  %v9134_v1 = vmul.f32 0.70710677, %v9113_v33  ;;  %v7282_v23 = vpop.eup %7281  ;;  %7285 = vpow2.f32 %v3336_v2 }
 0x4fa   :  { %v2999_v60 = vmul.f32 %v2935_v4, %v9083_v36  ;;  %v2808_v27 = vadd.f32 1.4214138, %v2744_v15  ;;  %v1898_v49 = vmul.f32 %v7280_v21, %v1897_v20  ;;  %vm1900_vm3 = vweird.f32 %v9085_v56 }
 0x4fb   :  { %v3830_v3 = vmul.f32 %v3766_v55, %v9047_v54  ;;  %v9139_v28 = vadd.f32 %v8885_v41, %v1188_v40  ;;  %v9143_v51 = vand.u32 2147483647, %v9134_v1  ;;  %vm1902_vm4 = vmor %vm1900_vm3, %vm1901_vm1  ;;  %vm1905_vm5 = vcmp.eq.f32.partialorder %v1904_v8, 8.507059e+37 }
 0x4fc   :  { %v3063_v58 = vadd.f32 0.2548296, %v2999_v60  ;;  %v2872_v22 = vmul.f32 %v2808_v27, %v9103_v6  ;;  %v1899_v19 = vadd.f32 %v7280_v21, %v1898_v49  ;;  %v1907_v29 = vor.u32 1.1754944e-38, %v1906_v30 }
 0x4fd   :  { %v7284_v31 = vpop.eup %7283  ;;  %v3257_v54 = vmul.f32 %v3193_v59, %v9065_v26  ;;  %v9148_v63 = vmul.f32 0.70710677, %v9139_v28  ;;  %v1919_v20 = vand.u32 2147483647, %v9110_v10  ;;  %v3194_v40 = vsub.f32 0.0, %v9100_v5  ;;  %v9158_v26 = vpop.f32.mrf.mxu0 }
 0x4fe   :  { %v3127_v56 = vmul.f32 %v3063_v58, %v9083_v36  ;;  %v2936_v2 = vadd.f32 -0.28449672, %v2872_v22  ;;  %v1903_v0 = vsel %vm1902_vm4, %v7280_v21, %v1899_v19  ;;  %v1911_v4 = vmul.f32 %v7284_v31, %v9110_v10  ;;  %13173 = vst [vmem:[#allocation52_spill] sm:$0xff] %v9158_v26  ;;  %v1191_v19 = vpop.f32.mrf.mxu3 }
 0x4ff   :  { %v9152_v15 = vsel %vm1905_vm5, %v1907_v29, %v1903_v0  ;;  %v1531_v55 = vmul.f32 0.3275911, %v9143_v51  ;;  %7108 = vmatmul.msk.f32.gmra.mxu0 %vm76_vm0, %v3830_v3  ;;  %7067 = vmatmul.msk.f32.gmra.mxu3 %vm163_vm2, %v8258_v32  ;;  %v7286_v30 = vpop.eup %7285  ;;  %vm1916_vm6 = vweird.f32 %v7284_v31  ;;  %v1921_v60 = vand.u32 2147483648, %v9110_v10 }
 0x500   :  { %v3447_v59 = vmul.f32 %v7282_v23, %v3127_v56  ;;  %v3000_v8 = vmul.f32 %v2936_v2, %v9103_v6  ;;  %v2617_v36 = vmul.f32 1.0614054, %v9152_v15  ;;  %v1912_v21 = vsub.f32 1.0, %v1911_v4 }
 0x501   :  { %v9165_v27 = vadd.f32 1.0, %v1531_v55  ;;  %v9168_v49 = vand.u32 2147483647, %v9148_v63  ;;  %v3338_v29 = vmul.f32 1.442695, %v3257_v54  ;;  %vm1915_vm7 = vweird.f32 %v9110_v10 }
 0x502   :  { %v3511_v3 = vsub.f32 1.0, %v3447_v59  ;;  %v3064_v58 = vadd.f32 0.2548296, %v3000_v8  ;;  %v2681_v23 = vadd.f32 -1.4531521, %v2617_v36  ;;  %v1913_v22 = vmul.f32 %v7284_v31, %v1912_v21  ;;  %vm1917_vm9 = vmor %vm1915_vm7, %vm1916_vm6 }
 0x503   :  { %v3258_v56 = vmul.f32 %v3194_v40, %v9100_v5  ;;  %7287 = vrcp.f32 %v9165_v27  ;;  %vm3575_vm8 = vcmp.lt.f32.partialorder %v8982_v12, 0.0  ;;  %vm1920_vm10 = vcmp.eq.f32.partialorder %v1919_v20, 8.507059e+37 }
 0x504   :  { %v3639_v32 = vsub.f32 0.0, %v3511_v3  ;;  %v3128_v2 = vmul.f32 %v3064_v58, %v9103_v6  ;;  %v2745_v0 = vmul.f32 %v2681_v23, %v9152_v15  ;;  %v1914_v4 = vadd.f32 %v7284_v31, %v1913_v22 }
 0x505   :  { %v1922_v55 = vor.u32 1.1754944e-38, %v1921_v60  ;;  %v1532_v54 = vmul.f32 0.3275911, %v9168_v49  ;;  %v3340_v21 = vmul.f32 1.442695, %v3258_v56  ;;  %7289 = vpow2.f32 %v3338_v29  ;;  %v9190_v60 = vpop.f32.mrf.mxu0 }
 0x506   :  { %v3703_v59 = vsel %vm3575_vm8, %v3639_v32, %v3511_v3  ;;  %v3448_v10 = vmul.f32 %v7286_v30, %v3128_v2  ;;  %v2809_v8 = vadd.f32 1.4214138, %v2745_v0  ;;  %v1918_v5 = vsel %vm1917_vm9, %v7284_v31, %v1914_v4  ;;  %13174 = vst [vmem:[#allocation53_spill] sm:$0xff] %v9190_v60  ;;  %v1194_v4 = vpop.f32.mrf.mxu3 }
 0x507   :  { %v3767_v40 = vadd.f32 1.0, %v3703_v59  ;;  %v9178_v36 = vsel %vm1920_vm10, %v1922_v55, %v1918_v5  ;;  %v9180_v6 = vadd.f32 1.0, %v1532_v54  ;;  %7068 = vmatmul.msk.f32.gmra.mxu3 %vm163_vm2, %v8270_v35  ;;  %v1336_v31 = vmul.f32 0.5, %v8976_v37 }
 0x508   :  { %v3512_v58 = vsub.f32 1.0, %v3448_v10  ;;  %v2873_v23 = vmul.f32 %v2809_v8, %v9152_v15  ;;  %v2618_v12 = vmul.f32 1.0614054, %v9178_v36  ;;  %vm3576_vm11 = vcmp.lt.f32.partialorder %v8994_v11, 0.0 }
 0x509   :  { %v7288_v20 = vpop.eup %7287  ;;  %v3831_v30 = vmul.f32 %v3767_v40, %v9120_v34  ;;  %7291 = vrcp.f32 %v9180_v6  ;;  %v9194_v32 = vmul.f32 0.5, %v9041_v17  ;;  %v1934_v35 = vand.u32 2147483647, %v9165_v27 }
 0x50a   :  { %v3640_v3 = vsub.f32 0.0, %v3512_v58  ;;  %v2937_v22 = vadd.f32 -0.28449672, %v2873_v23  ;;  %v2682_v56 = vadd.f32 -1.4531521, %v2618_v12  ;;  %v1926_v29 = vmul.f32 %v7288_v20, %v9165_v27 }
 0x50b   :  { %7293 = vpow2.f32 %v3340_v21  ;;  %v3195_v34 = vsub.f32 0.0, %v9143_v51  ;;  %7109 = vmatmul.msk.f32.gmra.mxu0 %vm76_vm0, %v3831_v30  ;;  %vm1930_vm12 = vweird.f32 %v9165_v27  ;;  %v1936_v17 = vand.u32 2147483648, %v9165_v27  ;;  %v7290_v59 = vpop.eup %7289 }
 0x50c   :  { %v3704_v37 = vsel %vm3576_vm11, %v3640_v3, %v3512_v58  ;;  %v3001_v11 = vmul.f32 %v2937_v22, %v9152_v15  ;;  %v2746_v2 = vmul.f32 %v2682_v56, %v9178_v36  ;;  %v1927_v0 = vsub.f32 1.0, %v1926_v29 }
 0x50d   :  { %v3768_v55 = vadd.f32 1.0, %v3704_v37  ;;  %v9204_v54 = vadd.f32 %v8885_v41, %v1191_v19  ;;  %vm1931_vm13 = vweird.f32 %v7288_v20  ;;  %vm9206_vm14 = vcmp.eq.f32.partialorder %v1934_v35, 8.507059e+37 }
 0x50e   :  { %v3065_v10 = vadd.f32 0.2548296, %v3001_v11  ;;  %v2810_v8 = vadd.f32 1.4214138, %v2746_v2  ;;  %v1928_v5 = vmul.f32 %v7288_v20, %v1927_v0  ;;  %v9214_v12 = vadd.f32 %v8885_v41, %v1194_v4  ;;  %vm1932_vm15 = vmor %vm1930_vm12, %vm1931_vm13 }
 0x50f   :  { %v7292_v40 = vpop.eup %7291  ;;  %v3832_v21 = vmul.f32 %v3768_v55, %v1336_v31  ;;  %v9211_v23 = vmul.f32 0.70710677, %v9204_v54  ;;  %7069 = vmatmul.msk.f32.gmra.mxu3 %vm163_vm2, %v8283_v39  ;;  %v1937_v56 = vor.u32 1.1754944e-38, %v1936_v17  ;;  %v1949_v29 = vand.u32 2147483647, %v9180_v6  ;;  %v9237_v55 = vpop.f32.mrf.mxu0 }
 0x510   :  { %v3129_v19 = vmul.f32 %v3065_v10, %v9152_v15  ;;  %v2874_v30 = vmul.f32 %v2810_v8, %v9178_v36  ;;  %v1929_v3 = vadd.f32 %v7288_v20, %v1928_v5  ;;  %v1941_v22 = vmul.f32 %v7292_v40, %v9180_v6 }
 0x511   :  { %v7294_v31 = vpop.eup %7293  ;;  %v1951_v35 = vand.u32 2147483648, %v9180_v6  ;;  %v9226_v37 = vand.u32 2147483647, %v9211_v23  ;;  %vm1946_vm1 = vweird.f32 %v7292_v40  ;;  %v9234_v27 = vmul.f32 0.70710677, %v9214_v12 }
 0x512   :  { %v3449_v15 = vmul.f32 %v7290_v59, %v3129_v19  ;;  %v2938_v11 = vadd.f32 -0.28449672, %v2874_v30  ;;  %v1933_v2 = vsel %vm1932_vm15, %v7288_v20, %v1929_v3  ;;  %v1942_v0 = vsub.f32 1.0, %v1941_v22 }
 0x513   :  { %v9230_v4 = vsel %vm9206_vm14, %v1937_v56, %v1933_v2  ;;  %v1533_v39 = vmul.f32 0.3275911, %v9226_v37  ;;  %7110 = vmatmul.msk.f32.gmra.mxu0 %vm76_vm0, %v3832_v21  ;;  %vm3577_vm3 = vcmp.lt.f32.partialorder %v9055_v61, 0.0  ;;  %v3259_v8 = vmul.f32 %v3195_v34, %v9143_v51  ;;  %v1197_v56 = vpop.f32.mrf.mxu3 }
 0x514   :  { %v3513_v17 = vsub.f32 1.0, %v3449_v15  ;;  %v3002_v59 = vmul.f32 %v2938_v11, %v9178_v36  ;;  %v2619_v20 = vmul.f32 1.0614054, %v9230_v4  ;;  %v1943_v10 = vmul.f32 %v7292_v40, %v1942_v0 }
 0x515   :  { %vm1945_vm4 = vweird.f32 %v9180_v6  ;;  %v9244_v5 = vadd.f32 1.0, %v1533_v39  ;;  %vm1950_vm6 = vcmp.eq.f32.partialorder %v1949_v29, 8.507059e+37  ;;  %v1952_v3 = vor.u32 1.1754944e-38, %v1951_v35 }
 0x516   :  { %v3641_v58 = vsub.f32 0.0, %v3513_v17  ;;  %v3066_v19 = vadd.f32 0.2548296, %v3002_v59  ;;  %v2683_v30 = vadd.f32 -1.4531521, %v2619_v20  ;;  %v1944_v21 = vadd.f32 %v7292_v40, %v1943_v10  ;;  %vm1947_vm5 = vmor %vm1945_vm4, %vm1946_vm1 }
 0x517   :  { %7295 = vrcp.f32 %v9244_v5  ;;  %v9249_v22 = vand.u32 2147483647, %v9234_v27  ;;  %7070 = vmatmul.msk.f32.gmra.mxu3 %vm163_vm2, %v8296_v44  ;;  %v3342_v11 = vmul.f32 1.442695, %v3259_v8  ;;  %v3196_v29 = vsub.f32 0.0, %v9168_v49 }
 0x518   :  { %v3705_v61 = vsel %vm3577_vm3, %v3641_v58, %v3513_v17  ;;  %v3130_v51 = vmul.f32 %v3066_v19, %v9178_v36  ;;  %v2747_v6 = vmul.f32 %v2683_v30, %v9230_v4  ;;  %v1948_v34 = vsel %vm1947_vm5, %v7292_v40, %v1944_v21 }
 0x519   :  { %v3769_v15 = vadd.f32 1.0, %v3705_v61  ;;  %v9255_v2 = vsel %vm1950_vm6, %v1952_v3, %v1948_v34  ;;  %v1534_v36 = vmul.f32 0.3275911, %v9249_v22  ;;  %7297 = vpow2.f32 %v3342_v11 }
 0x51a   :  { %v3450_v35 = vmul.f32 %v7294_v31, %v3130_v51  ;;  %v2811_v0 = vadd.f32 1.4214138, %v2747_v6  ;;  %v2620_v39 = vmul.f32 1.0614054, %v9255_v2  ;;  %v3260_v44 = vmul.f32 %v3196_v29, %v9168_v49  ;;  %v9266_v31 = vpop.f32.mrf.mxu0 }
 0x51b   :  { %v3833_v17 = vmul.f32 %v3769_v15, %v9194_v32  ;;  %v9263_v8 = vadd.f32 1.0, %v1534_v36  ;;  %v1338_v21 = vmul.f32 0.5, %v9068_v45  ;;  %vm3578_vm7 = vcmp.lt.f32.partialorder %v9088_v18, 0.0 }
 0x51c   :  { %v3514_v59 = vsub.f32 1.0, %v3450_v35  ;;  %v2875_v40 = vmul.f32 %v2811_v0, %v9230_v4  ;;  %v2684_v20 = vadd.f32 -1.4531521, %v2620_v39  ;;  %v9274_v49 = vadd.f32 %v8885_v41, %v1197_v56  ;;  %v1200_v56 = vpop.f32.mrf.mxu3 }
 0x51d   :  { %v7296_v10 = vpop.eup %7295  ;;  %7111 = vmatmul.msk.f32.gmra.mxu0 %vm76_vm0, %v3833_v17  ;;  %7299 = vrcp.f32 %v9263_v8  ;;  %v3344_v15 = vmul.f32 1.442695, %v3260_v44  ;;  %v1964_v11 = vand.u32 2147483647, %v9244_v5  ;;  %v1966_v45 = vand.u32 2147483648, %v9244_v5 }
 0x51e   :  { %v3642_v58 = vsub.f32 0.0, %v3514_v59  ;;  %v2939_v19 = vadd.f32 -0.28449672, %v2875_v40  ;;  %v2748_v32 = vmul.f32 %v2684_v20, %v9255_v2  ;;  %v1956_v30 = vmul.f32 %v7296_v10, %v9244_v5 }
 0x51f   :  { %7071 = vmatmul.msk.f32.gmra.mxu3 %vm163_vm2, %v8309_v48  ;;  %vm1961_vm8 = vweird.f32 %v7296_v10  ;;  %v7298_v0 = vpop.eup %7297  ;;  %v9283_v17 = vmul.f32 0.70710677, %v9274_v49  ;;  %vm1960_vm9 = vweird.f32 %v9244_v5  ;;  %7301 = vpow2.f32 %v3344_v15 }
 0x520   :  { %v3706_v3 = vsel %vm3578_vm7, %v3642_v58, %v3514_v59  ;;  %v3003_v61 = vmul.f32 %v2939_v19, %v9230_v4  ;;  %v2812_v51 = vadd.f32 1.4214138, %v2748_v32  ;;  %v1957_v6 = vsub.f32 1.0, %v1956_v30  ;;  %vm1962_vm10 = vmor %vm1960_vm9, %vm1961_vm8 }
 0x521   :  { %v3770_v34 = vadd.f32 1.0, %v3706_v3  ;;  %vm1965_vm11 = vcmp.eq.f32.partialorder %v1964_v11, 8.507059e+37  ;;  %v1967_v20 = vor.u32 1.1754944e-38, %v1966_v45  ;;  %v9288_v44 = vand.u32 2147483647, %v9283_v17 }
 0x522   :  { %v3067_v18 = vadd.f32 0.2548296, %v3003_v61  ;;  %v2876_v29 = vmul.f32 %v2812_v51, %v9255_v2  ;;  %v1958_v35 = vmul.f32 %v7296_v10, %v1957_v6  ;;  %v3197_v5 = vsub.f32 0.0, %v9226_v37  ;;  %v9298_v61 = vpop.f32.mrf.mxu0 }
 0x523   :  { %v3834_v39 = vmul.f32 %v3770_v34, %v1338_v21  ;;  %v7300_v40 = vpop.eup %7299  ;;  %v1979_v21 = vand.u32 2147483647, %v9263_v8  ;;  %v1535_v3 = vmul.f32 0.3275911, %v9288_v44  ;;  %v9307_v45 = vadd.f32 %v8885_v41, %v1200_v56 }
 0x524   :  { %v3131_v36 = vmul.f32 %v3067_v18, %v9230_v4  ;;  %v2940_v48 = vadd.f32 -0.28449672, %v2876_v29  ;;  %v1959_v59 = vadd.f32 %v7296_v10, %v1958_v35  ;;  %v1971_v4 = vmul.f32 %v7300_v40, %v9263_v8  ;;  %v1203_v56 = vpop.f32.mrf.mxu3 }
 0x525   :  { %7112 = vmatmul.msk.f32.gmra.mxu0 %vm76_vm0, %v3834_v39  ;;  %vm1976_vm12 = vweird.f32 %v7300_v40  ;;  %v9304_v11 = vadd.f32 1.0, %v1535_v3  ;;  %v7302_v39 = vpop.eup %7301  ;;  %vm3579_vm13 = vcmp.lt.f32.partialorder %v9134_v1, 0.0  ;;  %vm1975_vm14 = vweird.f32 %v9263_v8 }
 0x526   :  { %v3451_v58 = vmul.f32 %v7298_v0, %v3131_v36  ;;  %v3004_v19 = vmul.f32 %v2940_v48, %v9255_v2  ;;  %v1963_v32 = vsel %vm1962_vm10, %v7296_v10, %v1959_v59  ;;  %v1972_v15 = vsub.f32 1.0, %v1971_v4  ;;  %vm1977_vm15 = vmor %vm1975_vm14, %vm1976_vm12 }
 0x527   :  { %v9293_v30 = vsel %vm1965_vm11, %v1967_v20, %v1963_v32  ;;  %7072 = vmatmul.msk.f32.gmra.mxu3 %vm163_vm2, %v8322_v53  ;;  %v1981_v10 = vand.u32 2147483648, %v9263_v8  ;;  %v3261_v36 = vmul.f32 %v3197_v5, %v9226_v37  ;;  %7303 = vrcp.f32 %v9304_v11 }
 0x528   :  { %v3515_v51 = vsub.f32 1.0, %v3451_v58  ;;  %v3068_v6 = vadd.f32 0.2548296, %v3004_v19  ;;  %v2621_v34 = vmul.f32 1.0614054, %v9293_v30  ;;  %v1973_v0 = vmul.f32 %v7300_v40, %v1972_v15 }
 0x529   :  { %v1339_v20 = vmul.f32 0.5, %v9113_v33  ;;  %vm1980_vm1 = vcmp.eq.f32.partialorder %v1979_v21, 8.507059e+37  ;;  %v1982_v58 = vor.u32 1.1754944e-38, %v1981_v10  ;;  %v9318_v8 = vmul.f32 0.70710677, %v9307_v45 }
 0x52a   :  { %v3643_v18 = vsub.f32 0.0, %v3515_v51  ;;  %v3132_v29 = vmul.f32 %v3068_v6, %v9255_v2  ;;  %v2685_v35 = vadd.f32 -1.4531521, %v2621_v34  ;;  %v1974_v41 = vadd.f32 %v7300_v40, %v1973_v0  ;;  %v9335_v15 = vld [vmem:[%s12997_s9] ss:$0 sm:$0xff] }
 0x52b   :  { %v3346_v4 = vmul.f32 1.442695, %v3261_v36  ;;  %v3198_v3 = vsub.f32 0.0, %v9249_v22  ;;  %v9326_v21 = vand.u32 2147483647, %v9318_v8  ;;  %v1340_v34 = vmul.f32 0.5, %v9139_v28 }
 0x52c   :  { %v3707_v53 = vsel %vm3579_vm13, %v3643_v18, %v3515_v51  ;;  %v3452_v48 = vmul.f32 %v7302_v39, %v3132_v29  ;;  %v2749_v59 = vmul.f32 %v2685_v35, %v9293_v30  ;;  %v1978_v37 = vsel %vm1977_vm15, %v7300_v40, %v1974_v41  ;;  %v9341_v18 = vpop.f32.mrf.mxu0 }
 0x52d   :  { %v3771_v2 = vadd.f32 1.0, %v3707_v53  ;;  %v9320_v5 = vsel %vm1980_vm1, %v1982_v58, %v1978_v37  ;;  %v7304_v40 = vpop.eup %7303  ;;  %vm3580_vm3 = vcmp.lt.f32.partialorder %v9148_v63, 0.0  ;;  %v9338_v10 = vadd.f32 %v9335_v15, %v1203_v56 }
 0x52e   :  { %v3516_v1 = vsub.f32 1.0, %v3452_v48  ;;  %v2813_v19 = vadd.f32 1.4214138, %v2749_v59  ;;  %v2622_v6 = vmul.f32 1.0614054, %v9320_v5  ;;  %v1986_v0 = vmul.f32 %v7304_v40, %v9304_v11 }
 0x52f   :  { %v3835_v32 = vmul.f32 %v3771_v2, %v1339_v20  ;;  %7073 = vmatmul.msk.f32.gmra.mxu3 %vm163_vm2, %v8335_v57  ;;  %7305 = vpow2.f32 %v3346_v4  ;;  %v3262_v63 = vmul.f32 %v3198_v3, %v9249_v22  ;;  %v1536_v39 = vmul.f32 0.3275911, %v9326_v21 }
 0x530   :  { %v3644_v51 = vsub.f32 0.0, %v3516_v1  ;;  %v2877_v33 = vmul.f32 %v2813_v19, %v9293_v30  ;;  %v2686_v57 = vadd.f32 -1.4531521, %v2622_v6  ;;  %v1987_v48 = vsub.f32 1.0, %v1986_v0  ;;  %v1206_v19 = vpop.f32.mrf.mxu3 }
 0x531   :  { %7113 = vmatmul.msk.f32.gmra.mxu0 %vm76_vm0, %v3835_v32  ;;  %v1994_v59 = vand.u32 2147483647, %v9304_v11  ;;  %v1996_v56 = vand.u32 2147483648, %v9304_v11  ;;  %v9350_v20 = vadd.f32 1.0, %v1536_v39  ;;  %v9353_v2 = vmul.f32 0.70710677, %v9338_v10 }
 0x532   :  { %v3708_v29 = vsel %vm3580_vm3, %v3644_v51, %v3516_v1  ;;  %v2941_v35 = vadd.f32 -0.28449672, %v2877_v33  ;;  %v2750_v53 = vmul.f32 %v2686_v57, %v9320_v5  ;;  %v1988_v22 = vmul.f32 %v7304_v40, %v1987_v48  ;;  %v13177_v33 = vld [vmem:[#allocation18_spill] sm:$0xff] }
 0x533   :  { %v3772_v28 = vadd.f32 1.0, %v3708_v29  ;;  %vm1991_vm4 = vweird.f32 %v7304_v40  ;;  %v3348_v37 = vmul.f32 1.442695, %v3262_v63  ;;  %v3199_v32 = vsub.f32 0.0, %v9288_v44 }
 0x534   :  { %v3005_v36 = vmul.f32 %v2941_v35, %v9293_v30  ;;  %v2814_v1 = vadd.f32 1.4214138, %v2750_v53  ;;  %7307 = vrcp.f32 %v9350_v20  ;;  %v1989_v51 = vadd.f32 %v7304_v40, %v1988_v22  ;;  %v9373_v39 = vpop.f32.mrf.mxu0 }
 0x535   :  { %v3836_v41 = vmul.f32 %v3772_v28, %v1340_v34  ;;  %vm1990_vm5 = vweird.f32 %v9304_v11  ;;  %v7306_v6 = vpop.eup %7305  ;;  %v1997_v34 = vor.u32 1.1754944e-38, %v1996_v56  ;;  %v9363_v29 = vand.u32 2147483647, %v9353_v2 }
 0x536   :  { %v3069_v58 = vadd.f32 0.2548296, %v3005_v36  ;;  %v2878_v3 = vmul.f32 %v2814_v1, %v9320_v5  ;;  %vm1992_vm6 = vmor %vm1990_vm5, %vm1991_vm4  ;;  %v9366_v35 = vadd.f32 %v9335_v15, %v1206_v19  ;;  %vm1995_vm7 = vcmp.eq.f32.partialorder %v1994_v59, 8.507059e+37 }
 0x537   :  { %7074 = vmatmul.msk.f32.gmra.mxu3 %vm163_vm2, %v13177_v33  ;;  %v1993_v0 = vsel %vm1992_vm6, %v7304_v40, %v1989_v51  ;;  %7309 = vpow2.f32 %v3348_v37  ;;  %v3263_v28 = vmul.f32 %v3199_v32, %v9288_v44  ;;  %v1537_v63 = vmul.f32 0.3275911, %v9363_v29  ;;  %v13178_v33 = vld [vmem:[#allocation20_spill] sm:$0xff] }
 0x538   :  { %v3133_v4 = vmul.f32 %v3069_v58, %v9293_v30  ;;  %v2942_v57 = vadd.f32 -0.28449672, %v2878_v3  ;;  %v9369_v11 = vsel %vm1995_vm7, %v1997_v34, %v1993_v0  ;;  %v9381_v40 = vmul.f32 0.70710677, %v9366_v35  ;;  %v1209_v51 = vpop.f32.mrf.mxu3 }
 0x539   :  { %7114 = vmatmul.msk.f32.gmra.mxu0 %vm76_vm0, %v3836_v41  ;;  %v2623_v48 = vmul.f32 1.0614054, %v9369_v11  ;;  %v1341_v41 = vmul.f32 0.5, %v9204_v54  ;;  %v9378_v58 = vadd.f32 1.0, %v1537_v63  ;;  %vm3581_vm8 = vcmp.lt.f32.partialorder %v9211_v23, 0.0 }
 0x53a   :  { %v3453_v30 = vmul.f32 %v7306_v6, %v3133_v4  ;;  %v3006_v53 = vmul.f32 %v2942_v57, %v9320_v5  ;;  %v7308_v56 = vpop.eup %7307  ;;  %v1342_v19 = vmul.f32 0.5, %v9214_v12  ;;  %v3350_v37 = vmul.f32 1.442695, %v3263_v28 }
 0x53b   :  { %v2687_v44 = vadd.f32 -1.4531521, %v2623_v48  ;;  %v2001_v22 = vmul.f32 %v7308_v56, %v9350_v20  ;;  %7311 = vrcp.f32 %v9378_v58  ;;  %vm2006_vm9 = vweird.f32 %v7308_v56 }
 0x53c   :  { %v3517_v36 = vsub.f32 1.0, %v3453_v30  ;;  %v3070_v1 = vadd.f32 0.2548296, %v3006_v53  ;;  %v2009_v23 = vand.u32 2147483647, %v9350_v20  ;;  %v2011_v12 = vand.u32 2147483648, %v9350_v20 }
 0x53d   :  { %v2751_v4 = vmul.f32 %v2687_v44, %v9369_v11  ;;  %v2002_v3 = vsub.f32 1.0, %v2001_v22  ;;  %v7310_v6 = vpop.eup %7309  ;;  %v9394_v28 = vand.u32 2147483647, %v9381_v40  ;;  %vm2005_vm10 = vweird.f32 %v9350_v20  ;;  %v9406_v20 = vpop.f32.mrf.mxu0 }
 0x53e   :  { %v3645_v59 = vsub.f32 0.0, %v3517_v36  ;;  %v3134_v54 = vmul.f32 %v3070_v1, %v9320_v5  ;;  %v3200_v63 = vsub.f32 0.0, %v9326_v21  ;;  %vm3582_vm11 = vcmp.lt.f32.partialorder %v9234_v27, 0.0  ;;  %vm2007_vm12 = vmor %vm2005_vm10, %vm2006_vm9 }
 0x53f   :  { %7075 = vmatmul.msk.f32.gmra.mxu3 %vm163_vm2, %v13178_v33  ;;  %v2815_v57 = vadd.f32 1.4214138, %v2751_v4  ;;  %v2003_v0 = vmul.f32 %v7308_v56, %v2002_v3  ;;  %v1538_v1 = vmul.f32 0.3275911, %v9394_v28  ;;  %7313 = vpow2.f32 %v3350_v37 }
 0x540   :  { %v3709_v32 = vsel %vm3581_vm8, %v3645_v59, %v3517_v36  ;;  %v3454_v30 = vmul.f32 %v7310_v6, %v3134_v54  ;;  %v9399_v36 = vadd.f32 %v9335_v15, %v1209_v51  ;;  %vm2010_vm13 = vcmp.eq.f32.partialorder %v2009_v23, 8.507059e+37 }
 0x541   :  { %v3773_v34 = vadd.f32 1.0, %v3709_v32  ;;  %v2879_v48 = vmul.f32 %v2815_v57, %v9369_v11  ;;  %v2004_v59 = vadd.f32 %v7308_v56, %v2003_v0  ;;  %v7312_v44 = vpop.eup %7311  ;;  %v3264_v51 = vmul.f32 %v3200_v63, %v9326_v21 }
 0x542   :  { %v3518_v53 = vsub.f32 1.0, %v3454_v30  ;;  %v2016_v4 = vmul.f32 %v7312_v44, %v9378_v58  ;;  %v9412_v33 = vadd.f32 1.0, %v1538_v1  ;;  %v9415_v27 = vmul.f32 0.70710677, %v9399_v36 }
 0x543   :  { %v3837_v5 = vmul.f32 %v3773_v34, %v1341_v41  ;;  %v2012_v41 = vor.u32 1.1754944e-38, %v2011_v12  ;;  %v2943_v32 = vadd.f32 -0.28449672, %v2879_v48  ;;  %v2008_v54 = vsel %vm2007_vm12, %v7308_v56, %v2004_v59  ;;  %v13179_v12 = vld [vmem:[#allocation22_spill] sm:$0xff] }
 0x544   :  { %v3646_v22 = vsub.f32 0.0, %v3518_v53  ;;  %v2017_v23 = vsub.f32 1.0, %v2016_v4  ;;  %v2024_v30 = vand.u32 2147483647, %v9378_v58  ;;  %v2026_v57 = vand.u32 2147483648, %v9378_v58 }
 0x545   :  { %7115 = vmatmul.msk.f32.gmra.mxu0 %vm76_vm0, %v3837_v5  ;;  %v9409_v3 = vsel %vm2010_vm13, %v2012_v41, %v2008_v54  ;;  %v3007_v6 = vmul.f32 %v2943_v32, %v9369_v11  ;;  %7315 = vrcp.f32 %v9412_v33  ;;  %vm2021_vm14 = vweird.f32 %v7312_v44  ;;  %v7314_v63 = vpop.eup %7313  ;;  %v1212_v54 = vpop.f32.mrf.mxu3 }
 0x546   :  { %v3710_v37 = vsel %vm3582_vm11, %v3646_v22, %v3518_v53  ;;  %v2624_v34 = vmul.f32 1.0614054, %v9409_v3  ;;  %v2018_v5 = vmul.f32 %v7312_v44, %v2017_v23  ;;  %v3352_v48 = vmul.f32 1.442695, %v3264_v51 }
 0x547   :  { %7076 = vmatmul.msk.f32.gmra.mxu3 %vm163_vm2, %v13179_v12  ;;  %v3774_v56 = vadd.f32 1.0, %v3710_v37  ;;  %v3071_v21 = vadd.f32 0.2548296, %v3007_v6  ;;  %v3201_v59 = vsub.f32 0.0, %v9363_v29  ;;  %v9426_v1 = vand.u32 2147483647, %v9415_v27 }
 0x548   :  { %v2688_v0 = vadd.f32 -1.4531521, %v2624_v34  ;;  %v2019_v32 = vadd.f32 %v7312_v44, %v2018_v5  ;;  %vm2020_vm15 = vweird.f32 %v9378_v58  ;;  %v2027_v4 = vor.u32 1.1754944e-38, %v2026_v57  ;;  %v9438_v58 = vpop.f32.mrf.mxu0  ;;  %v13180_v5 = vld [vmem:[#allocation24_spill] sm:$0xff] }
 0x549   :  { %v3838_v53 = vmul.f32 %v3774_v56, %v1342_v19  ;;  %v3135_v41 = vmul.f32 %v3071_v21, %v9369_v11  ;;  %vm2022_vm1 = vmor %vm2020_vm15, %vm2021_vm14  ;;  %v1539_v37 = vmul.f32 0.3275911, %v9426_v1  ;;  %vm2025_vm3 = vcmp.eq.f32.partialorder %v2024_v30, 8.507059e+37 }
 0x54a   :  { %v2752_v22 = vmul.f32 %v2688_v0, %v9409_v3  ;;  %v2023_v6 = vsel %vm2022_vm1, %v7312_v44, %v2019_v32  ;;  %7317 = vpow2.f32 %v3352_v48  ;;  %v3265_v11 = vmul.f32 %v3201_v59, %v9363_v29 }
 0x54b   :  { %v3455_v19 = vmul.f32 %v7314_v63, %v3135_v41  ;;  %v7316_v34 = vpop.eup %7315  ;;  %v9433_v23 = vsel %vm2025_vm3, %v2027_v4, %v2023_v6  ;;  %v9436_v12 = vadd.f32 1.0, %v1539_v37  ;;  %vm3583_vm4 = vcmp.lt.f32.partialorder %v9283_v17, 0.0 }
 0x54c   :  { %v2816_v51 = vadd.f32 1.4214138, %v2752_v22  ;;  %v2625_v21 = vmul.f32 1.0614054, %v9433_v23  ;;  %v2031_v0 = vmul.f32 %v7316_v34, %v9412_v33  ;;  %v9448_v29 = vadd.f32 %v9335_v15, %v1212_v54 }
 0x54d   :  { %7116 = vmatmul.msk.f32.gmra.mxu0 %vm76_vm0, %v3838_v53  ;;  %v3519_v56 = vsub.f32 1.0, %v3455_v19  ;;  %7319 = vrcp.f32 %v9436_v12  ;;  %v3354_v48 = vmul.f32 1.442695, %v3265_v11  ;;  %vm2036_vm5 = vweird.f32 %v7316_v34 }
 0x54e   :  { %v2880_v57 = vmul.f32 %v2816_v51, %v9409_v3  ;;  %v2689_v63 = vadd.f32 -1.4531521, %v2625_v21  ;;  %v2032_v53 = vsub.f32 1.0, %v2031_v0  ;;  %v2039_v59 = vand.u32 2147483647, %v9412_v33  ;;  %v1215_v21 = vpop.f32.mrf.mxu3 }
 0x54f   :  { %7077 = vmatmul.msk.f32.gmra.mxu3 %vm163_vm2, %v13180_v5  ;;  %v3647_v44 = vsub.f32 0.0, %v3519_v56  ;;  %v2041_v41 = vand.u32 2147483648, %v9412_v33  ;;  %v1343_v54 = vmul.f32 0.5, %v9274_v49  ;;  %vm2035_vm6 = vweird.f32 %v9412_v33 }
 0x550   :  { %v2944_v30 = vadd.f32 -0.28449672, %v2880_v57  ;;  %v2753_v17 = vmul.f32 %v2689_v63, %v9433_v23  ;;  %v2033_v4 = vmul.f32 %v7316_v34, %v2032_v53  ;;  %v7318_v37 = vpop.eup %7317  ;;  %v9457_v57 = vmul.f32 0.70710677, %v9448_v29  ;;  %vm2037_vm8 = vmor %vm2035_vm6, %vm2036_vm5  ;;  %v13181_v63 = vld [vmem:[#allocation26_spill] sm:$0xff] }
 0x551   :  { %v3711_v22 = vsel %vm3583_vm4, %v3647_v44, %v3519_v56  ;;  %vm3584_vm7 = vcmp.lt.f32.partialorder %v9318_v8, 0.0  ;;  %7321 = vpow2.f32 %v3354_v48  ;;  %vm2040_vm9 = vcmp.eq.f32.partialorder %v2039_v59, 8.507059e+37 }
 0x552   :  { %v3008_v32 = vmul.f32 %v2944_v30, %v9409_v3  ;;  %v3775_v19 = vadd.f32 1.0, %v3711_v22  ;;  %v2817_v6 = vadd.f32 1.4214138, %v2753_v17  ;;  %v2034_v11 = vadd.f32 %v7316_v34, %v2033_v4 }
 0x553   :  { %v7320_v0 = vpop.eup %7319  ;;  %v2042_v5 = vor.u32 1.1754944e-38, %v2041_v41  ;;  %v3202_v22 = vsub.f32 0.0, %v9394_v28  ;;  %v2054_v48 = vand.u32 2147483647, %v9436_v12  ;;  %v2056_v4 = vand.u32 2147483648, %v9436_v12 }
 0x554   :  { %v3072_v51 = vadd.f32 0.2548296, %v3008_v32  ;;  %v3839_v56 = vmul.f32 %v3775_v19, %v1343_v54  ;;  %v2881_v33 = vmul.f32 %v2817_v6, %v9433_v23  ;;  %v2038_v44 = vsel %vm2037_vm8, %v7316_v34, %v2034_v11 }
 0x555   :  { %v2046_v30 = vmul.f32 %v7320_v0, %v9436_v12  ;;  %v9466_v53 = vsel %vm2040_vm9, %v2042_v5, %v2038_v44  ;;  %v9471_v32 = vand.u32 2147483647, %v9457_v57  ;;  %vm2051_vm10 = vweird.f32 %v7320_v0 }
 0x556   :  { %v3136_v49 = vmul.f32 %v3072_v51, %v9409_v3  ;;  %7117 = vmatmul.msk.f32.gmra.mxu0 %vm76_vm0, %v3839_v56  ;;  %v9474_v3 = vpop.f32.mrf.mxu0  ;;  %v2945_v34 = vadd.f32 -0.28449672, %v2881_v33  ;;  %v2626_v41 = vmul.f32 1.0614054, %v9466_v53  ;;  %v9480_v19 = vadd.f32 %v9335_v15, %v1215_v21 }
 0x557   :  { %7078 = vmatmul.msk.f32.gmra.mxu3 %vm163_vm2, %v13181_v63  ;;  %v2047_v17 = vsub.f32 1.0, %v2046_v30  ;;  %v1540_v54 = vmul.f32 0.3275911, %v9471_v32  ;;  %v7322_v5 = vpop.eup %7321  ;;  %vm2050_vm11 = vweird.f32 %v9436_v12  ;;  %vm2055_vm13 = vcmp.eq.f32.partialorder %v2054_v48, 8.507059e+37 }
 0x558   :  { %v3456_v59 = vmul.f32 %v7318_v37, %v3136_v49  ;;  %v3009_v6 = vmul.f32 %v2945_v34, %v9433_v23  ;;  %v2690_v11 = vadd.f32 -1.4531521, %v2626_v41  ;;  %v3266_v37 = vmul.f32 %v3202_v22, %v9394_v28  ;;  %vm2052_vm12 = vmor %vm2050_vm11, %vm2051_vm10 }
 0x559   :  { %v2048_v56 = vmul.f32 %v7320_v0, %v2047_v17  ;;  %v3203_v49 = vsub.f32 0.0, %v9426_v1  ;;  %v9486_v33 = vadd.f32 1.0, %v1540_v54  ;;  %v9492_v34 = vmul.f32 0.70710677, %v9480_v19  ;;  %v1218_v17 = vpop.f32.mrf.mxu3  ;;  %v13182_v54 = vld [vmem:[#allocation27_spill] sm:$0xff] }
 0x55a   :  { %v3520_v51 = vsub.f32 1.0, %v3456_v59  ;;  %v3073_v30 = vadd.f32 0.2548296, %v3009_v6  ;;  %v2754_v63 = vmul.f32 %v2690_v11, %v9466_v53  ;;  %v2057_v59 = vor.u32 1.1754944e-38, %v2056_v4 }
 0x55b   :  { %v2049_v21 = vadd.f32 %v7320_v0, %v2048_v56  ;;  %7323 = vrcp.f32 %v9486_v33  ;;  %v1344_v6 = vmul.f32 0.5, %v9307_v45  ;;  %v3356_v4 = vmul.f32 1.442695, %v3266_v37 }
 0x55c   :  { %v3648_v44 = vsub.f32 0.0, %v3520_v51  ;;  %v3137_v12 = vmul.f32 %v3073_v30, %v9433_v23  ;;  %v2818_v22 = vadd.f32 1.4214138, %v2754_v63  ;;  %v3267_v23 = vmul.f32 %v3203_v49, %v9426_v1 }
 0x55d   :  { %v2053_v41 = vsel %vm2052_vm12, %v7320_v0, %v2049_v21  ;;  %v9506_v0 = vand.u32 2147483647, %v9492_v34  ;;  %v1345_v45 = vmul.f32 0.5, %v9338_v10  ;;  %vm3585_vm14 = vcmp.lt.f32.partialorder %v9353_v2, 0.0 }
 0x55e   :  { %v3712_v28 = vsel %vm3584_vm7, %v3648_v44, %v3520_v51  ;;  %v9500_v11 = vsel %vm2055_vm13, %v2057_v59, %v2053_v41  ;;  %v3457_v56 = vmul.f32 %v7322_v5, %v3137_v12  ;;  %v2882_v7 = vmul.f32 %v2818_v22, %v9466_v53  ;;  %v9511_v30 = vpop.f32.mrf.mxu0 }
 0x55f   :  { %7079 = vmatmul.msk.f32.gmra.mxu3 %vm163_vm2, %v13182_v54  ;;  %v3776_v48 = vadd.f32 1.0, %v3712_v28  ;;  %v2627_v8 = vmul.f32 1.0614054, %v9500_v11  ;;  %v9509_v44 = vadd.f32 %v9335_v15, %v1218_v17  ;;  %7325 = vpow2.f32 %v3356_v4  ;;  %v13183_v4 = vld [vmem:[#allocation29_spill] sm:$0xff] }
 0x560   :  { %v3521_v37 = vsub.f32 1.0, %v3457_v56  ;;  %v2946_v63 = vadd.f32 -0.28449672, %v2882_v7  ;;  %v1541_v59 = vmul.f32 0.3275911, %v9506_v0  ;;  %v3204_v22 = vsub.f32 0.0, %v9471_v32 }
 0x561   :  { %v3840_v51 = vmul.f32 %v3776_v48, %v1344_v6  ;;  %v2691_v5 = vadd.f32 -1.4531521, %v2627_v8  ;;  %v7324_v21 = vpop.eup %7323  ;;  %v9517_v1 = vmul.f32 0.70710677, %v9509_v44  ;;  %v3358_v7 = vmul.f32 1.442695, %v3267_v23 }
 0x562   :  { %v3649_v49 = vsub.f32 0.0, %v3521_v37  ;;  %v3010_v28 = vmul.f32 %v2946_v63, %v9466_v53  ;;  %v2061_v10 = vmul.f32 %v7324_v21, %v9486_v33  ;;  %v9524_v41 = vadd.f32 1.0, %v1541_v59 }
 0x563   :  { %7118 = vmatmul.msk.f32.gmra.mxu0 %vm76_vm0, %v3840_v51  ;;  %v2755_v12 = vmul.f32 %v2691_v5, %v9500_v11  ;;  %v9527_v2 = vand.u32 2147483647, %v9517_v1  ;;  %v2069_v8 = vand.u32 2147483647, %v9486_v33  ;;  %v2071_v51 = vand.u32 2147483648, %v9486_v33 }
 0x564   :  { %v3713_v17 = vsel %vm3585_vm14, %v3649_v49, %v3521_v37  ;;  %v3074_v54 = vadd.f32 0.2548296, %v3010_v28  ;;  %v2062_v48 = vsub.f32 1.0, %v2061_v10  ;;  %7327 = vrcp.f32 %v9524_v41  ;;  %v1221_v37 = vpop.f32.mrf.mxu3 }
 0x565   :  { %v2819_v6 = vadd.f32 1.4214138, %v2755_v12  ;;  %v3777_v56 = vadd.f32 1.0, %v3713_v17  ;;  %vm2066_vm15 = vweird.f32 %v7324_v21  ;;  %v7326_v59 = vpop.eup %7325  ;;  %v3268_v28 = vmul.f32 %v3204_v22, %v9471_v32 }
 0x566   :  { %v3138_v23 = vmul.f32 %v3074_v54, %v9466_v53  ;;  %v2063_v5 = vmul.f32 %v7324_v21, %v2062_v48  ;;  %v1542_v12 = vmul.f32 0.3275911, %v9527_v2  ;;  %vm2065_vm1 = vweird.f32 %v9486_v33 }
 0x567   :  { %7080 = vmatmul.msk.f32.gmra.mxu3 %vm163_vm2, %v13183_v4  ;;  %v2883_v63 = vmul.f32 %v2819_v6, %v9500_v11  ;;  %v3841_v49 = vmul.f32 %v3777_v56, %v1345_v45  ;;  %v1346_v43 = vmul.f32 0.5, %v9366_v35  ;;  %7329 = vpow2.f32 %v3358_v7  ;;  %vm2067_vm3 = vmor %vm2065_vm1, %vm2066_vm15  ;;  %v9543_v6 = vpop.f32.mrf.mxu0 }
 0x568   :  { %v3458_v10 = vmul.f32 %v7326_v59, %v3138_v23  ;;  %v2064_v4 = vadd.f32 %v7324_v21, %v2063_v5  ;;  %v2072_v53 = vor.u32 1.1754944e-38, %v2071_v51  ;;  %v9540_v54 = vadd.f32 1.0, %v1542_v12 }
 0x569   :  { %v2947_v17 = vadd.f32 -0.28449672, %v2883_v63  ;;  %vm2070_vm4 = vcmp.eq.f32.partialorder %v2069_v8, 8.507059e+37  ;;  %vm3586_vm5 = vcmp.lt.f32.partialorder %v9381_v40, 0.0  ;;  %v3360_v35 = vmul.f32 1.442695, %v3268_v28 }
 0x56a   :  { %v3522_v45 = vsub.f32 1.0, %v3458_v10  ;;  %v2068_v22 = vsel %vm2067_vm3, %v7324_v21, %v2064_v4  ;;  %v7328_v48 = vpop.eup %7327  ;;  %7331 = vrcp.f32 %v9540_v54  ;;  %v13184_v63 = vld [vmem:[#allocation31_spill] sm:$0xff]  ;;  %v1347_v21 = vmul.f32 0.5, %v9399_v36 }
 0x56b   :  { %7119 = vmatmul.msk.f32.gmra.mxu0 %vm76_vm0, %v3841_v49  ;;  %v3011_v32 = vmul.f32 %v2947_v17, %v9500_v11  ;;  %v9547_v33 = vsel %vm2070_vm4, %v2072_v53, %v2068_v22  ;;  %v2076_v23 = vmul.f32 %v7328_v48, %v9524_v41  ;;  %vm3587_vm6 = vcmp.lt.f32.partialorder %v9415_v27, 0.0 }
 0x56c   :  { %v3650_v7 = vsub.f32 0.0, %v3522_v45  ;;  %v2628_v51 = vmul.f32 1.0614054, %v9547_v33  ;;  %v2084_v40 = vand.u32 2147483647, %v9524_v41  ;;  %v3205_v8 = vsub.f32 0.0, %v9506_v0  ;;  %v1224_v22 = vpop.f32.mrf.mxu3 }
 0x56d   :  { %v3075_v56 = vadd.f32 0.2548296, %v3011_v32  ;;  %v2077_v28 = vsub.f32 1.0, %v2076_v23  ;;  %v7330_v12 = vpop.eup %7329  ;;  %7333 = vpow2.f32 %v3360_v35  ;;  %vm2081_vm7 = vweird.f32 %v7328_v48 }
 0x56e   :  { %v3714_v5 = vsel %vm3586_vm5, %v3650_v7, %v3522_v45  ;;  %v2692_v49 = vadd.f32 -1.4531521, %v2628_v51  ;;  %v2086_v17 = vand.u32 2147483648, %v9524_v41  ;;  %v9562_v32 = vadd.f32 %v9335_v15, %v1221_v37 }
 0x56f   :  { %7081 = vmatmul.msk.f32.gmra.mxu3 %vm163_vm2, %v13184_v63  ;;  %v3139_v59 = vmul.f32 %v3075_v56, %v9500_v11  ;;  %v3778_v10 = vadd.f32 1.0, %v3714_v5  ;;  %v2078_v53 = vmul.f32 %v7328_v48, %v2077_v28  ;;  %vm2080_vm8 = vweird.f32 %v9524_v41  ;;  %v13187_v28 = vld [vmem:[#allocation33_spill] sm:$0xff] }
 0x570   :  { %v2756_v36 = vmul.f32 %v2692_v49, %v9547_v33  ;;  %v7332_v63 = vpop.eup %7331  ;;  %vm9565_vm9 = vcmp.eq.f32.partialorder %v2084_v40, 8.507059e+37  ;;  %v3269_v35 = vmul.f32 %v3205_v8, %v9506_v0  ;;  %vm2082_vm10 = vmor %vm2080_vm8, %vm2081_vm7  ;;  %v2087_v37 = vor.u32 1.1754944e-38, %v2086_v17  ;;  %v9580_v40 = vpop.f32.mrf.mxu0 }
 0x571   :  { %v3459_v4 = vmul.f32 %v7330_v12, %v3139_v59  ;;  %v3842_v45 = vmul.f32 %v3778_v10, %v1346_v43  ;;  %v2079_v51 = vadd.f32 %v7328_v48, %v2078_v53  ;;  %v2091_v23 = vmul.f32 %v7332_v63, %v9540_v54 }
 0x572   :  { %v2820_v56 = vadd.f32 1.4214138, %v2756_v36  ;;  %v2099_v5 = vand.u32 2147483647, %v9540_v54  ;;  %v9574_v43 = vmul.f32 0.70710677, %v9562_v32  ;;  %v9577_v41 = vadd.f32 %v9335_v15, %v1224_v22 }
 0x573   :  { %v3523_v7 = vsub.f32 1.0, %v3459_v4  ;;  %7120 = vmatmul.msk.f32.gmra.mxu0 %vm76_vm0, %v3842_v45  ;;  %v2083_v59 = vsel %vm2082_vm10, %v7328_v48, %v2079_v51  ;;  %v2092_v49 = vsub.f32 1.0, %v2091_v23  ;;  %v7334_v12 = vpop.eup %7333  ;;  %vm2096_vm11 = vweird.f32 %v7332_v63 }
 0x574   :  { %v2884_v8 = vmul.f32 %v2820_v56, %v9547_v33  ;;  %v9587_v10 = vsel %vm9565_vm9, %v2087_v37, %v2083_v59  ;;  %v2101_v17 = vand.u32 2147483648, %v9540_v54  ;;  %v9591_v4 = vand.u32 2147483647, %v9574_v43  ;;  %v1227_v13 = vpop.f32.mrf.mxu3 }
 0x575   :  { %v3651_v0 = vsub.f32 0.0, %v3523_v7  ;;  %v2629_v48 = vmul.f32 1.0614054, %v9587_v10  ;;  %v2093_v22 = vmul.f32 %v7332_v63, %v2092_v49  ;;  %v3206_v56 = vsub.f32 0.0, %v9527_v2 }
 0x576   :  { %v2948_v53 = vadd.f32 -0.28449672, %v2884_v8  ;;  %v1543_v11 = vmul.f32 0.3275911, %v9591_v4  ;;  %v9599_v51 = vmul.f32 0.70710677, %v9577_v41  ;;  %vm2095_vm12 = vweird.f32 %v9540_v54 }
 0x577   :  { %7082 = vmatmul.msk.f32.gmra.mxu3 %vm163_vm2, %v13187_v28  ;;  %v3715_v36 = vsel %vm3587_vm6, %v3651_v0, %v3523_v7  ;;  %v2693_v37 = vadd.f32 -1.4531521, %v2629_v48  ;;  %v2094_v59 = vadd.f32 %v7332_v63, %v2093_v22  ;;  %vm2097_vm13 = vmor %vm2095_vm12, %vm2096_vm11  ;;  %v2102_v7 = vor.u32 1.1754944e-38, %v2101_v17 }
 0x578   :  { %v3779_v45 = vadd.f32 1.0, %v3715_v36  ;;  %v3012_v23 = vmul.f32 %v2948_v53, %v9547_v33  ;;  %v9604_v0 = vadd.f32 1.0, %v1543_v11  ;;  %v9607_v8 = vand.u32 2147483647, %v9599_v51 }
 0x579   :  { %v2757_v28 = vmul.f32 %v2693_v37, %v9587_v10  ;;  %v2098_v36 = vsel %vm2097_vm13, %v7332_v63, %v2094_v59  ;;  %vm2100_vm14 = vcmp.eq.f32.partialorder %v2099_v5, 8.507059e+37  ;;  %v3270_v48 = vmul.f32 %v3206_v56, %v9527_v2  ;;  %v9620_v5 = vpop.f32.mrf.mxu0 }
 0x57a   :  { %v3843_v27 = vmul.f32 %v3779_v45, %v1347_v21  ;;  %v3076_v49 = vadd.f32 0.2548296, %v3012_v23  ;;  %v9610_v53 = vsel %vm2100_vm14, %v2102_v7, %v2098_v36  ;;  %7335 = vrcp.f32 %v9604_v0  ;;  %v13188_v45 = vld [vmem:[#allocation35_spill] sm:$0xff] }
 0x57b   :  { %v2821_v21 = vadd.f32 1.4214138, %v2757_v28  ;;  %v3362_v17 = vmul.f32 1.442695, %v3269_v35  ;;  %v2630_v22 = vmul.f32 1.0614054, %v9610_v53  ;;  %v9628_v7 = vadd.f32 %v9335_v15, %v1227_v13 }
 0x57c   :  { %7121 = vmatmul.msk.f32.gmra.mxu0 %vm76_vm0, %v3843_v27  ;;  %v3140_v54 = vmul.f32 %v3076_v49, %v9547_v33  ;;  %v1544_v63 = vmul.f32 0.3275911, %v9607_v8  ;;  %v3364_v23 = vmul.f32 1.442695, %v3270_v48  ;;  %v1348_v48 = vmul.f32 0.5, %v9448_v29  ;;  %v1230_v13 = vpop.f32.mrf.mxu3 }
 0x57d   :  { %v2885_v2 = vmul.f32 %v2821_v21, %v9587_v10  ;;  %v2694_v56 = vadd.f32 -1.4531521, %v2630_v22  ;;  %7337 = vpow2.f32 %v3362_v17  ;;  %vm3588_vm15 = vcmp.lt.f32.partialorder %v9457_v57, 0.0 }
 0x57e   :  { %v3460_v11 = vmul.f32 %v7334_v12, %v3140_v54  ;;  %v9623_v37 = vadd.f32 1.0, %v1544_v63  ;;  %v2114_v54 = vand.u32 2147483647, %v9604_v0  ;;  %v13189_v63 = vld [vmem:[#allocation36_spill] sm:$0xff]  ;;  %vm3589_vm1 = vcmp.lt.f32.partialorder %v9492_v34, 0.0 }
 0x57f   :  { %7083 = vmatmul.msk.f32.gmra.mxu3 %vm163_vm2, %v13188_v45  ;;  %v2949_v33 = vadd.f32 -0.28449672, %v2885_v2  ;;  %v2758_v35 = vmul.f32 %v2694_v56, %v9610_v53  ;;  %v2116_v2 = vand.u32 2147483648, %v9604_v0  ;;  %v3207_v29 = vsub.f32 0.0, %v9591_v4 }
 0x580   :  { %v3524_v59 = vsub.f32 1.0, %v3460_v11  ;;  %v7336_v27 = vpop.eup %7335  ;;  %7339 = vrcp.f32 %v9623_v37  ;;  %v9642_v57 = vmul.f32 0.70710677, %v9628_v7  ;;  %vm2110_vm4 = vweird.f32 %v9604_v0 }
 0x581   :  { %v3013_v12 = vmul.f32 %v2949_v33, %v9587_v10  ;;  %v2822_v28 = vadd.f32 1.4214138, %v2758_v35  ;;  %v2106_v36 = vmul.f32 %v7336_v27, %v9604_v0  ;;  %7341 = vpow2.f32 %v3364_v23 }
 0x582   :  { %v3652_v49 = vsub.f32 0.0, %v3524_v59  ;;  %vm2111_vm3 = vweird.f32 %v7336_v27  ;;  %vm9646_vm5 = vcmp.eq.f32.partialorder %v2114_v54, 8.507059e+37  ;;  %v2129_v0 = vand.u32 2147483647, %v9623_v37 }
 0x583   :  { %v3077_v17 = vadd.f32 0.2548296, %v3013_v12  ;;  %v2886_v22 = vmul.f32 %v2822_v28, %v9610_v53  ;;  %v2107_v45 = vsub.f32 1.0, %v2106_v36  ;;  %v7338_v56 = vpop.eup %7337  ;;  %v9651_v28 = vand.u32 2147483647, %v9642_v57  ;;  %v9653_v36 = vpop.f32.mrf.mxu0  ;;  %vm2112_vm6 = vmor %vm2110_vm4, %vm2111_vm3 }
 0x584   :  { %v3716_v21 = vsel %vm3588_vm15, %v3652_v49, %v3524_v59  ;;  %v2131_v54 = vand.u32 2147483648, %v9623_v37  ;;  %vm2125_vm8 = vweird.f32 %v9623_v37  ;;  %vm2130_vm10 = vcmp.eq.f32.partialorder %v2129_v0, 8.507059e+37 }
 0x585   :  { %v3780_v11 = vadd.f32 1.0, %v3716_v21  ;;  %v3141_v23 = vmul.f32 %v3077_v17, %v9587_v10  ;;  %v2950_v59 = vadd.f32 -0.28449672, %v2886_v22  ;;  %v2108_v33 = vmul.f32 %v7336_v27, %v2107_v45 }
 0x586   :  { %v7340_v35 = vpop.eup %7339  ;;  %v1545_v45 = vmul.f32 0.3275911, %v9651_v28  ;;  %vm3590_vm11 = vcmp.lt.f32.partialorder %v9517_v1, 0.0 }
 0x587   :  { %7084 = vmatmul.msk.f32.gmra.mxu3 %vm163_vm2, %v13189_v63  ;;  %v3844_v49 = vmul.f32 %v3780_v11, %v1348_v48  ;;  %v3461_v21 = vmul.f32 %v7338_v56, %v3141_v23  ;;  %v3014_v63 = vmul.f32 %v2950_v59, %v9610_v53  ;;  %v2109_v10 = vadd.f32 %v7336_v27, %v2108_v33  ;;  %v7342_v22 = vpop.eup %7341 }
 0x588   :  { %v2121_v17 = vmul.f32 %v7340_v35, %v9623_v37  ;;  %v2117_v48 = vor.u32 1.1754944e-38, %v2116_v2  ;;  %vm2126_vm7 = vweird.f32 %v7340_v35  ;;  %v9665_v59 = vadd.f32 1.0, %v1545_v45 }
 0x589   :  { %7122 = vmatmul.msk.f32.gmra.mxu0 %vm76_vm0, %v3844_v49  ;;  %v3525_v11 = vsub.f32 1.0, %v3461_v21  ;;  %v3078_v62 = vadd.f32 0.2548296, %v3014_v63  ;;  %v2113_v46 = vsel %vm2112_vm6, %v7336_v27, %v2109_v10  ;;  %v9668_v2 = vadd.f32 %v9335_v15, %v1230_v13  ;;  %vm2127_vm9 = vmor %vm2125_vm8, %vm2126_vm7 }
 0x58a   :  { %v2122_v56 = vsub.f32 1.0, %v2121_v17  ;;  %v9663_v23 = vsel %vm9646_vm5, %v2117_v48, %v2113_v46  ;;  %v3271_v27 = vmul.f32 %v3207_v29, %v9591_v4  ;;  %v3208_v46 = vsub.f32 0.0, %v9607_v8 }
 0x58b   :  { %v3653_v33 = vsub.f32 0.0, %v3525_v11  ;;  %v3142_v42 = vmul.f32 %v3078_v62, %v9610_v53  ;;  %v2631_v26 = vmul.f32 1.0614054, %v9663_v23  ;;  %7343 = vrcp.f32 %v9665_v59  ;;  %v1233_v53 = vpop.f32.mrf.mxu3 }
 0x58c   :  { %v2123_v49 = vmul.f32 %v7340_v35, %v2122_v56  ;;  %v1349_v63 = vmul.f32 0.5, %v9480_v19  ;;  %v9684_v17 = vmul.f32 0.70710677, %v9668_v2  ;;  %v3366_v48 = vmul.f32 1.442695, %v3271_v27 }
 0x58d   :  { %v3717_v13 = vsel %vm3589_vm1, %v3653_v33, %v3525_v11  ;;  %v3462_v12 = vmul.f32 %v7342_v22, %v3142_v42  ;;  %v2695_v21 = vadd.f32 -1.4531521, %v2631_v26  ;;  %v3272_v26 = vmul.f32 %v3208_v46, %v9607_v8  ;;  %v9689_v22 = vpop.f32.mrf.mxu0 }
 0x58e   :  { %v2124_v62 = vadd.f32 %v7340_v35, %v2123_v49  ;;  %v3781_v10 = vadd.f32 1.0, %v3717_v13  ;;  %v1350_v11 = vmul.f32 0.5, %v9509_v44  ;;  %v9698_v56 = vadd.f32 %v9335_v15, %v1233_v53 }
 0x58f   :  { %7085 = vmatmul.msk.f32.gmra.mxu3 %vm163_vm2, %v8558_v50  ;;  %v2132_v50 = vor.u32 1.1754944e-38, %v2131_v54  ;;  %v3526_v4 = vsub.f32 1.0, %v3462_v12  ;;  %v2759_v37 = vmul.f32 %v2695_v21, %v9663_v23  ;;  %7345 = vpow2.f32 %v3366_v48 }
 0x590   :  { %v2128_v29 = vsel %vm2127_vm9, %v7340_v35, %v2124_v62  ;;  %v3845_v34 = vmul.f32 %v3781_v10, %v1349_v63  ;;  %v9695_v35 = vand.u32 2147483647, %v9684_v17  ;;  %v3368_v1 = vmul.f32 1.442695, %v3272_v26 }
 0x591   :  { %v9686_v42 = vsel %vm2130_vm10, %v2132_v50, %v2128_v29  ;;  %v3654_v19 = vsub.f32 0.0, %v3526_v4  ;;  %v2823_v45 = vadd.f32 1.4214138, %v2759_v37  ;;  %v7344_v54 = vpop.eup %7343  ;;  %v2144_v62 = vand.u32 2147483647, %v9665_v59 }
 0x592   :  { %v2632_v0 = vmul.f32 1.0614054, %v9686_v42  ;;  %7123 = vmatmul.msk.f32.gmra.mxu0 %vm76_vm0, %v3845_v34  ;;  %v2136_v27 = vmul.f32 %v7344_v54, %v9665_v59  ;;  %v1546_v46 = vmul.f32 0.3275911, %v9695_v35  ;;  %v2146_v63 = vand.u32 2147483648, %v9665_v59 }
 0x593   :  { %v3718_v8 = vsel %vm3590_vm11, %v3654_v19, %v3526_v4  ;;  %v2887_v33 = vmul.f32 %v2823_v45, %v9663_v23  ;;  %v9712_v50 = vmul.f32 0.70710677, %v9698_v56  ;;  %vm2141_vm12 = vweird.f32 %v7344_v54  ;;  %v1236_v29 = vpop.f32.mrf.mxu3 }
 0x594   :  { %v2696_v49 = vadd.f32 -1.4531521, %v2632_v0  ;;  %v3782_v44 = vadd.f32 1.0, %v3718_v8  ;;  %v2137_v21 = vsub.f32 1.0, %v2136_v27  ;;  %v9709_v10 = vadd.f32 1.0, %v1546_v46 }
 0x595   :  { %v2951_v13 = vadd.f32 -0.28449672, %v2887_v33  ;;  %v3209_v34 = vsub.f32 0.0, %v9651_v28  ;;  %vm2140_vm13 = vweird.f32 %v9665_v59  ;;  %v7346_v45 = vpop.eup %7345  ;;  %v2147_v0 = vor.u32 1.1754944e-38, %v2146_v63  ;;  %v9723_v8 = vpop.f32.mrf.mxu0 }
 0x596   :  { %v2760_v12 = vmul.f32 %v2696_v49, %v9686_v42  ;;  %v3846_v53 = vmul.f32 %v3782_v44, %v1350_v11  ;;  %v2138_v37 = vmul.f32 %v7344_v54, %v2137_v21  ;;  %7347 = vrcp.f32 %v9709_v10  ;;  %vm2142_vm14 = vmor %vm2140_vm13, %vm2141_vm12 }
 0x597   :  { %7086 = vmatmul.msk.f32.gmra.mxu3 %vm163_vm2, %v8600_v24  ;;  %v3015_v24 = vmul.f32 %v2951_v13, %v9663_v23  ;;  %7349 = vpow2.f32 %v3368_v1  ;;  %v9720_v11 = vand.u32 2147483647, %v9712_v50  ;;  %vm2145_vm15 = vcmp.eq.f32.partialorder %v2144_v62, 8.507059e+37 }
 0x598   :  { %v2824_v4 = vadd.f32 1.4214138, %v2760_v12  ;;  %v2139_v19 = vadd.f32 %v7344_v54, %v2138_v37  ;;  %v3273_v44 = vmul.f32 %v3209_v34, %v9651_v28  ;;  %v9733_v46 = vadd.f32 %v9335_v15, %v1236_v29 }
 0x599   :  { %v3079_v48 = vadd.f32 0.2548296, %v3015_v24  ;;  %v1547_v1 = vmul.f32 0.3275911, %v9720_v11  ;;  %vm3591_vm1 = vcmp.lt.f32.partialorder %v9574_v43, 0.0  ;;  %v3210_v29 = vsub.f32 0.0, %v9695_v35 }
 0x59a   :  { %v2888_v26 = vmul.f32 %v2824_v4, %v9686_v42  ;;  %7124 = vmatmul.msk.f32.gmra.mxu0 %vm76_vm0, %v3846_v53  ;;  %v2143_v27 = vsel %vm2142_vm14, %v7344_v54, %v2139_v19  ;;  %v1351_v54 = vmul.f32 0.5, %v9562_v32  ;;  %v9742_v62 = vmul.f32 0.70710677, %v9733_v46 }
 0x59b   :  { %v3143_v33 = vmul.f32 %v3079_v48, %v9663_v23  ;;  %v9728_v59 = vsel %vm2145_vm15, %v2147_v0, %v2143_v27  ;;  %v1352_v4 = vmul.f32 0.5, %v9577_v41  ;;  %v3370_v37 = vmul.f32 1.442695, %v3273_v44  ;;  %v1239_v19 = vpop.f32.mrf.mxu3 }
 0x59c   :  { %v2952_v49 = vadd.f32 -0.28449672, %v2888_v26  ;;  %v2633_v23 = vmul.f32 1.0614054, %v9728_v59  ;;  %v7348_v21 = vpop.eup %7347  ;;  %v2161_v0 = vand.u32 2147483648, %v9709_v10  ;;  %vm2155_vm4 = vweird.f32 %v9709_v10 }
 0x59d   :  { %v3463_v13 = vmul.f32 %v7346_v45, %v3143_v33  ;;  %v2151_v15 = vmul.f32 %v7348_v21, %v9709_v10  ;;  %v7350_v24 = vpop.eup %7349  ;;  %vm2156_vm3 = vweird.f32 %v7348_v21  ;;  %v2159_v45 = vand.u32 2147483647, %v9709_v10 }
 0x59e   :  { %v3016_v12 = vmul.f32 %v2952_v49, %v9686_v42  ;;  %v2697_v63 = vadd.f32 -1.4531521, %v2633_v23  ;;  %v9753_v33 = vand.u32 2147483647, %v9742_v62  ;;  %vm2157_vm5 = vmor %vm2155_vm4, %vm2156_vm3  ;;  %vm3592_vm7 = vcmp.lt.f32.partialorder %v9599_v51, 0.0 }
 0x59f   :  { %7087 = vmatmul.msk.f32.gmra.mxu3 %vm163_vm2, %v8644_v38  ;;  %v9739_v38 = vadd.f32 1.0, %v1547_v1  ;;  %v3527_v28 = vsub.f32 1.0, %v3463_v13  ;;  %v2152_v26 = vsub.f32 1.0, %v2151_v15  ;;  %v3274_v1 = vmul.f32 %v3210_v29, %v9695_v35 }
 0x5a0   :  { %v3080_v53 = vadd.f32 0.2548296, %v3016_v12  ;;  %v2761_v48 = vmul.f32 %v2697_v63, %v9728_v59  ;;  %v1548_v13 = vmul.f32 0.3275911, %v9753_v33  ;;  %v9761_v12 = vpop.f32.mrf.mxu0  ;;  %vm2160_vm6 = vcmp.eq.f32.partialorder %v2159_v45, 8.507059e+37 }
 0x5a1   :  { %7351 = vrcp.f32 %v9739_v38  ;;  %v3655_v32 = vsub.f32 0.0, %v3527_v28  ;;  %v2153_v44 = vmul.f32 %v7348_v21, %v2152_v26  ;;  %13192 = vst [vmem:[#allocation18_spill] sm:$0xff] %v9761_v12  ;;  %v2176_v51 = vand.u32 2147483648, %v9739_v38 }
 0x5a2   :  { %v3144_v34 = vmul.f32 %v3080_v53, %v9686_v42  ;;  %v2825_v27 = vadd.f32 1.4214138, %v2761_v48  ;;  %7353 = vpow2.f32 %v3370_v37  ;;  %v9766_v15 = vadd.f32 1.0, %v1548_v13 }
 0x5a3   :  { %v3719_v41 = vsel %vm3591_vm1, %v3655_v32, %v3527_v28  ;;  %v2154_v63 = vadd.f32 %v7348_v21, %v2153_v44  ;;  %v9781_v44 = vld [vmem:[%s12997_s9] ss:$0 sm:$0xff]  ;;  %vm3593_vm9 = vcmp.lt.f32.partialorder %v9642_v57, 0.0  ;;  %vm2170_vm10 = vweird.f32 %v9739_v38 }
 0x5a4   :  { %v3464_v49 = vmul.f32 %v7350_v24, %v3144_v34  ;;  %v3783_v42 = vadd.f32 1.0, %v3719_v41  ;;  %v2889_v53 = vmul.f32 %v2825_v27, %v9728_v59  ;;  %v3372_v34 = vmul.f32 1.442695, %v3274_v1  ;;  %v1242_v1 = vpop.f32.mrf.mxu3 }
 0x5a5   :  { %v2158_v37 = vsel %vm2157_vm5, %v7348_v21, %v2154_v63  ;;  %7355 = vrcp.f32 %v9766_v15  ;;  %v2174_v21 = vand.u32 2147483647, %v9739_v38  ;;  %vm2185_vm14 = vweird.f32 %v9766_v15 }
 0x5a6   :  { %v3528_v23 = vsub.f32 1.0, %v3464_v49  ;;  %v3847_v28 = vmul.f32 %v3783_v42, %v1351_v54  ;;  %v2953_v35 = vadd.f32 -0.28449672, %v2889_v53  ;;  %v9784_v42 = vadd.f32 %v9781_v44, %v1239_v19 }
 0x5a7   :  { %7088 = vmatmul.msk.f32.gmra.mxu3 %vm163_vm2, %v8684_v52  ;;  %v7352_v43 = vpop.eup %7351  ;;  %v2162_v52 = vor.u32 1.1754944e-38, %v2161_v0  ;;  %7357 = vpow2.f32 %v3372_v34  ;;  %vm2175_vm12 = vcmp.eq.f32.partialorder %v2174_v21, 8.507059e+37  ;;  %v2177_v19 = vor.u32 1.1754944e-38, %v2176_v51 }
 0x5a8   :  { %v3656_v24 = vsub.f32 0.0, %v3528_v23  ;;  %v2166_v29 = vmul.f32 %v7352_v43, %v9739_v38  ;;  %7125 = vmatmul.msk.f32.gmra.mxu0 %vm76_vm0, %v3847_v28  ;;  %v3017_v54 = vmul.f32 %v2953_v35, %v9728_v59  ;;  %v7354_v45 = vpop.eup %7353  ;;  %vm2171_vm8 = vweird.f32 %v7352_v43 }
 0x5a9   :  { %v9770_v32 = vsel %vm2160_vm6, %v2162_v52, %v2158_v37  ;;  %vm2172_vm11 = vmor %vm2170_vm10, %vm2171_vm8  ;;  %v3211_v38 = vsub.f32 0.0, %v9720_v11  ;;  %vm3594_vm3 = vcmp.lt.f32.partialorder %v9684_v17, 0.0  ;;  %vm3595_vm8 = vcmp.lt.f32.partialorder %v9712_v50, 0.0 }
 0x5aa   :  { %v3720_v10 = vsel %vm3592_vm7, %v3656_v24, %v3528_v23  ;;  %v2634_v48 = vmul.f32 1.0614054, %v9770_v32  ;;  %v2167_v26 = vsub.f32 1.0, %v2166_v29  ;;  %v3081_v41 = vadd.f32 0.2548296, %v3017_v54 }
 0x5ab   :  { %v3784_v0 = vadd.f32 1.0, %v3720_v10  ;;  %v1353_v23 = vmul.f32 0.5, %v9628_v7  ;;  %v7356_v52 = vpop.eup %7355  ;;  %v2189_v29 = vand.u32 2147483647, %v9766_v15 }
 0x5ac   :  { %v2698_v49 = vadd.f32 -1.4531521, %v2634_v48  ;;  %v2168_v27 = vmul.f32 %v7352_v43, %v2167_v26  ;;  %v3145_v53 = vmul.f32 %v3081_v41, %v9728_v59  ;;  %v2181_v59 = vmul.f32 %v7356_v52, %v9766_v15 }
 0x5ad   :  { %v3848_v13 = vmul.f32 %v3784_v0, %v1352_v4  ;;  %v9797_v4 = vpop.f32.mrf.mxu0  ;;  %vm2186_vm13 = vweird.f32 %v7356_v52  ;;  %v9813_v0 = vadd.f32 %v9781_v44, %v1242_v1  ;;  %vm2190_vm1 = vcmp.eq.f32.partialorder %v2189_v29, 8.507059e+37 }
 0x5ae   :  { %v2762_v63 = vmul.f32 %v2698_v49, %v9770_v32  ;;  %v2169_v28 = vadd.f32 %v7352_v43, %v2168_v27  ;;  %13193 = vst [vmem:[#allocation20_spill] sm:$0xff] %v9797_v4  ;;  %v3465_v7 = vmul.f32 %v7354_v45, %v3145_v53  ;;  %v2182_v26 = vsub.f32 1.0, %v2181_v59  ;;  %v7358_v27 = vpop.eup %7357  ;;  %vm2187_vm15 = vmor %vm2185_vm14, %vm2186_vm13 }
 0x5af   :  { %7089 = vmatmul.msk.f32.gmra.mxu3 %vm163_vm2, %v8730_v47  ;;  %v9795_v47 = vmul.f32 0.70710677, %v9784_v42  ;;  %v3212_v53 = vsub.f32 0.0, %v9753_v33  ;;  %vm3596_vm13 = vcmp.lt.f32.partialorder %v9742_v62, 0.0 }
 0x5b0   :  { %v2826_v24 = vadd.f32 1.4214138, %v2762_v63  ;;  %v2173_v35 = vsel %vm2172_vm11, %v7352_v43, %v2169_v28  ;;  %7126 = vmatmul.msk.f32.gmra.mxu0 %vm76_vm0, %v3848_v13  ;;  %v3529_v10 = vsub.f32 1.0, %v3465_v7  ;;  %v2191_v43 = vand.u32 2147483648, %v9766_v15 }
 0x5b1   :  { %v9800_v37 = vsel %vm2175_vm12, %v2177_v19, %v2173_v35  ;;  %v9805_v34 = vand.u32 2147483647, %v9795_v47  ;;  %v2183_v49 = vmul.f32 %v7356_v52, %v2182_v26  ;;  %v3275_v13 = vmul.f32 %v3211_v38, %v9720_v11 }
 0x5b2   :  { %v2890_v54 = vmul.f32 %v2826_v24, %v9770_v32  ;;  %v2635_v48 = vmul.f32 1.0614054, %v9800_v37  ;;  %v3657_v21 = vsub.f32 0.0, %v3529_v10  ;;  %v1245_v24 = vpop.f32.mrf.mxu3  ;;  %v9829_v11 = vmul.f32 0.70710677, %v9813_v0 }
 0x5b3   :  { %v1549_v45 = vmul.f32 0.3275911, %v9805_v34  ;;  %v2184_v7 = vadd.f32 %v7356_v52, %v2183_v49  ;;  %vm3597_vm14 = vcmp.lt.f32.partialorder %v9795_v47, 0.0 }
 0x5b4   :  { %v2954_v51 = vadd.f32 -0.28449672, %v2890_v54  ;;  %v2699_v41 = vadd.f32 -1.4531521, %v2635_v48  ;;  %v3721_v1 = vsel %vm3593_vm9, %v3657_v21, %v3529_v10  ;;  %v3374_v10 = vmul.f32 1.442695, %v3275_v13 }
 0x5b5   :  { %v9820_v63 = vadd.f32 1.0, %v1549_v45  ;;  %v3785_v35 = vadd.f32 1.0, %v3721_v1  ;;  %v2188_v38 = vsel %vm2187_vm15, %v7356_v52, %v2184_v7  ;;  %v9833_v48 = vpop.f32.mrf.mxu0  ;;  %v3276_v21 = vmul.f32 %v3212_v53, %v9753_v33 }
 0x5b6   :  { %v3018_v28 = vmul.f32 %v2954_v51, %v9770_v32  ;;  %v2763_v19 = vmul.f32 %v2699_v41, %v9800_v37  ;;  %13194 = vst [vmem:[#allocation22_spill] sm:$0xff] %v9833_v48  ;;  %v9840_v51 = vand.u32 2147483647, %v9829_v11  ;;  %v9852_v1 = vmul.f32 0.5, %v9698_v56 }
 0x5b7   :  { %7090 = vmatmul.msk.f32.gmra.mxu3 %vm163_vm2, %v8777_v16  ;;  %v2192_v16 = vor.u32 1.1754944e-38, %v2191_v43  ;;  %7359 = vrcp.f32 %v9820_v63  ;;  %v3849_v57 = vmul.f32 %v3785_v35, %v1353_v23  ;;  %vm2200_vm5 = vweird.f32 %v9820_v63 }
 0x5b8   :  { %v3082_v15 = vadd.f32 0.2548296, %v3018_v28  ;;  %v2827_v59 = vadd.f32 1.4214138, %v2763_v19  ;;  %7361 = vpow2.f32 %v3374_v10  ;;  %v1550_v49 = vmul.f32 0.3275911, %v9840_v51 }
 0x5b9   :  { %v9831_v54 = vsel %vm2190_vm1, %v2192_v16, %v2188_v38  ;;  %7127 = vmatmul.msk.f32.gmra.mxu0 %vm76_vm0, %v3849_v57  ;;  %v3376_v28 = vmul.f32 1.442695, %v3276_v21  ;;  %v2206_v38 = vand.u32 2147483648, %v9820_v63 }
 0x5ba   :  { %v3146_v26 = vmul.f32 %v3082_v15, %v9770_v32  ;;  %v2891_v45 = vmul.f32 %v2827_v59, %v9800_v37  ;;  %v2636_v43 = vmul.f32 1.0614054, %v9831_v54  ;;  %v1354_v32 = vmul.f32 0.5, %v9668_v2  ;;  %v1248_v15 = vpop.f32.mrf.mxu3 }
 0x5bb   :  { %v9857_v2 = vadd.f32 %v9781_v44, %v1245_v24  ;;  %v2204_v59 = vand.u32 2147483647, %v9820_v63 }
 0x5bc   :  { %v3466_v52 = vmul.f32 %v7358_v27, %v3146_v26  ;;  %v2955_v23 = vadd.f32 -0.28449672, %v2891_v45  ;;  %v2700_v29 = vadd.f32 -1.4531521, %v2636_v43  ;;  %v9868_v43 = vadd.f32 %v9781_v44, %v1248_v15 }
 0x5bd   :  { %v7360_v41 = vpop.eup %7359  ;;  %v9870_v21 = vpop.f32.mrf.mxu0  ;;  %v9873_v17 = vmul.f32 0.70710677, %v9857_v2  ;;  %vm2205_vm7 = vcmp.eq.f32.partialorder %v2204_v59, 8.507059e+37 }
 0x5be   :  { %v3530_v33 = vsub.f32 1.0, %v3466_v52  ;;  %v3019_v13 = vmul.f32 %v2955_v23, %v9800_v37  ;;  %v2764_v53 = vmul.f32 %v2700_v29, %v9831_v54  ;;  %v2196_v27 = vmul.f32 %v7360_v41, %v9820_v63  ;;  %v7362_v26 = vpop.eup %7361  ;;  %13195 = vst [vmem:[#allocation24_spill] sm:$0xff] %v9870_v21 }
 0x5bf   :  { %7091 = vmatmul.msk.f32.gmra.mxu3 %vm163_vm2, %v8815_v9  ;;  %v9854_v9 = vadd.f32 1.0, %v1550_v49  ;;  %vm2201_vm4 = vweird.f32 %v7360_v41  ;;  %v2207_v49 = vor.u32 1.1754944e-38, %v2206_v38  ;;  %v3213_v63 = vsub.f32 0.0, %v9805_v34 }
 0x5c0   :  { %v3658_v19 = vsub.f32 0.0, %v3530_v33  ;;  %v3083_v7 = vadd.f32 0.2548296, %v3019_v13  ;;  %v2828_v35 = vadd.f32 1.4214138, %v2764_v53  ;;  %v2197_v16 = vsub.f32 1.0, %v2196_v27  ;;  %vm2202_vm6 = vmor %vm2200_vm5, %vm2201_vm4 }
 0x5c1   :  { %7363 = vrcp.f32 %v9854_v9  ;;  %v9881_v27 = vand.u32 2147483647, %v9873_v17  ;;  %v3277_v59 = vmul.f32 %v3213_v63, %v9805_v34  ;;  %v2219_v50 = vand.u32 2147483647, %v9854_v9 }
 0x5c2   :  { %v3722_v56 = vsel %vm3594_vm3, %v3658_v19, %v3530_v33  ;;  %v3147_v57 = vmul.f32 %v3083_v7, %v9800_v37  ;;  %v2892_v24 = vmul.f32 %v2828_v35, %v9831_v54  ;;  %v2198_v10 = vmul.f32 %v7360_v41, %v2197_v16  ;;  %v1251_v34 = vpop.f32.mrf.mxu3 }
 0x5c3   :  { %v3786_v45 = vadd.f32 1.0, %v3722_v56  ;;  %7365 = vpow2.f32 %v3376_v28  ;;  %v1551_v38 = vmul.f32 0.3275911, %v9881_v27  ;;  %vm2215_vm10 = vweird.f32 %v9854_v9 }
 0x5c4   :  { %v3467_v52 = vmul.f32 %v7362_v26, %v3147_v57  ;;  %v2956_v23 = vadd.f32 -0.28449672, %v2892_v24  ;;  %v2199_v29 = vadd.f32 %v7360_v41, %v2198_v10  ;;  %vm2220_vm12 = vcmp.eq.f32.partialorder %v2219_v50, 8.507059e+37 }
 0x5c5   :  { %v3850_v37 = vmul.f32 %v3786_v45, %v1354_v32  ;;  %v9888_v32 = vmul.f32 0.70710677, %v9868_v43 }
 0x5c6   :  { %v3531_v33 = vsub.f32 1.0, %v3467_v52  ;;  %v3020_v13 = vmul.f32 %v2956_v23, %v9831_v54  ;;  %v2203_v53 = vsel %vm2202_vm6, %v7360_v41, %v2199_v29  ;;  %v2221_v52 = vand.u32 2147483648, %v9854_v9 }
 0x5c7   :  { %7092 = vmatmul.msk.f32.gmra.mxu3 %vm163_vm2, %v8858_v14  ;;  %v7364_v28 = vpop.eup %7363  ;;  %v9884_v19 = vsel %vm2205_vm7, %v2207_v49, %v2203_v53  ;;  %v3214_v14 = vsub.f32 0.0, %v9840_v51  ;;  %7128 = vmatmul.msk.f32.gmra.mxu0 %vm76_vm0, %v3850_v37  ;;  %v9897_v56 = vand.u32 2147483647, %v9888_v32  ;;  %v9901_v23 = vadd.f32 1.0, %v1551_v38 }
 0x5c8   :  { %v3659_v7 = vsub.f32 0.0, %v3531_v33  ;;  %v3084_v35 = vadd.f32 0.2548296, %v3020_v13  ;;  %v2637_v16 = vmul.f32 1.0614054, %v9884_v19  ;;  %v2211_v41 = vmul.f32 %v7364_v28, %v9854_v9  ;;  %v9910_v13 = vpop.f32.mrf.mxu0 }
 0x5c9   :  { %v7366_v15 = vpop.eup %7365  ;;  %v1552_v29 = vmul.f32 0.3275911, %v9897_v56  ;;  %vm2216_vm9 = vweird.f32 %v7364_v28  ;;  %7367 = vrcp.f32 %v9901_v23  ;;  %13196 = vst [vmem:[#allocation26_spill] sm:$0xff] %v9910_v13  ;;  %vm2230_vm15 = vweird.f32 %v9901_v23 }
 0x5ca   :  { %v3723_v57 = vsel %vm3595_vm8, %v3659_v7, %v3531_v33  ;;  %v3148_v24 = vmul.f32 %v3084_v35, %v9831_v54  ;;  %v2701_v10 = vadd.f32 -1.4531521, %v2637_v16  ;;  %v2212_v26 = vsub.f32 1.0, %v2211_v41  ;;  %vm2217_vm11 = vmor %vm2215_vm10, %vm2216_vm9 }
 0x5cb   :  { %v3787_v45 = vadd.f32 1.0, %v3723_v57  ;;  %v3278_v33 = vmul.f32 %v3214_v14, %v9840_v51  ;;  %v3378_v16 = vmul.f32 1.442695, %v3277_v59  ;;  %v2222_v41 = vor.u32 1.1754944e-38, %v2221_v52 }
 0x5cc   :  { %v3468_v37 = vmul.f32 %v7366_v15, %v3148_v24  ;;  %v2765_v49 = vmul.f32 %v2701_v10, %v9884_v19  ;;  %v2213_v63 = vmul.f32 %v7364_v28, %v2212_v26  ;;  %v9913_v15 = vadd.f32 1.0, %v1552_v29 }
 0x5cd   :  { %v3851_v54 = vmul.f32 %v3787_v45, %v9852_v1  ;;  %v3380_v38 = vmul.f32 1.442695, %v3278_v33  ;;  %v1356_v10 = vmul.f32 0.5, %v9733_v46  ;;  %v3215_v45 = vsub.f32 0.0, %v9881_v27 }
 0x5ce   :  { %v3532_v53 = vsub.f32 1.0, %v3468_v37  ;;  %v2829_v7 = vadd.f32 1.4214138, %v2765_v49  ;;  %v2214_v35 = vadd.f32 %v7364_v28, %v2213_v63  ;;  %7369 = vrcp.f32 %v9913_v15  ;;  %v1254_v63 = vpop.f32.mrf.mxu3 }
 0x5cf   :  { %7093 = vmatmul.msk.f32.gmra.mxu3 %vm163_vm2, %v8943_v25  ;;  %7129 = vmatmul.msk.f32.gmra.mxu0 %vm76_vm0, %v3851_v54  ;;  %v7368_v59 = vpop.eup %7367  ;;  %7371 = vpow2.f32 %v3378_v16  ;;  %v2234_v37 = vand.u32 2147483647, %v9901_v23  ;;  %v3216_v49 = vsub.f32 0.0, %v9897_v56  ;;  %vm2245_vm6 = vweird.f32 %v9913_v15 }
 0x5d0   :  { %v3660_v25 = vsub.f32 0.0, %v3532_v53  ;;  %v2893_v1 = vmul.f32 %v2829_v7, %v9884_v19  ;;  %v2218_v51 = vsel %vm2217_vm11, %v7364_v28, %v2214_v35  ;;  %v9925_v28 = vmul.f32 0.5, %v9784_v42  ;;  %v9940_v35 = vpop.f32.mrf.mxu0 }
 0x5d1   :  { %v9918_v14 = vsel %vm2220_vm12, %v2222_v41, %v2218_v51  ;;  %v2226_v52 = vmul.f32 %v7368_v59, %v9901_v23  ;;  %7373 = vpow2.f32 %v3380_v38  ;;  %vm2231_vm1 = vweird.f32 %v7368_v59  ;;  %13197 = vst [vmem:[#allocation27_spill] sm:$0xff] %v9940_v35 }
 0x5d2   :  { %v3724_v57 = vsel %vm3596_vm13, %v3660_v25, %v3532_v53  ;;  %v2957_v24 = vadd.f32 -0.28449672, %v2893_v1  ;;  %v2638_v9 = vmul.f32 1.0614054, %v9918_v14  ;;  %v2236_v53 = vand.u32 2147483648, %v9901_v23  ;;  %vm2232_vm4 = vmor %vm2230_vm15, %vm2231_vm1 }
 0x5d3   :  { %v3788_v26 = vadd.f32 1.0, %v3724_v57  ;;  %v2227_v33 = vsub.f32 1.0, %v2226_v52  ;;  %v3279_v42 = vmul.f32 %v3215_v45, %v9881_v27  ;;  %v9937_v7 = vadd.f32 %v9781_v44, %v1251_v34 }
 0x5d4   :  { %v3021_v62 = vmul.f32 %v2957_v24, %v9884_v19  ;;  %v2702_v50 = vadd.f32 -1.4531521, %v2638_v9  ;;  %v7370_v16 = vpop.eup %7369  ;;  %v9944_v51 = vadd.f32 %v9781_v44, %v1254_v63  ;;  %vm9946_vm3 = vcmp.eq.f32.partialorder %v2234_v37, 8.507059e+37 }
 0x5d5   :  { %v3852_v29 = vmul.f32 %v3788_v26, %v1356_v10  ;;  %v2228_v1 = vmul.f32 %v7368_v59, %v2227_v33  ;;  %v7372_v38 = vpop.eup %7371  ;;  %v2241_v27 = vmul.f32 %v7370_v16, %v9913_v15  ;;  %v3280_v34 = vmul.f32 %v3216_v49, %v9897_v56 }
 0x5d6   :  { %v3085_v46 = vadd.f32 0.2548296, %v3021_v62  ;;  %v2766_v54 = vmul.f32 %v2702_v50, %v9918_v14  ;;  %v9953_v24 = vmul.f32 0.70710677, %v9937_v7  ;;  %v2237_v26 = vor.u32 1.1754944e-38, %v2236_v53  ;;  %v1257_v47 = vpop.f32.mrf.mxu3 }
 0x5d7   :  { %7130 = vmatmul.msk.f32.gmra.mxu0 %vm76_vm0, %v3852_v29  ;;  %v2229_v10 = vadd.f32 %v7368_v59, %v2228_v1  ;;  %v7374_v45 = vpop.eup %7373  ;;  %v2242_v62 = vsub.f32 1.0, %v2241_v27  ;;  %v2249_v50 = vand.u32 2147483647, %v9913_v15  ;;  %v2251_v52 = vand.u32 2147483648, %v9913_v15 }
 0x5d8   :  { %v3149_v41 = vmul.f32 %v3085_v46, %v9884_v19  ;;  %v2830_v25 = vadd.f32 1.4214138, %v2766_v54  ;;  %v9962_v56 = vand.u32 2147483647, %v9953_v24  ;;  %v9965_v63 = vmul.f32 0.70710677, %v9944_v51 }
 0x5d9   :  { %v2233_v49 = vsel %vm2232_vm4, %v7368_v59, %v2229_v10  ;;  %v2243_v23 = vmul.f32 %v7370_v16, %v2242_v62  ;;  %vm2246_vm5 = vweird.f32 %v7370_v16  ;;  %v2252_v1 = vor.u32 1.1754944e-38, %v2251_v52  ;;  %v9984_v62 = vpop.f32.mrf.mxu0 }
 0x5da   :  { %v3469_v9 = vmul.f32 %v7372_v38, %v3149_v41  ;;  %v2894_v19 = vmul.f32 %v2830_v25, %v9918_v14  ;;  %v9969_v46 = vsel %vm9946_vm3, %v2237_v26, %v2233_v49  ;;  %v1553_v54 = vmul.f32 0.3275911, %v9962_v56  ;;  %vm2247_vm7 = vmor %vm2245_vm6, %vm2246_vm5  ;;  %13200 = vst [vmem:[#allocation29_spill] sm:$0xff] %v9984_v62 }
 0x5db   :  { %v2639_v41 = vmul.f32 1.0614054, %v9969_v46  ;;  %v9975_v25 = vand.u32 2147483647, %v9965_v63  ;;  %v2244_v59 = vadd.f32 %v7370_v16, %v2243_v23  ;;  %vm2250_vm8 = vcmp.eq.f32.partialorder %v2249_v50, 8.507059e+37 }
 0x5dc   :  { %v3533_v29 = vsub.f32 1.0, %v3469_v9  ;;  %v2958_v37 = vadd.f32 -0.28449672, %v2894_v19  ;;  %v9978_v38 = vadd.f32 1.0, %v1553_v54  ;;  %v3382_v49 = vmul.f32 1.442695, %v3279_v42 }
 0x5dd   :  { %v2703_v9 = vadd.f32 -1.4531521, %v2639_v41  ;;  %v1554_v19 = vmul.f32 0.3275911, %v9975_v25  ;;  %v2248_v26 = vsel %vm2247_vm7, %v7370_v16, %v2244_v59  ;;  %vm3598_vm9 = vcmp.lt.f32.partialorder %v9829_v11, 0.0 }
 0x5de   :  { %v3661_v33 = vsub.f32 0.0, %v3533_v29  ;;  %v3022_v53 = vmul.f32 %v2958_v37, %v9918_v14  ;;  %7375 = vrcp.f32 %v9978_v38  ;;  %v9988_v37 = vsel %vm2250_vm8, %v2252_v1, %v2248_v26 }
 0x5df   :  { %v2767_v52 = vmul.f32 %v2703_v9, %v9969_v46  ;;  %v2640_v23 = vmul.f32 1.0614054, %v9988_v37  ;;  %v9992_v16 = vadd.f32 1.0, %v1554_v19  ;;  %v1358_v1 = vmul.f32 0.5, %v9813_v0 }
 0x5e0   :  { %v3725_v57 = vsel %vm3597_vm14, %v3661_v33, %v3533_v29  ;;  %v3086_v27 = vadd.f32 0.2548296, %v3022_v53  ;;  %v3384_v53 = vmul.f32 1.442695, %v3280_v34  ;;  %v2264_v9 = vand.u32 2147483647, %v9978_v38 }
 0x5e1   :  { %v3789_v10 = vadd.f32 1.0, %v3725_v57  ;;  %v2831_v33 = vadd.f32 1.4214138, %v2767_v52  ;;  %v2704_v50 = vadd.f32 -1.4531521, %v2640_v23  ;;  %7377 = vrcp.f32 %v9992_v16 }
 0x5e2   :  { %v3150_v15 = vmul.f32 %v3086_v27, %v9918_v14  ;;  %7379 = vpow2.f32 %v3382_v49  ;;  %v10001_v27 = vadd.f32 %v9781_v44, %v1257_v47  ;;  %v2266_v26 = vand.u32 2147483648, %v9978_v38 }
 0x5e3   :  { %v3853_v29 = vmul.f32 %v3789_v10, %v9925_v28  ;;  %v2895_v14 = vmul.f32 %v2831_v33, %v9969_v46  ;;  %v2768_v28 = vmul.f32 %v2704_v50, %v9988_v37  ;;  %7381 = vpow2.f32 %v3384_v53  ;;  %v1260_v33 = vpop.f32.mrf.mxu3 }
 0x5e4   :  { %v3470_v54 = vmul.f32 %v7374_v45, %v3150_v15  ;;  %v7376_v59 = vpop.eup %7375  ;;  %vm2260_vm10 = vweird.f32 %v9978_v38  ;;  %v3217_v47 = vsub.f32 0.0, %v9962_v56  ;;  %vm3599_vm12 = vcmp.lt.f32.partialorder %v9873_v17, 0.0 }
 0x5e5   :  { %7131 = vmatmul.msk.f32.gmra.mxu0 %vm76_vm0, %v3853_v29  ;;  %v2959_v45 = vadd.f32 -0.28449672, %v2895_v14  ;;  %v2256_v57 = vmul.f32 %v7376_v59, %v9978_v38  ;;  %v2832_v34 = vadd.f32 1.4214138, %v2768_v28  ;;  %v10010_v29 = vpop.f32.mrf.mxu0  ;;  %vm2261_vm11 = vweird.f32 %v7376_v59 }
 0x5e6   :  { %v3534_v41 = vsub.f32 1.0, %v3470_v54  ;;  %13201 = vst [vmem:[#allocation31_spill] sm:$0xff] %v10010_v29  ;;  %v10013_v54 = vmul.f32 0.70710677, %v10001_v27  ;;  %vm10016_vm13 = vcmp.eq.f32.partialorder %v2264_v9, 8.507059e+37  ;;  %vm2262_vm14 = vmor %vm2260_vm10, %vm2261_vm11  ;;  %v3218_v12 = vsub.f32 0.0, %v9975_v25 }
 0x5e7   :  { %v3023_v10 = vmul.f32 %v2959_v45, %v9969_v46  ;;  %v2257_v0 = vsub.f32 1.0, %v2256_v57  ;;  %v2896_v52 = vmul.f32 %v2832_v34, %v9988_v37  ;;  %v7378_v11 = vpop.eup %7377  ;;  %v2267_v57 = vor.u32 1.1754944e-38, %v2266_v26 }
 0x5e8   :  { %v3662_v42 = vsub.f32 0.0, %v3534_v41  ;;  %v7380_v50 = vpop.eup %7379  ;;  %v2271_v28 = vmul.f32 %v7378_v11, %v9992_v16  ;;  %v10023_v34 = vand.u32 2147483647, %v10013_v54  ;;  %v2279_v9 = vand.u32 2147483647, %v9992_v16 }
 0x5e9   :  { %v3087_v49 = vadd.f32 0.2548296, %v3023_v10  ;;  %v2258_v23 = vmul.f32 %v7376_v59, %v2257_v0  ;;  %v2281_v0 = vand.u32 2147483648, %v9992_v16  ;;  %vm2276_vm15 = vweird.f32 %v7378_v11 }
 0x5ea   :  { %v3726_v19 = vsel %vm3598_vm9, %v3662_v42, %v3534_v41  ;;  %v2960_v41 = vadd.f32 -0.28449672, %v2896_v52  ;;  %v1555_v26 = vmul.f32 0.3275911, %v10023_v34  ;;  %v10034_v52 = vadd.f32 %v9781_v44, %v1260_v33 }
 0x5eb   :  { %v3790_v15 = vadd.f32 1.0, %v3726_v19  ;;  %v3151_v42 = vmul.f32 %v3087_v49, %v9969_v46  ;;  %v2259_v45 = vadd.f32 %v7376_v59, %v2258_v23  ;;  %v7382_v19 = vpop.eup %7381  ;;  %vm2275_vm1 = vweird.f32 %v9992_v16 }
 0x5ec   :  { %v3024_v10 = vmul.f32 %v2960_v41, %v9988_v37  ;;  %v2282_v33 = vor.u32 1.1754944e-38, %v2281_v0  ;;  %vm2277_vm3 = vmor %vm2275_vm1, %vm2276_vm15  ;;  %v10048_v14 = vmul.f32 0.70710677, %v10034_v52  ;;  %vm2280_vm4 = vcmp.eq.f32.partialorder %v2279_v9, 8.507059e+37 }
 0x5ed   :  { %v3854_v53 = vmul.f32 %v3790_v15, %v1358_v1  ;;  %v2272_v1 = vsub.f32 1.0, %v2271_v28  ;;  %v3471_v46 = vmul.f32 %v7380_v50, %v3151_v42  ;;  %v2263_v15 = vsel %vm2262_vm14, %v7376_v59, %v2259_v45 }
 0x5ee   :  { %v3088_v49 = vadd.f32 0.2548296, %v3024_v10  ;;  %v10038_v23 = vsel %vm10016_vm13, %v2267_v57, %v2263_v15  ;;  %v3281_v10 = vmul.f32 %v3217_v47, %v9962_v56  ;;  %v1263_v15 = vpop.f32.mrf.mxu3  ;;  %v3282_v56 = vmul.f32 %v3218_v12, %v9975_v25 }
 0x5ef   :  { %7132 = vmatmul.msk.f32.gmra.mxu0 %vm76_vm0, %v3854_v53  ;;  %v2273_v38 = vmul.f32 %v7378_v11, %v2272_v1  ;;  %v3535_v41 = vsub.f32 1.0, %v3471_v46  ;;  %v2641_v28 = vmul.f32 1.0614054, %v10038_v23  ;;  %v10042_v53 = vadd.f32 1.0, %v1555_v26  ;;  %v10051_v46 = vpop.f32.mrf.mxu0 }
 0x5f0   :  { %v3152_v59 = vmul.f32 %v3088_v49, %v9988_v37  ;;  %13204 = vst [vmem:[#allocation33_spill] sm:$0xff] %v10051_v46  ;;  %v1359_v26 = vmul.f32 0.5, %v9857_v2  ;;  %v10062_v47 = vand.u32 2147483647, %v10048_v14  ;;  %v3386_v9 = vmul.f32 1.442695, %v3281_v10 }
 0x5f1   :  { %v2274_v50 = vadd.f32 %v7378_v11, %v2273_v38  ;;  %v3663_v42 = vsub.f32 0.0, %v3535_v41  ;;  %v2705_v45 = vadd.f32 -1.4531521, %v2641_v28  ;;  %7383 = vrcp.f32 %v10042_v53 }
 0x5f2   :  { %v3472_v57 = vmul.f32 %v7382_v19, %v3152_v59  ;;  %vm3600_vm5 = vcmp.lt.f32.partialorder %v9888_v32, 0.0  ;;  %v1556_v2 = vmul.f32 0.3275911, %v10062_v47  ;;  %v3388_v10 = vmul.f32 1.442695, %v3282_v56 }
 0x5f3   :  { %v2278_v1 = vsel %vm2277_vm3, %v7378_v11, %v2274_v50  ;;  %v3727_v37 = vsel %vm3599_vm12, %v3663_v42, %v3535_v41  ;;  %v2769_v16 = vmul.f32 %v2705_v45, %v10038_v23  ;;  %7385 = vpow2.f32 %v3386_v9 }
 0x5f4   :  { %v10056_v0 = vsel %vm2280_vm4, %v2282_v33, %v2278_v1  ;;  %v3791_v49 = vadd.f32 1.0, %v3727_v37  ;;  %v3536_v38 = vsub.f32 1.0, %v3472_v57  ;;  %v1360_v33 = vmul.f32 0.5, %v9868_v43 }
 0x5f5   :  { %v2642_v19 = vmul.f32 1.0614054, %v10056_v0  ;;  %v2833_v28 = vadd.f32 1.4214138, %v2769_v16  ;;  %v10071_v1 = vadd.f32 1.0, %v1556_v2  ;;  %v2296_v43 = vand.u32 2147483648, %v10042_v53 }
 0x5f6   :  { %v3855_v11 = vmul.f32 %v3791_v49, %v1359_v26  ;;  %v3664_v17 = vsub.f32 0.0, %v3536_v38  ;;  %v2294_v16 = vand.u32 2147483647, %v10042_v53  ;;  %v10078_v49 = vadd.f32 %v9781_v44, %v1263_v15  ;;  %v1266_v9 = vpop.f32.mrf.mxu3 }
 0x5f7   :  { %v2706_v41 = vadd.f32 -1.4531521, %v2642_v19  ;;  %v7384_v59 = vpop.eup %7383  ;;  %v2897_v50 = vmul.f32 %v2833_v28, %v10038_v23  ;;  %7387 = vrcp.f32 %v10071_v1  ;;  %v10081_v56 = vpop.f32.mrf.mxu0  ;;  %vm2290_vm7 = vweird.f32 %v10042_v53 }
 0x5f8   :  { %v3728_v42 = vsel %vm3600_vm5, %v3664_v17, %v3536_v38  ;;  %v2286_v12 = vmul.f32 %v7384_v59, %v10042_v53  ;;  %7133 = vmatmul.msk.f32.gmra.mxu0 %vm76_vm0, %v3855_v11  ;;  %vm2291_vm6 = vweird.f32 %v7384_v59  ;;  %13205 = vst [vmem:[#allocation35_spill] sm:$0xff] %v10081_v56  ;;  %v1361_v11 = vmul.f32 0.5, %v9937_v7 }
 0x5f9   :  { %v2770_v45 = vmul.f32 %v2706_v41, %v10056_v0  ;;  %v3792_v25 = vadd.f32 1.0, %v3728_v42  ;;  %v2961_v57 = vadd.f32 -0.28449672, %v2897_v50  ;;  %v3219_v2 = vsub.f32 0.0, %v10023_v34  ;;  %vm2292_vm8 = vmor %vm2290_vm7, %vm2291_vm6 }
 0x5fa   :  { %v2287_v37 = vsub.f32 1.0, %v2286_v12  ;;  %7389 = vpow2.f32 %v3388_v10  ;;  %v10088_v42 = vmul.f32 0.70710677, %v10078_v49  ;;  %vm2295_vm9 = vcmp.eq.f32.partialorder %v2294_v16, 8.507059e+37 }
 0x5fb   :  { %v2834_v32 = vadd.f32 1.4214138, %v2770_v45  ;;  %v3025_v26 = vmul.f32 %v2961_v57, %v10038_v23  ;;  %v3856_v38 = vmul.f32 %v3792_v25, %v1360_v33  ;;  %v2297_v33 = vor.u32 1.1754944e-38, %v2296_v43  ;;  %v7386_v45 = vpop.eup %7385 }
 0x5fc   :  { %v2288_v28 = vmul.f32 %v7384_v59, %v2287_v37  ;;  %v10092_v25 = vadd.f32 %v9781_v44, %v1266_v9  ;;  %vm3601_vm10 = vcmp.lt.f32.partialorder %v9953_v24, 0.0  ;;  %v10099_v10 = vand.u32 2147483647, %v10088_v42 }
 0x5fd   :  { %v2898_v19 = vmul.f32 %v2834_v32, %v10056_v0  ;;  %v3089_v17 = vadd.f32 0.2548296, %v3025_v26  ;;  %v7388_v53 = vpop.eup %7387  ;;  %v2309_v43 = vand.u32 2147483647, %v10071_v1  ;;  %vm2305_vm12 = vweird.f32 %v10071_v1 }
 0x5fe   :  { %v2289_v50 = vadd.f32 %v7384_v59, %v2288_v28  ;;  %v2301_v16 = vmul.f32 %v7388_v53, %v10071_v1  ;;  %vm2306_vm11 = vweird.f32 %v7388_v53  ;;  %vm3602_vm15 = vcmp.lt.f32.partialorder %v9965_v63, 0.0 }
 0x5ff   :  { %v2962_v41 = vadd.f32 -0.28449672, %v2898_v19  ;;  %v3153_v15 = vmul.f32 %v3089_v17, %v10038_v23  ;;  %v1557_v19 = vmul.f32 0.3275911, %v10099_v10  ;;  %vm2307_vm13 = vmor %vm2305_vm12, %vm2306_vm11  ;;  %vm2310_vm14 = vcmp.eq.f32.partialorder %v2309_v43, 8.507059e+37 }
 0x600   :  { %v2293_v7 = vsel %vm2292_vm8, %v7384_v59, %v2289_v50  ;;  %7134 = vmatmul.msk.f32.gmra.mxu0 %vm76_vm0, %v3856_v38  ;;  %v3283_v59 = vmul.f32 %v3219_v2, %v10023_v34  ;;  %v3220_v38 = vsub.f32 0.0, %v10062_v47  ;;  %v2302_v9 = vsub.f32 1.0, %v2301_v16  ;;  %v7390_v50 = vpop.eup %7389 }
 0x601   :  { %v3026_v12 = vmul.f32 %v2962_v41, %v10056_v0  ;;  %v3473_v57 = vmul.f32 %v7386_v45, %v3153_v15  ;;  %v10096_v23 = vsel %vm2295_vm9, %v2297_v33, %v2293_v7  ;;  %v10109_v41 = vmul.f32 0.70710677, %v10092_v25 }
 0x602   :  { %v2643_v37 = vmul.f32 1.0614054, %v10096_v23  ;;  %v2311_v34 = vand.u32 2147483648, %v10071_v1  ;;  %v10112_v2 = vadd.f32 1.0, %v1557_v19  ;;  %v1362_v63 = vmul.f32 0.5, %v9944_v51 }
 0x603   :  { %v3090_v32 = vadd.f32 0.2548296, %v3026_v12  ;;  %v3537_v26 = vsub.f32 1.0, %v3473_v57  ;;  %v2303_v12 = vmul.f32 %v7388_v53, %v2302_v9  ;;  %v10116_v7 = vand.u32 2147483647, %v10109_v41 }
 0x604   :  { %v2707_v17 = vadd.f32 -1.4531521, %v2643_v37  ;;  %7391 = vrcp.f32 %v10112_v2  ;;  %v3284_v9 = vmul.f32 %v3220_v38, %v10062_v47  ;;  %vm2320_vm3 = vweird.f32 %v10112_v2 }
 0x605   :  { %v3154_v28 = vmul.f32 %v3090_v32, %v10056_v0  ;;  %v3665_v15 = vsub.f32 0.0, %v3537_v26  ;;  %v10118_v0 = vpop.f32.mrf.mxu0  ;;  %v3390_v32 = vmul.f32 1.442695, %v3283_v59  ;;  %v1558_v4 = vmul.f32 0.3275911, %v10116_v7 }
 0x606   :  { %v2771_v45 = vmul.f32 %v2707_v17, %v10096_v23  ;;  %13206 = vst [vmem:[#allocation36_spill] sm:$0xff] %v10118_v0  ;;  %v2312_v17 = vor.u32 1.1754944e-38, %v2311_v34  ;;  %vm3603_vm7 = vcmp.lt.f32.partialorder %v10013_v54, 0.0  ;;  %vm3604_vm11 = vcmp.lt.f32.partialorder %v10048_v14, 0.0 }
 0x607   :  { %v3474_v33 = vmul.f32 %v7390_v50, %v3154_v28  ;;  %v3729_v57 = vsel %vm3601_vm10, %v3665_v15, %v3537_v26  ;;  %v2304_v28 = vadd.f32 %v7388_v53, %v2303_v12  ;;  %v1269_v50 = vpop.f32.mrf.mxu3  ;;  %7393 = vpow2.f32 %v3390_v32 }
 0x608   :  { %v3793_v37 = vadd.f32 1.0, %v3729_v57  ;;  %v2835_v19 = vadd.f32 1.4214138, %v2771_v45  ;;  %v2324_v32 = vand.u32 2147483647, %v10112_v2 }
 0x609   :  { %v3538_v16 = vsub.f32 1.0, %v3474_v33  ;;  %v2308_v1 = vsel %vm2307_vm13, %v7388_v53, %v2304_v28  ;;  %v10131_v33 = vadd.f32 1.0, %v1558_v4  ;;  %v10137_v53 = vadd.f32 %v9781_v44, %v1269_v50 }
 0x60a   :  { %v3857_v24 = vmul.f32 %v3793_v37, %v1361_v11  ;;  %v2899_v59 = vmul.f32 %v2835_v19, %v10096_v23  ;;  %v10129_v15 = vsel %vm2310_vm14, %v2312_v17, %v2308_v1  ;;  %v7392_v47 = vpop.eup %7391  ;;  %v3392_v11 = vmul.f32 1.442695, %v3284_v9 }
 0x60b   :  { %v3666_v26 = vsub.f32 0.0, %v3538_v16  ;;  %v2644_v43 = vmul.f32 1.0614054, %v10129_v15  ;;  %7395 = vrcp.f32 %v10131_v33  ;;  %v2316_v57 = vmul.f32 %v7392_v47, %v10112_v2 }
 0x60c   :  { %v2963_v12 = vadd.f32 -0.28449672, %v2899_v59  ;;  %7135 = vmatmul.msk.f32.gmra.mxu0 %vm76_vm0, %v3857_v24  ;;  %v3221_v37 = vsub.f32 0.0, %v10099_v10  ;;  %7397 = vpow2.f32 %v3392_v11  ;;  %v2326_v50 = vand.u32 2147483648, %v10112_v2 }
 0x60d   :  { %v3730_v45 = vsel %vm3602_vm15, %v3666_v26, %v3538_v16  ;;  %v2708_v34 = vadd.f32 -1.4531521, %v2644_v43  ;;  %v2317_v17 = vsub.f32 1.0, %v2316_v57  ;;  %v10145_v9 = vpop.f32.mrf.mxu0  ;;  %v10149_v51 = vmul.f32 0.70710677, %v10137_v53  ;;  %v7394_v24 = vpop.eup %7393 }
 0x60e   :  { %v3794_v38 = vadd.f32 1.0, %v3730_v45  ;;  %v3027_v4 = vmul.f32 %v2963_v12, %v10096_v23  ;;  %13207 = vst [vmem:[#allocation54_spill] sm:$0xff] %v10145_v9  ;;  %vm2321_vm1 = vweird.f32 %v7392_v47  ;;  %vm10153_vm4 = vcmp.eq.f32.partialorder %v2324_v32, 8.507059e+37 }
 0x60f   :  { %v2772_v28 = vmul.f32 %v2708_v34, %v10129_v15  ;;  %v2318_v1 = vmul.f32 %v7392_v47, %v2317_v17  ;;  %v1272_v45 = vpop.f32.mrf.mxu3  ;;  %v10159_v11 = vand.u32 2147483647, %v10149_v51  ;;  %vm2322_vm5 = vmor %vm2320_vm3, %vm2321_vm1  ;;  %v2327_v57 = vor.u32 1.1754944e-38, %v2326_v50 }
 0x610   :  { %v3858_v16 = vmul.f32 %v3794_v38, %v1362_v63  ;;  %v3091_v19 = vadd.f32 0.2548296, %v3027_v4  ;;  %v3285_v38 = vmul.f32 %v3221_v37, %v10099_v10  ;;  %v2339_v2 = vand.u32 2147483647, %v10131_v33 }
 0x611   :  { %v2836_v59 = vadd.f32 1.4214138, %v2772_v28  ;;  %v7396_v12 = vpop.eup %7395  ;;  %v2341_v32 = vand.u32 2147483648, %v10131_v33  ;;  %vm2335_vm8 = vweird.f32 %v10131_v33  ;;  %vm3605_vm1 = vcmp.lt.f32.partialorder %v10088_v42, 0.0 }
 0x612   :  { %v3155_v26 = vmul.f32 %v3091_v19, %v10096_v23  ;;  %v2319_v23 = vadd.f32 %v7392_v47, %v2318_v1  ;;  %v2331_v34 = vmul.f32 %v7396_v12, %v10131_v33  ;;  %v1559_v19 = vmul.f32 0.3275911, %v10159_v11 }
 0x613   :  { %v2900_v4 = vmul.f32 %v2836_v59, %v10129_v15  ;;  %vm2336_vm6 = vweird.f32 %v7396_v12  ;;  %vm2340_vm10 = vcmp.eq.f32.partialorder %v2339_v2, 8.507059e+37  ;;  %vm3606_vm3 = vcmp.lt.f32.partialorder %v10109_v41, 0.0 }
 0x614   :  { %v3475_v63 = vmul.f32 %v7394_v24, %v3155_v26  ;;  %7136 = vmatmul.msk.f32.gmra.mxu0 %vm76_vm0, %v3858_v16  ;;  %v2323_v28 = vsel %vm2322_vm5, %v7392_v47, %v2319_v23  ;;  %v2332_v17 = vsub.f32 1.0, %v2331_v34  ;;  %v7398_v24 = vpop.eup %7397  ;;  %v10171_v59 = vadd.f32 1.0, %v1559_v19  ;;  %vm2337_vm9 = vmor %vm2335_vm8, %vm2336_vm6 }
 0x615   :  { %v2964_v37 = vadd.f32 -0.28449672, %v2900_v4  ;;  %v10169_v26 = vsel %vm10153_vm4, %v2327_v57, %v2323_v28  ;;  %v10174_v16 = vadd.f32 %v9781_v44, %v1272_v45  ;;  %v1363_v47 = vmul.f32 0.5, %v10001_v27  ;;  %v10182_v44 = vpop.f32.mrf.mxu0 }
 0x616   :  { %v3539_v10 = vsub.f32 1.0, %v3475_v63  ;;  %v2645_v48 = vmul.f32 1.0614054, %v10169_v26  ;;  %v2333_v63 = vmul.f32 %v7396_v12, %v2332_v17  ;;  %7399 = vrcp.f32 %v10171_v59  ;;  %13210 = vst [vmem:[#allocation55_spill] sm:$0xff] %v10182_v44 }
 0x617   :  { %v3028_v1 = vmul.f32 %v2964_v37, %v10129_v15  ;;  %v3394_v57 = vmul.f32 1.442695, %v3285_v38  ;;  %v2342_v19 = vor.u32 1.1754944e-38, %v2341_v32  ;;  %v10188_v33 = vmul.f32 0.70710677, %v10174_v16 }
 0x618   :  { %v3667_v50 = vsub.f32 0.0, %v3539_v10  ;;  %v2709_v23 = vadd.f32 -1.4531521, %v2645_v48  ;;  %v2334_v34 = vadd.f32 %v7396_v12, %v2333_v63  ;;  %v3222_v17 = vsub.f32 0.0, %v10116_v7 }
 0x619   :  { %v3092_v4 = vadd.f32 0.2548296, %v3028_v1  ;;  %v10195_v2 = vand.u32 2147483647, %v10188_v33  ;;  %7401 = vpow2.f32 %v3394_v57  ;;  %vm2350_vm13 = vweird.f32 %v10171_v59 }
 0x61a   :  { %v3731_v43 = vsel %vm3603_vm7, %v3667_v50, %v3539_v10  ;;  %v2773_v54 = vmul.f32 %v2709_v23, %v10169_v26  ;;  %v2338_v37 = vsel %vm2337_vm9, %v7396_v12, %v2334_v34  ;;  %v1275_v10 = vpop.f32.mrf.mxu3  ;;  %v10201_v12 = vld [vmem:[%s12997_s9] ss:$0 sm:$0xff]  ;;  %v2354_v23 = vand.u32 2147483647, %v10171_v59 }
 0x61b   :  { %v3795_v45 = vadd.f32 1.0, %v3731_v43  ;;  %v3156_v27 = vmul.f32 %v3092_v4, %v10129_v15  ;;  %v10190_v48 = vsel %vm2340_vm10, %v2342_v19, %v2338_v37  ;;  %v10204_v32 = vadd.f32 %v10201_v12, %v1275_v10 }
 0x61c   :  { %v2837_v38 = vadd.f32 1.4214138, %v2773_v54  ;;  %v2646_v1 = vmul.f32 1.0614054, %v10190_v48  ;;  %v7400_v15 = vpop.eup %7399  ;;  %v3286_v4 = vmul.f32 %v3222_v17, %v10116_v7  ;;  %v3223_v34 = vsub.f32 0.0, %v10159_v11 }
 0x61d   :  { %v3859_v28 = vmul.f32 %v3795_v45, %v1363_v47  ;;  %v3476_v50 = vmul.f32 %v7398_v24, %v3156_v27  ;;  %v2346_v43 = vmul.f32 %v7400_v15, %v10171_v59  ;;  %v1560_v45 = vmul.f32 0.3275911, %v10195_v2 }
 0x61e   :  { %v2901_v63 = vmul.f32 %v2837_v38, %v10169_v26  ;;  %v2710_v47 = vadd.f32 -1.4531521, %v2646_v1  ;;  %vm2351_vm12 = vweird.f32 %v7400_v15  ;;  %v2356_v37 = vand.u32 2147483648, %v10171_v59  ;;  %v10223_v1 = vpop.f32.mrf.mxu0 }
 0x61f   :  { %7137 = vmatmul.msk.f32.gmra.mxu0 %vm76_vm0, %v3859_v28  ;;  %v3540_v24 = vsub.f32 1.0, %v3476_v50  ;;  %v2347_v54 = vsub.f32 1.0, %v2346_v43  ;;  %v10215_v10 = vadd.f32 1.0, %v1560_v45  ;;  %v10218_v28 = vmul.f32 0.70710677, %v10204_v32  ;;  %13211 = vst [vmem:[#allocation56_spill] sm:$0xff] %v10223_v1  ;;  %vm2352_vm14 = vmor %vm2350_vm13, %vm2351_vm12 }
 0x620   :  { %v2965_v19 = vadd.f32 -0.28449672, %v2901_v63  ;;  %v2774_v27 = vmul.f32 %v2710_v47, %v10190_v48  ;;  %v7402_v63 = vpop.eup %7401  ;;  %v1364_v47 = vmul.f32 0.5, %v10034_v52  ;;  %v3396_v21 = vmul.f32 1.442695, %v3286_v4 }
 0x621   :  { %v3668_v57 = vsub.f32 0.0, %v3540_v24  ;;  %v2348_v38 = vmul.f32 %v7400_v15, %v2347_v54  ;;  %7403 = vrcp.f32 %v10215_v10  ;;  %vm2355_vm15 = vcmp.eq.f32.partialorder %v2354_v23, 8.507059e+37 }
 0x622   :  { %v3029_v17 = vmul.f32 %v2965_v19, %v10169_v26  ;;  %v2838_v50 = vadd.f32 1.4214138, %v2774_v27  ;;  %v1278_v14 = vpop.f32.mrf.mxu3  ;;  %v3287_v19 = vmul.f32 %v3223_v34, %v10159_v11  ;;  %v10232_v27 = vand.u32 2147483647, %v10218_v28 }
 0x623   :  { %v3732_v7 = vsel %vm3604_vm11, %v3668_v57, %v3540_v24  ;;  %v2349_v35 = vadd.f32 %v7400_v15, %v2348_v38  ;;  %v2357_v57 = vor.u32 1.1754944e-38, %v2356_v37  ;;  %7405 = vpow2.f32 %v3396_v21 }
 0x624   :  { %v3796_v43 = vadd.f32 1.0, %v3732_v7  ;;  %v3093_v45 = vadd.f32 0.2548296, %v3029_v17  ;;  %v2902_v13 = vmul.f32 %v2838_v50, %v10190_v48  ;;  %v1561_v59 = vmul.f32 0.3275911, %v10232_v27 }
 0x625   :  { %v2353_v54 = vsel %vm2352_vm14, %v7400_v15, %v2349_v35  ;;  %v1365_v50 = vmul.f32 0.5, %v10078_v49  ;;  %v1366_v38 = vmul.f32 0.5, %v10092_v25  ;;  %v2371_v25 = vand.u32 2147483648, %v10215_v10 }
 0x626   :  { %v3860_v24 = vmul.f32 %v3796_v43, %v1364_v47  ;;  %v3157_v52 = vmul.f32 %v3093_v45, %v10169_v26  ;;  %v2966_v4 = vadd.f32 -0.28449672, %v2902_v13  ;;  %v10235_v7 = vsel %vm2355_vm15, %v2357_v57, %v2353_v54  ;;  %v10254_v57 = vpop.f32.mrf.mxu0 }
 0x627   :  { %v2647_v11 = vmul.f32 1.0614054, %v10235_v7  ;;  %v7404_v34 = vpop.eup %7403  ;;  %v3398_v13 = vmul.f32 1.442695, %v3287_v19  ;;  %v10243_v35 = vadd.f32 1.0, %v1561_v59  ;;  %v10250_v47 = vadd.f32 %v10201_v12, %v1278_v14  ;;  %13212 = vst [vmem:[#allocation57_spill] sm:$0xff] %v10254_v57 }
 0x628   :  { %7138 = vmatmul.msk.f32.gmra.mxu0 %vm76_vm0, %v3860_v24  ;;  %v3477_v17 = vmul.f32 %v7402_v63, %v3157_v52  ;;  %v3030_v37 = vmul.f32 %v2966_v4, %v10190_v48  ;;  %v2361_v23 = vmul.f32 %v7404_v34, %v10215_v10  ;;  %v2369_v63 = vand.u32 2147483647, %v10215_v10 }
 0x629   :  { %v2711_v15 = vadd.f32 -1.4531521, %v2647_v11  ;;  %7407 = vrcp.f32 %v10243_v35  ;;  %v7406_v19 = vpop.eup %7405  ;;  %vm2366_vm4 = vweird.f32 %v7404_v34  ;;  %vm2365_vm5 = vweird.f32 %v10215_v10 }
 0x62a   :  { %v3541_v21 = vsub.f32 1.0, %v3477_v17  ;;  %v3094_v26 = vadd.f32 0.2548296, %v3030_v37  ;;  %v2362_v24 = vsub.f32 1.0, %v2361_v23  ;;  %7409 = vpow2.f32 %v3398_v13  ;;  %v1281_v59 = vpop.f32.mrf.mxu3  ;;  %vm2367_vm7 = vmor %vm2365_vm5, %vm2366_vm4 }
 0x62b   :  { %v2775_v45 = vmul.f32 %v2711_v15, %v10235_v7  ;;  %v3224_v17 = vsub.f32 0.0, %v10195_v2  ;;  %v10263_v37 = vmul.f32 0.70710677, %v10250_v47  ;;  %vm2370_vm6 = vcmp.eq.f32.partialorder %v2369_v63, 8.507059e+37 }
 0x62c   :  { %v3669_v49 = vsub.f32 0.0, %v3541_v21  ;;  %v3158_v43 = vmul.f32 %v3094_v26, %v10190_v48  ;;  %v2363_v54 = vmul.f32 %v7404_v34, %v2362_v24  ;;  %v10271_v10 = vadd.f32 %v10201_v12, %v1281_v59 }
 0x62d   :  { %v2839_v4 = vadd.f32 1.4214138, %v2775_v45  ;;  %v10268_v23 = vand.u32 2147483647, %v10263_v37  ;;  %v3288_v63 = vmul.f32 %v3224_v17, %v10195_v2  ;;  %vm2380_vm9 = vweird.f32 %v10243_v35 }
 0x62e   :  { %v3733_v52 = vsel %vm3605_vm1, %v3669_v49, %v3541_v21  ;;  %v3478_v14 = vmul.f32 %v7406_v19, %v3158_v43  ;;  %v2364_v26 = vadd.f32 %v7404_v34, %v2363_v54  ;;  %v2372_v21 = vor.u32 1.1754944e-38, %v2371_v25 }
 0x62f   :  { %v3797_v48 = vadd.f32 1.0, %v3733_v52  ;;  %v2903_v13 = vmul.f32 %v2839_v4, %v10235_v7  ;;  %v7408_v15 = vpop.eup %7407  ;;  %v1562_v25 = vmul.f32 0.3275911, %v10268_v23  ;;  %vm3607_vm12 = vcmp.lt.f32.partialorder %v10149_v51, 0.0 }
 0x630   :  { %v3542_v11 = vsub.f32 1.0, %v3478_v14  ;;  %v2368_v45 = vsel %vm2367_vm7, %v7404_v34, %v2364_v26  ;;  %v2376_v24 = vmul.f32 %v7408_v15, %v10243_v35  ;;  %v7410_v19 = vpop.eup %7409  ;;  %vm2381_vm8 = vweird.f32 %v7408_v15 }
 0x631   :  { %v3861_v42 = vmul.f32 %v3797_v48, %v1365_v50  ;;  %v2967_v43 = vadd.f32 -0.28449672, %v2903_v13  ;;  %v10274_v52 = vsel %vm2370_vm6, %v2372_v21, %v2368_v45  ;;  %v2384_v50 = vand.u32 2147483647, %v10243_v35  ;;  %vm2382_vm10 = vmor %vm2380_vm9, %vm2381_vm8 }
 0x632   :  { %v3670_v49 = vsub.f32 0.0, %v3542_v11  ;;  %v2648_v34 = vmul.f32 1.0614054, %v10274_v52  ;;  %v2377_v54 = vsub.f32 1.0, %v2376_v24  ;;  %v2386_v48 = vand.u32 2147483648, %v10243_v35  ;;  %v1284_v45 = vpop.f32.mrf.mxu3 }
 0x633   :  { %7139 = vmatmul.msk.f32.gmra.mxu0 %vm76_vm0, %v3861_v42  ;;  %v3031_v4 = vmul.f32 %v2967_v43, %v10235_v7  ;;  %v10285_v13 = vadd.f32 1.0, %v1562_v25  ;;  %v10288_v21 = vmul.f32 0.70710677, %v10271_v10  ;;  %v10290_v42 = vpop.f32.mrf.mxu0  ;;  %v3400_v24 = vmul.f32 1.442695, %v3288_v63 }
 0x634   :  { %v3734_v14 = vsel %vm3606_vm3, %v3670_v49, %v3542_v11  ;;  %v2712_v17 = vadd.f32 -1.4531521, %v2648_v34  ;;  %v2378_v26 = vmul.f32 %v7408_v15, %v2377_v54  ;;  %13213 = vst [vmem:[#allocation58_spill] sm:$0xff] %v10290_v42  ;;  %v2387_v25 = vor.u32 1.1754944e-38, %v2386_v48 }
 0x635   :  { %v3798_v59 = vadd.f32 1.0, %v3734_v14  ;;  %v3095_v2 = vadd.f32 0.2548296, %v3031_v4  ;;  %7411 = vrcp.f32 %v10285_v13  ;;  %v3225_v14 = vsub.f32 0.0, %v10232_v27 }
 0x636   :  { %v2776_v49 = vmul.f32 %v2712_v17, %v10274_v52  ;;  %v2379_v43 = vadd.f32 %v7408_v15, %v2378_v26  ;;  %v10299_v4 = vand.u32 2147483647, %v10288_v21  ;;  %vm2385_vm11 = vcmp.eq.f32.partialorder %v2384_v50, 8.507059e+37 }
 0x637   :  { %v3862_v41 = vmul.f32 %v3798_v59, %v1366_v38  ;;  %v3159_v11 = vmul.f32 %v3095_v2, %v10235_v7  ;;  %7413 = vpow2.f32 %v3400_v24  ;;  %v3289_v17 = vmul.f32 %v3225_v14, %v10232_v27 }
 0x638   :  { %v2840_v34 = vadd.f32 1.4214138, %v2776_v49  ;;  %v2383_v54 = vsel %vm2382_vm10, %v7408_v15, %v2379_v43  ;;  %v1563_v59 = vmul.f32 0.3275911, %v10299_v4  ;;  %v1367_v49 = vmul.f32 0.5, %v10137_v53 }
 0x639   :  { %v3479_v38 = vmul.f32 %v7410_v19, %v3159_v11  ;;  %v10301_v7 = vsel %vm2385_vm11, %v2387_v25, %v2383_v54  ;;  %v2399_v54 = vand.u32 2147483647, %v10285_v13  ;;  %v2401_v53 = vand.u32 2147483648, %v10285_v13 }
 0x63a   :  { %v2904_v63 = vmul.f32 %v2840_v34, %v10274_v52  ;;  %v2649_v48 = vmul.f32 1.0614054, %v10301_v7  ;;  %v10308_v26 = vadd.f32 1.0, %v1563_v59  ;;  %v3402_v34 = vmul.f32 1.442695, %v3289_v17 }
 0x63b   :  { %7140 = vmatmul.msk.f32.gmra.mxu0 %vm76_vm0, %v3862_v41  ;;  %v3543_v35 = vsub.f32 1.0, %v3479_v38  ;;  %v7412_v2 = vpop.eup %7411  ;;  %v10315_v41 = vadd.f32 %v10201_v12, %v1284_v45  ;;  %v10319_v14 = vpop.f32.mrf.mxu0  ;;  %vm3608_vm14 = vcmp.lt.f32.partialorder %v10188_v33, 0.0  ;;  %vm2395_vm15 = vweird.f32 %v10285_v13 }
 0x63c   :  { %v2968_v15 = vadd.f32 -0.28449672, %v2904_v63  ;;  %v2713_v50 = vadd.f32 -1.4531521, %v2649_v48  ;;  %v2391_v11 = vmul.f32 %v7412_v2, %v10285_v13  ;;  %7415 = vrcp.f32 %v10308_v26  ;;  %13214 = vst [vmem:[#allocation59_spill] sm:$0xff] %v10319_v14  ;;  %v1287_v45 = vpop.f32.mrf.mxu3 }
 0x63d   :  { %v3671_v19 = vsub.f32 0.0, %v3543_v35  ;;  %vm2396_vm13 = vweird.f32 %v7412_v2  ;;  %v7414_v48 = vpop.eup %7413  ;;  %7417 = vpow2.f32 %v3402_v34  ;;  %vm2400_vm3 = vcmp.eq.f32.partialorder %v2399_v54, 8.507059e+37 }
 0x63e   :  { %v3032_v24 = vmul.f32 %v2968_v15, %v10274_v52  ;;  %v2777_v27 = vmul.f32 %v2713_v50, %v10301_v7  ;;  %v2392_v25 = vsub.f32 1.0, %v2391_v11  ;;  %v10329_v11 = vmul.f32 0.70710677, %v10315_v41  ;;  %vm2397_vm1 = vmor %vm2395_vm15, %vm2396_vm13 }
 0x63f   :  { %v3735_v43 = vsel %vm3607_vm12, %v3671_v19, %v3543_v35  ;;  %v1368_v19 = vmul.f32 0.5, %v10174_v16  ;;  %vm2410_vm5 = vweird.f32 %v10308_v26  ;;  %vm3609_vm8 = vcmp.lt.f32.partialorder %v10218_v28, 0.0 }
 0x640   :  { %v3799_v38 = vadd.f32 1.0, %v3735_v43  ;;  %v3096_v51 = vadd.f32 0.2548296, %v3032_v24  ;;  %v2841_v59 = vadd.f32 1.4214138, %v2777_v27  ;;  %v2393_v63 = vmul.f32 %v7412_v2, %v2392_v25 }
 0x641   :  { %v2402_v24 = vor.u32 1.1754944e-38, %v2401_v53  ;;  %v10341_v34 = vand.u32 2147483647, %v10329_v11  ;;  %vm3610_vm10 = vcmp.lt.f32.partialorder %v10263_v37, 0.0  ;;  %vm3611_vm15 = vcmp.lt.f32.partialorder %v10288_v21, 0.0 }
 0x642   :  { %v3863_v35 = vmul.f32 %v3799_v38, %v1367_v49  ;;  %v3160_v15 = vmul.f32 %v3096_v51, %v10274_v52  ;;  %v2905_v17 = vmul.f32 %v2841_v59, %v10301_v7  ;;  %v2394_v50 = vadd.f32 %v7412_v2, %v2393_v63  ;;  %v7416_v43 = vpop.eup %7415 }
 0x643   :  { %v10332_v49 = vadd.f32 %v10201_v12, %v1287_v45  ;;  %v2406_v52 = vmul.f32 %v7416_v43, %v10308_v26  ;;  %v3226_v38 = vsub.f32 0.0, %v10268_v23  ;;  %v2414_v51 = vand.u32 2147483647, %v10308_v26 }
 0x644   :  { %7141 = vmatmul.msk.f32.gmra.mxu0 %vm76_vm0, %v3863_v35  ;;  %v3480_v16 = vmul.f32 %v7414_v48, %v3160_v15  ;;  %v2969_v13 = vadd.f32 -0.28449672, %v2905_v17  ;;  %v2398_v27 = vsel %vm2397_vm1, %v7412_v2, %v2394_v50  ;;  %vm2411_vm4 = vweird.f32 %v7416_v43 }
 0x645   :  { %v10336_v25 = vsel %vm2400_vm3, %v2402_v24, %v2398_v27  ;;  %v2407_v63 = vsub.f32 1.0, %v2406_v52  ;;  %v2416_v2 = vand.u32 2147483648, %v10308_v26  ;;  %v1564_v45 = vmul.f32 0.3275911, %v10341_v34  ;;  %v10350_v24 = vpop.f32.mrf.mxu0  ;;  %vm2412_vm6 = vmor %vm2410_vm5, %vm2411_vm4 }
 0x646   :  { %v3544_v54 = vsub.f32 1.0, %v3480_v16  ;;  %v3033_v53 = vmul.f32 %v2969_v13, %v10301_v7  ;;  %v2650_v59 = vmul.f32 1.0614054, %v10336_v25  ;;  %v10348_v48 = vmul.f32 0.70710677, %v10332_v49  ;;  %13215 = vst [vmem:[#allocation60_spill] sm:$0xff] %v10350_v24  ;;  %v7418_v16 = vpop.eup %7417 }
 0x647   :  { %v2408_v50 = vmul.f32 %v7416_v43, %v2407_v63  ;;  %v3290_v13 = vmul.f32 %v3226_v38, %v10268_v23  ;;  %v3227_v27 = vsub.f32 0.0, %v10299_v4  ;;  %v10355_v52 = vadd.f32 1.0, %v1564_v45  ;;  %v1290_v63 = vpop.f32.mrf.mxu3 }
 0x648   :  { %v3672_v35 = vsub.f32 0.0, %v3544_v54  ;;  %v3097_v15 = vadd.f32 0.2548296, %v3033_v53  ;;  %v2714_v17 = vadd.f32 -1.4531521, %v2650_v59  ;;  %v2417_v56 = vor.u32 1.1754944e-38, %v2416_v2 }
 0x649   :  { %v2409_v59 = vadd.f32 %v7416_v43, %v2408_v50  ;;  %7419 = vrcp.f32 %v10355_v52  ;;  %v10364_v23 = vand.u32 2147483647, %v10348_v48  ;;  %vm2415_vm7 = vcmp.eq.f32.partialorder %v2414_v51, 8.507059e+37 }
 0x64a   :  { %v3736_v62 = vsel %vm3608_vm14, %v3672_v35, %v3544_v54  ;;  %v3161_v29 = vmul.f32 %v3097_v15, %v10301_v7  ;;  %v2778_v53 = vmul.f32 %v2714_v17, %v10336_v25  ;;  %v3404_v54 = vmul.f32 1.442695, %v3290_v13 }
 0x64b   :  { %v3800_v46 = vadd.f32 1.0, %v3736_v62  ;;  %v2413_v45 = vsel %vm2412_vm6, %v7416_v43, %v2409_v59  ;;  %v10369_v35 = vadd.f32 %v10201_v12, %v1290_v63  ;;  %v3291_v17 = vmul.f32 %v3227_v27, %v10299_v4 }
 0x64c   :  { %v3481_v26 = vmul.f32 %v7418_v16, %v3161_v29  ;;  %v2842_v38 = vadd.f32 1.4214138, %v2778_v53  ;;  %v10366_v7 = vsel %vm2415_vm7, %v2417_v56, %v2413_v45  ;;  %v1565_v50 = vmul.f32 0.3275911, %v10364_v23 }
 0x64d   :  { %v3864_v33 = vmul.f32 %v3800_v46, %v1368_v19  ;;  %v2651_v2 = vmul.f32 1.0614054, %v10366_v7  ;;  %7421 = vpow2.f32 %v3404_v54  ;;  %v10380_v51 = vmul.f32 0.70710677, %v10369_v35  ;;  %v10385_v53 = vpop.f32.mrf.mxu0 }
 0x64e   :  { %v3545_v62 = vsub.f32 1.0, %v3481_v26  ;;  %v2906_v15 = vmul.f32 %v2842_v38, %v10336_v25  ;;  %v10377_v56 = vadd.f32 1.0, %v1565_v50  ;;  %v1369_v59 = vmul.f32 0.5, %v10204_v32 }
 0x64f   :  { %7142 = vmatmul.msk.f32.gmra.mxu0 %vm76_vm0, %v3864_v33  ;;  %v2715_v46 = vadd.f32 -1.4531521, %v2651_v2  ;;  %v7420_v19 = vpop.eup %7419  ;;  %v3406_v26 = vmul.f32 1.442695, %v3291_v17  ;;  %v3228_v33 = vsub.f32 0.0, %v10341_v34  ;;  %vm2425_vm11 = vweird.f32 %v10355_v52 }
 0x650   :  { %v3673_v29 = vsub.f32 0.0, %v3545_v62  ;;  %v2970_v43 = vadd.f32 -0.28449672, %v2906_v15  ;;  %v2421_v27 = vmul.f32 %v7420_v19, %v10355_v52  ;;  %7423 = vrcp.f32 %v10377_v56 }
 0x651   :  { %v2779_v4 = vmul.f32 %v2715_v46, %v10366_v7  ;;  %v2431_v15 = vand.u32 2147483648, %v10355_v52  ;;  %v10393_v2 = vand.u32 2147483647, %v10380_v51  ;;  %vm2426_vm9 = vweird.f32 %v7420_v19 }
 0x652   :  { %v3737_v16 = vsel %vm3609_vm8, %v3673_v29, %v3545_v62  ;;  %v3034_v13 = vmul.f32 %v2970_v43, %v10336_v25  ;;  %v2422_v45 = vsub.f32 1.0, %v2421_v27  ;;  %v2429_v62 = vand.u32 2147483647, %v10355_v52  ;;  %v1293_v29 = vpop.f32.mrf.mxu3  ;;  %vm2427_vm12 = vmor %vm2425_vm11, %vm2426_vm9 }
 0x653   :  { %v3801_v63 = vadd.f32 1.0, %v3737_v16  ;;  %v2843_v38 = vadd.f32 1.4214138, %v2779_v4  ;;  %v7422_v43 = vpop.eup %7421  ;;  %v1370_v46 = vmul.f32 0.5, %v10250_v47  ;;  %7425 = vpow2.f32 %v3406_v26 }
 0x654   :  { %v3098_v28 = vadd.f32 0.2548296, %v3034_v13  ;;  %v2423_v17 = vmul.f32 %v7420_v19, %v2422_v45  ;;  %v1566_v16 = vmul.f32 0.3275911, %v10393_v2  ;;  %vm2430_vm13 = vcmp.eq.f32.partialorder %v2429_v62, 8.507059e+37 }
 0x655   :  { %v3865_v54 = vmul.f32 %v3801_v63, %v1369_v59  ;;  %v2907_v32 = vmul.f32 %v2843_v38, %v10366_v7  ;;  %v2432_v59 = vor.u32 1.1754944e-38, %v2431_v15  ;;  %v3292_v63 = vmul.f32 %v3228_v33, %v10341_v34 }
 0x656   :  { %v3162_v50 = vmul.f32 %v3098_v28, %v10336_v25  ;;  %v2424_v27 = vadd.f32 %v7420_v19, %v2423_v17  ;;  %v7424_v25 = vpop.eup %7423  ;;  %v10403_v28 = vadd.f32 1.0, %v1566_v16  ;;  %v10414_v52 = vadd.f32 %v10201_v12, %v1293_v29 }
 0x657   :  { %7143 = vmatmul.msk.f32.gmra.mxu0 %vm76_vm0, %v3865_v54  ;;  %v2971_v4 = vadd.f32 -0.28449672, %v2907_v32  ;;  %v2436_v45 = vmul.f32 %v7424_v25, %v10377_v56  ;;  %v10408_v54 = vmul.f32 0.5, %v10271_v10  ;;  %v10417_v32 = vpop.f32.mrf.mxu0  ;;  %v3408_v17 = vmul.f32 1.442695, %v3292_v63 }
 0x658   :  { %v3482_v13 = vmul.f32 %v7422_v43, %v3162_v50  ;;  %v2428_v38 = vsel %vm2427_vm12, %v7420_v19, %v2424_v27  ;;  %7427 = vrcp.f32 %v10403_v28  ;;  %vm2441_vm14 = vweird.f32 %v7424_v25 }
 0x659   :  { %v3035_v26 = vmul.f32 %v2971_v4, %v10366_v7  ;;  %v10410_v50 = vsel %vm2430_vm13, %v2432_v59, %v2428_v38  ;;  %v2437_v15 = vsub.f32 1.0, %v2436_v45  ;;  %v7426_v19 = vpop.eup %7425  ;;  %v2444_v10 = vand.u32 2147483647, %v10377_v56 }
 0x65a   :  { %v3546_v47 = vsub.f32 1.0, %v3482_v13  ;;  %v2652_v33 = vmul.f32 1.0614054, %v10410_v50  ;;  %v2446_v43 = vand.u32 2147483648, %v10377_v56  ;;  %vm2440_vm1 = vweird.f32 %v10377_v56  ;;  %v1296_v37 = vpop.f32.mrf.mxu3 }
 0x65b   :  { %v3099_v34 = vadd.f32 0.2548296, %v3035_v26  ;;  %v2438_v4 = vmul.f32 %v7424_v25, %v2437_v15  ;;  %v3229_v59 = vsub.f32 0.0, %v10364_v23  ;;  %v10429_v45 = vmul.f32 0.70710677, %v10414_v52  ;;  %vm2442_vm3 = vmor %vm2440_vm1, %vm2441_vm14 }
 0x65c   :  { %v3674_v62 = vsub.f32 0.0, %v3546_v47  ;;  %v2716_v13 = vadd.f32 -1.4531521, %v2652_v33  ;;  %7429 = vpow2.f32 %v3408_v17  ;;  %vm2445_vm4 = vcmp.eq.f32.partialorder %v2444_v10, 8.507059e+37 }
 0x65d   :  { %v3163_v29 = vmul.f32 %v3099_v34, %v10366_v7  ;;  %v2439_v38 = vadd.f32 %v7424_v25, %v2438_v4  ;;  %v2447_v7 = vor.u32 1.1754944e-38, %v2446_v43  ;;  %v2459_v43 = vand.u32 2147483647, %v10403_v28 }
 0x65e   :  { %v3738_v16 = vsel %vm3610_vm10, %v3674_v62, %v3546_v47  ;;  %v2780_v26 = vmul.f32 %v2716_v13, %v10410_v50  ;;  %v7428_v47 = vpop.eup %7427  ;;  %v10440_v13 = vadd.f32 %v10201_v12, %v1296_v37  ;;  %v2461_v4 = vand.u32 2147483648, %v10403_v28 }
 0x65f   :  { %v3802_v27 = vadd.f32 1.0, %v3738_v16  ;;  %v3483_v63 = vmul.f32 %v7426_v19, %v3163_v29  ;;  %v2443_v56 = vsel %vm2442_vm3, %v7424_v25, %v2439_v38  ;;  %v2451_v15 = vmul.f32 %v7428_v47, %v10403_v28  ;;  %v10450_v38 = vpop.f32.mrf.mxu0 }
 0x660   :  { %v2844_v33 = vadd.f32 1.4214138, %v2780_v26  ;;  %v10433_v19 = vsel %vm2445_vm4, %v2447_v7, %v2443_v56  ;;  %v3293_v16 = vmul.f32 %v3229_v59, %v10364_v23  ;;  %v10437_v29 = vand.u32 2147483647, %v10429_v45 }
 0x661   :  { %v3866_v62 = vmul.f32 %v3802_v27, %v1370_v46  ;;  %v3547_v34 = vsub.f32 1.0, %v3483_v63  ;;  %v2653_v10 = vmul.f32 1.0614054, %v10433_v19  ;;  %v2452_v25 = vsub.f32 1.0, %v2451_v15 }
 0x662   :  { %v2908_v17 = vmul.f32 %v2844_v33, %v10410_v50  ;;  %vm2456_vm5 = vweird.f32 %v7428_v47  ;;  %v1567_v23 = vmul.f32 0.3275911, %v10437_v29  ;;  %v7430_v37 = vpop.eup %7429  ;;  %v3230_v7 = vsub.f32 0.0, %v10393_v2 }
 0x663   :  { %7144 = vmatmul.msk.f32.gmra.mxu0 %vm76_vm0, %v3866_v62  ;;  %v3675_v46 = vsub.f32 0.0, %v3547_v34  ;;  %v2717_v63 = vadd.f32 -1.4531521, %v2653_v10  ;;  %v2453_v26 = vmul.f32 %v7428_v47, %v2452_v25  ;;  %v10456_v56 = vmul.f32 0.70710677, %v10440_v13 }
 0x664   :  { %v2972_v59 = vadd.f32 -0.28449672, %v2908_v17  ;;  %v10453_v33 = vadd.f32 1.0, %v1567_v23  ;;  %vm2455_vm6 = vweird.f32 %v10403_v28  ;;  %vm2460_vm8 = vcmp.eq.f32.partialorder %v2459_v43, 8.507059e+37  ;;  %v1299_v23 = vpop.f32.mrf.mxu3 }
 0x665   :  { %v3739_v27 = vsel %vm3611_vm15, %v3675_v46, %v3547_v34  ;;  %v2781_v0 = vmul.f32 %v2717_v63, %v10433_v19  ;;  %v2454_v21 = vadd.f32 %v7428_v47, %v2453_v26  ;;  %vm2457_vm7 = vmor %vm2455_vm6, %vm2456_vm5  ;;  %v2462_v46 = vor.u32 1.1754944e-38, %v2461_v4 }
 0x666   :  { %v3803_v62 = vadd.f32 1.0, %v3739_v27  ;;  %v3036_v15 = vmul.f32 %v2972_v59, %v10410_v50  ;;  %7431 = vrcp.f32 %v10453_v33  ;;  %v3410_v27 = vmul.f32 1.442695, %v3293_v16 }
 0x667   :  { %v2845_v10 = vadd.f32 1.4214138, %v2781_v0  ;;  %v2458_v25 = vsel %vm2457_vm7, %v7428_v47, %v2454_v21  ;;  %v3294_v59 = vmul.f32 %v3230_v7, %v10393_v2  ;;  %v10468_v63 = vand.u32 2147483647, %v10456_v56 }
 0x668   :  { %v3867_v34 = vmul.f32 %v3803_v62, %v10408_v54  ;;  %v3100_v17 = vadd.f32 0.2548296, %v3036_v15  ;;  %v10464_v9 = vsel %vm2460_vm8, %v2462_v46, %v2458_v25  ;;  %v1372_v62 = vmul.f32 0.5, %v10315_v41  ;;  %v10481_v46 = vpop.f32.mrf.mxu0 }
 0x669   :  { %v2909_v54 = vmul.f32 %v2845_v10, %v10433_v19  ;;  %v2654_v4 = vmul.f32 1.0614054, %v10464_v9  ;;  %v1568_v0 = vmul.f32 0.3275911, %v10468_v63  ;;  %7433 = vpow2.f32 %v3410_v27 }
 0x66a   :  { %v3164_v28 = vmul.f32 %v3100_v17, %v10410_v50  ;;  %v3412_v2 = vmul.f32 1.442695, %v3294_v59  ;;  %vm3612_vm9 = vcmp.lt.f32.partialorder %v10329_v11, 0.0  ;;  %v10487_v41 = vadd.f32 %v10201_v12, %v1299_v23 }
 0x66b   :  { %7145 = vmatmul.msk.f32.gmra.mxu0 %vm76_vm0, %v3867_v34  ;;  %v2973_v43 = vadd.f32 -0.28449672, %v2909_v54  ;;  %v2718_v16 = vadd.f32 -1.4531521, %v2654_v4  ;;  %v10476_v7 = vadd.f32 1.0, %v1568_v0  ;;  %vm3613_vm10 = vcmp.lt.f32.partialorder %v10348_v48, 0.0 }
 0x66c   :  { %v3484_v47 = vmul.f32 %v7430_v37, %v3164_v28  ;;  %v7432_v26 = vpop.eup %7431  ;;  %v2474_v37 = vand.u32 2147483647, %v10453_v33  ;;  %v2476_v59 = vand.u32 2147483648, %v10453_v33  ;;  %v1302_v0 = vpop.f32.mrf.mxu3  ;;  %vm2470_vm12 = vweird.f32 %v10453_v33 }
 0x66d   :  { %v3037_v21 = vmul.f32 %v2973_v43, %v10433_v19  ;;  %v2782_v50 = vmul.f32 %v2718_v16, %v10464_v9  ;;  %v2466_v34 = vmul.f32 %v7432_v26, %v10453_v33  ;;  %7435 = vrcp.f32 %v10476_v7 }
 0x66e   :  { %v3548_v15 = vsub.f32 1.0, %v3484_v47  ;;  %7437 = vpow2.f32 %v3412_v2  ;;  %vm2471_vm11 = vweird.f32 %v7432_v26  ;;  %v3231_v43 = vsub.f32 0.0, %v10437_v29 }
 0x66f   :  { %v3101_v10 = vadd.f32 0.2548296, %v3037_v21  ;;  %v2846_v25 = vadd.f32 1.4214138, %v2782_v50  ;;  %v2467_v27 = vsub.f32 1.0, %v2466_v34  ;;  %v7434_v47 = vpop.eup %7433  ;;  %vm2475_vm13 = vcmp.eq.f32.partialorder %v2474_v37, 8.507059e+37  ;;  %vm2472_vm14 = vmor %vm2470_vm12, %vm2471_vm11 }
 0x670   :  { %v3676_v17 = vsub.f32 0.0, %v3548_v15  ;;  %v10496_v16 = vmul.f32 0.70710677, %v10487_v41  ;;  %v2489_v37 = vand.u32 2147483647, %v10476_v7  ;;  %vm2485_vm1 = vweird.f32 %v10476_v7 }
 0x671   :  { %v3165_v11 = vmul.f32 %v3101_v10, %v10433_v19  ;;  %v2910_v54 = vmul.f32 %v2846_v25, %v10464_v9  ;;  %v2468_v4 = vmul.f32 %v7432_v26, %v2467_v27  ;;  %v2477_v19 = vor.u32 1.1754944e-38, %v2476_v59 }
 0x672   :  { %v3740_v28 = vsel %vm3612_vm9, %v3676_v17, %v3548_v15  ;;  %v10500_v17 = vand.u32 2147483647, %v10496_v16  ;;  %v10503_v10 = vadd.f32 %v10201_v12, %v1302_v0  ;;  %vm2490_vm4 = vcmp.eq.f32.partialorder %v2489_v37, 8.507059e+37 }
 0x673   :  { %v3804_v23 = vadd.f32 1.0, %v3740_v28  ;;  %v3485_v2 = vmul.f32 %v7434_v47, %v3165_v11  ;;  %v2974_v21 = vadd.f32 -0.28449672, %v2910_v54  ;;  %v2469_v50 = vadd.f32 %v7432_v26, %v2468_v4  ;;  %v7436_v15 = vpop.eup %7435 }
 0x674   :  { %v2481_v28 = vmul.f32 %v7436_v15, %v10476_v7  ;;  %v7438_v11 = vpop.eup %7437  ;;  %v1569_v59 = vmul.f32 0.3275911, %v10500_v17  ;;  %vm2486_vm15 = vweird.f32 %v7436_v15  ;;  %v1305_v57 = vpop.f32.mrf.mxu3  ;;  %vm3614_vm5 = vcmp.lt.f32.partialorder %v10380_v51, 0.0 }
 0x675   :  { %v3868_v34 = vmul.f32 %v3804_v23, %v1372_v62  ;;  %v3549_v33 = vsub.f32 1.0, %v3485_v2  ;;  %v3038_v25 = vmul.f32 %v2974_v21, %v10464_v9  ;;  %v2473_v27 = vsel %vm2472_vm14, %v7432_v26, %v2469_v50  ;;  %v10514_v2 = vpop.f32.mrf.mxu0  ;;  %vm2487_vm3 = vmor %vm2485_vm1, %vm2486_vm15 }
 0x676   :  { %v10507_v54 = vsel %vm2475_vm13, %v2477_v19, %v2473_v27  ;;  %v3295_v62 = vmul.f32 %v3231_v43, %v10437_v29  ;;  %v2482_v23 = vsub.f32 1.0, %v2481_v28  ;;  %v2491_v26 = vand.u32 2147483648, %v10476_v7 }
 0x677   :  { %7146 = vmatmul.msk.f32.gmra.mxu0 %vm76_vm0, %v3868_v34  ;;  %v3677_v4 = vsub.f32 0.0, %v3549_v33  ;;  %v3102_v0 = vadd.f32 0.2548296, %v3038_v25  ;;  %v2655_v47 = vmul.f32 1.0614054, %v10507_v54  ;;  %v10517_v21 = vadd.f32 1.0, %v1569_v59 }
 0x678   :  { %v10520_v29 = vmul.f32 0.70710677, %v10503_v10  ;;  %v2483_v19 = vmul.f32 %v7436_v15, %v2482_v23  ;;  %v1373_v25 = vmul.f32 0.5, %v10332_v49  ;;  %v3232_v28 = vsub.f32 0.0, %v10468_v63 }
 0x679   :  { %v3741_v43 = vsel %vm3613_vm10, %v3677_v4, %v3549_v33  ;;  %v3166_v50 = vmul.f32 %v3102_v0, %v10464_v9  ;;  %v2719_v34 = vadd.f32 -1.4531521, %v2655_v47  ;;  %7439 = vrcp.f32 %v10517_v21 }
 0x67a   :  { %v3805_v27 = vadd.f32 1.0, %v3741_v43  ;;  %v2484_v1 = vadd.f32 %v7436_v15, %v2483_v19  ;;  %v3414_v33 = vmul.f32 1.442695, %v3295_v62  ;;  %v2492_v9 = vor.u32 1.1754944e-38, %v2491_v26 }
 0x67b   :  { %v3486_v44 = vmul.f32 %v7438_v11, %v3166_v50  ;;  %v2783_v59 = vmul.f32 %v2719_v34, %v10507_v54  ;;  %v10532_v4 = vand.u32 2147483647, %v10520_v29  ;;  %v3296_v11 = vmul.f32 %v3232_v28, %v10468_v63 }
 0x67c   :  { %v3869_v48 = vmul.f32 %v3805_v27, %v1373_v25  ;;  %v2488_v47 = vsel %vm2487_vm3, %v7436_v15, %v2484_v1  ;;  %v1374_v34 = vmul.f32 0.5, %v10369_v35  ;;  %7441 = vpow2.f32 %v3414_v33 }
 0x67d   :  { %v3550_v49 = vsub.f32 1.0, %v3486_v44  ;;  %v2847_v0 = vadd.f32 1.4214138, %v2783_v59  ;;  %v10534_v23 = vsel %vm2490_vm4, %v2492_v9, %v2488_v47  ;;  %v1570_v43 = vmul.f32 0.3275911, %v10532_v4  ;;  %v10546_v19 = vpop.f32.mrf.mxu0 }
 0x67e   :  { %v2656_v26 = vmul.f32 1.0614054, %v10534_v23  ;;  %v3416_v27 = vmul.f32 1.442695, %v3296_v11  ;;  %v10550_v28 = vadd.f32 %v10201_v12, %v1305_v57  ;;  %v2504_v33 = vand.u32 2147483647, %v10517_v21  ;;  %v1308_v11 = vpop.f32.mrf.mxu3 }
 0x67f   :  { %7147 = vmatmul.msk.f32.gmra.mxu0 %vm76_vm0, %v3869_v48  ;;  %v3678_v7 = vsub.f32 0.0, %v3550_v49  ;;  %v2911_v62 = vmul.f32 %v2847_v0, %v10507_v54  ;;  %v7440_v50 = vpop.eup %7439  ;;  %v10543_v44 = vadd.f32 1.0, %v1570_v43  ;;  %v2506_v9 = vand.u32 2147483648, %v10517_v21 }
 0x680   :  { %v2720_v63 = vadd.f32 -1.4531521, %v2656_v26  ;;  %v2496_v37 = vmul.f32 %v7440_v50, %v10517_v21  ;;  %vm2501_vm6 = vweird.f32 %v7440_v50  ;;  %v10557_v57 = vmul.f32 0.70710677, %v10550_v28 }
 0x681   :  { %v3742_v1 = vsel %vm3614_vm5, %v3678_v7, %v3550_v49  ;;  %v2975_v15 = vadd.f32 -0.28449672, %v2911_v62  ;;  %7443 = vrcp.f32 %v10543_v44  ;;  %vm2500_vm7 = vweird.f32 %v10517_v21 }
 0x682   :  { %v3806_v25 = vadd.f32 1.0, %v3742_v1  ;;  %v2784_v51 = vmul.f32 %v2720_v63, %v10534_v23  ;;  %v2497_v59 = vsub.f32 1.0, %v2496_v37  ;;  %v7442_v43 = vpop.eup %7441  ;;  %7445 = vpow2.f32 %v3416_v27  ;;  %vm2502_vm8 = vmor %vm2500_vm7, %vm2501_vm6 }
 0x683   :  { %v3039_v35 = vmul.f32 %v2975_v15, %v10507_v54  ;;  %vm2505_vm9 = vcmp.eq.f32.partialorder %v2504_v33, 8.507059e+37  ;;  %v2507_v1 = vor.u32 1.1754944e-38, %v2506_v9  ;;  %v10564_v15 = vand.u32 2147483647, %v10557_v57 }
 0x684   :  { %v3870_v48 = vmul.f32 %v3806_v25, %v1374_v34  ;;  %v2848_v0 = vadd.f32 1.4214138, %v2784_v51  ;;  %v2498_v47 = vmul.f32 %v7440_v50, %v2497_v59  ;;  %v10567_v63 = vadd.f32 %v10201_v12, %v1308_v11 }
 0x685   :  { %v3103_v49 = vadd.f32 0.2548296, %v3039_v35  ;;  %v3233_v51 = vsub.f32 0.0, %v10500_v17  ;;  %v2519_v21 = vand.u32 2147483647, %v10543_v44  ;;  %vm3615_vm11 = vcmp.lt.f32.partialorder %v10429_v45, 0.0 }
 0x686   :  { %v2912_v62 = vmul.f32 %v2848_v0, %v10534_v23  ;;  %v2499_v26 = vadd.f32 %v7440_v50, %v2498_v47  ;;  %v1571_v59 = vmul.f32 0.3275911, %v10564_v15  ;;  %v10583_v11 = vmul.f32 0.70710677, %v10567_v63 }
 0x687   :  { %7148 = vmatmul.msk.f32.gmra.mxu0 %vm76_vm0, %v3870_v48  ;;  %v3167_v7 = vmul.f32 %v3103_v49, %v10507_v54  ;;  %v7444_v34 = vpop.eup %7443  ;;  %v10577_v49 = vpop.f32.mrf.mxu0  ;;  %vm2515_vm12 = vweird.f32 %v10543_v44  ;;  %v1375_v42 = vmul.f32 0.5, %v10414_v52  ;;  %vm2520_vm14 = vcmp.eq.f32.partialorder %v2519_v21, 8.507059e+37 }
 0x688   :  { %v2976_v25 = vadd.f32 -0.28449672, %v2912_v62  ;;  %v2503_v27 = vsel %vm2502_vm8, %v7440_v50, %v2499_v26  ;;  %v2511_v54 = vmul.f32 %v7444_v34, %v10543_v44  ;;  %v7446_v0 = vpop.eup %7445  ;;  %vm2516_vm10 = vweird.f32 %v7444_v34 }
 0x689   :  { %v3487_v37 = vmul.f32 %v7442_v43, %v3167_v7  ;;  %v10570_v35 = vsel %vm2505_vm9, %v2507_v1, %v2503_v27  ;;  %v2521_v50 = vand.u32 2147483648, %v10543_v44  ;;  %v10580_v47 = vadd.f32 1.0, %v1571_v59  ;;  %v1311_v59 = vpop.f32.mrf.mxu3  ;;  %vm2517_vm13 = vmor %vm2515_vm12, %vm2516_vm10 }
 0x68a   :  { %v3040_v33 = vmul.f32 %v2976_v25, %v10534_v23  ;;  %v2657_v9 = vmul.f32 1.0614054, %v10570_v35  ;;  %v2512_v12 = vsub.f32 1.0, %v2511_v54  ;;  %v3297_v1 = vmul.f32 %v3233_v51, %v10500_v17 }
 0x68b   :  { %v3551_v48 = vsub.f32 1.0, %v3487_v37  ;;  %7447 = vrcp.f32 %v10580_v47  ;;  %v2522_v45 = vor.u32 1.1754944e-38, %v2521_v50  ;;  %v10594_v44 = vand.u32 2147483647, %v10583_v11 }
 0x68c   :  { %v3104_v7 = vadd.f32 0.2548296, %v3040_v33  ;;  %v2721_v62 = vadd.f32 -1.4531521, %v2657_v9  ;;  %v2513_v26 = vmul.f32 %v7444_v34, %v2512_v12  ;;  %v3418_v12 = vmul.f32 1.442695, %v3297_v1 }
 0x68d   :  { %v3679_v43 = vsub.f32 0.0, %v3551_v48  ;;  %v1572_v21 = vmul.f32 0.3275911, %v10594_v44  ;;  %vm3616_vm15 = vcmp.lt.f32.partialorder %v10456_v56, 0.0  ;;  %vm2530_vm3 = vweird.f32 %v10580_v47 }
 0x68e   :  { %v3168_v25 = vmul.f32 %v3104_v7, %v10534_v23  ;;  %v2785_v27 = vmul.f32 %v2721_v62, %v10570_v35  ;;  %v2514_v54 = vadd.f32 %v7444_v34, %v2513_v26  ;;  %7449 = vpow2.f32 %v3418_v12 }
 0x68f   :  { %v3743_v37 = vsel %vm3615_vm11, %v3679_v43, %v3551_v48  ;;  %v3234_v43 = vsub.f32 0.0, %v10532_v4  ;;  %vm3617_vm6 = vcmp.lt.f32.partialorder %v10496_v16, 0.0  ;;  %vm3618_vm11 = vcmp.lt.f32.partialorder %v10520_v29, 0.0 }
 0x690   :  { %v3807_v33 = vadd.f32 1.0, %v3743_v37  ;;  %v3488_v9 = vmul.f32 %v7446_v0, %v3168_v25  ;;  %v2849_v17 = vadd.f32 1.4214138, %v2785_v27  ;;  %v2518_v51 = vsel %vm2517_vm13, %v7444_v34, %v2514_v54  ;;  %v10606_v37 = vpop.f32.mrf.mxu0 }
 0x691   :  { %v10596_v23 = vsel %vm2520_vm14, %v2522_v45, %v2518_v51  ;;  %v7448_v50 = vpop.eup %7447  ;;  %v1376_v0 = vmul.f32 0.5, %v10440_v13  ;;  %v3298_v25 = vmul.f32 %v3234_v43, %v10532_v4  ;;  %v10609_v27 = vadd.f32 1.0, %v1572_v21  ;;  %v10614_v13 = vld [vmem:[%s12997_s9] ss:$0 sm:$0xff] }
 0x692   :  { %v3871_v48 = vmul.f32 %v3807_v33, %v1375_v42  ;;  %v3552_v7 = vsub.f32 1.0, %v3488_v9  ;;  %v2913_v52 = vmul.f32 %v2849_v17, %v10570_v35  ;;  %v2658_v62 = vmul.f32 1.0614054, %v10596_v23 }
 0x693   :  { %v2526_v1 = vmul.f32 %v7448_v50, %v10580_v47  ;;  %v10617_v56 = vadd.f32 %v10614_v13, %v1311_v59  ;;  %v2534_v51 = vand.u32 2147483647, %v10580_v47  ;;  %v2536_v4 = vand.u32 2147483648, %v10580_v47 }
 0x694   :  { %7149 = vmatmul.msk.f32.gmra.mxu0 %vm76_vm0, %v3871_v48  ;;  %v3680_v42 = vsub.f32 0.0, %v3552_v7  ;;  %v2977_v34 = vadd.f32 -0.28449672, %v2913_v52  ;;  %v2722_v26 = vadd.f32 -1.4531521, %v2658_v62  ;;  %7451 = vrcp.f32 %v10609_v27  ;;  %v1314_v52 = vpop.f32.mrf.mxu3 }
 0x695   :  { %v2527_v9 = vsub.f32 1.0, %v2526_v1  ;;  %vm2531_vm1 = vweird.f32 %v7448_v50  ;;  %v3420_v62 = vmul.f32 1.442695, %v3298_v25  ;;  %v1377_v1 = vmul.f32 0.5, %v10487_v41 }
 0x696   :  { %v3744_v54 = vsel %vm3616_vm15, %v3680_v42, %v3552_v7  ;;  %v3041_v33 = vmul.f32 %v2977_v34, %v10570_v35  ;;  %v2786_v45 = vmul.f32 %v2722_v26, %v10596_v23  ;;  %v10625_v7 = vmul.f32 0.70710677, %v10617_v56  ;;  %v7450_v26 = vpop.eup %7449  ;;  %vm2532_vm4 = vmor %vm2530_vm3, %vm2531_vm1 }
 0x697   :  { %v3808_v17 = vadd.f32 1.0, %v3744_v54  ;;  %v2528_v43 = vmul.f32 %v7448_v50, %v2527_v9  ;;  %v2537_v54 = vor.u32 1.1754944e-38, %v2536_v4  ;;  %vm2535_vm5 = vcmp.eq.f32.partialorder %v2534_v51, 8.507059e+37 }
 0x698   :  { %v3105_v48 = vadd.f32 0.2548296, %v3041_v33  ;;  %v2850_v12 = vadd.f32 1.4214138, %v2786_v45  ;;  %v3235_v33 = vsub.f32 0.0, %v10564_v15  ;;  %v10636_v9 = vpop.f32.mrf.mxu0  ;;  %7453 = vpow2.f32 %v3420_v62 }
 0x699   :  { %v3872_v59 = vmul.f32 %v3808_v17, %v1376_v0  ;;  %v2529_v34 = vadd.f32 %v7448_v50, %v2528_v43  ;;  %v10633_v0 = vand.u32 2147483647, %v10625_v7  ;;  %v10652_v62 = vadd.f32 %v10614_v13, %v1314_v52 }
 0x69a   :  { %v3169_v21 = vmul.f32 %v3105_v48, %v10570_v35  ;;  %v2914_v42 = vmul.f32 %v2850_v12, %v10596_v23  ;;  %v7452_v17 = vpop.eup %7451  ;;  %v3299_v51 = vmul.f32 %v3235_v33, %v10564_v15  ;;  %vm2545_vm8 = vweird.f32 %v10609_v27 }
 0x69b   :  { %v2533_v35 = vsel %vm2532_vm4, %v7448_v50, %v2529_v34  ;;  %v1573_v47 = vmul.f32 0.3275911, %v10633_v0  ;;  %v2541_v43 = vmul.f32 %v7452_v17, %v10609_v27  ;;  %v10646_v50 = vmul.f32 0.5, %v10503_v10 }
 0x69c   :  { %7150 = vmatmul.msk.f32.gmra.mxu0 %vm76_vm0, %v3872_v59  ;;  %v3489_v25 = vmul.f32 %v7450_v26, %v3169_v21  ;;  %v2978_v45 = vadd.f32 -0.28449672, %v2914_v42  ;;  %v10639_v41 = vsel %vm2535_vm5, %v2537_v54, %v2533_v35  ;;  %vm2546_vm7 = vweird.f32 %v7452_v17 }
 0x69d   :  { %v2659_v12 = vmul.f32 1.0614054, %v10639_v41  ;;  %v10649_v59 = vadd.f32 1.0, %v1573_v47  ;;  %v2542_v26 = vsub.f32 1.0, %v2541_v43  ;;  %v2549_v54 = vand.u32 2147483647, %v10609_v27  ;;  %vm2547_vm9 = vmor %vm2545_vm8, %vm2546_vm7 }
 0x69e   :  { %v3553_v4 = vsub.f32 1.0, %v3489_v25  ;;  %v3042_v48 = vmul.f32 %v2978_v45, %v10596_v23  ;;  %v2551_v25 = vand.u32 2147483648, %v10609_v27  ;;  %v1317_v45 = vpop.f32.mrf.mxu3  ;;  %v7454_v35 = vpop.eup %7453  ;;  %v10664_v60 = vmul.f32 0.70710677, %v10652_v62 }
 0x69f   :  { %v2723_v34 = vadd.f32 -1.4531521, %v2659_v12  ;;  %7455 = vrcp.f32 %v10649_v59  ;;  %v2543_v52 = vmul.f32 %v7452_v17, %v2542_v26  ;;  %v3236_v12 = vsub.f32 0.0, %v10594_v44 }
 0x6a0   :  { %v3681_v21 = vsub.f32 0.0, %v3553_v4  ;;  %v3106_v42 = vadd.f32 0.2548296, %v3042_v48  ;;  %v3422_v48 = vmul.f32 1.442695, %v3299_v51  ;;  %v10666_v16 = vpop.f32.mrf.mxu0  ;;  %vm2550_vm10 = vcmp.eq.f32.partialorder %v2549_v54, 8.507059e+37 }
 0x6a1   :  { %v2787_v33 = vmul.f32 %v2723_v34, %v10639_v41  ;;  %v2544_v24 = vadd.f32 %v7452_v17, %v2543_v52  ;;  %v10674_v34 = vand.u32 2147483647, %v10664_v60  ;;  %vm2560_vm13 = vweird.f32 %v10649_v59 }
 0x6a2   :  { %v3745_v10 = vsel %vm3617_vm6, %v3681_v21, %v3553_v4  ;;  %v3170_v15 = vmul.f32 %v3106_v42, %v10596_v23  ;;  %v2552_v4 = vor.u32 1.1754944e-38, %v2551_v25  ;;  %v10670_v21 = vadd.f32 %v10614_v13, %v1317_v45 }
 0x6a3   :  { %v3809_v47 = vadd.f32 1.0, %v3745_v10  ;;  %v2851_v14 = vadd.f32 1.4214138, %v2787_v33  ;;  %v2548_v42 = vsel %vm2547_vm9, %v7452_v17, %v2544_v24  ;;  %7457 = vpow2.f32 %v3422_v48 }
 0x6a4   :  { %v3490_v43 = vmul.f32 %v7454_v35, %v3170_v15  ;;  %v10677_v10 = vsel %vm2550_vm10, %v2552_v4, %v2548_v42  ;;  %v3300_v24 = vmul.f32 %v3236_v12, %v10594_v44  ;;  %v2564_v17 = vand.u32 2147483647, %v10649_v59 }
 0x6a5   :  { %v3873_v23 = vmul.f32 %v3809_v47, %v1377_v1  ;;  %v2915_v27 = vmul.f32 %v2851_v14, %v10639_v41  ;;  %v7456_v26 = vpop.eup %7455  ;;  %v10680_v1 = vmul.f32 0.70710677, %v10670_v21  ;;  %v2660_v25 = vmul.f32 1.0614054, %v10677_v10 }
 0x6a6   :  { %v3554_v51 = vsub.f32 1.0, %v3490_v43  ;;  %v2556_v14 = vmul.f32 %v7456_v26, %v10649_v59  ;;  %v1574_v29 = vmul.f32 0.3275911, %v10674_v34  ;;  %v2566_v48 = vand.u32 2147483648, %v10649_v59 }
 0x6a7   :  { %7151 = vmatmul.msk.f32.gmra.mxu0 %vm76_vm0, %v3873_v23  ;;  %v2979_v54 = vadd.f32 -0.28449672, %v2915_v27  ;;  %v10689_v15 = vand.u32 2147483647, %v10680_v1  ;;  %v2724_v45 = vadd.f32 -1.4531521, %v2660_v25  ;;  %vm2561_vm12 = vweird.f32 %v7456_v26 }
 0x6a8   :  { %v3682_v13 = vsub.f32 0.0, %v3554_v51  ;;  %v2557_v35 = vsub.f32 1.0, %v2556_v14  ;;  %v10693_v43 = vadd.f32 1.0, %v1574_v29  ;;  %v10697_v27 = vpop.f32.mrf.mxu0  ;;  %v3424_v29 = vmul.f32 1.442695, %v3300_v24  ;;  %vm2562_vm14 = vmor %vm2560_vm13, %vm2561_vm12 }
 0x6a9   :  { %v3043_v52 = vmul.f32 %v2979_v54, %v10639_v41  ;;  %v1575_v23 = vmul.f32 0.3275911, %v10689_v15  ;;  %v2788_v12 = vmul.f32 %v2724_v45, %v10677_v10  ;;  %v7458_v42 = vpop.eup %7457  ;;  %vm2565_vm15 = vcmp.eq.f32.partialorder %v2564_v17, 8.507059e+37 }
 0x6aa   :  { %v3746_v33 = vsel %vm3618_vm11, %v3682_v13, %v3554_v51  ;;  %v2558_v4 = vmul.f32 %v7456_v26, %v2557_v35  ;;  %v3237_v13 = vsub.f32 0.0, %v10633_v0  ;;  %7459 = vrcp.f32 %v10693_v43 }
 0x6ab   :  { %v3810_v47 = vadd.f32 1.0, %v3746_v33  ;;  %v3107_v44 = vadd.f32 0.2548296, %v3043_v52  ;;  %v2852_v25 = vadd.f32 1.4214138, %v2788_v12  ;;  %v2567_v33 = vor.u32 1.1754944e-38, %v2566_v48 }
 0x6ac   :  { %v2559_v14 = vadd.f32 %v7456_v26, %v2558_v4  ;;  %v10704_v52 = vadd.f32 1.0, %v1575_v23  ;;  %v10716_v48 = vld [vmem:[%s12998_s10] ss:$0 sm:$0xff]  ;;  %vm3619_vm1 = vcmp.lt.f32.partialorder %v10557_v57, 0.0  ;;  %vm2575_vm4 = vweird.f32 %v10693_v43 }
 0x6ad   :  { %v3874_v51 = vmul.f32 %v3810_v47, %v10646_v50  ;;  %v3171_v54 = vmul.f32 %v3107_v44, %v10639_v41  ;;  %v2916_v50 = vmul.f32 %v2852_v25, %v10677_v10  ;;  %v3301_v41 = vmul.f32 %v3237_v13, %v10633_v0 }
 0x6ae   :  { %v2563_v35 = vsel %vm2562_vm14, %v7456_v26, %v2559_v14  ;;  %7461 = vrcp.f32 %v10704_v52  ;;  %vm3620_vm8 = vcmp.lt.f32.partialorder %v10583_v11, 0.0  ;;  %vm2590_vm9 = vweird.f32 %v10704_v52 }
 0x6af   :  { %7152 = vmatmul.msk.f32.gmra.mxu0 %vm76_vm0, %v3874_v51  ;;  %v3491_v45 = vmul.f32 %v7458_v42, %v3171_v54  ;;  %v10708_v47 = vsel %vm2565_vm15, %v2567_v33, %v2563_v35  ;;  %v2980_v12 = vadd.f32 -0.28449672, %v2916_v50  ;;  %7463 = vpow2.f32 %v3424_v29 }
 0x6b0   :  { %v2661_v59 = vmul.f32 1.0614054, %v10708_v47  ;;  %v7460_v24 = vpop.eup %7459  ;;  %v10720_v0 = vpop.f32.mrf.mxu0  ;;  %v10724_v42 = vadd.f32 %v10716_v48, %v9543_v6  ;;  %v3426_v51 = vmul.f32 1.442695, %v3301_v41  ;;  %v1379_v29 = vmul.f32 0.5, %v10550_v28 }
 0x6b1   :  { %v3555_v44 = vsub.f32 1.0, %v3491_v45  ;;  %v3044_v26 = vmul.f32 %v2980_v12, %v10677_v10  ;;  %v2571_v4 = vmul.f32 %v7460_v24, %v10693_v43  ;;  %v2579_v45 = vand.u32 2147483647, %v10693_v43 }
 0x6b2   :  { %v2725_v17 = vadd.f32 -1.4531521, %v2661_v59  ;;  %v2581_v50 = vand.u32 2147483648, %v10693_v43  ;;  %vm2576_vm3 = vweird.f32 %v7460_v24  ;;  %v4130_v41 = vadd.f32 %v10716_v48, %v9620_v5 }
 0x6b3   :  { %v3683_v23 = vsub.f32 0.0, %v3555_v44  ;;  %v3108_v54 = vadd.f32 0.2548296, %v3044_v26  ;;  %v2572_v14 = vsub.f32 1.0, %v2571_v4  ;;  %7465 = vpow2.f32 %v3426_v51  ;;  %vm2577_vm5 = vmor %vm2575_vm4, %vm2576_vm3 }
 0x6b4   :  { %v2789_v25 = vmul.f32 %v2725_v17, %v10708_v47  ;;  %v7462_v35 = vpop.eup %7461  ;;  %vm2580_vm6 = vcmp.eq.f32.partialorder %v2579_v45, 8.507059e+37  ;;  %v3238_v4 = vsub.f32 0.0, %v10674_v34  ;;  %v2596_v51 = vand.u32 2147483648, %v10704_v52 }
 0x6b5   :  { %v3747_v13 = vsel %vm3619_vm1, %v3683_v23, %v3555_v44  ;;  %v3172_v12 = vmul.f32 %v3108_v54, %v10677_v10  ;;  %v2573_v59 = vmul.f32 %v7460_v24, %v2572_v14  ;;  %v7464_v57 = vpop.eup %7463  ;;  %v2586_v23 = vmul.f32 %v7462_v35, %v10704_v52 }
 0x6b6   :  { %v3811_v33 = vadd.f32 1.0, %v3747_v13  ;;  %v2853_v6 = vadd.f32 1.4214138, %v2789_v25  ;;  %v2582_v10 = vor.u32 1.1754944e-38, %v2581_v50  ;;  %vm2591_vm7 = vweird.f32 %v7462_v35 }
 0x6b7   :  { %v3492_v28 = vmul.f32 %v7464_v57, %v3172_v12  ;;  %v2574_v17 = vadd.f32 %v7460_v24, %v2573_v59  ;;  %v2587_v13 = vsub.f32 1.0, %v2586_v23  ;;  %v2594_v43 = vand.u32 2147483647, %v10704_v52  ;;  %vm2592_vm10 = vmor %vm2590_vm9, %vm2591_vm7 }
 0x6b8   :  { %v3875_v44 = vmul.f32 %v3811_v33, %v1379_v29  ;;  %v2917_v26 = vmul.f32 %v2853_v6, %v10708_v47  ;;  %v4231_v14 = vpop.f32.mrf.mxu0  ;;  %v4139_v45 = vadd.f32 %v10716_v48, %v9723_v8  ;;  %v3302_v8 = vmul.f32 %v3238_v4, %v10674_v34 }
 0x6b9   :  { %v3556_v54 = vsub.f32 1.0, %v3492_v28  ;;  %v2578_v25 = vsel %vm2577_vm5, %v7460_v24, %v2574_v17  ;;  %v2588_v33 = vmul.f32 %v7462_v35, %v2587_v13  ;;  %v7466_v59 = vpop.eup %7465  ;;  %v1380_v24 = vmul.f32 0.5, %v10567_v63 }
 0x6ba   :  { %7153 = vmatmul.msk.f32.gmra.mxu0 %vm76_vm0, %v3875_v44  ;;  %v2981_v5 = vadd.f32 -0.28449672, %v2917_v26  ;;  %v10740_v29 = vsel %vm2580_vm6, %v2582_v10, %v2578_v25  ;;  %v2597_v26 = vor.u32 1.1754944e-38, %v2596_v51  ;;  %vm2595_vm11 = vcmp.eq.f32.partialorder %v2594_v43, 8.507059e+37 }
 0x6bb   :  { %v3684_v50 = vsub.f32 0.0, %v3556_v54  ;;  %v2662_v6 = vmul.f32 1.0614054, %v10740_v29  ;;  %v2589_v57 = vadd.f32 %v7462_v35, %v2588_v33  ;;  %v3239_v11 = vsub.f32 0.0, %v10689_v15 }
 0x6bc   :  { %v3045_v12 = vmul.f32 %v2981_v5, %v10708_v47  ;;  %v4127_v52 = vadd.f32 %v10716_v48, %v9580_v40  ;;  %v4133_v34 = vadd.f32 %v10716_v48, %v9653_v36  ;;  %v4232_v40 = vadd.f32 %v10716_v48, %v4231_v14 }
 0x6bd   :  { %v3748_v44 = vsel %vm3620_vm8, %v3684_v50, %v3556_v54  ;;  %v2726_v28 = vadd.f32 -1.4531521, %v2662_v6  ;;  %v2593_v10 = vsel %vm2592_vm10, %v7462_v35, %v2589_v57  ;;  %v4136_v54 = vadd.f32 %v10716_v48, %v9689_v22  ;;  %v13216_v35 = vld [vmem:[#allocation34_spill] sm:$0xff]  ;;  %v13217_v22 = vld [vmem:[#allocation28_spill] sm:$0xff] }
 0x6be   :  { %v3109_v23 = vadd.f32 0.2548296, %v3045_v12  ;;  %v3812_v17 = vadd.f32 1.0, %v3748_v44  ;;  %v10753_v63 = vsel %vm2595_vm11, %v2597_v26, %v2593_v10  ;;  %v3428_v50 = vmul.f32 1.442695, %v3302_v8 }
 0x6bf   :  { %v2790_v5 = vmul.f32 %v2726_v28, %v10740_v29  ;;  %v2663_v51 = vmul.f32 1.0614054, %v10753_v63  ;;  %v3303_v36 = vmul.f32 %v3239_v11, %v10689_v15  ;;  %v4229_v28 = vadd.f32 %v10716_v48, %v10720_v0 }
 0x6c0   :  { %v3173_v13 = vmul.f32 %v3109_v23, %v10708_v47  ;;  %v3876_v25 = vmul.f32 %v3812_v17, %v1380_v24  ;;  %v4300_v47 = vadd.f32 %v4139_v45, %v13216_v35  ;;  %v4297_v24 = vadd.f32 %v4130_v41, %v13217_v22  ;;  %v13218_v23 = vld [vmem:[#allocation32_spill] sm:$0xff]  ;;  %v13219_v17 = vld [vmem:[#allocation30_spill] sm:$0xff] }
 0x6c1   :  { %v2854_v33 = vadd.f32 1.4214138, %v2790_v5  ;;  %v4234_v43 = vpop.f32.mrf.mxu0  ;;  %v2727_v12 = vadd.f32 -1.4531521, %v2663_v51  ;;  %v4299_v45 = vadd.f32 %v4136_v54, %v13218_v23  ;;  %v4298_v8 = vadd.f32 %v4133_v34, %v13219_v17 }
 0x6c2   :  { %v3493_v4 = vmul.f32 %v7466_v59, %v3173_v13  ;;  %7154 = vmatmul.msk.f32.gmra.mxu0 %vm76_vm0, %v3876_v25  ;;  %v4235_v6 = vadd.f32 %v10716_v48, %v4234_v43  ;;  %vm3621_vm12 = vcmp.lt.f32.partialorder %v10625_v7, 0.0  ;;  %7467 = vpow2.f32 %v3428_v50 }
 0x6c3   :  { %v2918_v44 = vmul.f32 %v2854_v33, %v10740_v29  ;;  %v2791_v59 = vmul.f32 %v2727_v12, %v10753_v63  ;;  %v4226_v13 = vadd.f32 %v10716_v48, %v10697_v27  ;;  %v4331_v15 = vadd.f32 %v4299_v45, %v4232_v40  ;;  %v13220_v27 = vld [vmem:[#allocation25_spill] sm:$0xff] }
 0x6c4   :  { %v3557_v57 = vsub.f32 1.0, %v3493_v4  ;;  %v4332_v26 = vadd.f32 %v4300_v47, %v4235_v6  ;;  %v1381_v5 = vmul.f32 0.5, %v10617_v56  ;;  %v3430_v0 = vmul.f32 1.442695, %v3303_v36  ;;  %v13221_v6 = vld [vmem:[#allocation23_spill] sm:$0xff] }
 0x6c5   :  { %v2982_v10 = vadd.f32 -0.28449672, %v2918_v44  ;;  %v2855_v41 = vadd.f32 1.4214138, %v2791_v59  ;;  %v4223_v7 = vadd.f32 %v10716_v48, %v10666_v16  ;;  %v4330_v34 = vadd.f32 %v4298_v8, %v4229_v28  ;;  %v13223_v8 = vld [vmem:[#allocation19_spill] sm:$0xff] }
 0x6c6   :  { %v3685_v14 = vsub.f32 0.0, %v3557_v57  ;;  %4637 = vmatpush.msra.mxu1 %v4332_v26  ;;  %v4121_v47 = vadd.f32 %v10716_v48, %v9511_v30  ;;  %v4296_v4 = vadd.f32 %v4127_v52, %v13220_v27  ;;  %v4220_v12 = vadd.f32 %v10716_v48, %v10636_v9 }
 0x6c7   :  { %v3046_v54 = vmul.f32 %v2982_v10, %v10740_v29  ;;  %v2919_v51 = vmul.f32 %v2855_v41, %v10753_v63  ;;  %v4329_v40 = vadd.f32 %v4297_v24, %v4226_v13  ;;  %v4118_v16 = vadd.f32 %v10716_v48, %v9474_v3  ;;  %v13222_v24 = vld [vmem:[#allocation21_spill] sm:$0xff] }
 0x6c8   :  { %v3749_v11 = vsel %vm3621_vm12, %v3685_v14, %v3557_v57  ;;  %4638 = vmatpush.msra.mxu1 %v4331_v15  ;;  %v4295_v57 = vadd.f32 %v10724_v42, %v13221_v6  ;;  %7469 = vpow2.f32 %v3430_v0  ;;  %v7468_v52 = vpop.eup %7467  ;;  %v4217_v36 = vadd.f32 %v10716_v48, %v10606_v37  ;;  %v13224_v15 = vld [vmem:[#allocation17_spill] sm:$0xff] }
 0x6c9   :  { %v3813_v25 = vadd.f32 1.0, %v3749_v11  ;;  %v3110_v33 = vadd.f32 0.2548296, %v3046_v54  ;;  %v2983_v50 = vadd.f32 -0.28449672, %v2919_v51  ;;  %v4328_v45 = vadd.f32 %v4296_v4, %v4223_v7 }
 0x6ca   :  { %4639 = vmatpush.msra.mxu1 %v4330_v34  ;;  %v4115_v9 = vadd.f32 %v10716_v48, %v9438_v58  ;;  %v4294_v59 = vadd.f32 %v4121_v47, %v13222_v24  ;;  %v4214_v42 = vadd.f32 %v10716_v48, %v10577_v49  ;;  %v4327_v28 = vadd.f32 %v4295_v57, %v4220_v12  ;;  %v4412_v24 = vld [vmem:[%s13000_s12 + $0x1f8] sm:$0xff] }
 0x6cb   :  { %v3877_v56 = vmul.f32 %v3813_v25, %v1381_v5  ;;  %v3174_v30 = vmul.f32 %v3110_v33, %v10740_v29  ;;  %v3047_v44 = vmul.f32 %v2983_v50, %v10753_v63  ;;  %v4112_v26 = vadd.f32 %v10716_v48, %v9406_v20  ;;  %v13226_v33 = vld [vmem:[#allocation15_spill] sm:$0xff] }
 0x6cc   :  { %v10786_v43 = vpop.f32.mrf.mxu0  ;;  %4640 = vmatpush.msra.mxu1 %v4329_v40  ;;  %v4293_v14 = vadd.f32 %v4118_v16, %v13223_v8  ;;  %v4211_v10 = vadd.f32 %v10716_v48, %v10546_v19  ;;  %v4326_v41 = vadd.f32 %v4294_v59, %v4217_v36  ;;  %v4109_v49 = vadd.f32 %v10716_v48, %v9373_v39  ;;  %v13227_v16 = vld [vmem:[#allocation14_spill] sm:$0xff] }
 0x6cd   :  { %7155 = vmatmul.msk.f32.gmra.mxu0 %vm76_vm0, %v3877_v56  ;;  %v3494_v3 = vmul.f32 %v7468_v52, %v3174_v30  ;;  %v3111_v29 = vadd.f32 0.2548296, %v3047_v44  ;;  %v4292_v5 = vadd.f32 %v4115_v9, %v13224_v15  ;;  %v4208_v20 = vadd.f32 %v10716_v48, %v10514_v2  ;;  %v13228_v44 = vld [vmem:[#allocation13_spill] sm:$0xff] }
 0x6ce   :  { %4641 = vmatpush.msra.mxu1 %v4328_v45  ;;  %v7470_v13 = vpop.eup %7469  ;;  %vm3622_vm13 = vcmp.lt.f32.partialorder %v10664_v60, 0.0  ;;  %v4325_v54 = vadd.f32 %v4293_v14, %v4214_v42  ;;  %v4106_v19 = vadd.f32 %v10716_v48, %v9341_v18  ;;  %v4205_v51 = vadd.f32 %v10716_v48, %v10481_v46  ;;  %v13229_v9 = vld [vmem:[#allocation53_spill] sm:$0xff]  ;;  %v13231_v42 = vld [vmem:[#allocation60_spill] sm:$0xff] }
 0x6cf   :  { %v3558_v37 = vsub.f32 1.0, %v3494_v3  ;;  %v3175_v58 = vmul.f32 %v3111_v29, %v10753_v63  ;;  %v13225_v63 = vld [vmem:[#allocation16_spill] sm:$0xff]  ;;  %v4324_v34 = vadd.f32 %v4292_v5, %v4211_v10  ;;  %v1382_v47 = vmul.f32 0.5, %v10652_v62  ;;  %v4413_v5 = vld [vmem:[%s12999_s11] sm:$0xff] }
 0x6d0   :  { %4642 = vmatpush.msra.mxu1 %v4327_v28  ;;  %v4291_v25 = vadd.f32 %v4112_v26, %v13225_v63  ;;  %v4103_v60 = vadd.f32 %v10716_v48, %v9298_v61  ;;  %v4290_v56 = vadd.f32 %v4109_v49, %v13226_v33  ;;  %v4202_v18 = vadd.f32 %v10716_v48, %v10450_v38  ;;  %v13230_v3 = vld [vmem:[#allocation12_spill] sm:$0xff]  ;;  %v4468_v63 = vld [vmem:[%s12999_s11 + $0x1b8] sm:$0xff] }
 0x6d1   :  { %v3686_v11 = vsub.f32 0.0, %v3558_v37  ;;  %v3495_v0 = vmul.f32 %v7470_v13, %v3175_v58  ;;  %v4100_v40 = vadd.f32 %v10716_v48, %v9266_v31  ;;  %v4289_v62 = vadd.f32 %v4106_v19, %v13227_v16  ;;  %v13234_v58 = vld [vmem:[#allocation10_spill] sm:$0xff]  ;;  %v4419_v19 = vld [vmem:[%s12999_s11 + $0x30] sm:$0xff] }
 0x6d2   :  { %4643 = vmatpush.msra.mxu1 %v4326_v41  ;;  %v4323_v50 = vadd.f32 %v4291_v25, %v4208_v20  ;;  %vm3623_vm14 = vcmp.lt.f32.partialorder %v10680_v1, 0.0  ;;  %v4199_v57 = vadd.f32 %v10716_v48, %v10417_v32  ;;  %v4322_v61 = vadd.f32 %v4290_v56, %v4205_v51  ;;  %v4415_v20 = vld [vmem:[%s12999_s11 + $0x10] sm:$0xff]  ;;  %v4421_v51 = vld [vmem:[%s12999_s11 + $0x40] sm:$0xff] }
 0x6d3   :  { %v3750_v39 = vsel %vm3622_vm13, %v3686_v11, %v3558_v37  ;;  %v3559_v4 = vsub.f32 1.0, %v3495_v0  ;;  %v4097_v38 = vadd.f32 %v10716_v48, %v9237_v55  ;;  %v4288_v36 = vadd.f32 %v4103_v60, %v13228_v44  ;;  %v13232_v37 = vld [vmem:[#allocation11_spill] sm:$0xff]  ;;  %v4427_v60 = vld [vmem:[%s12999_s11 + $0x70] sm:$0xff] }
 0x6d4   :  { %v10821_v7 = vpop.f32.mrf.mxu0  ;;  %v3814_v2 = vadd.f32 1.0, %v3750_v39  ;;  %4644 = vmatpush.msra.mxu1 %v4325_v54  ;;  %v4196_v31 = vadd.f32 %v10716_v48, %v10385_v53  ;;  %v4321_v45 = vadd.f32 %v4289_v62, %v4202_v18  ;;  %v1383_v1 = vmul.f32 0.5, %v10670_v21  ;;  %v13233_v53 = vld [vmem:[#allocation59_spill] sm:$0xff]  ;;  %v4435_v62 = vld [vmem:[%s12999_s11 + $0xb0] sm:$0xff] }
 0x6d5   :  { %v3687_v46 = vsub.f32 0.0, %v3559_v4  ;;  %v4094_v32 = vadd.f32 %v10716_v48, %v13229_v9  ;;  %v4287_v59 = vadd.f32 %v4100_v40, %v13230_v3  ;;  %v4193_v29 = vadd.f32 %v10716_v48, %v13231_v42  ;;  %v4417_v0 = vld [vmem:[%s12999_s11 + $0x20] sm:$0xff]  ;;  %v4375_v9 = vld [vmem:[%s13000_s12 + $0xd0] sm:$0xff] }
 0x6d6   :  { %v3878_v12 = vmul.f32 %v3814_v2, %v1382_v47  ;;  %4645 = vmatpush.msra.mxu1 %v4324_v34  ;;  %v4320_v28 = vadd.f32 %v4288_v36, %v4199_v57  ;;  %v4286_v14 = vadd.f32 %v4097_v38, %v13232_v37  ;;  %v4190_v10 = vadd.f32 %v10716_v48, %v13233_v53  ;;  %v4423_v34 = vld [vmem:[%s12999_s11 + $0x50] sm:$0xff]  ;;  %v4425_v2 = vld [vmem:[%s12999_s11 + $0x60] sm:$0xff]  ;;  %v4380_v57 = vld [vmem:[%s13000_s12 + $0xf8] sm:$0xff] }
 0x6d7   :  { %v3751_v30 = vsel %vm3623_vm14, %v3687_v46, %v3559_v4  ;;  %v4319_v21 = vadd.f32 %v4287_v59, %v4196_v31  ;;  %v4285_v41 = vadd.f32 %v4094_v32, %v13234_v58  ;;  %v4429_v56 = vld [vmem:[%s12999_s11 + $0x80] sm:$0xff]  ;;  %4634 = vperm.xlu2 %7199, %v4380_v57   ;;  %v4363_v38 = vld [vmem:[%s13000_s12 + $0x70] sm:$0xff]  ;;  %v4362_v31 = vld [vmem:[%s13000_s12 + $0x68] sm:$0xff] }
 0x6d8   :  { %7156 = vmatmul.msk.f32.gmra.mxu0 %vm76_vm0, %v3878_v12  ;;  %4646 = vmatpush.msra.mxu1 %v4323_v50  ;;  %v3815_v52 = vadd.f32 1.0, %v3751_v30  ;;  %v4318_v13 = vadd.f32 %v4286_v14, %v4193_v29  ;;  %v4431_v50 = vld [vmem:[%s12999_s11 + $0x90] sm:$0xff]  ;;  %v4433_v46 = vld [vmem:[%s12999_s11 + $0xa0] sm:$0xff]  ;;  %v13235_v32 = vld [vmem:[#allocation58_spill] sm:$0xff] }
 0x6d9   :  { %v4317_v49 = vadd.f32 %v4285_v41, %v4190_v10  ;;  %v4437_v30 = vld [vmem:[%s12999_s11 + $0xc0] sm:$0xff]  ;;  %v4187_v59 = vadd.f32 %v10716_v48, %v13235_v32  ;;  %v4443_v42 = vld [vmem:[%s12999_s11 + $0xf0] sm:$0xff]  ;;  %v13237_v14 = vld [vmem:[#allocation56_spill] sm:$0xff] }
 0x6da   :  { %4647 = vmatpush.msra.mxu1 %v4322_v61  ;;  %v3879_v55 = vmul.f32 %v3815_v52, %v1383_v1  ;;  %v4439_v52 = vld [vmem:[%s12999_s11 + $0xd0] sm:$0xff]  ;;  %v4181_v53 = vadd.f32 %v10716_v48, %v13237_v14  ;;  %v13238_v10 = vld [vmem:[#allocation52_spill] sm:$0xff]  ;;  %v4445_v57 = vld [vmem:[%s12999_s11 + $0x100] sm:$0xff] }
 0x6db   :  { %v13236_v29 = vld [vmem:[#allocation57_spill] sm:$0xff] }
 0x6dc   :  { %4648 = vmatpush.msra.mxu1 %v4321_v45  ;;  %v4441_v45 = vld [vmem:[%s12999_s11 + $0xe0] sm:$0xff] }
 0x6de   :  { %4649 = vmatpush.msra.mxu1 %v4320_v28  ;;  %v4184_v28 = vadd.f32 %v10716_v48, %v13236_v29  ;;  %v4372_v29 = vld [vmem:[%s13000_s12 + $0xb8] sm:$0xff] }
 0x6df   :  { %4549 = vperm.xlu2 %7199, %v4363_v38  }
 0x6e0   :  { %v10847_v26 = vpop.f32.mrf.mxu0  ;;  %7157 = vmatmul.msk.f32.gmra.mxu0 %vm76_vm0, %v3879_v55  ;;  %4650 = vmatpush.msra.mxu1 %v4319_v21  ;;  %v4316_v21 = vadd.f32 %v4187_v59, %v13238_v10 }
 0x6e2   :  { %4651 = vmatpush.msra.mxu1 %v4318_v13 }
 0x6e4   :  { %4652 = vmatpush.msra.mxu1 %v4317_v49  ;;  %v4359_v49 = vld [vmem:[%s13000_s12 + $0x50] sm:$0xff] }
 0x6e5   :  { %4653 = vmatmul.f32.vlgmr.msra.gmra.mxu1 %v4413_v5  ;;  %v13239_v5 = vld [vmem:[#allocation55_spill] sm:$0xff] }
 0x6e7   :  { %4544 = vperm.xlu2 %7199, %v4362_v31  }
 0x6e8   :  { %v10857_v11 = vpop.f32.mrf.mxu0 }
 0x6ed   :  { %4656 = vmatmul.f32.gmra.mxu1 %v4415_v20  ;;  %v4178_v20 = vadd.f32 %v10716_v48, %v13239_v5 }
 0x6ef   :  { %4609 = vperm.xlu2 %7199, %v4375_v9  }
 0x6f4   :  { %v10862_v54 = vpop.f32.mrf.mxu0 }
 0x6f5   :  { %4659 = vmatmul.f32.gmra.mxu1 %v4417_v0  ;;  %v13240_v0 = vld [vmem:[#allocation51_spill] sm:$0xff] }
 0x6f7   :  { %4529 = vperm.xlu2 %7199, %v4359_v49  }
 0x6fc   :  { %v10870_v25 = vpop.f32.mrf.mxu0 }
 0x6fd   :  { %4662 = vmatmul.f32.gmra.mxu1 %v4419_v19  ;;  %v4315_v19 = vadd.f32 %v4184_v28, %v13240_v0  ;;  %v13247_v28 = vld [vmem:[#allocation33_spill] sm:$0xff] }
 0x6ff   :  { %4594 = vperm.xlu2 %7199, %v4372_v29  }
 0x704   :  { %v10875_v39 = vpop.f32.mrf.mxu0 }
 0x705   :  { %4665 = vmatmul.f32.gmra.mxu1 %v4421_v51 }
 0x70d   :  { %4668 = vmatmul.f32.gmra.mxu1 %v4423_v34 }
 0x711   :  { %v10880_v47 = vpop.f32.mrf.mxu0 }
 0x715   :  { %4671 = vmatmul.f32.gmra.mxu1 %v4425_v2  ;;  %v13241_v2 = vld [vmem:[#allocation54_spill] sm:$0xff] }
 0x719   :  { %v10885_v4 = vpop.f32.mrf.mxu0 }
 0x71a   :  { %v4262_v5 = vadd.f32 %v10716_v48, %v10885_v4 }
 0x71d   :  { %4674 = vmatmul.f32.gmra.mxu1 %v4427_v60  ;;  %v4175_v60 = vadd.f32 %v10716_v48, %v13241_v2 }
 0x724   :  { %v4264_v18 = vpop.f32.mrf.mxu0 }
 0x725   :  { %4677 = vmatmul.f32.gmra.mxu1 %v4429_v56  ;;  %v13242_v56 = vld [vmem:[#allocation50_spill] sm:$0xff] }
 0x72c   :  { %v4267_v12 = vpop.f32.mrf.mxu0 }
 0x72d   :  { %4680 = vmatmul.f32.gmra.mxu1 %v4431_v50  ;;  %v4314_v50 = vadd.f32 %v4181_v53, %v13242_v56  ;;  %v4268_v59 = vadd.f32 %v10716_v48, %v4267_v12  ;;  %v4265_v53 = vadd.f32 %v10716_v48, %v4264_v18  ;;  %v13250_v12 = vld [vmem:[#allocation46_spill] sm:$0xff]  ;;  %v4475_v56 = vld [vmem:[%s12999_s11 + $0x1f0] sm:$0xff] }
 0x735   :  { %4683 = vmatmul.f32.gmra.mxu1 %v4433_v46 }
 0x737   :  { %v4270_v40 = vpop.f32.mrf.mxu0 }
 0x738   :  { %v4271_v31 = vadd.f32 %v10716_v48, %v4270_v40  ;;  %v13248_v40 = vld [vmem:[#allocation47_spill] sm:$0xff] }
 0x73d   :  { %4686 = vmatmul.f32.gmra.mxu1 %v4435_v62 }
 0x73f   :  { %v4273_v61 = vpop.f32.mrf.mxu0 }
 0x740   :  { %v4274_v46 = vadd.f32 %v10716_v48, %v4273_v61  ;;  %v13246_v61 = vld [vmem:[#allocation48_spill] sm:$0xff] }
 0x741   :  { %v4312_v32 = vadd.f32 %v4175_v60, %v13246_v61  ;;  %v4259_v60 = vadd.f32 %v10716_v48, %v10880_v47  ;;  %v4400_v61 = vld [vmem:[%s13000_s12 + $0x198] sm:$0xff] }
 0x745   :  { %4689 = vmatmul.f32.gmra.mxu1 %v4437_v30  ;;  %v13243_v30 = vld [vmem:[#allocation36_spill] sm:$0xff] }
 0x746   :  { %v4172_v38 = vadd.f32 %v10716_v48, %v13243_v30  ;;  %v4256_v30 = vadd.f32 %v10716_v48, %v10875_v39 }
 0x748   :  { %v4311_v14 = vadd.f32 %v4172_v38, %v13248_v40 }
 0x74a   :  { %v4276_v36 = vpop.f32.mrf.mxu0 }
 0x74b   :  { %v4277_v51 = vadd.f32 %v10716_v48, %v4276_v36 }
 0x74d   :  { %4692 = vmatmul.f32.gmra.mxu1 %v4439_v52  ;;  %v13244_v52 = vld [vmem:[#allocation49_spill] sm:$0xff] }
 0x74e   :  { %v4313_v36 = vadd.f32 %v4178_v20, %v13244_v52  ;;  %v4343_v20 = vadd.f32 %v4311_v14, %v4268_v59  ;;  %v13257_v59 = vld [vmem:[#allocation24_spill] sm:$0xff]  ;;  %v4449_v14 = vld [vmem:[%s12999_s11 + $0x120] sm:$0xff] }
 0x74f   :  { %v4151_v39 = vadd.f32 %v10716_v48, %v13257_v59  ;;  %v4416_v59 = vld [vmem:[%s12999_s11 + $0x18] sm:$0xff] }
 0x755   :  { %v4279_v1 = vpop.f32.mrf.mxu0  ;;  %4695 = vmatmul.f32.gmra.mxu1 %v4441_v45  ;;  %v4346_v45 = vadd.f32 %v4314_v50, %v4277_v51  ;;  %v13251_v51 = vld [vmem:[#allocation29_spill] sm:$0xff] }
 0x756   :  { %v4280_v41 = vadd.f32 %v10716_v48, %v4279_v1  ;;  %v13245_v1 = vld [vmem:[#allocation35_spill] sm:$0xff]  ;;  %v4160_v18 = vadd.f32 %v10716_v48, %v13251_v51  ;;  %v4244_v51 = vadd.f32 %v10716_v48, %v10847_v26  ;;  %v4238_v26 = vadd.f32 %v10716_v48, %v10786_v43 }
 0x757   :  { %v4169_v9 = vadd.f32 %v10716_v48, %v13245_v1  ;;  %v4453_v43 = vld [vmem:[%s12999_s11 + $0x140] sm:$0xff] }
 0x758   :  { %v4347_v62 = vadd.f32 %v4315_v19, %v4280_v41  ;;  %v13249_v41 = vld [vmem:[#allocation31_spill] sm:$0xff]  ;;  %v4447_v19 = vld [vmem:[%s12999_s11 + $0x110] sm:$0xff] }
 0x759   :  { %v4310_v49 = vadd.f32 %v4169_v9, %v13250_v12  ;;  %v4253_v9 = vadd.f32 %v10716_v48, %v10870_v25  ;;  %v4460_v12 = vld [vmem:[%s12999_s11 + $0x178] sm:$0xff] }
 0x75b   :  { %v4342_v50 = vadd.f32 %v4310_v49, %v4265_v53  ;;  %v13259_v53 = vld [vmem:[#allocation22_spill] sm:$0xff] }
 0x75c   :  { %v4148_v25 = vadd.f32 %v10716_v48, %v13259_v53  ;;  %v4420_v53 = vld [vmem:[%s12999_s11 + $0x38] sm:$0xff] }
 0x75d   :  { %v4282_v55 = vpop.f32.mrf.mxu0  ;;  %4698 = vmatmul.f32.gmra.mxu1 %v4443_v42  ;;  %v4345_v42 = vadd.f32 %v4313_v36, %v4274_v46  ;;  %v13253_v46 = vld [vmem:[#allocation27_spill] sm:$0xff]  ;;  %v4356_v36 = vld [vmem:[%s13000_s12 + $0x38] sm:$0xff] }
 0x75e   :  { %v4283_v13 = vadd.f32 %v10716_v48, %v4282_v55  ;;  %v4166_v55 = vadd.f32 %v10716_v48, %v13247_v28  ;;  %v4157_v4 = vadd.f32 %v10716_v48, %v13253_v46  ;;  %4514 = vperm.xlu2 %7199, %v4356_v36   ;;  %v4250_v28 = vadd.f32 %v10716_v48, %v10862_v54 }
 0x760   :  { %v4348_v34 = vadd.f32 %v4316_v21, %v4283_v13  ;;  %v4344_v21 = vadd.f32 %v4312_v32, %v4271_v31  ;;  %v4163_v13 = vadd.f32 %v10716_v48, %v13249_v41  ;;  %v13255_v31 = vld [vmem:[#allocation26_spill] sm:$0xff] }
 0x761   :  { %v4154_v47 = vadd.f32 %v10716_v48, %v13255_v31  ;;  %v4451_v31 = vld [vmem:[%s12999_s11 + $0x130] sm:$0xff] }
 0x762   :  { %4750 = vmatpush.msra.mxu2 %v4348_v34  ;;  %v13252_v34 = vld [vmem:[#allocation45_spill] sm:$0xff] }
 0x763   :  { %v4309_v2 = vadd.f32 %v4166_v55, %v13252_v34 }
 0x764   :  { %4751 = vmatpush.msra.mxu2 %v4347_v62  ;;  %v13254_v62 = vld [vmem:[#allocation44_spill] sm:$0xff] }
 0x765   :  { %4701 = vmatmul.f32.gmra.mxu1 %v4445_v57  ;;  %v4308_v57 = vadd.f32 %v4163_v13, %v13254_v62  ;;  %v4341_v38 = vadd.f32 %v4309_v2, %v4262_v5  ;;  %v4247_v13 = vadd.f32 %v10716_v48, %v10857_v11  ;;  %v13261_v5 = vld [vmem:[#allocation20_spill] sm:$0xff]  ;;  %v4369_v2 = vld [vmem:[%s13000_s12 + $0xa0] sm:$0xff] }
 0x766   :  { %4752 = vmatpush.msra.mxu2 %v4346_v45  ;;  %v13256_v45 = vld [vmem:[#allocation43_spill] sm:$0xff]  ;;  %v4145_v54 = vadd.f32 %v10716_v48, %v13261_v5  ;;  %4579 = vperm.xlu2 %7199, %v4369_v2  }
 0x767   :  { %v4307_v1 = vadd.f32 %v4160_v18, %v13256_v45  ;;  %v4340_v32 = vadd.f32 %v4308_v57, %v4259_v60  ;;  %v13263_v60 = vld [vmem:[#allocation18_spill] sm:$0xff]  ;;  %v4465_v2 = vld [vmem:[%s12999_s11 + $0x1a0] sm:$0xff] }
 0x768   :  { %4753 = vmatpush.msra.mxu2 %v4345_v42  ;;  %v13258_v42 = vld [vmem:[#allocation42_spill] sm:$0xff]  ;;  %v4142_v11 = vadd.f32 %v10716_v48, %v13263_v60 }
 0x769   :  { %v4306_v29 = vadd.f32 %v4157_v4, %v13258_v42  ;;  %v4339_v55 = vadd.f32 %v4307_v1, %v4256_v30  ;;  %v4241_v4 = vadd.f32 %v10716_v48, %v10821_v7  ;;  %v13265_v30 = vld [vmem:[#allocation38_spill] sm:$0xff]  ;;  %v4353_v48 = vld [vmem:[%s13000_s12 + $0x20] sm:$0xff] }
 0x76a   :  { %4754 = vmatpush.msra.mxu2 %v4344_v21  ;;  %v13260_v21 = vld [vmem:[#allocation41_spill] sm:$0xff]  ;;  %v4428_v60 = vld [vmem:[%s12999_s11 + $0x78] sm:$0xff] }
 0x76b   :  { %v4305_v41 = vadd.f32 %v4154_v47, %v13260_v21  ;;  %v4338_v49 = vadd.f32 %v4306_v29, %v4253_v9  ;;  %v13266_v47 = vld [vmem:[#allocation37_spill] sm:$0xff] }
 0x76c   :  { %4755 = vmatpush.msra.mxu2 %v4343_v20  ;;  %v13262_v20 = vld [vmem:[#allocation40_spill] sm:$0xff]  ;;  %v4301_v1 = vadd.f32 %v4142_v11, %v13266_v47  ;;  %v4455_v29 = vld [vmem:[%s12999_s11 + $0x150] sm:$0xff] }
 0x76d   :  { %4704 = vmatmul.f32.gmra.mxu1 %v4447_v19  ;;  %v4304_v19 = vadd.f32 %v4151_v39, %v13262_v20  ;;  %v4337_v18 = vadd.f32 %v4305_v41, %v4250_v28  ;;  %v4366_v39 = vld [vmem:[%s13000_s12 + $0x88] sm:$0xff]  ;;  %v4459_v41 = vld [vmem:[%s12999_s11 + $0x170] sm:$0xff] }
 0x76e   :  { %4756 = vmatpush.msra.mxu2 %v4342_v50  ;;  %v13264_v50 = vld [vmem:[#allocation39_spill] sm:$0xff]  ;;  %v4333_v7 = vadd.f32 %v4301_v1, %v4238_v26  ;;  %4499 = vperm.xlu2 %7199, %v4353_v48   ;;  %v4418_v28 = vld [vmem:[%s12999_s11 + $0x28] sm:$0xff]  ;;  %v4432_v26 = vld [vmem:[%s12999_s11 + $0x98] sm:$0xff] }
 0x76f   :  { %v4303_v46 = vadd.f32 %v4148_v25, %v13264_v50  ;;  %v4336_v57 = vadd.f32 %v4304_v19, %v4247_v13  ;;  %v11053_v25 = vpop.f32.mrf.mxu1  ;;  %v4422_v13 = vld [vmem:[%s12999_s11 + $0x48] sm:$0xff]  ;;  %v4463_v19 = vld [vmem:[%s12999_s11 + $0x190] sm:$0xff] }
 0x770   :  { %4757 = vmatpush.msra.mxu2 %v4341_v38  ;;  %v4302_v38 = vadd.f32 %v4145_v54, %v13265_v30  ;;  %v4424_v54 = vld [vmem:[%s12999_s11 + $0x58] sm:$0xff]  ;;  %v4434_v1 = vld [vmem:[%s12999_s11 + $0xa8] sm:$0xff] }
 0x771   :  { %v4335_v36 = vadd.f32 %v4303_v46, %v4244_v51  ;;  %v4467_v46 = vld [vmem:[%s12999_s11 + $0x1b0] sm:$0xff]  ;;  %v4438_v48 = vld [vmem:[%s12999_s11 + $0xc8] sm:$0xff] }
 0x772   :  { %4758 = vmatpush.msra.mxu2 %v4340_v32  ;;  %v4334_v9 = vadd.f32 %v4302_v38, %v4241_v4  ;;  %v4414_v32 = vld [vmem:[%s12999_s11 + $0x8] sm:$0xff]  ;;  %v4469_v38 = vld [vmem:[%s12999_s11 + $0x1c0] sm:$0xff] }
 0x773   :  { %v4430_v4 = vld [vmem:[%s12999_s11 + $0x88] sm:$0xff] }
 0x774   :  { %4759 = vmatpush.msra.mxu2 %v4339_v55  ;;  %v4350_v55 = vld [vmem:[%s13000_s12 + $0x8] sm:$0xff] }
 0x775   :  { %4707 = vmatmul.f32.gmra.mxu1 %v4449_v14  ;;  %v4457_v14 = vld [vmem:[%s12999_s11 + $0x160] sm:$0xff] }
 0x776   :  { %4760 = vmatpush.msra.mxu2 %v4338_v49  ;;  %4564 = vperm.xlu2 %7199, %v4366_v39   ;;  %v4461_v49 = vld [vmem:[%s12999_s11 + $0x180] sm:$0xff]  ;;  %v11124_v39 = vpop.permute.xlu2 %4634 }
 0x777   :  { %v11064_v5 = vpop.f32.mrf.mxu1  ;;  %13267 = vst [vmem:[#allocation53_spill] sm:$0xff] %v11124_v39 }
 0x778   :  { %4761 = vmatpush.msra.mxu2 %v4337_v18  ;;  %v4426_v18 = vld [vmem:[%s12999_s11 + $0x68] sm:$0xff] }
 0x77a   :  { %4762 = vmatpush.msra.mxu2 %v4336_v57 }
 0x77c   :  { %4763 = vmatpush.msra.mxu2 %v4335_v36  ;;  %v4471_v36 = vld [vmem:[%s12999_s11 + $0x1d0] sm:$0xff] }
 0x77d   :  { %4710 = vmatmul.f32.gmra.mxu1 %v4451_v31 }
 0x77e   :  { %4764 = vmatpush.msra.mxu2 %v4334_v9  ;;  %4484 = vperm.xlu2 %7199, %v4350_v55   ;;  %v4473_v9 = vld [vmem:[%s12999_s11 + $0x1e0] sm:$0xff]  ;;  %v4446_v55 = vld [vmem:[%s12999_s11 + $0x108] sm:$0xff] }
 0x77f   :  { %v11072_v51 = vpop.f32.mrf.mxu1 }
 0x780   :  { %4765 = vmatpush.msra.mxu2 %v4333_v7 }
 0x781   :  { %4766 = vmatmul.f32.vlgmr.msra.gmra.mxu2 %v4414_v32  ;;  %v4436_v32 = vld [vmem:[%s12999_s11 + $0xb8] sm:$0xff] }
 0x785   :  { %4713 = vmatmul.f32.gmra.mxu1 %v4453_v43  ;;  %v4440_v43 = vld [vmem:[%s12999_s11 + $0xd8] sm:$0xff] }
 0x787   :  { %v11083_v11 = vpop.f32.mrf.mxu1 }
 0x789   :  { %4769 = vmatmul.f32.gmra.mxu2 %v4416_v59  ;;  %v4442_v59 = vld [vmem:[%s12999_s11 + $0xe8] sm:$0xff] }
 0x78d   :  { %4716 = vmatmul.f32.gmra.mxu1 %v4455_v29  ;;  %v4444_v29 = vld [vmem:[%s12999_s11 + $0xf8] sm:$0xff] }
 0x78f   :  { %v11091_v57 = vpop.f32.mrf.mxu1 }
 0x791   :  { %4772 = vmatmul.f32.gmra.mxu2 %v4418_v28  ;;  %v11129_v28 = vpop.permute.xlu2 %4549 }
 0x795   :  { %4719 = vmatmul.f32.gmra.mxu1 %v4457_v14  ;;  %v11134_v14 = vpop.permute.xlu0 %4614 }
 0x796   :  { %13268 = vst [vmem:[#allocation60_spill] sm:$0xff] %v11134_v14 }
 0x797   :  { %v11102_v31 = vpop.f32.mrf.mxu1 }
 0x799   :  { %4775 = vmatmul.f32.gmra.mxu2 %v4420_v53  ;;  %v4382_v53 = vld [vmem:[%s13000_s12 + $0x108] sm:$0xff] }
 0x79a   :  { %6214 = vperm.xlu2 %7199, %v4382_v53  }
 0x79d   :  { %4722 = vmatmul.f32.gmra.mxu1 %v4459_v41 }
 0x79f   :  { %v11110_v7 = vpop.f32.mrf.mxu1 }
 0x7a1   :  { %4778 = vmatmul.f32.gmra.mxu2 %v4422_v13  ;;  %v11141_v13 = vpop.permute.xlu2 %4544 }
 0x7a5   :  { %4725 = vmatmul.f32.gmra.mxu1 %v4461_v49  ;;  %v4448_v49 = vld [vmem:[%s12999_s11 + $0x118] sm:$0xff] }
 0x7a9   :  { %4781 = vmatmul.f32.gmra.mxu2 %v4424_v54  ;;  %v11146_v54 = vpop.permute.xlu0 %4534 }
 0x7ad   :  { %4728 = vmatmul.f32.gmra.mxu1 %v4463_v19  ;;  %v11148_v19 = vpop.permute.xlu1 %4629 }
 0x7ae   :  { %13269 = vst [vmem:[#allocation59_spill] sm:$0xff] %v11148_v19 }
 0x7b1   :  { %4784 = vmatmul.f32.gmra.mxu2 %v4426_v18  ;;  %v4385_v18 = vld [vmem:[%s13000_s12 + $0x120] sm:$0xff] }
 0x7b2   :  { %6229 = vperm.xlu2 %7199, %v4385_v18  }
 0x7b5   :  { %4731 = vmatmul.f32.gmra.mxu1 %v4465_v2 }
 0x7b9   :  { %4787 = vmatmul.f32.gmra.mxu2 %v4428_v60  ;;  %v4450_v60 = vld [vmem:[%s12999_s11 + $0x128] sm:$0xff] }
 0x7bd   :  { %4734 = vmatmul.f32.gmra.mxu1 %v4467_v46  ;;  %v11158_v46 = vpop.permute.xlu2 %4609 }
 0x7be   :  { %13270 = vst [vmem:[#allocation58_spill] sm:$0xff] %v11158_v46 }
 0x7c1   :  { %4790 = vmatmul.f32.gmra.mxu2 %v4430_v4  ;;  %v11160_v4 = vpop.permute.xlu0 %4599 }
 0x7c2   :  { %13271 = vst [vmem:[#allocation57_spill] sm:$0xff] %v11160_v4 }
 0x7c5   :  { %4737 = vmatmul.f32.gmra.mxu1 %v4469_v38  ;;  %v4388_v38 = vld [vmem:[%s13000_s12 + $0x138] sm:$0xff] }
 0x7c6   :  { %6244 = vperm.xlu2 %7199, %v4388_v38  }
 0x7c9   :  { %4793 = vmatmul.f32.gmra.mxu2 %v4432_v26  ;;  %v11165_v26 = vpop.permute.xlu1 %4554 }
 0x7cd   :  { %4740 = vmatmul.f32.gmra.mxu1 %v4471_v36 }
 0x7d1   :  { %4796 = vmatmul.f32.gmra.mxu2 %v4434_v1  ;;  %v4452_v1 = vld [vmem:[%s12999_s11 + $0x138] sm:$0xff] }
 0x7d5   :  { %4743 = vmatmul.f32.gmra.mxu1 %v4473_v9  ;;  %v11172_v9 = vpop.permute.xlu2 %4529 }
 0x7d9   :  { %4799 = vmatmul.f32.gmra.mxu2 %v4436_v32  ;;  %v4391_v32 = vld [vmem:[%s13000_s12 + $0x150] sm:$0xff] }
 0x7da   :  { %6259 = vperm.xlu2 %7199, %v4391_v32  }
 0x7dd   :  { %v11188_v53 = vpop.permute.xlu2 %4594 }
 0x7de   :  { %13273 = vst [vmem:[#allocation55_spill] sm:$0xff] %v11188_v53 }
 0x7e1   :  { %4802 = vmatmul.f32.gmra.mxu2 %v4438_v48 }
 0x7e5   :  { %v11209_v0 = vpop.permute.xlu2 %4514 }
 0x7e9   :  { %4805 = vmatmul.f32.gmra.mxu2 %v4440_v43  ;;  %v11179_v43 = vpop.permute.xlu0 %4519 }
 0x7ed   :  { %v11229_v34 = vpop.permute.xlu2 %4579 }
 0x7ee   :  { %13276 = vst [vmem:[#allocation35_spill] sm:$0xff] %v11229_v34 }
 0x7f1   :  { %4808 = vmatmul.f32.gmra.mxu2 %v4442_v59  ;;  %v11181_v59 = vpop.permute.xlu1 %4624  ;;  %v11198_v38 = vpop.permute.xlu0 %4584 }
 0x7f2   :  { %13272 = vst [vmem:[#allocation56_spill] sm:$0xff] %v11181_v59 }
 0x7f3   :  { %13274 = vst [vmem:[#allocation54_spill] sm:$0xff] %v11198_v38 }
 0x7f5   :  { %v11243_v21 = vpop.permute.xlu2 %4499 }
 0x7f9   :  { %4811 = vmatmul.f32.gmra.mxu2 %v4444_v29  ;;  %v4454_v29 = vld [vmem:[%s12999_s11 + $0x148] sm:$0xff] }
 0x7fd   :  { %v11255_v35 = vpop.permute.xlu2 %4564 }
 0x7fe   :  { %13279 = vst [vmem:[#allocation29_spill] sm:$0xff] %v11255_v35 }
 0x801   :  { %4814 = vmatmul.f32.gmra.mxu2 %v4446_v55  ;;  %v11186_v55 = vpop.f32.mrf.mxu1  ;;  %4746 = vmatmul.f32.gmra.mxu1 %v4475_v56  ;;  %v4403_v56 = vld [vmem:[%s13000_s12 + $0x1b0] sm:$0xff] }
 0x804   :  { %v11139_v41 = vpop.f32.mrf.mxu2 }
 0x809   :  { %4817 = vmatmul.f32.gmra.mxu2 %v4448_v49  ;;  %v4394_v49 = vld [vmem:[%s13000_s12 + $0x168] sm:$0xff]  ;;  %v11202_v32 = vpop.f32.mrf.mxu1 }
 0x80a   :  { %6274 = vperm.xlu2 %7199, %v4394_v49   ;;  %v4458_v49 = vld [vmem:[%s12999_s11 + $0x168] sm:$0xff] }
 0x80c   :  { %v11153_v2 = vpop.f32.mrf.mxu2 }
 0x811   :  { %4820 = vmatmul.f32.gmra.mxu2 %v4450_v60  ;;  %v4456_v60 = vld [vmem:[%s12999_s11 + $0x158] sm:$0xff]  ;;  %v11224_v40 = vpop.f32.mrf.mxu1 }
 0x814   :  { %v11167_v36 = vpop.f32.mrf.mxu2 }
 0x819   :  { %4823 = vmatmul.f32.gmra.mxu2 %v4452_v1  ;;  %v11200_v1 = vpop.permute.xlu1 %4619  ;;  %v4684_v42 = vpop.f32.mrf.mxu1 }
 0x81a   :  { %13275 = vst [vmem:[#allocation36_spill] sm:$0xff] %v11200_v1  ;;  %v4685_v33 = vadd.f32 %v4684_v42, %v11172_v9 }
 0x81c   :  { %v11177_v48 = vpop.f32.mrf.mxu2 }
 0x821   :  { %4826 = vmatmul.f32.gmra.mxu2 %v4454_v29  ;;  %v4397_v29 = vld [vmem:[%s13000_s12 + $0x180] sm:$0xff]  ;;  %v4540_v52 = vpop.permute.xlu1 %4539  ;;  %v4687_v47 = vpop.f32.mrf.mxu1 }
 0x822   :  { %6289 = vperm.xlu2 %7199, %v4397_v29  }
 0x824   :  { %v11193_v18 = vpop.f32.mrf.mxu2 }
 0x829   :  { %4829 = vmatmul.f32.gmra.mxu2 %v4456_v60  ;;  %v11217_v60 = vpop.permute.xlu0 %4504  ;;  %v4690_v6 = vpop.f32.mrf.mxu1 }
 0x82a   :  { %6304 = vperm.xlu2 %7199, %v4400_v61   ;;  %v4462_v61 = vld [vmem:[%s12999_s11 + $0x188] sm:$0xff] }
 0x82c   :  { %v11207_v10 = vpop.f32.mrf.mxu2 }
 0x831   :  { %4832 = vmatmul.f32.gmra.mxu2 %v4458_v49  ;;  %v11231_v62 = vpop.permute.xlu0 %4569  ;;  %v11236_v49 = vpop.permute.xlu1 %4604 }
 0x832   :  { %13277 = vst [vmem:[#allocation33_spill] sm:$0xff] %v11231_v62  ;;  %6319 = vperm.xlu2 %7199, %v4403_v56   ;;  %v4464_v56 = vld [vmem:[%s12999_s11 + $0x198] sm:$0xff]  ;;  %v4693_v16 = vpop.f32.mrf.mxu1 }
 0x833   :  { %13278 = vst [vmem:[#allocation31_spill] sm:$0xff] %v11236_v49 }
 0x834   :  { %v11222_v29 = vpop.f32.mrf.mxu2 }
 0x839   :  { %4835 = vmatmul.f32.gmra.mxu2 %v4460_v12  ;;  %v4406_v12 = vld [vmem:[%s13000_s12 + $0x1c8] sm:$0xff]  ;;  %v4490_v50 = vpop.permute.xlu0 %4489  ;;  %v11250_v30 = vpop.permute.xlu1 %4524 }
 0x83a   :  { %6334 = vperm.xlu2 %7199, %v4406_v12   ;;  %v4466_v12 = vld [vmem:[%s12999_s11 + $0x1a8] sm:$0xff]  ;;  %v4661_v9 = vadd.f32 %v11072_v51, %v4490_v50 }
 0x83c   :  { %v11238_v45 = vpop.f32.mrf.mxu2 }
 0x841   :  { %4838 = vmatmul.f32.gmra.mxu2 %v4462_v61  ;;  %v4409_v61 = vld [vmem:[%s13000_s12 + $0x1e0] sm:$0xff]  ;;  %v4480_v17 = vpop.permute.xlu0 %4479  ;;  %v11265_v22 = vpop.permute.xlu1 %4589 }
 0x842   :  { %6349 = vperm.xlu2 %7199, %v4409_v61   ;;  %13280 = vst [vmem:[#allocation27_spill] sm:$0xff] %v11265_v22  ;;  %v4655_v27 = vadd.f32 %v11053_v25, %v4480_v17  ;;  %v4485_v61 = vpop.permute.xlu2 %4484 }
 0x843   :  { %v4658_v17 = vadd.f32 %v11064_v5, %v4485_v61  ;;  %v4691_v61 = vadd.f32 %v4690_v6, %v4540_v52  ;;  %v4472_v6 = vld [vmem:[%s12999_s11 + $0x1d8] sm:$0xff]  ;;  %v4696_v52 = vpop.f32.mrf.mxu1 }
 0x844   :  { %v11248_v20 = vpop.f32.mrf.mxu2 }
 0x849   :  { %4841 = vmatmul.f32.gmra.mxu2 %v4464_v56  ;;  %v11269_v56 = vadd.f32 %v11139_v41, %v4655_v27  ;;  %v4510_v27 = vpop.permute.xlu1 %4509  ;;  %v4688_v41 = vadd.f32 %v4687_v47, %v11146_v54 }
 0x84a   :  { %6364 = vperm.xlu2 %7199, %v4412_v24  }
 0x84b   :  { %13281 = vst [vmem:[#allocation26_spill] sm:$0xff] %v11269_v56  ;;  %v11275_v15 = vmul.f32 0.70710677, %v11269_v56 }
 0x84c   :  { %v11260_v23 = vpop.f32.mrf.mxu2 }
 0x84d   :  { %13282 = vst [vmem:[#allocation24_spill] sm:$0xff] %v11275_v15  ;;  %v11282_v25 = vand.u32 2147483647, %v11275_v15 }
 0x84f   :  { %13283 = vst [vmem:[#allocation22_spill] sm:$0xff] %v11282_v25  ;;  %v4959_v3 = vmul.f32 0.3275911, %v11282_v25 }
 0x851   :  { %4844 = vmatmul.f32.gmra.mxu2 %v4466_v12  ;;  %v11286_v12 = vadd.f32 %v11153_v2, %v4658_v17  ;;  %v11303_v2 = vadd.f32 1.0, %v4959_v3  ;;  %v11309_v17 = vpop.permute.xlu1 %4574 }
 0x852   :  { %13287 = vst [vmem:[#allocation62_spill] sm:$0xff] %v11309_v17 }
 0x853   :  { %13284 = vst [vmem:[#allocation20_spill] sm:$0xff] %v11286_v12  ;;  %v11296_v5 = vmul.f32 0.70710677, %v11286_v12  ;;  %7471 = vrcp.f32 %v11303_v2 }
 0x854   :  { %v4797_v8 = vpop.f32.mrf.mxu2  ;;  %13286 = vst [vmem:[#allocation61_spill] sm:$0xff] %v11303_v2 }
 0x855   :  { %13285 = vst [vmem:[#allocation18_spill] sm:$0xff] %v11296_v5  ;;  %v11301_v54 = vadd.f32 %v4797_v8, %v4685_v33  ;;  %v11316_v8 = vadd.f32 %v11167_v36, %v4661_v9 }
 0x857   :  { %13288 = vst [vmem:[#allocation63_spill] sm:$0xff] %v11316_v8  ;;  %v11319_v33 = vmul.f32 0.70710677, %v11301_v54 }
 0x859   :  { %4847 = vmatmul.f32.gmra.mxu2 %v4468_v63  ;;  %v4470_v63 = vld [vmem:[%s12999_s11 + $0x1c8] sm:$0xff]  ;;  %v11339_v9 = vand.u32 2147483647, %v11319_v33  ;;  %v11345_v58 = vpop.eup %7471  ;;  %v4495_v14 = vpop.permute.xlu1 %4494 }
 0x85a   :  { %13290 = vst [vmem:[#allocation65_spill] sm:$0xff] %v11345_v58  ;;  %v4664_v49 = vadd.f32 %v11083_v11, %v4495_v14  ;;  %v4697_v11 = vadd.f32 %v4696_v52, %v11129_v28  ;;  %v4699_v14 = vpop.f32.mrf.mxu1  ;;  %v11394_v28 = vadd.f32 %v11186_v55, %v11209_v0 }
 0x85c   :  { %v4800_v24 = vpop.f32.mrf.mxu2  ;;  %v11379_v22 = vadd.f32 %v11177_v48, %v4664_v49 }
 0x85d   :  { %v11289_v44 = vadd.f32 %v4800_v24, %v4688_v41  ;;  %v11312_v41 = vand.u32 2147483647, %v11296_v5 }
 0x85e   :  { %13292 = vst [vmem:[#allocation67_spill] sm:$0xff] %v11379_v22 }
 0x85f   :  { %v11299_v47 = vmul.f32 0.70710677, %v11289_v44  ;;  %v4960_v36 = vmul.f32 0.3275911, %v11312_v41  ;;  %v5792_v49 = vsub.f32 0.0, %v11312_v41 }
 0x861   :  { %4850 = vmatmul.f32.gmra.mxu2 %v4470_v63  ;;  %v11306_v42 = vand.u32 2147483647, %v11299_v47  ;;  %v4694_v63 = vadd.f32 %v4693_v16, %v11141_v13  ;;  %v11347_v19 = vadd.f32 1.0, %v4960_v36  ;;  %v4969_v16 = vmul.f32 0.3275911, %v11339_v9 }
 0x862   :  { %v5024_v36 = vmul.f32 %v11345_v58, %v11303_v2 }
 0x863   :  { %v4970_v24 = vmul.f32 0.3275911, %v11306_v42  ;;  %13291 = vst [vmem:[#allocation66_spill] sm:$0xff] %v11347_v19  ;;  %v11381_v38 = vadd.f32 1.0, %v4969_v16  ;;  %v4700_v16 = vadd.f32 %v4699_v14, %v11165_v26 }
 0x864   :  { %v4803_v37 = vpop.f32.mrf.mxu2  ;;  %v5025_v48 = vsub.f32 1.0, %v5024_v36 }
 0x865   :  { %v11321_v3 = vadd.f32 %v4803_v37, %v4691_v61  ;;  %v11324_v50 = vadd.f32 1.0, %v4970_v24  ;;  %v11336_v37 = vmul.f32 0.70710677, %v11316_v8 }
 0x866   :  { %v11421_v56 = vmul.f32 %v11345_v58, %v5025_v48  ;;  %v5184_v58 = vand.u32 2147483648, %v11381_v38 }
 0x867   :  { %v11330_v51 = vmul.f32 0.70710677, %v11321_v3  ;;  %7473 = vrcp.f32 %v11324_v50  ;;  %13289 = vst [vmem:[#allocation64_spill] sm:$0xff] %v11336_v37  ;;  %v4929_v1 = vand.u32 2147483647, %v11336_v37  ;;  %vm5193_vm4 = vweird.f32 %v11324_v50 }
 0x868   :  { %13296 = vst [vmem:[#allocation71_spill] sm:$0xff] %v11421_v56 }
 0x869   :  { %v11342_v61 = vand.u32 2147483647, %v11330_v51  ;;  %4853 = vmatmul.f32.gmra.mxu2 %v4472_v6  ;;  %v4474_v6 = vld [vmem:[%s12999_s11 + $0x1e8] sm:$0xff]  ;;  %v4961_v4 = vmul.f32 0.3275911, %v4929_v1 }
 0x86b   :  { %v4971_v24 = vmul.f32 0.3275911, %v11342_v61 }
 0x86c   :  { %v4806_v59 = vpop.f32.mrf.mxu2 }
 0x86d   :  { %v11351_v13 = vadd.f32 1.0, %v4971_v24  ;;  %v11353_v46 = vadd.f32 %v4806_v59, %v4694_v63  ;;  %v11355_v39 = vpop.eup %7473  ;;  %v11368_v59 = vadd.f32 %v11102_v31, %v11217_v60  ;;  %v11371_v63 = vadd.f32 %v11110_v7, %v4510_v27 }
 0x86e   :  { %v5189_v53 = vmul.f32 %v11355_v39, %v11324_v50  ;;  %v4679_v31 = vadd.f32 %v11202_v32, %v11179_v43  ;;  %v4682_v7 = vadd.f32 %v11224_v40, %v11250_v30  ;;  %v4667_v60 = vadd.f32 %v11091_v57, %v11243_v21 }
 0x86f   :  { %7475 = vrcp.f32 %v11351_v13  ;;  %v11375_v24 = vmul.f32 0.70710677, %v11353_v46  ;;  %v5049_v43 = vand.u32 2147483648, %v11347_v19  ;;  %v5793_v32 = vsub.f32 0.0, %v4929_v1 }
 0x870   :  { %7477 = vrcp.f32 %v11347_v19  ;;  %v5190_v52 = vsub.f32 1.0, %v5189_v53  ;;  %v11400_v57 = vadd.f32 1.0, %v4961_v4  ;;  %v11412_v53 = vadd.f32 %v11193_v18, %v4667_v60  ;;  %v4476_v4 = vld [vmem:[%s12999_s11 + $0x1f8] sm:$0xff] }
 0x871   :  { %4856 = vmatmul.f32.gmra.mxu2 %v4474_v6  ;;  %v11390_v27 = vand.u32 2147483647, %v11375_v24  ;;  %v11403_v6 = vmul.f32 0.70710677, %v11379_v22  ;;  %7479 = vrcp.f32 %v11381_v38  ;;  %v11430_v18 = vor.u32 1.1754944e-38, %v5049_v43 }
 0x872   :  { %13295 = vst [vmem:[#allocation70_spill] sm:$0xff] %v11412_v53  ;;  %v11432_v60 = vmul.f32 %v5793_v32, %v4929_v1  ;;  %v11450_v1 = vadd.f32 %v11260_v23, %v4682_v7  ;;  %v5214_v32 = vand.u32 2147483648, %v11351_v13  ;;  %vm5194_vm1 = vweird.f32 %v11355_v39 }
 0x873   :  { %v4972_v40 = vmul.f32 0.3275911, %v11390_v27  ;;  %13293 = vst [vmem:[#allocation68_spill] sm:$0xff] %v11403_v6  ;;  %vm5208_vm3 = vweird.f32 %v11351_v13  ;;  %v5212_v23 = vand.u32 2147483647, %v11351_v13  ;;  %v11473_v62 = vadd.f32 %v11248_v20, %v4679_v31  ;;  %vm11481_vm6 = vmor %vm5193_vm4, %vm5194_vm1 }
 0x874   :  { %v4809_v30 = vpop.f32.mrf.mxu2  ;;  %13298 = vst [vmem:[#allocation73_spill] sm:$0xff] %v11430_v18  ;;  %v11493_v17 = vmul.f32 0.70710677, %v11450_v1  ;;  %v11505_v22 = vadd.f32 %v11207_v10, %v11368_v59 }
 0x875   :  { %v7476_v21 = vpop.eup %7475  ;;  %v11406_v0 = vadd.f32 %v4809_v30, %v4697_v11  ;;  %v11415_v14 = vadd.f32 1.0, %v4972_v40  ;;  %v11424_v11 = vmul.f32 %v5792_v49, %v11312_v41  ;;  %v5191_v30 = vmul.f32 %v11355_v39, %v5190_v52  ;;  %13299 = vst [vmem:[#allocation74_spill] sm:$0xff] %v11432_v60 }
 0x876   :  { %v11408_v55 = vpop.eup %7477  ;;  %v5204_v36 = vmul.f32 %v7476_v21, %v11351_v13  ;;  %v11441_v41 = vand.u32 2147483647, %v11403_v6  ;;  %v11447_v49 = vmul.f32 0.70710677, %v11412_v53  ;;  %vm5209_vm15 = vweird.f32 %v7476_v21  ;;  %13305 = vst [vmem:[#allocation76_spill] sm:$0xff] %v11505_v22 }
 0x877   :  { %13294 = vst [vmem:[#allocation69_spill] sm:$0xff] %v11408_v55  ;;  %v11428_v26 = vmul.f32 0.70710677, %v11406_v0  ;;  %7481 = vrcp.f32 %v11415_v14  ;;  %v11437_v15 = vmul.f32 %v11408_v55, %v11347_v19  ;;  %v11452_v43 = vpop.eup %7479  ;;  %v5192_v34 = vadd.f32 %v11355_v39, %v5191_v30  ;;  %vm11466_vm5 = vmor %vm5208_vm3, %vm5209_vm15 }
 0x878   :  { %13297 = vst [vmem:[#allocation72_spill] sm:$0xff] %v11424_v11  ;;  %v5205_v40 = vsub.f32 1.0, %v5204_v36  ;;  %7483 = vrcp.f32 %v11400_v57  ;;  %v5197_v30 = vand.u32 2147483647, %v11324_v50  ;;  %v4962_v37 = vmul.f32 0.3275911, %v11441_v41 }
 0x879   :  { %v11444_v48 = vand.u32 2147483647, %v11428_v26  ;;  %4859 = vmatmul.f32.gmra.mxu2 %v4476_v4  ;;  %13300 = vst [vmem:[#allocation75_spill] sm:$0xff] %v11447_v49  ;;  %v5199_v4 = vand.u32 2147483648, %v11324_v50  ;;  %v5174_v13 = vmul.f32 %v11452_v43, %v11381_v38  ;;  %v5215_v50 = vor.u32 1.1754944e-38, %v5214_v32 }
 0x87a   :  { %v5206_v52 = vmul.f32 %v7476_v21, %v5205_v40  ;;  %v5196_v20 = vsel %vm11481_vm6, %v11355_v39, %v5192_v34  ;;  %vm5213_vm7 = vcmp.eq.f32.partialorder %v5212_v23, 8.507059e+37  ;;  %vm5198_vm8 = vcmp.eq.f32.partialorder %v5197_v30, 8.507059e+37 }
 0x87b   :  { %v4973_v36 = vmul.f32 0.3275911, %v11444_v48  ;;  %v11514_v23 = vmul.f32 0.70710677, %v11473_v62  ;;  %v11518_v30 = vand.u32 2147483647, %v11493_v17  ;;  %vm5223_vm10 = vweird.f32 %v11415_v14 }
 0x87c   :  { %v4812_v12 = vpop.f32.mrf.mxu2  ;;  %v5207_v5 = vadd.f32 %v7476_v21, %v5206_v52  ;;  %v5229_v10 = vand.u32 2147483648, %v11415_v14  ;;  %vm5179_vm14 = vweird.f32 %v11452_v43  ;;  %vm5178_vm3 = vweird.f32 %v11381_v38 }
 0x87d   :  { %v11462_v7 = vadd.f32 1.0, %v4973_v36  ;;  %v11464_v40 = vadd.f32 %v4812_v12, %v4700_v16  ;;  %v7482_v8 = vpop.eup %7481  ;;  %13306 = vst [vmem:[#allocation77_spill] sm:$0xff] %v11514_v23  ;;  %v5175_v12 = vsub.f32 1.0, %v5174_v13  ;;  %vm11585_vm4 = vmor %vm5178_vm3, %vm5179_vm14  ;;  %vm5995_vm3 = vcmp.lt.f32.partialorder %v11330_v51, 0.0 }
 0x87e   :  { %v5211_v52 = vsel %vm11466_vm5, %v7476_v21, %v5207_v5  ;;  %v11485_v16 = vpop.eup %7483  ;;  %v5219_v36 = vmul.f32 %v7482_v8, %v11415_v14  ;;  %v5200_v5 = vor.u32 1.1754944e-38, %v5199_v4  ;;  %v11499_v21 = vand.u32 2147483647, %v11447_v49 }
 0x87f   :  { %7485 = vrcp.f32 %v11462_v7  ;;  %v11496_v31 = vmul.f32 0.70710677, %v11464_v40  ;;  %v11501_v35 = vsel %vm5213_vm7, %v5215_v50, %v5211_v52  ;;  %vm5224_vm9 = vweird.f32 %v7482_v8 }
 0x880   :  { %v5220_v32 = vsub.f32 1.0, %v5219_v36  ;;  %v5515_v39 = vmul.f32 1.0614054, %v11501_v35  ;;  %v11511_v4 = vsel %vm5198_vm8, %v5200_v5, %v5196_v20  ;;  %v11522_v36 = vpop.f32.mrf.mxu1  ;;  %v5227_v5 = vand.u32 2147483647, %v11415_v14  ;;  %vm11532_vm11 = vmor %vm5223_vm10, %vm5224_vm9 }
 0x881   :  { %v11508_v34 = vand.u32 2147483647, %v11496_v31  ;;  %13307 = vst [vmem:[#allocation78_spill] sm:$0xff] %v11522_v36  ;;  %v5514_v13 = vmul.f32 1.0614054, %v11511_v4  ;;  %v5176_v14 = vmul.f32 %v11452_v43, %v5175_v12  ;;  %vm5238_vm15 = vweird.f32 %v11462_v7 }
 0x882   :  { %v5221_v6 = vmul.f32 %v7482_v8, %v5220_v32  ;;  %v11527_v32 = vadd.f32 1.0, %v4962_v37  ;;  %v5547_v53 = vadd.f32 -1.4531521, %v5515_v39  ;;  %v11537_v36 = vmul.f32 0.3275911, %v11499_v21 }
 0x883   :  { %v4974_v59 = vmul.f32 0.3275911, %v11508_v34  ;;  %v11546_v49 = vand.u32 2147483647, %v11514_v23  ;;  %v4968_v39 = vmul.f32 0.3275911, %v11518_v30  ;;  %v5177_v12 = vadd.f32 %v11452_v43, %v5176_v14 }
 0x884   :  { %v5222_v20 = vadd.f32 %v7482_v8, %v5221_v6  ;;  %v11540_v6 = vmul.f32 0.70710677, %v11505_v22  ;;  %vm5228_vm12 = vcmp.eq.f32.partialorder %v5227_v5, 8.507059e+37  ;;  %v5546_v56 = vadd.f32 -1.4531521, %v5514_v13 }
 0x885   :  { %v7486_v50 = vpop.eup %7485  ;;  %v11530_v11 = vadd.f32 1.0, %v4974_v59  ;;  %v5230_v59 = vor.u32 1.1754944e-38, %v5229_v10  ;;  %v5579_v25 = vmul.f32 %v5547_v53, %v11501_v35  ;;  %v11563_v5 = vadd.f32 %v11222_v29, %v11371_v63 }
 0x886   :  { %v5234_v52 = vmul.f32 %v7486_v50, %v11462_v7  ;;  %13310 = vst [vmem:[#allocation79_spill] sm:$0xff] %v11540_v6  ;;  %v5226_v37 = vsel %vm11532_vm11, %v7482_v8, %v5222_v20  ;;  %vm5239_vm13 = vweird.f32 %v7486_v50  ;;  %v5244_v8 = vand.u32 2147483648, %v11462_v7 }
 0x887   :  { %7487 = vrcp.f32 %v11530_v11  ;;  %v11551_v2 = vsel %vm5228_vm12, %v5230_v59, %v5226_v37  ;;  %v5242_v20 = vand.u32 2147483647, %v11462_v7  ;;  %13311 = vst [vmem:[#allocation80_spill] sm:$0xff] %v11563_v5  ;;  %v11567_v53 = vadd.f32 %v11238_v45, %v11394_v28  ;;  %vm11570_vm1 = vmor %vm5238_vm15, %vm5239_vm13 }
 0x888   :  { %v5235_v18 = vsub.f32 1.0, %v5234_v52  ;;  %v5182_v52 = vand.u32 2147483647, %v11381_v38  ;;  %v4967_v13 = vmul.f32 0.3275911, %v11546_v49  ;;  %v11578_v59 = vpop.f32.mrf.mxu1  ;;  %v11580_v45 = vadd.f32 1.0, %v4968_v39 }
 0x889   :  { %v5611_v63 = vadd.f32 1.4214138, %v5579_v25  ;;  %13314 = vst [vmem:[#allocation81_spill] sm:$0xff] %v11578_v59  ;;  %v5185_v28 = vor.u32 1.1754944e-38, %v5184_v58  ;;  %v5245_v60 = vor.u32 1.1754944e-38, %v5244_v8  ;;  %v5803_v38 = vsub.f32 0.0, %v11342_v61  ;;  %v11597_v25 = vpop.f32.mrf.mxu2 }
 0x88a   :  { %v5236_v22 = vmul.f32 %v7486_v50, %v5235_v18  ;;  %v5516_v18 = vmul.f32 1.0614054, %v11551_v2  ;;  %vm5243_vm5 = vcmp.eq.f32.partialorder %v5242_v20, 8.507059e+37  ;;  %vm11593_vm6 = vcmp.eq.f32.partialorder %v5182_v52, 8.507059e+37  ;;  %13319 = vst [vmem:[#allocation82_spill] sm:$0xff] %v11597_v25 }
 0x88b   :  { %v5804_v14 = vsub.f32 0.0, %v11390_v27  ;;  %v5257_v20 = vand.u32 2147483647, %v11530_v11  ;;  %v5259_v59 = vand.u32 2147483648, %v11530_v11  ;;  %7489 = vrcp.f32 %v11580_v45 }
 0x88c   :  { %v5237_v10 = vadd.f32 %v7486_v50, %v5236_v22  ;;  %v5578_v22 = vmul.f32 %v5546_v56, %v11511_v4  ;;  %v5548_v29 = vadd.f32 -1.4531521, %v5516_v18  ;;  %vm5253_vm8 = vweird.f32 %v11530_v11 }
 0x88d   :  { %v7488_v37 = vpop.eup %7487  ;;  %v5260_v25 = vor.u32 1.1754944e-38, %v5259_v59  ;;  %vm5258_vm10 = vcmp.eq.f32.partialorder %v5257_v20, 8.507059e+37  ;;  %v11630_v59 = vmul.f32 0.70710677, %v11567_v53  ;;  %vm5163_vm12 = vweird.f32 %v11580_v45 }
 0x88e   :  { %v5241_v7 = vsel %vm11570_vm1, %v7486_v50, %v5237_v10  ;;  %v5249_v55 = vmul.f32 %v7488_v37, %v11530_v11  ;;  %v5181_v50 = vsel %vm11585_vm4, %v11452_v43, %v5177_v12  ;;  %v5580_v10 = vmul.f32 %v5548_v29, %v11551_v2 }
 0x88f   :  { %v11599_v8 = vsel %vm5243_vm5, %v5245_v60, %v5241_v7  ;;  %v5610_v18 = vadd.f32 1.4214138, %v5578_v22  ;;  %v5643_v43 = vmul.f32 %v5611_v63, %v11501_v35  ;;  %vm5254_vm7 = vweird.f32 %v7488_v37 }
 0x890   :  { %v5250_v58 = vsub.f32 1.0, %v5249_v55  ;;  %v5517_v52 = vmul.f32 1.0614054, %v11599_v8  ;;  %v5612_v55 = vadd.f32 1.4214138, %v5580_v10  ;;  %v5802_v60 = vsub.f32 0.0, %v11306_v42  ;;  %vm5255_vm9 = vmor %vm5253_vm8, %vm5254_vm7  ;;  %v11627_v39 = vpop.f32.mrf.mxu1 }
 0x891   :  { %v5835_v7 = vmul.f32 %v5803_v38, %v11342_v61  ;;  %v11612_v22 = vsel %vm11593_vm6, %v5185_v28, %v5181_v50  ;;  %v5642_v63 = vmul.f32 %v5610_v18, %v11511_v4  ;;  %v5805_v10 = vsub.f32 0.0, %v11444_v48  ;;  %13320 = vst [vmem:[#allocation83_spill] sm:$0xff] %v11627_v39  ;;  %v11634_v20 = vpop.eup %7489 }
 0x892   :  { %v5251_v12 = vmul.f32 %v7488_v37, %v5250_v58  ;;  %v5549_v56 = vadd.f32 -1.4531521, %v5517_v52  ;;  %v5836_v58 = vmul.f32 %v5804_v14, %v11390_v27  ;;  %v5644_v19 = vmul.f32 %v5612_v55, %v11551_v2 }
 0x893   :  { %v5675_v28 = vadd.f32 -0.28449672, %v5643_v43  ;;  %v11621_v38 = vmul.f32 0.70710677, %v11563_v5  ;;  %v5806_v50 = vsub.f32 0.0, %v11508_v34  ;;  %v11637_v52 = vadd.f32 1.0, %v4967_v13 }
 0x894   :  { %v5252_v29 = vadd.f32 %v7488_v37, %v5251_v12  ;;  %v5581_v61 = vmul.f32 %v5549_v56, %v11599_v8  ;;  %v5513_v27 = vmul.f32 1.0614054, %v11612_v22  ;;  %v5674_v14 = vadd.f32 -0.28449672, %v5642_v63  ;;  %v11639_v56 = vpop.f32.mrf.mxu2 }
 0x895   :  { %v5881_v43 = vmul.f32 1.442695, %v5836_v58  ;;  %v5676_v12 = vadd.f32 -0.28449672, %v5644_v19  ;;  %v5879_v55 = vmul.f32 1.442695, %v5835_v7  ;;  %v5707_v39 = vmul.f32 %v5675_v28, %v11501_v35 }
 0x896   :  { %v5256_v23 = vsel %vm5255_vm9, %v7488_v37, %v5252_v29  ;;  %v5834_v37 = vmul.f32 %v5802_v60, %v11306_v42  ;;  %13321 = vst [vmem:[#allocation84_spill] sm:$0xff] %v11639_v56  ;;  %v5838_v42 = vmul.f32 %v5806_v50, %v11508_v34  ;;  %v5545_v5 = vadd.f32 -1.4531521, %v5513_v27 }
 0x897   :  { %v11623_v11 = vsel %vm5258_vm10, %v5260_v25, %v5256_v23  ;;  %v5837_v23 = vmul.f32 %v5805_v10, %v11444_v48  ;;  %v5613_v25 = vadd.f32 1.4214138, %v5581_v61  ;;  %v5708_v63 = vmul.f32 %v5676_v12, %v11551_v2 }
 0x898   :  { %v5518_v18 = vmul.f32 1.0614054, %v11623_v11  ;;  %v11646_v58 = vand.u32 2147483647, %v11630_v59  ;;  %v5877_v48 = vmul.f32 1.442695, %v5834_v37  ;;  %v5706_v13 = vmul.f32 %v5674_v14, %v11511_v4 }
 0x899   :  { %v5645_v60 = vmul.f32 %v5613_v25, %v11599_v8  ;;  %7491 = vpow2.f32 %v5881_v43  ;;  %v5883_v7 = vmul.f32 1.442695, %v5837_v23  ;;  %v5740_v61 = vadd.f32 0.2548296, %v5708_v63 }
 0x89a   :  { %v5550_v29 = vadd.f32 -1.4531521, %v5518_v18  ;;  %v11651_v28 = vand.u32 2147483647, %v11540_v6  ;;  %7493 = vrcp.f32 %v11637_v52  ;;  %v5739_v50 = vadd.f32 0.2548296, %v5707_v39 }
 0x89b   :  { %v5677_v10 = vadd.f32 -0.28449672, %v5645_v60  ;;  %v5159_v27 = vmul.f32 %v11634_v20, %v11580_v45  ;;  %7495 = vpow2.f32 %v5879_v55  ;;  %v5885_v37 = vmul.f32 1.442695, %v5838_v42 }
 0x89c   :  { %v5582_v19 = vmul.f32 %v5550_v29, %v11623_v11  ;;  %v5577_v18 = vmul.f32 %v5545_v5, %v11612_v22  ;;  %v11658_v14 = vand.u32 2147483647, %v11621_v38  ;;  %7497 = vpow2.f32 %v5877_v48  ;;  %v11664_v29 = vpop.f32.mrf.mxu1 }
 0x89d   :  { %v5738_v23 = vadd.f32 0.2548296, %v5706_v13  ;;  %v4966_v25 = vmul.f32 0.3275911, %v11646_v58  ;;  %7499 = vpow2.f32 %v5883_v7  ;;  %v5709_v12 = vmul.f32 %v5677_v10, %v11599_v8  ;;  %13322 = vst [vmem:[#allocation85_spill] sm:$0xff] %v11664_v29 }
 0x89e   :  { %v5614_v34 = vadd.f32 1.4214138, %v5582_v19  ;;  %v5772_v39 = vmul.f32 %v5740_v61, %v11551_v2  ;;  %v11667_v55 = vadd.f32 1.0, %v11537_v36  ;;  %v5801_v5 = vsub.f32 0.0, %v11339_v9  ;;  %v11675_v61 = vpop.f32.mrf.mxu2 }
 0x89f   :  { %v5771_v60 = vmul.f32 %v5739_v50, %v11501_v35  ;;  %v7492_v63 = vpop.eup %7491  ;;  %v5160_v48 = vsub.f32 1.0, %v5159_v27  ;;  %7501 = vpow2.f32 %v5885_v37  ;;  %v5741_v19 = vadd.f32 0.2548296, %v5709_v12  ;;  %13323 = vst [vmem:[#allocation86_spill] sm:$0xff] %v11675_v61 }
 0x8a0   :  { %v5646_v43 = vmul.f32 %v5614_v34, %v11623_v11  ;;  %v5609_v13 = vadd.f32 1.4214138, %v5577_v18  ;;  %v11671_v7 = vpop.eup %7493  ;;  %v5932_v36 = vmul.f32 %v7492_v63, %v5772_v39  ;;  %v5770_v34 = vmul.f32 %v5738_v23, %v11511_v4 }
 0x8a1   :  { %v7496_v29 = vpop.eup %7495  ;;  %v4965_v35 = vmul.f32 0.3275911, %v11658_v14  ;;  %v11680_v50 = vadd.f32 1.0, %v4966_v25  ;;  %v5773_v27 = vmul.f32 %v5741_v19, %v11599_v8  ;;  %7503 = vrcp.f32 %v11527_v32 }
 0x8a2   :  { %v5678_v42 = vadd.f32 -0.28449672, %v5646_v43  ;;  %v4964_v43 = vmul.f32 0.3275911, %v11651_v28  ;;  %v7498_v37 = vpop.eup %7497  ;;  %v5833_v18 = vmul.f32 %v5801_v5, %v11339_v9  ;;  %7505 = vrcp.f32 %v11667_v55 }
 0x8a3   :  { %v7500_v10 = vpop.eup %7499  ;;  %v5144_v4 = vmul.f32 %v11671_v7, %v11637_v52  ;;  %v5161_v23 = vmul.f32 %v11634_v20, %v5160_v48  ;;  %v5641_v25 = vmul.f32 %v5609_v13, %v11612_v22  ;;  %v5964_v63 = vsub.f32 1.0, %v5932_v36 }
 0x8a4   :  { %v5710_v2 = vmul.f32 %v5678_v42, %v11623_v11  ;;  %v5931_v42 = vmul.f32 %v7496_v29, %v5771_v60  ;;  %v5933_v8 = vmul.f32 %v7500_v10, %v5773_v27  ;;  %v5930_v19 = vmul.f32 %v7498_v37, %v5770_v34  ;;  %v11701_v36 = vpop.f32.mrf.mxu1 }
 0x8a5   :  { %v7502_v61 = vpop.eup %7501  ;;  %v11691_v56 = vadd.f32 1.0, %v4964_v43  ;;  %v11693_v9 = vadd.f32 1.0, %v4965_v35  ;;  %7507 = vrcp.f32 %v11680_v50  ;;  %v5169_v29 = vand.u32 2147483648, %v11580_v45 }
 0x8a6   :  { %v5742_v12 = vadd.f32 0.2548296, %v5710_v2  ;;  %v5875_v5 = vmul.f32 1.442695, %v5833_v18  ;;  %v5965_v2 = vsub.f32 1.0, %v5933_v8  ;;  %v5963_v48 = vsub.f32 1.0, %v5931_v42  ;;  %v11708_v42 = vpop.f32.mrf.mxu2 }
 0x8a7   :  { %v5145_v6 = vsub.f32 1.0, %v5144_v4  ;;  %v5673_v13 = vadd.f32 -0.28449672, %v5641_v25  ;;  %vm5164_vm11 = vweird.f32 %v11634_v20  ;;  %v11699_v10 = vpop.eup %7503  ;;  %v6028_v35 = vsub.f32 0.0, %v5964_v63 }
 0x8a8   :  { %v5774_v39 = vmul.f32 %v5742_v12, %v11623_v11  ;;  %v5162_v11 = vadd.f32 %v11634_v20, %v5161_v23  ;;  %v6029_v43 = vsub.f32 0.0, %v5965_v2  ;;  %v5962_v27 = vsub.f32 1.0, %v5930_v19  ;;  %v11703_v37 = vpop.eup %7505  ;;  %vm11712_vm14 = vmor %vm5163_vm12, %vm5164_vm11 }
 0x8a9   :  { %vm5997_vm13 = vcmp.lt.f32.partialorder %v11428_v26, 0.0  ;;  %v5167_v18 = vand.u32 2147483647, %v11580_v45  ;;  %7509 = vpow2.f32 %v5875_v5  ;;  %v6027_v23 = vsub.f32 0.0, %v5963_v48 }
 0x8aa   :  { %v5934_v60 = vmul.f32 %v7502_v61, %v5774_v39  ;;  %v5170_v61 = vor.u32 1.1754944e-38, %v5169_v29  ;;  %v6061_v4 = vsel %vm5997_vm13, %v6029_v43, %v5965_v2  ;;  %vm5996_vm15 = vcmp.lt.f32.partialorder %v11375_v24, 0.0 }
 0x8ab   :  { %v11716_v39 = vpop.eup %7507  ;;  %vm5998_vm1 = vcmp.lt.f32.partialorder %v11496_v31, 0.0  ;;  %v5705_v26 = vmul.f32 %v5673_v13, %v11612_v22  ;;  %v5166_v45 = vsel %vm11712_vm14, %v11634_v20, %v5162_v11  ;;  %v6060_v19 = vsel %vm5996_vm15, %v6028_v35, %v5964_v63 }
 0x8ac   :  { %v5966_v34 = vsub.f32 1.0, %v5934_v60  ;;  %v6026_v29 = vsub.f32 0.0, %v5962_v27  ;;  %v4878_v5 = vmul.f32 0.5, %v11464_v40  ;;  %v6093_v2 = vadd.f32 1.0, %v6061_v4 }
 0x8ad   :  { %vm5168_vm4 = vcmp.eq.f32.partialorder %v5167_v18, 8.507059e+37  ;;  %v5146_v24 = vmul.f32 %v11671_v7, %v5145_v6  ;;  %vm5994_vm5 = vcmp.lt.f32.partialorder %v11299_v47, 0.0  ;;  %v6059_v31 = vsel %vm5995_vm3, %v6027_v23, %v5963_v48  ;;  %v11738_v18 = vpop.f32.mrf.mxu1 }
 0x8ae   :  { %v6030_v12 = vsub.f32 0.0, %v5966_v34  ;;  %v11728_v13 = vsel %vm5168_vm4, %v5170_v61, %v5166_v45  ;;  %v4877_v43 = vmul.f32 0.5, %v11406_v0  ;;  %v6092_v11 = vadd.f32 1.0, %v6060_v19 }
 0x8af   :  { %v5737_v51 = vadd.f32 0.2548296, %v5705_v26  ;;  %7511 = vrcp.f32 %v11693_v9  ;;  %v5129_v40 = vmul.f32 %v11716_v39, %v11680_v50  ;;  %v4876_v63 = vmul.f32 0.5, %v11353_v46  ;;  %v11750_v26 = vpop.f32.mrf.mxu2 }
 0x8b0   :  { %v6062_v8 = vsel %vm5998_vm1, %v6030_v12, %v5966_v34  ;;  %v7510_v34 = vpop.eup %7509  ;;  %v6058_v35 = vsel %vm5994_vm5, %v6026_v29, %v5962_v27  ;;  %v6125_v6 = vmul.f32 %v6093_v2, %v4877_v43  ;;  %v6091_v47 = vadd.f32 1.0, %v6059_v31 }
 0x8b1   :  { %v6094_v60 = vadd.f32 1.0, %v6062_v8  ;;  %v5769_v48 = vmul.f32 %v5737_v51, %v11612_v22  ;;  %v5512_v61 = vmul.f32 1.0614054, %v11728_v13  ;;  %v5794_v0 = vsub.f32 0.0, %v11441_v41 }
 0x8b2   :  { %7513 = vrcp.f32 %v11691_v56  ;;  %v5800_v12 = vsub.f32 0.0, %v11518_v30  ;;  %v4875_v4 = vmul.f32 0.5, %v11321_v3  ;;  %v6124_v46 = vmul.f32 %v6092_v11, %v4876_v63 }
 0x8b3   :  { %v6126_v20 = vmul.f32 %v6094_v60, %v4878_v5  ;;  %v6090_v27 = vadd.f32 1.0, %v6058_v35  ;;  %v5147_v23 = vadd.f32 %v11671_v7, %v5146_v24  ;;  %vm5149_vm6 = vweird.f32 %v11671_v7 }
 0x8b4   :  { %v11747_v22 = vmul.f32 %v11485_v16, %v11400_v57  ;;  %v5154_v25 = vand.u32 2147483648, %v11637_v52  ;;  %v5929_v45 = vmul.f32 %v7510_v34, %v5769_v48  ;;  %v5544_v8 = vadd.f32 -1.4531521, %v5512_v61 }
 0x8b5   :  { %6367 = vmatpush.msrb.mxu1 %v6126_v20  ;;  %v5130_v19 = vsub.f32 1.0, %v5129_v40  ;;  %vm5148_vm7 = vweird.f32 %v11637_v52  ;;  %v4874_v3 = vmul.f32 0.5, %v11289_v44  ;;  %v6123_v29 = vmul.f32 %v6091_v47, %v4875_v4  ;;  %v11754_v5 = vpop.eup %7511 }
 0x8b6   :  { %v5832_v60 = vmul.f32 %v5800_v12, %v11518_v30  ;;  %v5961_v2 = vsub.f32 1.0, %v5929_v45  ;;  %v5576_v24 = vmul.f32 %v5544_v8, %v11728_v13  ;;  %vm11760_vm8 = vmor %vm5148_vm7, %vm5149_vm6  ;;  %v5152_v43 = vand.u32 2147483647, %v11637_v52 }
 0x8b7   :  { %6368 = vmatpush.msrb.mxu1 %v6125_v6  ;;  %v5069_v44 = vmul.f32 %v11699_v10, %v11527_v32  ;;  %v5826_v20 = vmul.f32 %v5794_v0, %v11441_v41  ;;  %v6122_v11 = vmul.f32 %v6090_v27, %v4874_v3  ;;  %v5151_v30 = vsel %vm11760_vm8, %v11671_v7, %v5147_v23 }
 0x8b8   :  { %v11771_v51 = vpop.eup %7513  ;;  %v5055_v34 = vsub.f32 1.0, %v11747_v22  ;;  %v5155_v40 = vor.u32 1.1754944e-38, %v5154_v25  ;;  %v6025_v63 = vsub.f32 0.0, %v5961_v2  ;;  %v5608_v35 = vadd.f32 1.4214138, %v5576_v24 }
 0x8b9   :  { %6369 = vmatpush.msrb.mxu1 %v6124_v46  ;;  %v5114_v52 = vmul.f32 %v11754_v5, %v11693_v9  ;;  %v5131_v6 = vmul.f32 %v11716_v39, %v5130_v19  ;;  %vm5993_vm9 = vcmp.lt.f32.partialorder %v11319_v33, 0.0  ;;  %vm5153_vm10 = vcmp.eq.f32.partialorder %v5152_v43, 8.507059e+37  ;;  %v11787_v33 = vpop.f32.mrf.mxu1 }
 0x8ba   :  { %v5873_v41 = vmul.f32 1.442695, %v5832_v60  ;;  %v6057_v47 = vsel %vm5993_vm9, %v6025_v63, %v5961_v2  ;;  %v5640_v7 = vmul.f32 %v5608_v35, %v11728_v13  ;;  %v11779_v48 = vsel %vm5153_vm10, %v5155_v40, %v5151_v30  ;;  %v11795_v60 = vpop.f32.mrf.mxu2 }
 0x8bb   :  { %6370 = vmatpush.msrb.mxu1 %v6123_v29  ;;  %v5070_v61 = vsub.f32 1.0, %v5069_v44  ;;  %v5079_v0 = vand.u32 2147483648, %v11527_v32  ;;  %v5084_v12 = vmul.f32 %v11703_v37, %v11667_v55  ;;  %v5094_v4 = vand.u32 2147483648, %v11667_v55 }
 0x8bc   :  { %v5099_v46 = vmul.f32 %v11771_v51, %v11691_v56  ;;  %v5799_v27 = vsub.f32 0.0, %v11546_v49  ;;  %v4873_v23 = vmul.f32 0.5, %v11301_v54  ;;  %v6089_v25 = vadd.f32 1.0, %v6057_v47 }
 0x8bd   :  { %6371 = vmatpush.msrb.mxu1 %v6122_v11  ;;  %v5672_v45 = vadd.f32 -0.28449672, %v5640_v7  ;;  %v5511_v8 = vmul.f32 1.0614054, %v11779_v48  ;;  %v5132_v19 = vadd.f32 %v11716_v39, %v5131_v6  ;;  %vm5134_vm11 = vweird.f32 %v11716_v39 }
 0x8be   :  { %v5115_v3 = vsub.f32 1.0, %v5114_v52  ;;  %v5139_v29 = vand.u32 2147483648, %v11680_v50  ;;  %7515 = vpow2.f32 %v5873_v41  ;;  %v6121_v2 = vmul.f32 %v6089_v25, %v4873_v23 }
 0x8bf   :  { %vm5133_vm12 = vweird.f32 %v11680_v50  ;;  %v5704_v24 = vmul.f32 %v5672_v45, %v11728_v13  ;;  %v5543_v54 = vadd.f32 -1.4531521, %v5511_v8  ;;  %v5137_v31 = vand.u32 2147483647, %v11680_v50 }
 0x8c0   :  { %v11800_v43 = vmul.f32 1.442695, %v5826_v20  ;;  %v11802_v44 = vor.u32 1.1754944e-38, %v5094_v4  ;;  %v5795_v11 = vsub.f32 0.0, %v11499_v21  ;;  %v5831_v30 = vmul.f32 %v5799_v27, %v11546_v49  ;;  %6372 = vmatpush.msrb.mxu1 %v6121_v2  ;;  %vm11808_vm13 = vmor %vm5133_vm12, %vm5134_vm11 }
 0x8c1   :  { %v11813_v63 = vmul.f32 %v11699_v10, %v5070_v61  ;;  %v5736_v35 = vadd.f32 0.2548296, %v5704_v24  ;;  %v5575_v50 = vmul.f32 %v5543_v54, %v11779_v48  ;;  %v5136_v20 = vsel %vm11808_vm13, %v11716_v39, %v5132_v19 }
 0x8c2   :  { %v5085_v52 = vsub.f32 1.0, %v5084_v12  ;;  %v5100_v6 = vsub.f32 1.0, %v5099_v46  ;;  %v5116_v49 = vmul.f32 %v11754_v5, %v5115_v3  ;;  %v5140_v41 = vor.u32 1.1754944e-38, %v5139_v29  ;;  %v11832_v3 = vpop.f32.mrf.mxu1  ;;  %v11839_v40 = vpop.f32.mrf.mxu2 }
 0x8c3   :  { %v5796_v47 = vsub.f32 0.0, %v11651_v28  ;;  %v5768_v7 = vmul.f32 %v5736_v35, %v11728_v13  ;;  %v5607_v4 = vadd.f32 1.4214138, %v5575_v50  ;;  %vm5138_vm14 = vcmp.eq.f32.partialorder %v5137_v31, 8.507059e+37 }
 0x8c4   :  { %v7516_v61 = vpop.eup %7515  ;;  %vm5103_vm15 = vweird.f32 %v11691_v56  ;;  %v5798_v27 = vsub.f32 0.0, %v11646_v58  ;;  %v5871_v23 = vmul.f32 1.442695, %v5831_v30  ;;  %v11824_v25 = vsel %vm5138_vm14, %v5140_v41, %v5136_v20 }
 0x8c5   :  { %v5109_v39 = vand.u32 2147483648, %v11691_v56  ;;  %v5928_v12 = vmul.f32 %v7516_v61, %v5768_v7  ;;  %v5639_v46 = vmul.f32 %v5607_v4, %v11779_v48  ;;  %v5510_v45 = vmul.f32 1.0614054, %v11824_v25 }
 0x8c6   :  { %v5086_v8 = vmul.f32 %v11703_v37, %v5085_v52  ;;  %v5101_v13 = vmul.f32 %v11771_v51, %v5100_v6  ;;  %v5797_v19 = vsub.f32 0.0, %v11658_v14  ;;  %v5117_v29 = vadd.f32 %v11754_v5, %v5116_v49 }
 0x8c7   :  { %v5960_v2 = vsub.f32 1.0, %v5928_v12  ;;  %v5671_v24 = vadd.f32 -0.28449672, %v5639_v46  ;;  %v5542_v54 = vadd.f32 -1.4531521, %v5510_v45  ;;  %vm5119_vm1 = vweird.f32 %v11754_v5 }
 0x8c8   :  { %vm5118_vm3 = vweird.f32 %v11693_v9  ;;  %v5124_v31 = vand.u32 2147483648, %v11693_v9  ;;  %v5830_v30 = vmul.f32 %v5798_v27, %v11646_v58  ;;  %7517 = vpow2.f32 %v5871_v23 }
 0x8c9   :  { %vm5088_vm4 = vweird.f32 %v11667_v55  ;;  %v6024_v35 = vsub.f32 0.0, %v5960_v2  ;;  %v5703_v50 = vmul.f32 %v5671_v24, %v11779_v48  ;;  %v5574_v20 = vmul.f32 %v5542_v54, %v11824_v25  ;;  %vm11847_vm6 = vmor %vm5118_vm3, %vm5119_vm1 }
 0x8ca   :  { %v5122_v52 = vand.u32 2147483647, %v11693_v9  ;;  %v5829_v6 = vmul.f32 %v5797_v19, %v11658_v14  ;;  %vm5992_vm5 = vcmp.lt.f32.partialorder %v11493_v17, 0.0  ;;  %v5102_v58 = vadd.f32 %v11771_v51, %v5101_v13  ;;  %v11873_v54 = vpop.f32.mrf.mxu1 }
 0x8cb   :  { %vm5104_vm7 = vweird.f32 %v11771_v51  ;;  %v6056_v41 = vsel %vm5992_vm5, %v6024_v35, %v5960_v2  ;;  %v5735_v7 = vadd.f32 0.2548296, %v5703_v50  ;;  %v5606_v4 = vadd.f32 1.4214138, %v5574_v20 }
 0x8cc   :  { %v5121_v61 = vsel %vm11847_vm6, %v11754_v5, %v5117_v29  ;;  %v5125_v9 = vor.u32 1.1754944e-38, %v5124_v31  ;;  %v5869_v27 = vmul.f32 1.442695, %v5830_v30  ;;  %v4872_v14 = vmul.f32 0.5, %v11450_v1  ;;  %vm11861_vm9 = vmor %vm5103_vm15, %vm5104_vm7 }
 0x8cd   :  { %v6088_v17 = vadd.f32 1.0, %v6056_v41  ;;  %v5110_v23 = vor.u32 1.1754944e-38, %v5109_v39  ;;  %v5767_v12 = vmul.f32 %v5735_v7, %v11779_v48  ;;  %v5638_v46 = vmul.f32 %v5606_v4, %v11824_v25 }
 0x8ce   :  { %vm5123_vm8 = vcmp.eq.f32.partialorder %v5122_v52, 8.507059e+37  ;;  %v7518_v13 = vpop.eup %7517  ;;  %v5106_v1 = vsel %vm11861_vm9, %v11771_v51, %v5102_v58  ;;  %v5107_v39 = vand.u32 2147483647, %v11691_v56  ;;  %vm5073_vm10 = vweird.f32 %v11527_v32  ;;  %v11884_v52 = vpop.f32.mrf.mxu2 }
 0x8cf   :  { %v6120_v19 = vmul.f32 %v6088_v17, %v4872_v14  ;;  %v11865_v5 = vsel %vm5123_vm8, %v5125_v9, %v5121_v61  ;;  %v5867_v48 = vmul.f32 1.442695, %v5829_v6  ;;  %v5927_v29 = vmul.f32 %v7518_v13, %v5767_v12 }
 0x8d0   :  { %v5670_v2 = vadd.f32 -0.28449672, %v5638_v46  ;;  %v5509_v24 = vmul.f32 1.0614054, %v11865_v5  ;;  %7519 = vpow2.f32 %v5869_v27  ;;  %vm5108_vm11 = vcmp.eq.f32.partialorder %v5107_v39, 8.507059e+37 }
 0x8d1   :  { %6373 = vmatpush.msrb.mxu1 %v6120_v19  ;;  %v5087_v31 = vadd.f32 %v11703_v37, %v5086_v8  ;;  %vm5089_vm12 = vweird.f32 %v11703_v37  ;;  %v5959_v30 = vsub.f32 1.0, %v5927_v29  ;;  %v11878_v35 = vsel %vm5108_vm11, %v5110_v23, %v5106_v1 }
 0x8d2   :  { %v5702_v51 = vmul.f32 %v5670_v2, %v11824_v25  ;;  %v5541_v56 = vadd.f32 -1.4531521, %v5509_v24  ;;  %v5828_v50 = vmul.f32 %v5796_v47, %v11651_v28  ;;  %v4871_v20 = vmul.f32 0.5, %v11473_v62  ;;  %vm11889_vm13 = vmor %vm5088_vm4, %vm5089_vm12  ;;  %v13336_v28 = vld [vmem:[#allocation77_spill] sm:$0xff]  ;;  %v11924_v24 = vpop.f32.mrf.mxu1 }
 0x8d3   :  { %v5508_v6 = vmul.f32 1.0614054, %v11878_v35  ;;  %v5092_v49 = vand.u32 2147483647, %v11667_v55  ;;  %v6023_v58 = vsub.f32 0.0, %v5959_v30  ;;  %v5091_v62 = vsel %vm11889_vm13, %v11703_v37, %v5087_v31 }
 0x8d4   :  { %v5734_v41 = vadd.f32 0.2548296, %v5702_v51  ;;  %v5573_v7 = vmul.f32 %v5541_v56, %v11865_v5  ;;  %vm5991_vm14 = vcmp.lt.f32.partialorder %v13336_v28, 0.0  ;;  %v5072_v4 = vadd.f32 %v11699_v10, %v11813_v63 }
 0x8d5   :  { %v5540_v47 = vadd.f32 -1.4531521, %v5508_v6  ;;  %vm5093_vm15 = vcmp.eq.f32.partialorder %v5092_v49, 8.507059e+37  ;;  %v6055_v61 = vsel %vm5991_vm14, %v6023_v58, %v5959_v30  ;;  %vm5074_vm1 = vweird.f32 %v11699_v10 }
 0x8d6   :  { %v5766_v9 = vmul.f32 %v5734_v41, %v11824_v25  ;;  %v5605_v27 = vadd.f32 1.4214138, %v5573_v7  ;;  %v7520_v55 = vpop.eup %7519  ;;  %v6087_v14 = vadd.f32 1.0, %v6055_v61  ;;  %v11905_v23 = vsel %vm5093_vm15, %v11802_v44, %v5091_v62  ;;  %vm5075_vm4 = vmor %vm5073_vm10, %vm5074_vm1  ;;  %v13340_v61 = vld [vmem:[#allocation74_spill] sm:$0xff] }
 0x8d7   :  { %v5572_v17 = vmul.f32 %v5540_v47, %v11878_v35  ;;  %v5077_v37 = vand.u32 2147483647, %v11527_v32  ;;  %v5080_v12 = vor.u32 1.1754944e-38, %v5079_v0  ;;  %v5507_v25 = vmul.f32 1.0614054, %v11905_v23  ;;  %v13339_v47 = vld [vmem:[#allocation69_spill] sm:$0xff] }
 0x8d8   :  { %v5926_v46 = vmul.f32 %v7520_v55, %v5766_v9  ;;  %v5637_v63 = vmul.f32 %v5605_v27, %v11865_v5  ;;  %vm5058_vm3 = vweird.f32 %v11400_v57  ;;  %v5827_v45 = vmul.f32 %v5795_v11, %v11499_v21 }
 0x8d9   :  { %v5865_v13 = vmul.f32 1.442695, %v5828_v50  ;;  %v6119_v19 = vmul.f32 %v6087_v14, %v4871_v20  ;;  %v5604_v44 = vadd.f32 1.4214138, %v5572_v17  ;;  %v5539_v39 = vadd.f32 -1.4531521, %v5507_v25 }
 0x8da   :  { %v5958_v0 = vsub.f32 1.0, %v5926_v46  ;;  %v5669_v1 = vadd.f32 -0.28449672, %v5637_v63  ;;  %v5076_v29 = vsel %vm5075_vm4, %v11699_v10, %v5072_v4  ;;  %v5056_v2 = vmul.f32 %v11485_v16, %v5055_v34  ;;  %v11932_v10 = vpop.f32.mrf.mxu2  ;;  %v13337_v34 = vld [vmem:[#allocation66_spill] sm:$0xff] }
 0x8db   :  { %7521 = vpow2.f32 %v5867_v48  ;;  %6374 = vmatpush.msrb.mxu1 %v6119_v19  ;;  %v5636_v21 = vmul.f32 %v5604_v44, %v11878_v35  ;;  %vm5078_vm5 = vcmp.eq.f32.partialorder %v5077_v37, 8.507059e+37  ;;  %v5571_v31 = vmul.f32 %v5539_v39, %v11905_v23  ;;  %v13344_v19 = vld [vmem:[#allocation61_spill] sm:$0xff]  ;;  %v11966_v44 = vpop.f32.mrf.mxu1 }
 0x8dc   :  { %v6022_v11 = vsub.f32 0.0, %v5958_v0  ;;  %v5701_v32 = vmul.f32 %v5669_v1, %v11865_v5  ;;  %v11929_v30 = vsel %vm5078_vm5, %v5080_v12, %v5076_v29  ;;  %v5863_v51 = vmul.f32 1.442695, %v5827_v45 }
 0x8dd   :  { %7523 = vpow2.f32 %v5865_v13  ;;  %vm5990_vm6 = vcmp.lt.f32.partialorder %v11630_v59, 0.0  ;;  %v5668_v22 = vadd.f32 -0.28449672, %v5636_v21  ;;  %vm5043_vm7 = vweird.f32 %v13337_v34 }
 0x8de   :  { %v6054_v48 = vsel %vm5990_vm6, %v6022_v11, %v5958_v0  ;;  %v5733_v56 = vadd.f32 0.2548296, %v5701_v32  ;;  %v5603_v50 = vadd.f32 1.4214138, %v5571_v31  ;;  %v5506_v20 = vmul.f32 1.0614054, %v11929_v30 }
 0x8df   :  { %v4870_v6 = vmul.f32 0.5, %v11567_v53  ;;  %v6086_v8 = vadd.f32 1.0, %v6054_v48  ;;  %v5700_v49 = vmul.f32 %v5668_v22, %v11878_v35  ;;  %v5057_v58 = vadd.f32 %v11485_v16, %v5056_v2 }
 0x8e0   :  { %v5765_v41 = vmul.f32 %v5733_v56, %v11865_v5  ;;  %v5635_v59 = vmul.f32 %v5603_v50, %v11905_v23  ;;  %v5538_v7 = vadd.f32 -1.4531521, %v5506_v20  ;;  %vm5059_vm8 = vweird.f32 %v11485_v16 }
 0x8e1   :  { %v7522_v62 = vpop.eup %7521  ;;  %v13338_v28 = vsub.f32 1.0, %v11437_v15  ;;  %v11946_v9 = vmul.f32 1.442695, %v13340_v61  ;;  %v6118_v53 = vmul.f32 %v6086_v8, %v4870_v6  ;;  %v5732_v27 = vadd.f32 0.2548296, %v5700_v49  ;;  %vm11952_vm9 = vmor %vm5058_vm3, %vm5059_vm8  ;;  %v13351_v61 = vld [vmem:[#allocation76_spill] sm:$0xff] }
 0x8e2   :  { %v13341_v55 = vand.u32 2147483648, %v11400_v57  ;;  %7525 = vpow2.f32 %v5863_v51  ;;  %v5925_v5 = vmul.f32 %v7522_v62, %v5765_v41  ;;  %v5667_v17 = vadd.f32 -0.28449672, %v5635_v59  ;;  %v13347_v51 = vld [vmem:[#allocation80_spill] sm:$0xff]  ;;  %v13348_v41 = vld [vmem:[#allocation79_spill] sm:$0xff] }
 0x8e3   :  { %v5041_v4 = vmul.f32 %v13339_v47, %v13338_v28  ;;  %v7524_v15 = vpop.eup %7523  ;;  %6375 = vmatpush.msrb.mxu1 %v6118_v53  ;;  %v5764_v12 = vmul.f32 %v5732_v27, %v11878_v35  ;;  %v5570_v46 = vmul.f32 %v5538_v7, %v11929_v30  ;;  %v5061_v63 = vsel %vm11952_vm9, %v11485_v16, %v5057_v58  ;;  %v13349_v59 = vld [vmem:[#allocation71_spill] sm:$0xff]  ;;  %v13350_v7 = vld [vmem:[#allocation65_spill] sm:$0xff] }
 0x8e4   :  { %v5065_v14 = vor.u32 1.1754944e-38, %v13341_v55  ;;  %v5062_v25 = vand.u32 2147483647, %v11400_v57  ;;  %7527 = vpow2.f32 %v11800_v43  ;;  %vm5989_vm10 = vcmp.lt.f32.partialorder %v11621_v38, 0.0  ;;  %v11972_v43 = vpop.f32.mrf.mxu2  ;;  %v13352_v55 = vld [vmem:[#allocation73_spill] sm:$0xff] }
 0x8e5   :  { %v5957_v45 = vsub.f32 1.0, %v5925_v5  ;;  %v5699_v13 = vmul.f32 %v5667_v17, %v11905_v23  ;;  %vm5028_vm11 = vweird.f32 %v13344_v19  ;;  %v5924_v35 = vmul.f32 %v7524_v15, %v5764_v12  ;;  %v13353_v15 = vld [vmem:[#allocation75_spill] sm:$0xff] }
 0x8e6   :  { %v5602_v0 = vadd.f32 1.4214138, %v5570_v46  ;;  %vm5063_vm12 = vcmp.eq.f32.partialorder %v5062_v25, 8.507059e+37  ;;  %v5042_v1 = vadd.f32 %v13339_v47, %v5041_v4  ;;  %vm5044_vm13 = vweird.f32 %v13339_v47 }
 0x8e7   :  { %v6021_v39 = vsub.f32 0.0, %v5957_v45  ;;  %v5731_v16 = vadd.f32 0.2548296, %v5699_v13  ;;  %v11969_v29 = vsel %vm5063_vm12, %v5065_v14, %v5061_v63  ;;  %v5956_v57 = vsub.f32 1.0, %v5924_v35  ;;  %vm11978_vm14 = vmor %vm5043_vm7, %vm5044_vm13 }
 0x8e8   :  { %v5634_v2 = vmul.f32 %v5602_v0, %v11929_v30  ;;  %v5505_v21 = vmul.f32 1.0614054, %v11969_v29  ;;  %v5047_v32 = vand.u32 2147483647, %v13337_v34  ;;  %v7526_v31 = vpop.eup %7525  ;;  %v4869_v22 = vmul.f32 0.5, %v13347_v51 }
 0x8e9   :  { %v6053_v48 = vsel %vm5989_vm10, %v6021_v39, %v5957_v45  ;;  %v5763_v56 = vmul.f32 %v5731_v16, %v11905_v23  ;;  %v5046_v50 = vsel %vm11978_vm14, %v13339_v47, %v5042_v1  ;;  %v6020_v6 = vsub.f32 0.0, %v5956_v57  ;;  %v12009_v45 = vpop.f32.mrf.mxu1 }
 0x8ea   :  { %v6085_v20 = vadd.f32 1.0, %v6053_v48  ;;  %v5666_v8 = vadd.f32 -0.28449672, %v5634_v2  ;;  %v5537_v49 = vadd.f32 -1.4531521, %v5505_v21  ;;  %v7528_v58 = vpop.eup %7527  ;;  %vm5988_vm15 = vcmp.lt.f32.partialorder %v13348_v41, 0.0  ;;  %v4560_v41 = vpop.permute.xlu1 %4559 }
 0x8eb   :  { %v5923_v34 = vmul.f32 %v7526_v31, %v5763_v56  ;;  %vm5048_vm1 = vcmp.eq.f32.partialorder %v5047_v32, 8.507059e+37  ;;  %v5027_v62 = vadd.f32 %v13350_v7, %v13349_v59  ;;  %v6052_v28 = vsel %vm5988_vm15, %v6020_v6, %v5956_v57  ;;  %v13357_v57 = vld [vmem:[#allocation70_spill] sm:$0xff]  ;;  %v13359_v56 = vld [vmem:[#allocation72_spill] sm:$0xff] }
 0x8ec   :  { %v6117_v38 = vmul.f32 %v6085_v20, %v4869_v22  ;;  %v5698_v23 = vmul.f32 %v5666_v8, %v11929_v30  ;;  %v5569_v4 = vmul.f32 %v5537_v49, %v11969_v29  ;;  %v4868_v47 = vmul.f32 0.5, %v13351_v61  ;;  %v12020_v51 = vpop.f32.mrf.mxu2  ;;  %v13358_v22 = vld [vmem:[#allocation22_spill] sm:$0xff] }
 0x8ed   :  { %v6084_v53 = vadd.f32 1.0, %v6052_v28  ;;  %v5955_v27 = vsub.f32 1.0, %v5923_v34  ;;  %v11997_v14 = vsel %vm5048_vm1, %v13352_v55, %v5046_v50  ;;  %vm5029_vm3 = vweird.f32 %v13350_v7 }
 0x8ee   :  { %6376 = vmatpush.msrb.mxu1 %v6117_v38  ;;  %v5730_v5 = vadd.f32 0.2548296, %v5698_v23  ;;  %v5601_v17 = vadd.f32 1.4214138, %v5569_v4  ;;  %v5504_v37 = vmul.f32 1.0614054, %v11997_v14  ;;  %vm12004_vm5 = vmor %vm5028_vm11, %vm5029_vm3  ;;  %7529 = vpow2.f32 %v11946_v9 }
 0x8ef   :  { %vm5987_vm4 = vcmp.lt.f32.partialorder %v13353_v15, 0.0  ;;  %v6116_v12 = vmul.f32 %v6084_v53, %v4868_v47  ;;  %v6019_v46 = vsub.f32 0.0, %v5955_v27  ;;  %v5032_v25 = vand.u32 2147483647, %v13344_v19  ;;  %v13361_v9 = vld [vmem:[#allocation68_spill] sm:$0xff] }
 0x8f0   :  { %v5762_v13 = vmul.f32 %v5730_v5, %v11929_v30  ;;  %v5633_v35 = vmul.f32 %v5601_v17, %v11969_v29  ;;  %v5536_v0 = vadd.f32 -1.4531521, %v5504_v37  ;;  %v5031_v1 = vsel %vm12004_vm5, %v13350_v7, %v5027_v62  ;;  %v13360_v62 = vld [vmem:[#allocation78_spill] sm:$0xff] }
 0x8f1   :  { %v13356_v39 = vand.u32 2147483648, %v13344_v19  ;;  %v4867_v2 = vmul.f32 0.5, %v13357_v57  ;;  %6377 = vmatpush.msrb.mxu1 %v6116_v12  ;;  %v6051_v21 = vsel %vm5987_vm4, %v6019_v46, %v5955_v27  ;;  %vm5033_vm6 = vcmp.eq.f32.partialorder %v5032_v25, 8.507059e+37  ;;  %v13362_v27 = vld [vmem:[#allocation67_spill] sm:$0xff]  ;;  %v13363_v5 = vld [vmem:[#allocation82_spill] sm:$0xff]  ;;  %v12039_v12 = vpop.f32.mrf.mxu1 }
 0x8f2   :  { %v6083_v11 = vadd.f32 1.0, %v6051_v21  ;;  %v5922_v32 = vmul.f32 %v7528_v58, %v5762_v13  ;;  %v5665_v31 = vadd.f32 -0.28449672, %v5633_v35  ;;  %v5568_v30 = vmul.f32 %v5536_v0, %v11997_v14 }
 0x8f3   :  { %v5035_v16 = vor.u32 1.1754944e-38, %v13356_v39  ;;  %v5791_v48 = vsub.f32 0.0, %v13358_v22  ;;  %v5857_v50 = vmul.f32 1.442695, %v13359_v56  ;;  %v4703_v38 = vadd.f32 %v13360_v62, %v4560_v41  ;;  %v13365_v39 = vld [vmem:[#allocation29_spill] sm:$0xff]  ;;  %v13370_v56 = vld [vmem:[#allocation64_spill] sm:$0xff] }
 0x8f4   :  { %v6115_v20 = vmul.f32 %v6083_v11, %v4867_v2  ;;  %v5954_v6 = vsub.f32 1.0, %v5922_v32  ;;  %v5697_v8 = vmul.f32 %v5665_v31, %v11969_v29  ;;  %v5600_v49 = vadd.f32 1.4214138, %v5568_v30  ;;  %v7530_v53 = vpop.eup %7529  ;;  %v12042_v25 = vpop.f32.mrf.mxu2  ;;  %v13368_v30 = vld [vmem:[#allocation33_spill] sm:$0xff]  ;;  %v13373_v41 = vld [vmem:[#allocation84_spill] sm:$0xff] }
 0x8f5   :  { %v12025_v19 = vsel %vm5033_vm6, %v5035_v16, %v5031_v1  ;;  %v5823_v28 = vmul.f32 %v5791_v48, %v13358_v22  ;;  %vm5986_vm7 = vcmp.lt.f32.partialorder %v13361_v9, 0.0  ;;  %7531 = vpow2.f32 %v5857_v50  ;;  %v13366_v16 = vld [vmem:[#allocation81_spill] sm:$0xff]  ;;  %v13369_v22 = vld [vmem:[#allocation83_spill] sm:$0xff] }
 0x8f6   :  { %v5503_v58 = vmul.f32 1.0614054, %v12025_v19  ;;  %6378 = vmatpush.msrb.mxu1 %v6115_v20  ;;  %v6018_v34 = vsub.f32 0.0, %v5954_v6  ;;  %v5729_v59 = vadd.f32 0.2548296, %v5697_v8  ;;  %v5632_v7 = vmul.f32 %v5600_v49, %v11997_v14  ;;  %v13371_v20 = vld [vmem:[#allocation63_spill] sm:$0xff] }
 0x8f7   :  { %v4866_v55 = vmul.f32 0.5, %v13362_v27  ;;  %v12036_v17 = vadd.f32 %v13363_v5, %v4703_v38  ;;  %v4706_v57 = vadd.f32 %v13366_v16, %v13365_v39  ;;  %v4709_v48 = vadd.f32 %v13369_v22, %v13368_v30  ;;  %v13376_v62 = vld [vmem:[#allocation85_spill] sm:$0xff]  ;;  %v13380_v5 = vld [vmem:[#allocation18_spill] sm:$0xff] }
 0x8f8   :  { %v5535_v23 = vadd.f32 -1.4531521, %v5503_v58  ;;  %v6050_v4 = vsel %vm5986_vm7, %v6018_v34, %v5954_v6  ;;  %v5761_v61 = vmul.f32 %v5729_v59, %v11969_v29  ;;  %v5664_v47 = vadd.f32 -0.28449672, %v5632_v7  ;;  %v13375_v7 = vld [vmem:[#allocation62_spill] sm:$0xff] }
 0x8f9   :  { %13364 = vst [vmem:[#allocation77_spill] sm:$0xff] %v12036_v17  ;;  %v6082_v37 = vadd.f32 1.0, %v6050_v4  ;;  %v5855_v29 = vmul.f32 1.442695, %v5823_v28  ;;  %v12047_v2 = vmul.f32 0.70710677, %v12036_v17  ;;  %v12059_v34 = vadd.f32 %v13373_v41, %v4706_v57 }
 0x8fa   :  { %v5567_v15 = vmul.f32 %v5535_v23, %v12025_v19  ;;  %v5921_v46 = vmul.f32 %v7530_v53, %v5761_v61  ;;  %v5696_v63 = vmul.f32 %v5664_v47, %v11997_v14  ;;  %vm5985_vm8 = vcmp.lt.f32.partialorder %v13370_v56, 0.0  ;;  %v13377_v23 = vld [vmem:[#allocation86_spill] sm:$0xff]  ;;  %v12069_v53 = vpop.f32.mrf.mxu1 }
 0x8fb   :  { %v6114_v13 = vmul.f32 %v6082_v37, %v4866_v55  ;;  %13367 = vst [vmem:[#allocation66_spill] sm:$0xff] %v12047_v2  ;;  %v7532_v11 = vpop.eup %7531  ;;  %7533 = vpow2.f32 %v5855_v29  ;;  %v4865_v6 = vmul.f32 0.5, %v13371_v20  ;;  %v12056_v58 = vand.u32 2147483647, %v12047_v2 }
 0x8fc   :  { %v5599_v35 = vadd.f32 1.4214138, %v5567_v15  ;;  %v5953_v0 = vsub.f32 1.0, %v5921_v46  ;;  %v5728_v1 = vadd.f32 0.2548296, %v5696_v63  ;;  %13374 = vst [vmem:[#allocation74_spill] sm:$0xff] %v12059_v34  ;;  %v4712_v38 = vadd.f32 %v13376_v62, %v13375_v7  ;;  %v12064_v9 = vpop.f32.mrf.mxu2 }
 0x8fd   :  { %6379 = vmatpush.msrb.mxu1 %v6114_v13  ;;  %13372 = vst [vmem:[#allocation69_spill] sm:$0xff] %v12056_v58  ;;  %v12067_v4 = vadd.f32 %v13377_v23, %v4709_v48  ;;  %vm5984_vm9 = vcmp.lt.f32.partialorder %v13380_v5, 0.0  ;;  %v4975_v37 = vmul.f32 0.3275911, %v12056_v58  ;;  %v12077_v15 = vmul.f32 0.70710677, %v12059_v34 }
 0x8fe   :  { %v5631_v21 = vmul.f32 %v5599_v35, %v12025_v19  ;;  %v6017_v32 = vsub.f32 0.0, %v5953_v0  ;;  %v5760_v31 = vmul.f32 %v5728_v1, %v11997_v14  ;;  %v12072_v27 = vadd.f32 %v11708_v42, %v4712_v38  ;;  %v13382_v13 = vld [vmem:[#allocation20_spill] sm:$0xff]  ;;  %v6143_v23 = vld [vmem:[#allocation2] sm:$0xff] }
 0x8ff   :  { %13378 = vst [vmem:[#allocation61_spill] sm:$0xff] %v12067_v4  ;;  %v4864_v35 = vmul.f32 0.5, %v13382_v13  ;;  %v12084_v42 = vmul.f32 0.70710677, %v12067_v4  ;;  %v13388_v48 = vld [vmem:[#allocation24_spill] sm:$0xff] }
 0x900   :  { %v5663_v50 = vadd.f32 -0.28449672, %v5631_v21  ;;  %v6049_v8 = vsel %vm5985_vm8, %v6017_v32, %v5953_v0  ;;  %v5920_v49 = vmul.f32 %v7532_v11, %v5760_v31  ;;  %13379 = vst [vmem:[#allocation80_spill] sm:$0xff] %v12072_v27  ;;  %v13383_v0 = vld [vmem:[#allocation35_spill] sm:$0xff]  ;;  %v12087_v57 = vmul.f32 0.70710677, %v12072_v27 }
 0x901   :  { %v6081_v59 = vadd.f32 1.0, %v6049_v8  ;;  %13381 = vst [vmem:[#allocation79_spill] sm:$0xff] %v12077_v15  ;;  %v7534_v63 = vpop.eup %7533  ;;  %v4715_v1 = vadd.f32 %v11701_v36, %v13383_v0  ;;  %v12089_v21 = vadd.f32 1.0, %v4975_v37  ;;  %v4944_v11 = vand.u32 2147483647, %v12077_v15 }
 0x902   :  { %v5695_v14 = vmul.f32 %v5663_v50, %v12025_v19  ;;  %v5952_v28 = vsub.f32 1.0, %v5920_v49  ;;  %13384 = vst [vmem:[#allocation71_spill] sm:$0xff] %v12084_v42  ;;  %v4945_v30 = vand.u32 2147483647, %v12084_v42  ;;  %vm5983_vm10 = vcmp.lt.f32.partialorder %v13388_v48, 0.0  ;;  %v13390_v49 = vld [vmem:[#allocation54_spill] sm:$0xff] }
 0x903   :  { %v6113_v61 = vmul.f32 %v6081_v59, %v4865_v6  ;;  %13385 = vst [vmem:[#allocation65_spill] sm:$0xff] %v12087_v57  ;;  %v12096_v36 = vadd.f32 %v11750_v26, %v4715_v1  ;;  %v12100_v56 = vand.u32 2147483647, %v12087_v57  ;;  %7535 = vrcp.f32 %v12089_v21  ;;  %v13389_v6 = vld [vmem:[#allocation26_spill] sm:$0xff]  ;;  %v4744_v59 = vpop.f32.mrf.mxu1  ;;  %v13397_v1 = vld [vmem:[#allocation57_spill] sm:$0xff] }
 0x904   :  { %v5727_v47 = vadd.f32 0.2548296, %v5695_v14  ;;  %v6016_v55 = vsub.f32 0.0, %v5952_v28  ;;  %13386 = vst [vmem:[#allocation76_spill] sm:$0xff] %v12089_v21  ;;  %v12092_v31 = vpop.f32.mrf.mxu2  ;;  %v4976_v50 = vmul.f32 0.3275911, %v4944_v11  ;;  %v4718_v41 = vadd.f32 %v11738_v18, %v13390_v49 }
 0x905   :  { %6380 = vmatpush.msrb.mxu1 %v6113_v61  ;;  %13387 = vst [vmem:[#allocation73_spill] sm:$0xff] %v12096_v36  ;;  %v4863_v8 = vmul.f32 0.5, %v13389_v6  ;;  %v4977_v26 = vmul.f32 0.3275911, %v4945_v30  ;;  %v12107_v7 = vmul.f32 0.70710677, %v12096_v36 }
 0x906   :  { %v5759_v46 = vmul.f32 %v5727_v47, %v12025_v19  ;;  %v6048_v29 = vsel %vm5984_vm9, %v6016_v55, %v5952_v28  ;;  %v4978_v62 = vmul.f32 0.3275911, %v12100_v56  ;;  %v12111_v38 = vadd.f32 %v11795_v60, %v4718_v41  ;;  %v13401_v49 = vld [vmem:[#allocation53_spill] sm:$0xff] }
 0x907   :  { %v6080_v39 = vadd.f32 1.0, %v6048_v29  ;;  %13391 = vst [vmem:[#allocation75_spill] sm:$0xff] %v12107_v7  ;;  %v12113_v61 = vadd.f32 1.0, %v4976_v50  ;;  %v12119_v18 = vadd.f32 1.0, %v4977_v26  ;;  %v12122_v5 = vand.u32 2147483647, %v12107_v7 }
 0x908   :  { %v5919_v16 = vmul.f32 %v7534_v63, %v5759_v46  ;;  %v12124_v37 = vadd.f32 1.0, %v4978_v62  ;;  %v12127_v60 = vmul.f32 0.70710677, %v12111_v38  ;;  %v5808_v46 = vsub.f32 0.0, %v4944_v11  ;;  %v13396_v29 = vld [vmem:[#allocation27_spill] sm:$0xff] }
 0x909   :  { %v6112_v19 = vmul.f32 %v6080_v39, %v4864_v35  ;;  %13392 = vst [vmem:[#allocation70_spill] sm:$0xff] %v12113_v61  ;;  %v12117_v55 = vpop.eup %7535  ;;  %7537 = vrcp.f32 %v12113_v61  ;;  %v5809_v13 = vsub.f32 0.0, %v4945_v30  ;;  %v4721_v0 = vadd.f32 %v11787_v33, %v13396_v29  ;;  %v13400_v33 = vld [vmem:[#allocation60_spill] sm:$0xff] }
 0x90a   :  { %v5951_v32 = vsub.f32 1.0, %v5919_v16  ;;  %13393 = vst [vmem:[#allocation22_spill] sm:$0xff] %v12117_v55  ;;  %v5264_v63 = vmul.f32 %v12117_v55, %v12089_v21  ;;  %v4727_v39 = vadd.f32 %v11873_v54, %v13397_v1  ;;  %7539 = vrcp.f32 %v12119_v18 }
 0x90b   :  { %6381 = vmatpush.msrb.mxu1 %v6112_v19  ;;  %13394 = vst [vmem:[#allocation72_spill] sm:$0xff] %v12119_v18  ;;  %v4747_v35 = vpop.f32.mrf.mxu1  ;;  %v4979_v16 = vmul.f32 0.3275911, %v12122_v5  ;;  %v13398_v19 = vld [vmem:[#allocation55_spill] sm:$0xff]  ;;  %7541 = vrcp.f32 %v12124_v37  ;;  %v12144_v50 = vand.u32 2147483647, %v12127_v60  ;;  %v12148_v6 = vadd.f32 %v12009_v45, %v13400_v33 }
 0x90c   :  { %v6015_v22 = vsub.f32 0.0, %v5951_v32  ;;  %v12115_v47 = vpop.f32.mrf.mxu2  ;;  %13395 = vst [vmem:[#allocation78_spill] sm:$0xff] %v12127_v60  ;;  %v5274_v54 = vand.u32 2147483648, %v12089_v21  ;;  %v4748_v41 = vadd.f32 %v4747_v35, %v13401_v49  ;;  %v5265_v62 = vsub.f32 1.0, %v5264_v63 }
 0x90d   :  { %v5289_v45 = vand.u32 2147483648, %v12113_v61  ;;  %v5810_v1 = vsub.f32 0.0, %v12100_v56  ;;  %v4980_v63 = vmul.f32 0.3275911, %v12144_v50  ;;  %v5812_v17 = vsub.f32 0.0, %v12144_v50 }
 0x90e   :  { %v6047_v20 = vsel %vm5983_vm10, %v6015_v22, %v5951_v32  ;;  %v4724_v32 = vadd.f32 %v11832_v3, %v13398_v19  ;;  %v13399_v22 = vld [vmem:[#allocation31_spill] sm:$0xff]  ;;  %v12266_v4 = vmul.f32 0.5, %v12111_v38 }
 0x90f   :  { %v6079_v14 = vadd.f32 1.0, %v6047_v20  ;;  %v4730_v48 = vadd.f32 %v11924_v24, %v13399_v22  ;;  %v6145_v20 = vld [vmem:[#allocation2 + $0x10] sm:$0xff]  ;;  %v13403_v24 = vld [vmem:[#allocation36_spill] sm:$0xff]  ;;  %v12160_v29 = vpop.eup %7537  ;;  %v12179_v22 = vor.u32 1.1754944e-38, %v5274_v54  ;;  %v12197_v54 = vor.u32 1.1754944e-38, %v5289_v45 }
 0x910   :  { %v12158_v26 = vadd.f32 %v12039_v12, %v13403_v24  ;;  %13404 = vst [vmem:[#allocation68_spill] sm:$0xff] %v12160_v29  ;;  %v13406_v12 = vld [vmem:[#allocation59_spill] sm:$0xff]  ;;  %v5279_v49 = vmul.f32 %v12160_v29, %v12113_v61  ;;  %v5304_v24 = vand.u32 2147483648, %v12119_v18 }
 0x911   :  { %v6111_v28 = vmul.f32 %v6079_v14, %v4863_v8  ;;  %v5840_v8 = vmul.f32 %v5808_v46, %v4944_v11  ;;  %v13402_v14 = vld [vmem:[#allocation58_spill] sm:$0xff]  ;;  %v12164_v11 = vadd.f32 1.0, %v4979_v16  ;;  %v12173_v19 = vadd.f32 %v4744_v59, %v13406_v12  ;;  %13408 = vst [vmem:[#allocation82_spill] sm:$0xff] %v12179_v22 }
 0x912   :  { %v12154_v3 = vadd.f32 %v11966_v44, %v13402_v14  ;;  %v13405_v44 = vld [vmem:[#allocation56_spill] sm:$0xff]  ;;  %v12190_v59 = vmul.f32 %v12117_v55, %v5265_v62  ;;  %v12195_v14 = vadd.f32 %v11884_v52, %v4724_v32  ;;  %13412 = vst [vmem:[#allocation83_spill] sm:$0xff] %v12197_v54  ;;  %v5811_v62 = vsub.f32 0.0, %v12122_v5  ;;  %v6147_v52 = vld [vmem:[#allocation2 + $0x20] sm:$0xff] }
 0x913   :  { %6382 = vmatpush.msrb.mxu1 %v6111_v28  ;;  %v5841_v28 = vmul.f32 %v5809_v13, %v4945_v30  ;;  %v12170_v35 = vadd.f32 %v12069_v53, %v13405_v44  ;;  %v12177_v13 = vpop.eup %7539  ;;  %v12181_v16 = vmul.f32 1.442695, %v5840_v8  ;;  %v5842_v8 = vmul.f32 %v5810_v1, %v12100_v56  ;;  %13422 = vst [vmem:[#allocation24_spill] sm:$0xff] %v12266_v4 }
 0x914   :  { %6383 = vmatmul.f32.vlgmr.msrb.gmra.mxu1 %v6143_v23  ;;  %v4860_v23 = vpop.f32.mrf.mxu2  ;;  %13407 = vst [vmem:[#allocation67_spill] sm:$0xff] %v12177_v13  ;;  %v12187_v53 = vpop.eup %7541  ;;  %7543 = vrcp.f32 %v12164_v11  ;;  %v12215_v56 = vadd.f32 %v11932_v10, %v4727_v39  ;;  %v5280_v1 = vsub.f32 1.0, %v5279_v49  ;;  %v12219_v44 = vmul.f32 0.70710677, %v12195_v14 }
 0x915   :  { %v12166_v46 = vadd.f32 %v4860_v23, %v4748_v41  ;;  %13409 = vst [vmem:[#allocation29_spill] sm:$0xff] %v12181_v16  ;;  %v5891_v41 = vmul.f32 1.442695, %v5841_v28  ;;  %v12208_v28 = vadd.f32 1.0, %v4980_v63  ;;  %v5309_v32 = vmul.f32 %v12187_v53, %v12124_v37 }
 0x916   :  { %13410 = vst [vmem:[#allocation81_spill] sm:$0xff] %v12187_v53  ;;  %v12222_v12 = vadd.f32 %v11972_v43, %v4730_v48  ;;  %v5319_v63 = vand.u32 2147483648, %v12124_v37  ;;  %v5893_v30 = vmul.f32 1.442695, %v5842_v8  ;;  %v12228_v39 = vor.u32 1.1754944e-38, %v5304_v24 }
 0x917   :  { %v12185_v33 = vmul.f32 0.70710677, %v12166_v46  ;;  %13411 = vst [vmem:[#allocation33_spill] sm:$0xff] %v12190_v59  ;;  %7545 = vpow2.f32 %v5891_v41  ;;  %v5843_v49 = vmul.f32 %v5811_v62, %v12122_v5  ;;  %v5310_v34 = vsub.f32 1.0, %v5309_v32 }
 0x918   :  { %13414 = vst [vmem:[#allocation63_spill] sm:$0xff] %v12219_v44  ;;  %7547 = vrcp.f32 %v12208_v28  ;;  %v12236_v48 = vmul.f32 0.70710677, %v12215_v56  ;;  %v12240_v8 = vmul.f32 %v12160_v29, %v5280_v1  ;;  %v12244_v24 = vand.u32 2147483647, %v12219_v44  ;;  %v6153_v29 = vld [vmem:[#allocation2 + $0x50] sm:$0xff] }
 0x919   :  { %13415 = vst [vmem:[#allocation84_spill] sm:$0xff] %v12228_v39  ;;  %v12247_v5 = vmul.f32 0.70710677, %v12222_v12  ;;  %v12249_v62 = vor.u32 1.1754944e-38, %v5319_v63  ;;  %v12254_v32 = vadd.f32 %v12020_v51, %v12154_v3  ;;  %v6149_v63 = vld [vmem:[#allocation2 + $0x30] sm:$0xff]  ;;  %v12322_v22 = vadd.f32 %v12042_v25, %v12148_v6 }
 0x91a   :  { %v12232_v41 = vpop.eup %7543  ;;  %13417 = vst [vmem:[#allocation85_spill] sm:$0xff] %v12236_v48  ;;  %v5895_v51 = vmul.f32 1.442695, %v5843_v49  ;;  %v12273_v3 = vand.u32 2147483647, %v12236_v48  ;;  %v12379_v44 = vmul.f32 0.5, %v12195_v14 }
 0x91b   :  { %13416 = vst [vmem:[#allocation62_spill] sm:$0xff] %v12232_v41  ;;  %v12263_v15 = vmul.f32 %v12232_v41, %v12164_v11  ;;  %v4982_v27 = vmul.f32 0.3275911, %v12244_v24  ;;  %v12281_v38 = vand.u32 2147483647, %v12247_v5  ;;  %v12415_v61 = vmul.f32 0.5, %v12215_v56 }
 0x91c   :  { %6386 = vmatmul.f32.gmra.mxu1 %v6145_v20  ;;  %v4834_v20 = vadd.f32 %v11839_v40, %v4721_v0  ;;  %v12202_v40 = vand.u32 2147483647, %v12185_v33  ;;  %v5294_v0 = vmul.f32 %v12177_v13, %v12119_v18  ;;  %13418 = vst [vmem:[#allocation86_spill] sm:$0xff] %v12240_v8  ;;  %v12290_v57 = vmul.f32 0.70710677, %v12254_v32  ;;  %v6157_v48 = vld [vmem:[#allocation2 + $0x70] sm:$0xff] }
 0x91d   :  { %13419 = vst [vmem:[#allocation18_spill] sm:$0xff] %v12249_v62  ;;  %v5325_v7 = vsub.f32 1.0, %v12263_v15  ;;  %v4984_v15 = vmul.f32 0.3275911, %v12281_v38  ;;  %vm6014_vm15 = vcmp.lt.f32.partialorder %v12185_v33, 0.0 }
 0x91e   :  { %v12212_v23 = vmul.f32 0.70710677, %v4834_v20  ;;  %v4990_v45 = vmul.f32 0.3275911, %v12202_v40  ;;  %v5295_v10 = vsub.f32 1.0, %v5294_v0  ;;  %v5334_v0 = vand.u32 2147483648, %v12164_v11 }
 0x91f   :  { %v12287_v49 = vmul.f32 0.5, %v4834_v20  ;;  %v12340_v54 = vadd.f32 1.0, %v4984_v15  ;;  %v5822_v15 = vsub.f32 0.0, %v12202_v40  ;;  %v12373_v8 = vmul.f32 %v12232_v41, %v5325_v7  ;;  %13431 = vst [vmem:[#allocation58_spill] sm:$0xff] %v12379_v44 }
 0x920   :  { %13413 = vst [vmem:[#allocation64_spill] sm:$0xff] %v12212_v23  ;;  %v12226_v2 = vadd.f32 1.0, %v4990_v45  ;;  %v4949_v43 = vand.u32 2147483647, %v12212_v23  ;;  %v12256_v45 = vpop.eup %7545  ;;  %v12259_v1 = vmul.f32 %v12177_v13, %v5295_v10  ;;  %v12277_v42 = vor.u32 1.1754944e-38, %v5334_v0 }
 0x921   :  { %13420 = vst [vmem:[#allocation20_spill] sm:$0xff] %v12256_v45  ;;  %v12275_v10 = vpop.eup %7547  ;;  %v12285_v45 = vadd.f32 %v12115_v47, %v12173_v19  ;;  %v12294_v0 = vadd.f32 %v12092_v31, %v12170_v35  ;;  %v12301_v47 = vadd.f32 %v12064_v9, %v12158_v26  ;;  %v4983_v35 = vmul.f32 0.3275911, %v12273_v3 }
 0x922   :  { %7549 = vrcp.f32 %v12226_v2  ;;  %13421 = vst [vmem:[#allocation35_spill] sm:$0xff] %v12259_v1  ;;  %v5813_v31 = vsub.f32 0.0, %v4949_v43  ;;  %v12318_v26 = vand.u32 2147483647, %v12290_v57  ;;  %v5499_v58 = vand.u32 2147483648, %v12226_v2 }
 0x923   :  { %7551 = vpow2.f32 %v5893_v30  ;;  %v5349_v30 = vand.u32 2147483648, %v12208_v28  ;;  %13424 = vst [vmem:[#allocation54_spill] sm:$0xff] %v12275_v10  ;;  %v12333_v23 = vadd.f32 1.0, %v4983_v35  ;;  %vm5493_vm12 = vweird.f32 %v12226_v2 }
 0x924   :  { %6389 = vmatmul.f32.gmra.mxu1 %v6147_v52  ;;  %v5844_v52 = vmul.f32 %v5812_v17, %v12144_v50  ;;  %v12270_v17 = vmul.f32 %v12187_v53, %v5310_v34  ;;  %v4981_v50 = vmul.f32 0.3275911, %v4949_v43  ;;  %13425 = vst [vmem:[#allocation27_spill] sm:$0xff] %v12277_v42  ;;  %v5845_v59 = vmul.f32 %v5813_v31, %v4949_v43 }
 0x925   :  { %13426 = vst [vmem:[#allocation57_spill] sm:$0xff] %v12287_v49  ;;  %v12297_v16 = vor.u32 1.1754944e-38, %v5349_v30  ;;  %v12315_v30 = vmul.f32 0.70710677, %v12285_v45  ;;  %v5500_v43 = vor.u32 1.1754944e-38, %v5499_v58  ;;  %v5854_v13 = vmul.f32 %v5822_v15, %v12202_v40 }
 0x926   :  { %13423 = vst [vmem:[#allocation26_spill] sm:$0xff] %v12270_v17  ;;  %v5897_v36 = vmul.f32 1.442695, %v5844_v52  ;;  %v5339_v52 = vmul.f32 %v12275_v10, %v12208_v28  ;;  %v12308_v4 = vadd.f32 1.0, %v4981_v50  ;;  %v12325_v50 = vmul.f32 0.70710677, %v12294_v0 }
 0x927   :  { %13427 = vst [vmem:[#allocation55_spill] sm:$0xff] %v12297_v16  ;;  %v12337_v25 = vand.u32 2147483647, %v12315_v30  ;;  %v4985_v31 = vmul.f32 0.3275911, %v12318_v26  ;;  %v6155_v16 = vld [vmem:[#allocation2 + $0x60] sm:$0xff] }
 0x928   :  { %v7550_v34 = vpop.eup %7549  ;;  %v5340_v55 = vsub.f32 1.0, %v5339_v52  ;;  %7553 = vrcp.f32 %v12308_v4  ;;  %v12346_v52 = vand.u32 2147483647, %v12325_v50  ;;  %v5899_v21 = vmul.f32 1.442695, %v5845_v59  ;;  %13429 = vst [vmem:[#allocation60_spill] sm:$0xff] %v12373_v8 }
 0x929   :  { %v5489_v19 = vmul.f32 %v7550_v34, %v12226_v2  ;;  %v12304_v20 = vpop.eup %7551  ;;  %vm5494_vm11 = vweird.f32 %v7550_v34  ;;  %13435 = vst [vmem:[#allocation87_spill] sm:$0xff] %v12415_v61  ;;  %v5394_v61 = vand.u32 2147483648, %v12333_v23 }
 0x92a   :  { %13428 = vst [vmem:[#allocation31_spill] sm:$0xff] %v12304_v20  ;;  %v6151_v20 = vld [vmem:[#allocation2 + $0x40] sm:$0xff]  ;;  %vm5495_vm13 = vmor %vm5493_vm12, %vm5494_vm11 }
 0x92b   :  { %v5490_v9 = vsub.f32 1.0, %v5489_v19  ;;  %v5497_v19 = vand.u32 2147483647, %v12226_v2  ;;  %v5364_v2 = vand.u32 2147483648, %v12308_v4  ;;  %v12454_v8 = vor.u32 1.1754944e-38, %v5394_v61 }
 0x92c   :  { %6392 = vmatmul.f32.gmra.mxu1 %v6149_v63  ;;  %v12311_v63 = vadd.f32 1.0, %v4982_v27  ;;  %v12329_v27 = vmul.f32 0.70710677, %v12301_v47 }
 0x92d   :  { %v5491_v49 = vmul.f32 %v7550_v34, %v5490_v9  ;;  %v12343_v9 = vmul.f32 0.70710677, %v12322_v22  ;;  %vm5498_vm14 = vcmp.eq.f32.partialorder %v5497_v19, 8.507059e+37  ;;  %v12382_v1 = vor.u32 1.1754944e-38, %v5364_v2 }
 0x92e   :  { %7555 = vrcp.f32 %v12311_v63  ;;  %v12350_v35 = vand.u32 2147483647, %v12329_v27  ;;  %v12359_v39 = vpop.eup %7553 }
 0x92f   :  { %v5492_v6 = vadd.f32 %v7550_v34, %v5491_v49  ;;  %7557 = vrcp.f32 %v12333_v23  ;;  %v12363_v19 = vand.u32 2147483647, %v12343_v9  ;;  %13432 = vst [vmem:[#allocation36_spill] sm:$0xff] %v12382_v1  ;;  %v5354_v7 = vmul.f32 %v12359_v39, %v12308_v4 }
 0x930   :  { %7559 = vpow2.f32 %v5895_v51  ;;  %v12369_v51 = vadd.f32 1.0, %v4985_v31  ;;  %v4987_v59 = vmul.f32 0.3275911, %v12350_v35  ;;  %v5815_v31 = vsub.f32 0.0, %v12273_v3 }
 0x931   :  { %v5496_v60 = vsel %vm5495_vm13, %v7550_v34, %v5492_v6  ;;  %7561 = vpow2.f32 %v5897_v36  ;;  %v5814_v34 = vsub.f32 0.0, %v12244_v24  ;;  %v4988_v6 = vmul.f32 0.3275911, %v12346_v52 }
 0x932   :  { %v12354_v49 = vsel %vm5498_vm14, %v5500_v43, %v5496_v60  ;;  %7563 = vrcp.f32 %v12340_v54  ;;  %v12376_v36 = vmul.f32 %v12275_v10, %v5340_v55  ;;  %v4986_v2 = vmul.f32 0.3275911, %v12363_v19 }
 0x933   :  { %v5534_v58 = vmul.f32 1.0614054, %v12354_v49  ;;  %7565 = vpow2.f32 %v5899_v21  ;;  %v5846_v55 = vmul.f32 %v5814_v34, %v12244_v24  ;;  %v12393_v14 = vadd.f32 1.0, %v4988_v6 }
 0x934   :  { %6395 = vmatmul.f32.gmra.mxu1 %v6151_v20  ;;  %v4989_v20 = vmul.f32 0.3275911, %v12337_v25  ;;  %v12366_v60 = vpop.eup %7555  ;;  %13430 = vst [vmem:[#allocation53_spill] sm:$0xff] %v12376_v36  ;;  %7567 = vrcp.f32 %v12369_v51  ;;  %v12399_v15 = vadd.f32 1.0, %v4987_v59  ;;  %v5379_v21 = vand.u32 2147483648, %v12311_v63 }
 0x935   :  { %v5566_v43 = vadd.f32 -1.4531521, %v5534_v58  ;;  %v12388_v42 = vpop.eup %7557  ;;  %v5369_v44 = vmul.f32 %v12366_v60, %v12311_v63  ;;  %v5816_v24 = vsub.f32 0.0, %v12281_v38  ;;  %v5917_v34 = vmul.f32 1.442695, %v5854_v13 }
 0x936   :  { %v12385_v62 = vadd.f32 1.0, %v4989_v20  ;;  %v12395_v40 = vpop.eup %7559  ;;  %v5384_v6 = vmul.f32 %v12388_v42, %v12333_v23  ;;  %v5817_v13 = vsub.f32 0.0, %v12318_v26  ;;  %v12419_v53 = vadd.f32 1.0, %v4986_v2 }
 0x937   :  { %v5598_v58 = vmul.f32 %v5566_v43, %v12354_v49  ;;  %13433 = vst [vmem:[#allocation56_spill] sm:$0xff] %v12395_v40  ;;  %v12401_v43 = vpop.eup %7561  ;;  %v5847_v40 = vmul.f32 %v5815_v31, %v12273_v3  ;;  %v5370_v31 = vsub.f32 1.0, %v5369_v44  ;;  %v12434_v41 = vor.u32 1.1754944e-38, %v5379_v21 }
 0x938   :  { %13434 = vst [vmem:[#allocation59_spill] sm:$0xff] %v12401_v43  ;;  %7569 = vrcp.f32 %v12385_v62  ;;  %v5901_v43 = vmul.f32 1.442695, %v5846_v55  ;;  %v5848_v55 = vmul.f32 %v5816_v24, %v12281_v38  ;;  %v5818_v44 = vsub.f32 0.0, %v12363_v19 }
 0x939   :  { %v5630_v20 = vadd.f32 1.4214138, %v5598_v58  ;;  %v5355_v58 = vsub.f32 1.0, %v5354_v7  ;;  %7571 = vrcp.f32 %v12393_v14  ;;  %v5903_v2 = vmul.f32 1.442695, %v5847_v40 }
 0x93a   :  { %7573 = vrcp.f32 %v12399_v15  ;;  %v5409_v38 = vand.u32 2147483648, %v12340_v54  ;;  %v5849_v24 = vmul.f32 %v5817_v13, %v12318_v26  ;;  %v12458_v13 = vmul.f32 0.5, %v12222_v12 }
 0x93b   :  { %v5662_v59 = vmul.f32 %v5630_v20, %v12354_v49  ;;  %7575 = vpow2.f32 %v5917_v34  ;;  %v5385_v20 = vsub.f32 1.0, %v5384_v6  ;;  %v5905_v6 = vmul.f32 1.442695, %v5848_v55 }
 0x93c   :  { %6398 = vmatmul.f32.gmra.mxu1 %v6153_v29  ;;  %v12407_v29 = vpop.eup %7563  ;;  %7577 = vpow2.f32 %v5901_v43  ;;  %13437 = vst [vmem:[#allocation89_spill] sm:$0xff] %v12458_v13  ;;  %v12464_v1 = vor.u32 1.1754944e-38, %v5409_v38  ;;  %v12477_v38 = vmul.f32 0.5, %v12254_v32  ;;  %v12490_v32 = vmul.f32 0.5, %v12301_v47 }
 0x93d   :  { %v5694_v17 = vadd.f32 -0.28449672, %v5662_v59  ;;  %v12422_v3 = vpop.eup %7565  ;;  %v5399_v7 = vmul.f32 %v12407_v29, %v12340_v54  ;;  %v12432_v59 = vmul.f32 %v12359_v39, %v5355_v58  ;;  %7579 = vrcp.f32 %v12419_v53 }
 0x93e   :  { %13436 = vst [vmem:[#allocation88_spill] sm:$0xff] %v12422_v3  ;;  %v12427_v56 = vpop.eup %7567  ;;  %v12452_v58 = vmul.f32 %v12388_v42, %v5385_v20  ;;  %7581 = vpow2.f32 %v5903_v2  ;;  %v5907_v20 = vmul.f32 1.442695, %v5849_v24  ;;  %v5439_v24 = vand.u32 2147483648, %v12419_v53 }
 0x93f   :  { %v5726_v18 = vmul.f32 %v5694_v17, %v12354_v49  ;;  %v12437_v3 = vpop.eup %7569  ;;  %v12445_v17 = vmul.f32 %v12366_v60, %v5370_v31  ;;  %v5400_v21 = vsub.f32 1.0, %v5399_v7  ;;  %v5414_v43 = vmul.f32 %v12427_v56, %v12369_v51  ;;  %13439 = vst [vmem:[#allocation91_spill] sm:$0xff] %v12477_v38 }
 0x940   :  { %v12442_v34 = vpop.eup %7571  ;;  %v5424_v31 = vand.u32 2147483648, %v12369_v51  ;;  %v5850_v7 = vmul.f32 %v5818_v44, %v12363_v19  ;;  %v5474_v55 = vmul.f32 %v12437_v3, %v12385_v62  ;;  %7583 = vpow2.f32 %v5905_v6 }
 0x941   :  { %v5758_v40 = vadd.f32 0.2548296, %v5726_v18  ;;  %v5459_v61 = vmul.f32 %v12442_v34, %v12393_v14  ;;  %v12471_v12 = vmul.f32 %v12407_v29, %v5400_v21  ;;  %v5819_v19 = vsub.f32 0.0, %v12350_v35 }
 0x942   :  { %v12482_v13 = vor.u32 1.1754944e-38, %v5424_v31  ;;  %v12485_v21 = vmul.f32 0.5, %v12322_v22  ;;  %v5909_v6 = vmul.f32 1.442695, %v5850_v7  ;;  %7585 = vpow2.f32 %v5907_v20 }
 0x943   :  { %v5790_v18 = vmul.f32 %v5758_v40, %v12354_v49  ;;  %v5415_v40 = vsub.f32 1.0, %v5414_v43  ;;  %v5475_v43 = vsub.f32 1.0, %v5474_v55  ;;  %v5460_v38 = vsub.f32 1.0, %v5459_v61 }
 0x944   :  { %6401 = vmatmul.f32.gmra.mxu1 %v6155_v16  ;;  %v12449_v16 = vpop.eup %7573  ;;  %v5851_v22 = vmul.f32 %v5819_v19, %v12350_v35  ;;  %v12499_v7 = vor.u32 1.1754944e-38, %v5439_v24  ;;  %v5820_v55 = vsub.f32 0.0, %v12346_v52  ;;  %7587 = vpow2.f32 %v5909_v6  ;;  %v6159_v24 = vld [vmem:[#allocation2 + $0x80] sm:$0xff] }
 0x945   :  { %v7576_v26 = vpop.eup %7575  ;;  %v12493_v36 = vmul.f32 %v12427_v56, %v5415_v40  ;;  %v5476_v61 = vmul.f32 %v12437_v3, %v5475_v43  ;;  %vm5448_vm1 = vweird.f32 %v12399_v15  ;;  %v5454_v35 = vand.u32 2147483648, %v12399_v15 }
 0x946   :  { %v5950_v2 = vmul.f32 %v7576_v26, %v5790_v18  ;;  %v12468_v49 = vpop.eup %7577  ;;  %v5444_v18 = vmul.f32 %v12449_v16, %v12399_v15  ;;  %v5461_v33 = vmul.f32 %v12442_v34, %v5460_v38  ;;  %v5484_v19 = vand.u32 2147483648, %v12385_v62 }
 0x947   :  { %13438 = vst [vmem:[#allocation90_spill] sm:$0xff] %v12468_v49  ;;  %v12474_v44 = vpop.eup %7579  ;;  %vm5463_vm3 = vweird.f32 %v12393_v14  ;;  %vm5433_vm4 = vweird.f32 %v12419_v53  ;;  %vm5478_vm5 = vweird.f32 %v12385_v62  ;;  %v5477_v38 = vadd.f32 %v12437_v3, %v5476_v61 }
 0x948   :  { %v5982_v26 = vsub.f32 1.0, %v5950_v2  ;;  %v12487_v49 = vpop.eup %7581  ;;  %v5429_v31 = vmul.f32 %v12474_v44, %v12419_v53  ;;  %v4894_v2 = vmul.f32 0.5, %v12166_v46  ;;  %v5852_v46 = vmul.f32 %v5820_v55, %v12346_v52 }
 0x949   :  { %13440 = vst [vmem:[#allocation92_spill] sm:$0xff] %v12487_v49  ;;  %v12502_v47 = vpop.eup %7583  ;;  %v5911_v49 = vmul.f32 1.442695, %v5851_v22  ;;  %vm5479_vm6 = vweird.f32 %v12437_v3  ;;  %v5485_v22 = vor.u32 1.1754944e-38, %v5484_v19  ;;  %vm5464_vm8 = vweird.f32 %v12442_v34 }
 0x94a   :  { %v6046_v10 = vsub.f32 0.0, %v5982_v26  ;;  %v12511_v6 = vpop.eup %7585  ;;  %vm5480_vm7 = vmor %vm5478_vm5, %vm5479_vm6  ;;  %v5467_v52 = vand.u32 2147483647, %v12393_v14  ;;  %vm5418_vm11 = vweird.f32 %v12369_v51  ;;  %vm5449_vm13 = vweird.f32 %v12449_v16 }
 0x94b   :  { %v12525_v55 = vpop.eup %7587  ;;  %vm5465_vm10 = vmor %vm5463_vm3, %vm5464_vm8  ;;  %7589 = vpow2.f32 %v5911_v49  ;;  %vm5388_vm6 = vweird.f32 %v12333_v23  ;;  %vm5419_vm8 = vweird.f32 %v12427_v56 }
 0x94c   :  { %6404 = vmatmul.f32.gmra.mxu1 %v6157_v48  ;;  %v5445_v48 = vsub.f32 1.0, %v5444_v18  ;;  %v6078_v20 = vsel %vm6014_vm15, %v6046_v10, %v5982_v26  ;;  %v5430_v18 = vsub.f32 1.0, %v5429_v31  ;;  %v5469_v10 = vand.u32 2147483648, %v12393_v14  ;;  %vm5450_vm14 = vmor %vm5448_vm1, %vm5449_vm13 }
 0x94d   :  { %v6110_v40 = vadd.f32 1.0, %v6078_v20  ;;  %v5821_v20 = vsub.f32 0.0, %v12337_v25  ;;  %v5482_v31 = vand.u32 2147483647, %v12385_v62  ;;  %vm5468_vm12 = vcmp.eq.f32.partialorder %v5467_v52, 8.507059e+37 }
 0x94e   :  { %v5446_v43 = vmul.f32 %v12449_v16, %v5445_v48  ;;  %v5462_v48 = vadd.f32 %v12442_v34, %v5461_v33  ;;  %v5913_v14 = vmul.f32 1.442695, %v5852_v46  ;;  %vm5403_vm15 = vweird.f32 %v12340_v54 }
 0x94f   :  { %v6142_v26 = vmul.f32 %v6110_v40, %v4894_v2  ;;  %v5431_v2 = vmul.f32 %v12474_v44, %v5430_v18  ;;  %v5470_v40 = vor.u32 1.1754944e-38, %v5469_v10  ;;  %vm5483_vm9 = vcmp.eq.f32.partialorder %v5482_v31, 8.507059e+37 }
 0x950   :  { %v5466_v61 = vsel %vm5465_vm10, %v12442_v34, %v5462_v48  ;;  %v5447_v33 = vadd.f32 %v12449_v16, %v5446_v43  ;;  %v5455_v18 = vor.u32 1.1754944e-38, %v5454_v35  ;;  %v5853_v10 = vmul.f32 %v5821_v20, %v12337_v25 }
 0x951   :  { %6480 = vmatpush.msrb.mxu2 %v6142_v26  ;;  %v12537_v26 = vsel %vm5468_vm12, %v5470_v40, %v5466_v61  ;;  %v12547_v34 = vmul.f32 0.5, %v12294_v0  ;;  %v12551_v35 = vmul.f32 0.5, %v12285_v45  ;;  %v5432_v48 = vadd.f32 %v12474_v44, %v5431_v2 }
 0x952   :  { %v5532_v31 = vmul.f32 1.0614054, %v12537_v26  ;;  %vm5434_vm1 = vweird.f32 %v12474_v44  ;;  %7591 = vpow2.f32 %v5913_v14  ;;  %v5915_v0 = vmul.f32 1.442695, %v5853_v10 }
 0x953   :  { %vm5435_vm5 = vmor %vm5433_vm4, %vm5434_vm1  ;;  %v5437_v45 = vand.u32 2147483647, %v12419_v53  ;;  %v5417_v2 = vadd.f32 %v12427_v56, %v12493_v36  ;;  %v5422_v61 = vand.u32 2147483647, %v12369_v51  ;;  %v6626_v36 = vld [vmem:[%s13002_s14 + $0x8] sm:$0xff]  ;;  %vm5404_vm10 = vweird.f32 %v12407_v29 }
 0x954   :  { %6407 = vmatmul.f32.gmra.mxu1 %v6159_v24  ;;  %v5481_v24 = vsel %vm5480_vm7, %v12437_v3, %v5477_v38  ;;  %v5452_v3 = vand.u32 2147483647, %v12399_v15  ;;  %v6161_v38 = vld [vmem:[#allocation2 + $0x90] sm:$0xff]  ;;  %v5564_v25 = vadd.f32 -1.4531521, %v5532_v31  ;;  %v5436_v40 = vsel %vm5435_vm5, %v12474_v44, %v5432_v48  ;;  %vm5420_vm4 = vmor %vm5418_vm11, %vm5419_vm8  ;;  %6737 = vmatpush.msrb.mxu3 %v6626_v36 }
 0x955   :  { %v12532_v62 = vsel %vm5483_vm9, %v5485_v22, %v5481_v24  ;;  %v5451_v22 = vsel %vm5450_vm14, %v12449_v16, %v5447_v33  ;;  %vm5438_vm7 = vcmp.eq.f32.partialorder %v5437_v45, 8.507059e+37  ;;  %v5402_v44 = vadd.f32 %v12407_v29, %v12471_v12  ;;  %vm12593_vm11 = vmor %vm5403_vm15, %vm5404_vm10 }
 0x956   :  { %v5533_v19 = vmul.f32 1.0614054, %v12532_v62  ;;  %vm5453_vm3 = vcmp.eq.f32.partialorder %v5452_v3, 8.507059e+37  ;;  %v5596_v16 = vmul.f32 %v5564_v25, %v12537_v26  ;;  %v12572_v53 = vsel %vm5438_vm7, %v12499_v7, %v5436_v40  ;;  %v12581_v3 = vpop.eup %7589 }
 0x957   :  { %v12553_v46 = vsel %vm5453_vm3, %v5455_v18, %v5451_v22  ;;  %v6163_v18 = vld [vmem:[#allocation2 + $0xa0] sm:$0xff]  ;;  %v5530_v10 = vmul.f32 1.0614054, %v12572_v53  ;;  %v5421_v7 = vsel %vm5420_vm4, %v12427_v56, %v5417_v2  ;;  %vm5423_vm9 = vcmp.eq.f32.partialorder %v5422_v61, 8.507059e+37 }
 0x958   :  { %v5565_v43 = vadd.f32 -1.4531521, %v5533_v19  ;;  %v5531_v20 = vmul.f32 1.0614054, %v12553_v46  ;;  %v5628_v24 = vadd.f32 1.4214138, %v5596_v16  ;;  %v12587_v31 = vsel %vm5423_vm9, %v12482_v13, %v5421_v7 }
 0x959   :  { %7593 = vpow2.f32 %v5915_v0  ;;  %v5562_v22 = vadd.f32 -1.4531521, %v5530_v10  ;;  %v5529_v25 = vmul.f32 1.0614054, %v12587_v31  ;;  %v5407_v48 = vand.u32 2147483647, %v12340_v54 }
 0x95a   :  { %v5597_v15 = vmul.f32 %v5565_v43, %v12532_v62  ;;  %v5563_v52 = vadd.f32 -1.4531521, %v5531_v20  ;;  %v5660_v14 = vmul.f32 %v5628_v24, %v12537_v26  ;;  %v7592_v43 = vpop.eup %7591  ;;  %v5406_v20 = vsel %vm12593_vm11, %v12407_v29, %v5402_v44  ;;  %v6165_v44 = vld [vmem:[#allocation2 + $0xb0] sm:$0xff] }
 0x95b   :  { %v5594_v16 = vmul.f32 %v5562_v22, %v12572_v53  ;;  %v5561_v45 = vadd.f32 -1.4531521, %v5529_v25  ;;  %vm5408_vm12 = vcmp.eq.f32.partialorder %v5407_v48, 8.507059e+37  ;;  %vm5389_vm13 = vweird.f32 %v12388_v42 }
 0x95c   :  { %6410 = vmatmul.f32.gmra.mxu1 %v6161_v38  ;;  %v5629_v49 = vadd.f32 1.4214138, %v5597_v15  ;;  %v5595_v19 = vmul.f32 %v5563_v52, %v12553_v46  ;;  %v5692_v12 = vadd.f32 -0.28449672, %v5660_v14  ;;  %vm6013_vm14 = vcmp.lt.f32.partialorder %v12315_v30, 0.0  ;;  %vm12615_vm15 = vmor %vm5388_vm6, %vm5389_vm13 }
 0x95d   :  { %v5626_v24 = vadd.f32 1.4214138, %v5594_v16  ;;  %v5593_v29 = vmul.f32 %v5561_v45, %v12587_v31  ;;  %v12611_v54 = vsel %vm5408_vm12, %v12464_v1, %v5406_v20  ;;  %vm6012_vm3 = vcmp.lt.f32.partialorder %v12325_v50, 0.0 }
 0x95e   :  { %v5661_v33 = vmul.f32 %v5629_v49, %v12532_v62  ;;  %v5627_v38 = vadd.f32 1.4214138, %v5595_v19  ;;  %v5724_v0 = vmul.f32 %v5692_v12, %v12537_v26  ;;  %v5387_v49 = vadd.f32 %v12388_v42, %v12452_v58 }
 0x95f   :  { %v5528_v19 = vmul.f32 1.0614054, %v12611_v54  ;;  %v7594_v1 = vpop.eup %7593  ;;  %vm5373_vm1 = vweird.f32 %v12311_v63  ;;  %v5658_v14 = vmul.f32 %v5626_v24, %v12572_v53  ;;  %v5625_v10 = vadd.f32 1.4214138, %v5593_v29 }
 0x960   :  { %v5693_v51 = vadd.f32 -0.28449672, %v5661_v33  ;;  %v5659_v13 = vmul.f32 %v5627_v38, %v12553_v46  ;;  %v5756_v2 = vadd.f32 0.2548296, %v5724_v0  ;;  %v5391_v36 = vsel %vm12615_vm15, %v12388_v42, %v5387_v49 }
 0x961   :  { %v5392_v7 = vand.u32 2147483647, %v12333_v23  ;;  %v5560_v38 = vadd.f32 -1.4531521, %v5528_v19  ;;  %v5317_v12 = vand.u32 2147483647, %v12124_v37  ;;  %v5657_v25 = vmul.f32 %v5625_v10, %v12587_v31 }
 0x962   :  { %v5725_v56 = vmul.f32 %v5693_v51, %v12532_v62  ;;  %v5691_v40 = vadd.f32 -0.28449672, %v5659_v13  ;;  %vm6011_vm5 = vcmp.lt.f32.partialorder %v12329_v27, 0.0  ;;  %v5690_v42 = vadd.f32 -0.28449672, %v5658_v14 }
 0x963   :  { %vm5393_vm6 = vcmp.eq.f32.partialorder %v5392_v7, 8.507059e+37  ;;  %v5689_v48 = vadd.f32 -0.28449672, %v5657_v25  ;;  %vm5358_vm7 = vweird.f32 %v12308_v4  ;;  %vm6010_vm8 = vcmp.lt.f32.partialorder %v12343_v9, 0.0  ;;  %v13449_v9 = vld [vmem:[#allocation53_spill] sm:$0xff] }
 0x964   :  { %6413 = vmatmul.f32.gmra.mxu1 %v6163_v18  ;;  %v5757_v52 = vadd.f32 0.2548296, %v5725_v56  ;;  %v5723_v33 = vmul.f32 %v5691_v40, %v12553_v46  ;;  %v5788_v18 = vmul.f32 %v5756_v2, %v12537_v26  ;;  %v5592_v56 = vmul.f32 %v5560_v38, %v12611_v54 }
 0x965   :  { %v12636_v23 = vsel %vm5393_vm6, %v12454_v8, %v5391_v36  ;;  %v5722_v20 = vmul.f32 %v5690_v42, %v12572_v53  ;;  %v5721_v8 = vmul.f32 %v5689_v48, %v12587_v31  ;;  %vm5374_vm4 = vweird.f32 %v12366_v60 }
 0x966   :  { %v5789_v58 = vmul.f32 %v5757_v52, %v12532_v62  ;;  %v5755_v51 = vadd.f32 0.2548296, %v5723_v33  ;;  %v5948_v22 = vmul.f32 %v7592_v43, %v5788_v18  ;;  %v5527_v0 = vmul.f32 1.0614054, %v12636_v23  ;;  %vm12657_vm10 = vmor %vm5373_vm1, %vm5374_vm4 }
 0x967   :  { %v5624_v45 = vadd.f32 1.4214138, %v5592_v56  ;;  %v5754_v52 = vadd.f32 0.2548296, %v5722_v20  ;;  %v5753_v33 = vadd.f32 0.2548296, %v5721_v8  ;;  %vm5343_vm11 = vweird.f32 %v12208_v28 }
 0x968   :  { %v5949_v62 = vmul.f32 %v7594_v1, %v5789_v58  ;;  %v5787_v26 = vmul.f32 %v5755_v51, %v12553_v46  ;;  %v5980_v13 = vsub.f32 1.0, %v5948_v22  ;;  %v5372_v46 = vadd.f32 %v12366_v60, %v12445_v17  ;;  %v13451_v8 = vld [vmem:[#allocation85_spill] sm:$0xff] }
 0x969   :  { %v5559_v40 = vadd.f32 -1.4531521, %v5527_v0  ;;  %v5656_v29 = vmul.f32 %v5624_v45, %v12611_v54  ;;  %v5786_v58 = vmul.f32 %v5754_v52, %v12572_v53  ;;  %vm6009_vm9 = vcmp.lt.f32.partialorder %v12290_v57, 0.0  ;;  %v13450_v45 = vld [vmem:[#allocation54_spill] sm:$0xff] }
 0x96a   :  { %v5981_v15 = vsub.f32 1.0, %v5949_v62  ;;  %v5947_v16 = vmul.f32 %v12581_v3, %v5787_v26  ;;  %v6044_v49 = vsub.f32 0.0, %v5980_v13  ;;  %v6167_v3 = vld [vmem:[#allocation2 + $0xc0] sm:$0xff]  ;;  %v5785_v53 = vmul.f32 %v5753_v33, %v12587_v31 }
 0x96b   :  { %v5688_v1 = vadd.f32 -0.28449672, %v5656_v29  ;;  %v5591_v30 = vmul.f32 %v5559_v40, %v12636_v23  ;;  %v5946_v50 = vmul.f32 %v12525_v55, %v5786_v58  ;;  %v5376_v14 = vsel %vm12657_vm10, %v12366_v60, %v5372_v46  ;;  %v13455_v29 = vld [vmem:[#allocation91_spill] sm:$0xff] }
 0x96c   :  { %6416 = vmatmul.f32.gmra.mxu1 %v6165_v44  ;;  %v6045_v43 = vsub.f32 0.0, %v5981_v15  ;;  %v5979_v24 = vsub.f32 1.0, %v5947_v16  ;;  %v6076_v17 = vsel %vm6012_vm3, %v6044_v49, %v5980_v13  ;;  %v5945_v31 = vmul.f32 %v12511_v6, %v5785_v53  ;;  %v13460_v53 = vld [vmem:[#allocation55_spill] sm:$0xff] }
 0x96d   :  { %v6108_v19 = vadd.f32 1.0, %v6076_v17  ;;  %v5720_v62 = vmul.f32 %v5688_v1, %v12611_v54  ;;  %v5623_v51 = vadd.f32 1.4214138, %v5591_v30  ;;  %v5978_v55 = vsub.f32 1.0, %v5946_v50  ;;  %v13458_v30 = vld [vmem:[#allocation72_spill] sm:$0xff] }
 0x96e   :  { %v6077_v2 = vsel %vm6013_vm14, %v6045_v43, %v5981_v15  ;;  %v6043_v36 = vsub.f32 0.0, %v5979_v24  ;;  %v5377_v38 = vand.u32 2147483647, %v12311_v63  ;;  %vm5359_vm12 = vweird.f32 %v12359_v39 }
 0x96f   :  { %v6109_v61 = vadd.f32 1.0, %v6077_v2  ;;  %v6140_v10 = vmul.f32 %v6108_v19, %v12547_v34  ;;  %v5752_v22 = vadd.f32 0.2548296, %v5720_v62  ;;  %v5655_v60 = vmul.f32 %v5623_v51, %v12636_v23  ;;  %vm12683_vm3 = vmor %vm5358_vm7, %vm5359_vm12  ;;  %v13452_v2 = vld [vmem:[#allocation36_spill] sm:$0xff] }
 0x970   :  { %v6075_v7 = vsel %vm6011_vm5, %v6043_v36, %v5979_v24  ;;  %v5357_v34 = vadd.f32 %v12359_v39, %v12432_v59  ;;  %vm5328_vm13 = vweird.f32 %v12164_v11  ;;  %vm6008_vm14 = vcmp.lt.f32.partialorder %v12247_v5, 0.0  ;;  %v13456_v19 = vld [vmem:[#allocation60_spill] sm:$0xff]  ;;  %v13457_v36 = vld [vmem:[#allocation62_spill] sm:$0xff] }
 0x971   :  { %v6141_v18 = vmul.f32 %v6109_v61, %v12551_v35  ;;  %v6107_v35 = vadd.f32 1.0, %v6075_v7  ;;  %v6042_v42 = vsub.f32 0.0, %v5978_v55  ;;  %v5977_v25 = vsub.f32 1.0, %v5945_v31  ;;  %v6171_v7 = vld [vmem:[#allocation2 + $0xe0] sm:$0xff] }
 0x972   :  { %vm5378_vm15 = vcmp.eq.f32.partialorder %v5377_v38, 8.507059e+37  ;;  %v5784_v59 = vmul.f32 %v5752_v22, %v12611_v54  ;;  %v5687_v6 = vadd.f32 -0.28449672, %v5655_v60  ;;  %v5361_v26 = vsel %vm12683_vm3, %v12359_v39, %v5357_v34  ;;  %v13463_v38 = vld [vmem:[#allocation26_spill] sm:$0xff]  ;;  %v13464_v22 = vld [vmem:[#allocation81_spill] sm:$0xff] }
 0x973   :  { %6481 = vmatpush.msrb.mxu2 %v6141_v18  ;;  %v6139_v27 = vmul.f32 %v6107_v35, %v12490_v32  ;;  %v12689_v15 = vsel %vm5378_vm15, %v12434_v41, %v5376_v14  ;;  %v6169_v32 = vld [vmem:[#allocation2 + $0xd0] sm:$0xff]  ;;  %v6074_v56 = vsel %vm6010_vm8, %v6042_v42, %v5978_v55  ;;  %v6041_v13 = vsub.f32 0.0, %v5977_v25 }
 0x974   :  { %6419 = vmatmul.f32.gmra.mxu1 %v6167_v3  ;;  %v5526_v20 = vmul.f32 1.0614054, %v12689_v15  ;;  %v5362_v48 = vand.u32 2147483647, %v12308_v4  ;;  %v6106_v0 = vadd.f32 1.0, %v6074_v56  ;;  %v5944_v54 = vmul.f32 %v12502_v47, %v5784_v59  ;;  %v13465_v34 = vld [vmem:[#allocation89_spill] sm:$0xff] }
 0x975   :  { %6482 = vmatpush.msrb.mxu2 %v6140_v10  ;;  %v5719_v41 = vmul.f32 %v5687_v6, %v12636_v23  ;;  %v5347_v43 = vand.u32 2147483647, %v12208_v28  ;;  %vm5313_vm1 = vweird.f32 %v12124_v37  ;;  %v6073_v39 = vsel %vm6009_vm9, %v6041_v13, %v5977_v25 }
 0x976   :  { %v5558_v16 = vadd.f32 -1.4531521, %v5526_v20  ;;  %vm5363_vm5 = vcmp.eq.f32.partialorder %v5362_v48, 8.507059e+37  ;;  %v5342_v46 = vadd.f32 %v13450_v45, %v13449_v9  ;;  %v6138_v4 = vmul.f32 %v6106_v0, %v12485_v21 }
 0x977   :  { %6483 = vmatpush.msrb.mxu2 %v6139_v27  ;;  %v6105_v49 = vadd.f32 1.0, %v6073_v39  ;;  %v5976_v52 = vsub.f32 1.0, %v5944_v54  ;;  %v5751_v47 = vadd.f32 0.2548296, %v5719_v41  ;;  %vm6007_vm6 = vcmp.lt.f32.partialorder %v13451_v8, 0.0  ;;  %v13469_v39 = vld [vmem:[#allocation35_spill] sm:$0xff] }
 0x978   :  { %v5590_v40 = vmul.f32 %v5558_v16, %v12689_v15  ;;  %v12710_v24 = vsel %vm5363_vm5, %v13452_v2, %v5361_v26  ;;  %vm5344_vm7 = vweird.f32 %v13450_v45  ;;  %vm12713_vm8 = vcmp.eq.f32.partialorder %v5347_v43, 8.507059e+37  ;;  %v13470_v16 = vld [vmem:[#allocation67_spill] sm:$0xff]  ;;  %v6173_v2 = vld [vmem:[#allocation2 + $0xf0] sm:$0xff] }
 0x979   :  { %6484 = vmatpush.msrb.mxu2 %v6138_v4  ;;  %v6137_v3 = vmul.f32 %v6105_v49, %v13455_v29  ;;  %v6040_v21 = vsub.f32 0.0, %v5976_v52  ;;  %v5783_v61 = vmul.f32 %v5751_v47, %v12636_v23  ;;  %v5525_v17 = vmul.f32 1.0614054, %v12710_v24  ;;  %vm5345_vm4 = vmor %vm5343_vm11, %vm5344_vm7  ;;  %v13459_v23 = vld [vmem:[#allocation92_spill] sm:$0xff] }
 0x97a   :  { %v5622_v58 = vadd.f32 1.4214138, %v5590_v40  ;;  %v5346_v33 = vsel %vm5345_vm4, %v13450_v45, %v5342_v46  ;;  %v5327_v1 = vadd.f32 %v13457_v36, %v13456_v19  ;;  %vm5329_vm9 = vweird.f32 %v13457_v36  ;;  %v13471_v45 = vld [vmem:[#allocation63_spill] sm:$0xff]  ;;  %v13476_v19 = vld [vmem:[#allocation86_spill] sm:$0xff] }
 0x97b   :  { %vm5298_vm10 = vweird.f32 %v13458_v30  ;;  %6485 = vmatpush.msrb.mxu2 %v6137_v3  ;;  %v6072_v44 = vsel %vm6008_vm14, %v6040_v21, %v5976_v52  ;;  %v5943_v18 = vmul.f32 %v13459_v23, %v5783_v61  ;;  %v5557_v50 = vadd.f32 -1.4531521, %v5525_v17  ;;  %vm12737_vm11 = vmor %vm5328_vm13, %vm5329_vm9  ;;  %v13472_v52 = vld [vmem:[#allocation87_spill] sm:$0xff]  ;;  %v13475_v17 = vld [vmem:[#allocation90_spill] sm:$0xff] }
 0x97c   :  { %6422 = vmatmul.f32.gmra.mxu1 %v6169_v32  ;;  %v12733_v28 = vsel %vm12713_vm8, %v13460_v53, %v5346_v33  ;;  %v6104_v10 = vadd.f32 1.0, %v6072_v44  ;;  %v5654_v62 = vmul.f32 %v5622_v58, %v12689_v15  ;;  %v5331_v51 = vsel %vm12737_vm11, %v13457_v36, %v5327_v1  ;;  %v13467_v32 = vld [vmem:[#allocation27_spill] sm:$0xff]  ;;  %v13477_v36 = vld [vmem:[#allocation68_spill] sm:$0xff] }
 0x97d   :  { %v5524_v5 = vmul.f32 1.0614054, %v12733_v28  ;;  %v5975_v35 = vsub.f32 1.0, %v5943_v18  ;;  %v5589_v55 = vmul.f32 %v5557_v50, %v12710_v24  ;;  %v5332_v31 = vand.u32 2147483647, %v12164_v11  ;;  %v13466_v11 = vld [vmem:[#allocation70_spill] sm:$0xff] }
 0x97e   :  { %v5312_v60 = vadd.f32 %v13464_v22, %v13463_v38  ;;  %v6136_v27 = vmul.f32 %v6104_v10, %v13465_v34  ;;  %v5686_v42 = vadd.f32 -0.28449672, %v5654_v62  ;;  %vm5314_vm12 = vweird.f32 %v13464_v22  ;;  %v13478_v18 = vld [vmem:[#allocation84_spill] sm:$0xff] }
 0x97f   :  { %v5556_v25 = vadd.f32 -1.4531521, %v5524_v5  ;;  %v6039_v63 = vsub.f32 0.0, %v5975_v35  ;;  %v5621_v59 = vadd.f32 1.4214138, %v5589_v55  ;;  %vm5333_vm13 = vcmp.eq.f32.partialorder %v5332_v31, 8.507059e+37  ;;  %vm5315_vm14 = vmor %vm5313_vm1, %vm5314_vm12 }
 0x980   :  { %vm5318_vm15 = vcmp.eq.f32.partialorder %v5317_v12, 8.507059e+37  ;;  %vm5283_vm3 = vweird.f32 %v13466_v11  ;;  %6486 = vmatpush.msrb.mxu2 %v6136_v27  ;;  %v5718_v6 = vmul.f32 %v5686_v42, %v12689_v15  ;;  %v12760_v56 = vsel %vm5333_vm13, %v13467_v32, %v5331_v51  ;;  %v13468_v12 = vld [vmem:[#allocation18_spill] sm:$0xff]  ;;  %v13481_v34 = vld [vmem:[#allocation88_spill] sm:$0xff] }
 0x981   :  { %v5588_v26 = vmul.f32 %v5556_v25, %v12733_v28  ;;  %v5316_v13 = vsel %vm5315_vm14, %v13464_v22, %v5312_v60  ;;  %v6071_v20 = vsel %vm6007_vm6, %v6039_v63, %v5975_v35  ;;  %v5653_v48 = vmul.f32 %v5621_v59, %v12710_v24  ;;  %v13480_v60 = vld [vmem:[#allocation78_spill] sm:$0xff] }
 0x982   :  { %v5523_v37 = vmul.f32 1.0614054, %v12760_v56  ;;  %v12768_v0 = vsel %vm5318_vm15, %v13468_v12, %v5316_v13  ;;  %v6103_v54 = vadd.f32 1.0, %v6071_v20  ;;  %v5750_v41 = vadd.f32 0.2548296, %v5718_v6 }
 0x983   :  { %v5620_v43 = vadd.f32 1.4214138, %v5588_v26  ;;  %v5297_v9 = vadd.f32 %v13470_v16, %v13469_v39  ;;  %vm6006_vm1 = vcmp.lt.f32.partialorder %v13471_v45, 0.0  ;;  %v5685_v46 = vadd.f32 -0.28449672, %v5653_v48  ;;  %v13483_v48 = vld [vmem:[#allocation64_spill] sm:$0xff] }
 0x984   :  { %6425 = vmatmul.f32.gmra.mxu1 %v6171_v7  ;;  %v5555_v4 = vadd.f32 -1.4531521, %v5523_v37  ;;  %v5522_v49 = vmul.f32 1.0614054, %v12768_v0  ;;  %vm5299_vm5 = vweird.f32 %v13470_v16  ;;  %v6135_v47 = vmul.f32 %v6103_v54, %v13472_v52  ;;  %v13479_v7 = vld [vmem:[#allocation76_spill] sm:$0xff]  ;;  %v13484_v37 = vld [vmem:[#allocation59_spill] sm:$0xff] }
 0x985   :  { %v5782_v8 = vmul.f32 %v5750_v41, %v12689_v15  ;;  %v5652_v40 = vmul.f32 %v5620_v43, %v12733_v28  ;;  %vm12780_vm6 = vmor %vm5298_vm10, %vm5299_vm5  ;;  %v5302_v29 = vand.u32 2147483647, %v13458_v30  ;;  %v5717_v3 = vmul.f32 %v5685_v46, %v12710_v24  ;;  %v13485_v43 = vld [vmem:[#allocation58_spill] sm:$0xff] }
 0x986   :  { %v5587_v21 = vmul.f32 %v5555_v4, %v12760_v56  ;;  %v5554_v61 = vadd.f32 -1.4531521, %v5522_v49  ;;  %v5301_v15 = vsel %vm12780_vm6, %v13470_v16, %v5297_v9  ;;  %6487 = vmatpush.msrb.mxu2 %v6135_v47  ;;  %v5282_v1 = vadd.f32 %v13477_v36, %v13476_v19  ;;  %v13486_v49 = vld [vmem:[#allocation33_spill] sm:$0xff]  ;;  %v13487_v52 = vld [vmem:[#allocation22_spill] sm:$0xff] }
 0x987   :  { %v5942_v58 = vmul.f32 %v13475_v17, %v5782_v8  ;;  %v5684_v33 = vadd.f32 -0.28449672, %v5652_v40  ;;  %vm5303_vm7 = vcmp.eq.f32.partialorder %v5302_v29, 8.507059e+37  ;;  %v5749_v44 = vadd.f32 0.2548296, %v5717_v3  ;;  %v13491_v19 = vld [vmem:[#allocation57_spill] sm:$0xff] }
 0x988   :  { %v5619_v23 = vadd.f32 1.4214138, %v5587_v21  ;;  %v5586_v30 = vmul.f32 %v5554_v61, %v12768_v0  ;;  %v12795_v50 = vsel %vm5303_vm7, %v13478_v18, %v5301_v15  ;;  %vm5284_vm8 = vweird.f32 %v13477_v36  ;;  %v13490_v15 = vld [vmem:[#allocation56_spill] sm:$0xff] }
 0x989   :  { %v5974_v53 = vsub.f32 1.0, %v5942_v58  ;;  %v5716_v14 = vmul.f32 %v5684_v33, %v12733_v28  ;;  %v5521_v10 = vmul.f32 1.0614054, %v12795_v50  ;;  %vm5268_vm4 = vweird.f32 %v13479_v7  ;;  %vm5285_vm9 = vmor %vm5283_vm3, %vm5284_vm8 }
 0x98a   :  { %v5781_v62 = vmul.f32 %v5749_v44, %v12710_v24  ;;  %v5651_v5 = vmul.f32 %v5619_v23, %v12760_v56  ;;  %v5618_v51 = vadd.f32 1.4214138, %v5586_v30  ;;  %v5287_v35 = vand.u32 2147483647, %v13466_v11  ;;  %v13482_v11 = vld [vmem:[#allocation83_spill] sm:$0xff] }
 0x98b   :  { %v6038_v55 = vsub.f32 0.0, %v5974_v53  ;;  %v5748_v31 = vadd.f32 0.2548296, %v5716_v14  ;;  %v5553_v38 = vadd.f32 -1.4531521, %v5521_v10  ;;  %v5286_v22 = vsel %vm5285_vm9, %v13477_v36, %v5282_v1  ;;  %v6175_v30 = vld [vmem:[#allocation2 + $0x100] sm:$0xff] }
 0x98c   :  { %6428 = vmatmul.f32.gmra.mxu1 %v6173_v2  ;;  %vm6004_vm10 = vcmp.lt.f32.partialorder %v13480_v60, 0.0  ;;  %v5941_v27 = vmul.f32 %v13481_v34, %v5781_v62  ;;  %v5683_v42 = vadd.f32 -0.28449672, %v5651_v5  ;;  %v5650_v24 = vmul.f32 %v5618_v51, %v12768_v0  ;;  %v13492_v14 = vld [vmem:[#allocation31_spill] sm:$0xff] }
 0x98d   :  { %vm5288_vm11 = vcmp.eq.f32.partialorder %v5287_v35, 8.507059e+37  ;;  %v6070_v25 = vsel %vm6006_vm1, %v6038_v55, %v5974_v53  ;;  %v5780_v63 = vmul.f32 %v5748_v31, %v12733_v28  ;;  %v5585_v59 = vmul.f32 %v5553_v38, %v12795_v50  ;;  %v13495_v35 = vld [vmem:[#allocation82_spill] sm:$0xff]  ;;  %v13496_v31 = vld [vmem:[#allocation24_spill] sm:$0xff] }
 0x98e   :  { %v12815_v6 = vsel %vm5288_vm11, %v13482_v11, %v5286_v22  ;;  %v6102_v26 = vadd.f32 1.0, %v6070_v25  ;;  %v5973_v32 = vsub.f32 1.0, %v5941_v27  ;;  %v5715_v13 = vmul.f32 %v5683_v42, %v12760_v56  ;;  %v13497_v27 = vld [vmem:[#allocation29_spill] sm:$0xff]  ;;  %v13498_v42 = vld [vmem:[#allocation75_spill] sm:$0xff] }
 0x98f   :  { %v5682_v20 = vadd.f32 -0.28449672, %v5650_v24  ;;  %vm6005_vm12 = vcmp.lt.f32.partialorder %v13483_v48, 0.0  ;;  %v5940_v12 = vmul.f32 %v13484_v37, %v5780_v63  ;;  %v5617_v54 = vadd.f32 1.4214138, %v5585_v59  ;;  %v13499_v63 = vld [vmem:[#allocation65_spill] sm:$0xff] }
 0x990   :  { %v5520_v41 = vmul.f32 1.0614054, %v12815_v6  ;;  %v6134_v39 = vmul.f32 %v6102_v26, %v13485_v43  ;;  %v6037_v28 = vsub.f32 0.0, %v5973_v32  ;;  %v5747_v16 = vadd.f32 0.2548296, %v5715_v13  ;;  %v13501_v48 = vld [vmem:[#allocation20_spill] sm:$0xff] }
 0x991   :  { %v5714_v9 = vmul.f32 %v5682_v20, %v12768_v0  ;;  %v5972_v45 = vsub.f32 1.0, %v5940_v12  ;;  %v5649_v46 = vmul.f32 %v5617_v54, %v12795_v50  ;;  %v5267_v47 = vadd.f32 %v13487_v52, %v13486_v49  ;;  %v6177_v54 = vld [vmem:[#allocation2 + $0x110] sm:$0xff] }
 0x992   :  { %v5552_v4 = vadd.f32 -1.4531521, %v5520_v41  ;;  %6488 = vmatpush.msrb.mxu2 %v6134_v39  ;;  %v6069_v8 = vsel %vm6005_vm12, %v6037_v28, %v5973_v32  ;;  %v5779_v40 = vmul.f32 %v5747_v16, %v12760_v56  ;;  %vm5269_vm13 = vweird.f32 %v13487_v52  ;;  %v13500_v32 = vld [vmem:[#allocation73_spill] sm:$0xff]  ;;  %v13502_v41 = vld [vmem:[#allocation80_spill] sm:$0xff] }
 0x993   :  { %v5746_v2 = vadd.f32 0.2548296, %v5714_v9  ;;  %v6101_v57 = vadd.f32 1.0, %v6069_v8  ;;  %v6036_v29 = vsub.f32 0.0, %v5972_v45  ;;  %v5681_v3 = vadd.f32 -0.28449672, %v5649_v46  ;;  %vm12831_vm14 = vmor %vm5268_vm4, %vm5269_vm13 }
 0x994   :  { %v5584_v21 = vmul.f32 %v5552_v4, %v12815_v6  ;;  %v5939_v17 = vmul.f32 %v13490_v15, %v5779_v40  ;;  %v5271_v56 = vsel %vm12831_vm14, %v13487_v52, %v5267_v47  ;;  %v5272_v33 = vand.u32 2147483647, %v13479_v7  ;;  %6431 = vmatmul.f32.gmra.mxu1 %v6175_v30  ;;  %v13503_v40 = vld [vmem:[#allocation71_spill] sm:$0xff] }
 0x995   :  { %v5778_v58 = vmul.f32 %v5746_v2, %v12768_v0  ;;  %v6133_v36 = vmul.f32 %v6101_v57, %v13491_v19  ;;  %v6068_v1 = vsel %vm6004_vm10, %v6036_v29, %v5972_v45  ;;  %v5713_v44 = vmul.f32 %v5681_v3, %v12795_v50  ;;  %v13493_v0 = vld [vmem:[#allocation69_spill] sm:$0xff] }
 0x996   :  { %v5616_v23 = vadd.f32 1.4214138, %v5584_v21  ;;  %v6100_v18 = vadd.f32 1.0, %v6068_v1  ;;  %v5971_v53 = vsub.f32 1.0, %v5939_v17  ;;  %vm5273_vm15 = vcmp.eq.f32.partialorder %v5272_v33, 8.507059e+37  ;;  %v13504_v3 = vld [vmem:[#allocation61_spill] sm:$0xff] }
 0x997   :  { %v5938_v10 = vmul.f32 %v13492_v14, %v5778_v58  ;;  %v13494_v62 = vsub.f32 0.0, %v13493_v0  ;;  %6489 = vmatpush.msrb.mxu2 %v6133_v36  ;;  %v5745_v7 = vadd.f32 0.2548296, %v5713_v44  ;;  %v5276_v55 = vsel %vm5273_vm15, %v13495_v35, %v5271_v56  ;;  %v6179_v58 = vld [vmem:[#allocation2 + $0x120] sm:$0xff]  ;;  %v13506_v44 = vld [vmem:[#allocation74_spill] sm:$0xff]  ;;  %v13508_v35 = vld [vmem:[#allocation77_spill] sm:$0xff] }
 0x998   :  { %v5648_v51 = vmul.f32 %v5616_v23, %v12815_v6  ;;  %v6132_v38 = vmul.f32 %v6100_v18, %v13496_v31  ;;  %v6035_v22 = vsub.f32 0.0, %v5971_v53  ;;  %v5519_v34 = vmul.f32 1.0614054, %v5276_v55  ;;  %v13505_v36 = vld [vmem:[#allocation79_spill] sm:$0xff] }
 0x999   :  { %v5839_v5 = vmul.f32 %v13494_v62, %v13493_v0  ;;  %v5970_v60 = vsub.f32 1.0, %v5938_v10  ;;  %7595 = vpow2.f32 %v13497_v27  ;;  %vm6003_vm3 = vcmp.lt.f32.partialorder %v13498_v42, 0.0  ;;  %v6181_v0 = vld [vmem:[#allocation2 + $0x130] sm:$0xff]  ;;  %v6148_v42 = vld [vmem:[#allocation2 + $0x28] sm:$0xff] }
 0x99a   :  { %v5777_v24 = vmul.f32 %v5745_v7, %v12795_v50  ;;  %v5680_v25 = vadd.f32 -0.28449672, %v5648_v51  ;;  %vm6002_vm1 = vcmp.lt.f32.partialorder %v13499_v63, 0.0  ;;  %6490 = vmatpush.msrb.mxu2 %v6132_v38  ;;  %v6067_v59 = vsel %vm6003_vm3, %v6035_v22, %v5971_v53  ;;  %v13507_v7 = vld [vmem:[#allocation66_spill] sm:$0xff]  ;;  %v6185_v27 = vld [vmem:[#allocation2 + $0x150] sm:$0xff] }
 0x99b   :  { %v6034_v11 = vsub.f32 0.0, %v5970_v60  ;;  %v5551_v26 = vadd.f32 -1.4531521, %v5519_v34  ;;  %v4883_v13 = vmul.f32 0.5, %v13500_v32  ;;  %v6099_v20 = vadd.f32 1.0, %v6067_v59  ;;  %v6183_v34 = vld [vmem:[#allocation2 + $0x140] sm:$0xff] }
 0x99c   :  { %v5937_v37 = vmul.f32 %v13501_v48, %v5777_v24  ;;  %v5712_v12 = vmul.f32 %v5680_v25, %v12815_v6  ;;  %v4882_v43 = vmul.f32 0.5, %v13502_v41  ;;  %6434 = vmatmul.f32.gmra.mxu1 %v6177_v54  ;;  %v5887_v49 = vmul.f32 1.442695, %v5839_v5  ;;  %v6187_v24 = vld [vmem:[#allocation2 + $0x160] sm:$0xff]  ;;  %v6384_v25 = vpop.f32.mrf.mxu1  ;;  %v6150_v63 = vld [vmem:[#allocation2 + $0x38] sm:$0xff]  ;;  %v6189_v59 = vld [vmem:[#allocation2 + $0x170] sm:$0xff] }
 0x99d   :  { %v6066_v39 = vsel %vm6002_vm1, %v6034_v11, %v5970_v60  ;;  %v5583_v28 = vmul.f32 %v5551_v26, %v5276_v55  ;;  %v6131_v50 = vmul.f32 %v6099_v20, %v4883_v13  ;;  %vm6001_vm5 = vcmp.lt.f32.partialorder %v13503_v40, 0.0  ;;  %v6144_v60 = vld [vmem:[#allocation2 + $0x8] sm:$0xff]  ;;  %v6191_v32 = vld [vmem:[#allocation2 + $0x180] sm:$0xff]  ;;  %v6154_v13 = vld [vmem:[#allocation2 + $0x58] sm:$0xff] }
 0x99e   :  { %v6098_v16 = vadd.f32 1.0, %v6066_v39  ;;  %v5969_v9 = vsub.f32 1.0, %v5937_v37  ;;  %v5744_v45 = vadd.f32 0.2548296, %v5712_v12  ;;  %v4881_v21 = vmul.f32 0.5, %v13504_v3  ;;  %v6152_v26 = vld [vmem:[#allocation2 + $0x48] sm:$0xff] }
 0x99f   :  { %v5615_v46 = vadd.f32 1.4214138, %v5583_v28  ;;  %v7596_v4 = vpop.eup %7595  ;;  %6491 = vmatpush.msrb.mxu2 %v6131_v50  ;;  %7597 = vpow2.f32 %v5887_v49  ;;  %vm6000_vm6 = vcmp.lt.f32.partialorder %v13505_v36, 0.0  ;;  %v4880_v23 = vmul.f32 0.5, %v13506_v44  ;;  %v6193_v20 = vld [vmem:[#allocation2 + $0x190] sm:$0xff]  ;;  %v6156_v37 = vld [vmem:[#allocation2 + $0x68] sm:$0xff]  ;;  %v6215_v36 = vpop.permute.xlu2 %6214 }
 0x9a0   :  { %v6130_v52 = vmul.f32 %v6098_v16, %v4882_v43  ;;  %v6033_v47 = vsub.f32 0.0, %v5969_v9  ;;  %v5776_v8 = vmul.f32 %v5744_v45, %v12815_v6  ;;  %vm5999_vm7 = vcmp.lt.f32.partialorder %v13507_v7, 0.0  ;;  %v6195_v12 = vld [vmem:[#allocation2 + $0x1a0] sm:$0xff]  ;;  %v6158_v41 = vld [vmem:[#allocation2 + $0x78] sm:$0xff]  ;;  %v6197_v43 = vld [vmem:[#allocation2 + $0x1b0] sm:$0xff] }
 0x9a1   :  { %v5647_v2 = vmul.f32 %v5615_v46, %v5276_v55  ;;  %v4879_v31 = vmul.f32 0.5, %v13508_v35  ;;  %v6160_v28 = vld [vmem:[#allocation2 + $0x88] sm:$0xff]  ;;  %v6199_v50 = vld [vmem:[#allocation2 + $0x1c0] sm:$0xff]  ;;  %v6201_v45 = vld [vmem:[#allocation2 + $0x1d0] sm:$0xff] }
 0x9a2   :  { %6492 = vmatpush.msrb.mxu2 %v6130_v52  ;;  %v6065_v57 = vsel %vm6001_vm5, %v6033_v47, %v5969_v9  ;;  %v5936_v29 = vmul.f32 %v7596_v4, %v5776_v8  ;;  %v6162_v9 = vld [vmem:[#allocation2 + $0x98] sm:$0xff]  ;;  %v6164_v46 = vld [vmem:[#allocation2 + $0xa8] sm:$0xff]  ;;  %v6203_v4 = vld [vmem:[#allocation2 + $0x1e0] sm:$0xff] }
 0x9a3   :  { %v6097_v61 = vadd.f32 1.0, %v6065_v57  ;;  %v5679_v15 = vadd.f32 -0.28449672, %v5647_v2  ;;  %v6166_v52 = vld [vmem:[#allocation2 + $0xb8] sm:$0xff]  ;;  %v6205_v47 = vld [vmem:[#allocation2 + $0x1f0] sm:$0xff]  ;;  %v6168_v40 = vld [vmem:[#allocation2 + $0xc8] sm:$0xff] }
 0x9a4   :  { %v5968_v17 = vsub.f32 1.0, %v5936_v29  ;;  %6437 = vmatmul.f32.gmra.mxu1 %v6179_v58  ;;  %v6387_v11 = vpop.f32.mrf.mxu1  ;;  %v6170_v2 = vld [vmem:[#allocation2 + $0xd8] sm:$0xff]  ;;  %v6625_v57 = vld [vmem:[%s13002_s14] sm:$0xff]  ;;  %v6172_v29 = vld [vmem:[#allocation2 + $0xe8] sm:$0xff] }
 0x9a5   :  { %v6129_v56 = vmul.f32 %v6097_v61, %v4881_v21  ;;  %v5711_v33 = vmul.f32 %v5679_v15, %v5276_v55  ;;  %v7598_v53 = vpop.eup %7597  ;;  %6738 = vmatpush.msrb.mxu3 %v6625_v57  ;;  %v6174_v3 = vld [vmem:[#allocation2 + $0xf8] sm:$0xff]  ;;  %v6176_v21 = vld [vmem:[#allocation2 + $0x108] sm:$0xff]  ;;  %v6210_v61 = vpop.permute.xlu1 %6209 }
 0x9a6   :  { %v6032_v19 = vsub.f32 0.0, %v5968_v17  ;;  %v6385_v15 = vadd.f32 %v6384_v25, %v6210_v61  ;;  %v13511_v7 = vld [vmem:[#allocation12_spill] sm:$0xff] }
 0x9a7   :  { %6493 = vmatpush.msrb.mxu2 %v6129_v56  ;;  %v5743_v6 = vadd.f32 0.2548296, %v5711_v33  ;;  %v6178_v56 = vld [vmem:[#allocation2 + $0x118] sm:$0xff]  ;;  %v6192_v57 = vld [vmem:[#allocation2 + $0x188] sm:$0xff] }
 0x9a8   :  { %v6064_v1 = vsel %vm6000_vm6, %v6032_v19, %v5968_v17  ;;  %v13509_v33 = vld [vmem:[#allocation10_spill] sm:$0xff] }
 0x9a9   :  { %v6096_v30 = vadd.f32 1.0, %v6064_v1  ;;  %v5775_v18 = vmul.f32 %v5743_v6, %v5276_v55  ;;  %v6146_v55 = vld [vmem:[#allocation2 + $0x18] sm:$0xff]  ;;  %v6388_v6 = vadd.f32 %v6387_v11, %v6215_v36 }
 0x9aa   :  { %v6186_v11 = vld [vmem:[#allocation2 + $0x158] sm:$0xff] }
 0x9ab   :  { %v6128_v14 = vmul.f32 %v6096_v30, %v4880_v23  ;;  %v5935_v10 = vmul.f32 %v7598_v53, %v5775_v18  ;;  %v6180_v23 = vld [vmem:[#allocation2 + $0x128] sm:$0xff]  ;;  %v13510_v30 = vld [vmem:[#allocation11_spill] sm:$0xff] }
 0x9ac   :  { %6440 = vmatmul.f32.gmra.mxu1 %v6181_v0  ;;  %v6390_v48 = vpop.f32.mrf.mxu1 }
 0x9ad   :  { %6494 = vmatpush.msrb.mxu2 %v6128_v14  ;;  %v5967_v62 = vsub.f32 1.0, %v5935_v10  ;;  %v6220_v14 = vpop.permute.xlu0 %6219  ;;  %v6225_v35 = vpop.permute.xlu1 %6224 }
 0x9ae   :  { %v6391_v10 = vadd.f32 %v6390_v48, %v6220_v14 }
 0x9af   :  { %v6031_v5 = vsub.f32 0.0, %v5967_v62 }
 0x9b1   :  { %v6063_v51 = vsel %vm5999_vm7, %v6031_v5, %v5967_v62  ;;  %v6182_v5 = vld [vmem:[#allocation2 + $0x138] sm:$0xff] }
 0x9b2   :  { %v6095_v38 = vadd.f32 1.0, %v6063_v51 }
 0x9b4   :  { %v6127_v22 = vmul.f32 %v6095_v38, %v4879_v31  ;;  %6443 = vmatmul.f32.gmra.mxu1 %v6183_v34  ;;  %v12867_v54 = vpop.f32.mrf.mxu1  ;;  %v6184_v34 = vld [vmem:[#allocation2 + $0x148] sm:$0xff] }
 0x9b5   :  { %v6394_v31 = vadd.f32 %v12867_v54, %v6225_v35 }
 0x9b6   :  { %6495 = vmatpush.msrb.mxu2 %v6127_v22 }
 0x9b7   :  { %6496 = vmatmul.f32.vlgmr.msrb.gmra.mxu2 %v6144_v60 }
 0x9bc   :  { %6446 = vmatmul.f32.gmra.mxu1 %v6185_v27  ;;  %v12869_v39 = vpop.f32.mrf.mxu1 }
 0x9bf   :  { %6499 = vmatmul.f32.gmra.mxu2 %v6146_v55  ;;  %v13512_v55 = vld [vmem:[#allocation13_spill] sm:$0xff] }
 0x9c4   :  { %6449 = vmatmul.f32.gmra.mxu1 %v6187_v24  ;;  %v12871_v16 = vpop.f32.mrf.mxu1 }
 0x9c7   :  { %6502 = vmatmul.f32.gmra.mxu2 %v6148_v42  ;;  %v6230_v42 = vpop.permute.xlu2 %6229 }
 0x9c8   :  { %v6397_v24 = vadd.f32 %v12869_v39, %v6230_v42  ;;  %v6240_v39 = vpop.permute.xlu1 %6239 }
 0x9cc   :  { %6452 = vmatmul.f32.gmra.mxu1 %v6189_v59  ;;  %v12873_v49 = vpop.f32.mrf.mxu1 }
 0x9cf   :  { %6505 = vmatmul.f32.gmra.mxu2 %v6150_v63 }
 0x9d4   :  { %6455 = vmatmul.f32.gmra.mxu1 %v6191_v32  ;;  %v12875_v8 = vpop.f32.mrf.mxu1 }
 0x9d7   :  { %6508 = vmatmul.f32.gmra.mxu2 %v6152_v26  ;;  %v13513_v26 = vld [vmem:[#allocation14_spill] sm:$0xff] }
 0x9dc   :  { %6458 = vmatmul.f32.gmra.mxu1 %v6193_v20  ;;  %v6408_v53 = vpop.f32.mrf.mxu1 }
 0x9df   :  { %6511 = vmatmul.f32.gmra.mxu2 %v6154_v13  ;;  %v6235_v13 = vpop.permute.xlu0 %6234 }
 0x9e0   :  { %v6400_v20 = vadd.f32 %v12871_v16, %v6235_v13  ;;  %v6245_v16 = vpop.permute.xlu2 %6244 }
 0x9e4   :  { %6461 = vmatmul.f32.gmra.mxu1 %v6195_v12  ;;  %v6411_v38 = vpop.f32.mrf.mxu1  ;;  %v6188_v12 = vld [vmem:[#allocation2 + $0x168] sm:$0xff] }
 0x9e7   :  { %6514 = vmatmul.f32.gmra.mxu2 %v6156_v37 }
 0x9ec   :  { %6464 = vmatmul.f32.gmra.mxu1 %v6197_v43  ;;  %v6414_v63 = vpop.f32.mrf.mxu1 }
 0x9ef   :  { %6517 = vmatmul.f32.gmra.mxu2 %v6158_v41  ;;  %v13514_v41 = vld [vmem:[#allocation15_spill] sm:$0xff] }
 0x9f4   :  { %6467 = vmatmul.f32.gmra.mxu1 %v6199_v50  ;;  %v6417_v54 = vpop.f32.mrf.mxu1 }
 0x9f7   :  { %6520 = vmatmul.f32.gmra.mxu2 %v6160_v28  ;;  %v6403_v28 = vadd.f32 %v12873_v49, %v6240_v39  ;;  %v6250_v49 = vpop.permute.xlu0 %6249 }
 0x9fc   :  { %6470 = vmatmul.f32.gmra.mxu1 %v6201_v45  ;;  %v6190_v45 = vld [vmem:[#allocation2 + $0x178] sm:$0xff] }
 0x9ff   :  { %6523 = vmatmul.f32.gmra.mxu2 %v6162_v9 }
 0xa04   :  { %6473 = vmatmul.f32.gmra.mxu1 %v6203_v4 }
 0xa07   :  { %6526 = vmatmul.f32.gmra.mxu2 %v6164_v46  ;;  %v13515_v46 = vld [vmem:[#allocation16_spill] sm:$0xff] }
 0xa0c   :  { %6476 = vmatmul.f32.gmra.mxu1 %v6205_v47  ;;  %v6406_v47 = vadd.f32 %v12875_v8, %v6245_v16  ;;  %v6255_v8 = vpop.permute.xlu1 %6254 }
 0xa0f   :  { %6529 = vmatmul.f32.gmra.mxu2 %v6166_v52  ;;  %v6420_v52 = vpop.f32.mrf.mxu1 }
 0xa17   :  { %6532 = vmatmul.f32.gmra.mxu2 %v6168_v40  ;;  %v6423_v61 = vpop.f32.mrf.mxu1 }
 0xa1f   :  { %6535 = vmatmul.f32.gmra.mxu2 %v6170_v2 }
 0xa27   :  { %6538 = vmatmul.f32.gmra.mxu2 %v6172_v29  ;;  %v13516_v29 = vld [vmem:[#allocation17_spill] sm:$0xff] }
 0xa2f   :  { %6541 = vmatmul.f32.gmra.mxu2 %v6174_v3 }
 0xa37   :  { %6544 = vmatmul.f32.gmra.mxu2 %v6176_v21  ;;  %v6409_v21 = vadd.f32 %v6408_v53, %v6250_v49 }
 0xa3a   :  { %v6497_v17 = vpop.f32.mrf.mxu2 }
 0xa3b   :  { %v6498_v58 = vadd.f32 %v6497_v17, %v6385_v15 }
 0xa3d   :  { %v6593_v19 = vadd.f32 %v6498_v58, %v13509_v33  ;;  %v6194_v58 = vld [vmem:[#allocation2 + $0x198] sm:$0xff] }
 0xa3f   :  { %6547 = vmatmul.f32.gmra.mxu2 %v6178_v56  ;;  %7158 = vmatmul.msk.f32.vlgmr.msrb.gmra.mxu3 %vm76_vm0, %v6593_v19  ;;  %v13517_v56 = vld [vmem:[#allocation19_spill] sm:$0xff]  ;;  %v6412_v19 = vadd.f32 %v6411_v38, %v6255_v8 }
 0xa42   :  { %v6500_v1 = vpop.f32.mrf.mxu2 }
 0xa43   :  { %v6501_v44 = vadd.f32 %v6500_v1, %v6388_v6  ;;  %v6426_v6 = vpop.f32.mrf.mxu1 }
 0xa45   :  { %v6594_v18 = vadd.f32 %v6501_v44, %v13510_v30  ;;  %v6196_v44 = vld [vmem:[#allocation2 + $0x1a8] sm:$0xff] }
 0xa47   :  { %6550 = vmatmul.f32.gmra.mxu2 %v6180_v23  ;;  %7159 = vmatmul.msk.f32.gmra.mxu3 %vm76_vm0, %v6594_v18  ;;  %v13518_v23 = vld [vmem:[#allocation21_spill] sm:$0xff]  ;;  %v6260_v18 = vpop.permute.xlu2 %6259 }
 0xa48   :  { %v6415_v53 = vadd.f32 %v6414_v63, %v6260_v18  ;;  %v6202_v63 = vld [vmem:[#allocation2 + $0x1d8] sm:$0xff] }
 0xa4a   :  { %v6503_v0 = vpop.f32.mrf.mxu2 }
 0xa4b   :  { %v6504_v62 = vadd.f32 %v6503_v0, %v6391_v10  ;;  %v6198_v0 = vld [vmem:[#allocation2 + $0x1b8] sm:$0xff] }
 0xa4d   :  { %v6595_v51 = vadd.f32 %v6504_v62, %v13511_v7  ;;  %v6429_v62 = vpop.f32.mrf.mxu1 }
 0xa4f   :  { %6553 = vmatmul.f32.gmra.mxu2 %v6182_v5  ;;  %7160 = vmatmul.msk.f32.gmra.mxu3 %vm76_vm0, %v6595_v51  ;;  %v13519_v5 = vld [vmem:[#allocation23_spill] sm:$0xff]  ;;  %v6265_v51 = vpop.permute.xlu0 %6264 }
 0xa50   :  { %v6418_v35 = vadd.f32 %v6417_v54, %v6265_v51 }
 0xa52   :  { %v6506_v22 = vpop.f32.mrf.mxu2 }
 0xa53   :  { %v6507_v60 = vadd.f32 %v6506_v22, %v6394_v31  ;;  %v6200_v22 = vld [vmem:[#allocation2 + $0x1c8] sm:$0xff] }
 0xa55   :  { %v6596_v27 = vadd.f32 %v6507_v60, %v13512_v55  ;;  %v13520_v60 = vld [vmem:[#allocation25_spill] sm:$0xff]  ;;  %v6432_v55 = vpop.f32.mrf.mxu1 }
 0xa57   :  { %6556 = vmatmul.f32.gmra.mxu2 %v6184_v34  ;;  %7161 = vmatmul.msk.f32.gmra.mxu3 %vm76_vm0, %v6596_v27  ;;  %v6270_v27 = vpop.permute.xlu1 %6269 }
 0xa58   :  { %v6421_v42 = vadd.f32 %v6420_v52, %v6270_v27 }
 0xa5a   :  { %v6509_v25 = vpop.f32.mrf.mxu2 }
 0xa5b   :  { %v6510_v59 = vadd.f32 %v6509_v25, %v6397_v24 }
 0xa5d   :  { %v6597_v32 = vadd.f32 %v6510_v59, %v13513_v26  ;;  %v13521_v59 = vld [vmem:[#allocation28_spill] sm:$0xff]  ;;  %v6275_v26 = vpop.permute.xlu2 %6274  ;;  %v6435_v13 = vpop.f32.mrf.mxu1 }
 0xa5f   :  { %6559 = vmatmul.f32.gmra.mxu2 %v6186_v11  ;;  %7162 = vmatmul.msk.f32.gmra.mxu3 %vm76_vm0, %v6597_v32  ;;  %v6424_v32 = vadd.f32 %v6423_v61, %v6275_v26  ;;  %v13525_v61 = vld [vmem:[#allocation37_spill] sm:$0xff] }
 0xa62   :  { %v6512_v48 = vpop.f32.mrf.mxu2 }
 0xa63   :  { %v6513_v37 = vadd.f32 %v6512_v48, %v6400_v20 }
 0xa65   :  { %v6598_v43 = vadd.f32 %v6513_v37, %v13514_v41  ;;  %v6204_v37 = vld [vmem:[#allocation2 + $0x1e8] sm:$0xff]  ;;  %v6280_v41 = vpop.permute.xlu0 %6279 }
 0xa67   :  { %6562 = vmatmul.f32.gmra.mxu2 %v6188_v12  ;;  %7163 = vmatmul.msk.f32.gmra.mxu3 %vm76_vm0, %v6598_v43  ;;  %v13522_v12 = vld [vmem:[#allocation30_spill] sm:$0xff]  ;;  %v6427_v43 = vadd.f32 %v6426_v6, %v6280_v41 }
 0xa6a   :  { %v6515_v50 = vpop.f32.mrf.mxu2 }
 0xa6b   :  { %v6516_v9 = vadd.f32 %v6515_v50, %v6403_v28  ;;  %v6438_v28 = vpop.f32.mrf.mxu1 }
 0xa6d   :  { %v6599_v4 = vadd.f32 %v6516_v9, %v13515_v46  ;;  %v6206_v9 = vld [vmem:[#allocation2 + $0x1f8] sm:$0xff] }
 0xa6f   :  { %6565 = vmatmul.f32.gmra.mxu2 %v6190_v45  ;;  %7164 = vmatmul.msk.f32.gmra.mxu3 %vm76_vm0, %v6599_v4  ;;  %v13523_v45 = vld [vmem:[#allocation32_spill] sm:$0xff]  ;;  %v6285_v4 = vpop.permute.xlu1 %6284 }
 0xa70   :  { %v6430_v52 = vadd.f32 %v6429_v62, %v6285_v4 }
 0xa72   :  { %v6518_v40 = vpop.f32.mrf.mxu2 }
 0xa73   :  { %v6519_v2 = vadd.f32 %v6518_v40, %v6406_v47  ;;  %v6441_v40 = vpop.f32.mrf.mxu1 }
 0xa75   :  { %v6600_v3 = vadd.f32 %v6519_v2, %v13516_v29  ;;  %v13524_v2 = vld [vmem:[#allocation34_spill] sm:$0xff]  ;;  %v6290_v29 = vpop.permute.xlu2 %6289 }
 0xa77   :  { %6568 = vmatmul.f32.gmra.mxu2 %v6192_v57  ;;  %7165 = vmatmul.msk.f32.gmra.mxu3 %vm76_vm0, %v6600_v3  ;;  %v6433_v3 = vadd.f32 %v6432_v55, %v6290_v29 }
 0xa7a   :  { %v6521_v15 = vpop.f32.mrf.mxu2 }
 0xa7b   :  { %v6522_v17 = vadd.f32 %v6521_v15, %v6409_v21 }
 0xa7d   :  { %v6601_v33 = vadd.f32 %v6522_v17, %v13517_v56  ;;  %v6444_v17 = vpop.f32.mrf.mxu1 }
 0xa7f   :  { %6571 = vmatmul.f32.gmra.mxu2 %v6194_v58  ;;  %7166 = vmatmul.msk.f32.gmra.mxu3 %vm76_vm0, %v6601_v33  ;;  %v6295_v58 = vpop.permute.xlu0 %6294 }
 0xa80   :  { %v6436_v56 = vadd.f32 %v6435_v13, %v6295_v58  ;;  %v13530_v13 = vld [vmem:[#allocation42_spill] sm:$0xff] }
 0xa82   :  { %v6524_v36 = vpop.f32.mrf.mxu2 }
 0xa83   :  { %v6525_v1 = vadd.f32 %v6524_v36, %v6412_v19  ;;  %v13526_v36 = vld [vmem:[#allocation38_spill] sm:$0xff] }
 0xa85   :  { %v6602_v30 = vadd.f32 %v6525_v1, %v13518_v23  ;;  %v6300_v1 = vpop.permute.xlu1 %6299  ;;  %v6447_v23 = vpop.f32.mrf.mxu1 }
 0xa87   :  { %6574 = vmatmul.f32.gmra.mxu2 %v6196_v44  ;;  %7167 = vmatmul.msk.f32.gmra.mxu3 %vm76_vm0, %v6602_v30  ;;  %v6439_v44 = vadd.f32 %v6438_v28, %v6300_v1 }
 0xa8a   :  { %v6527_v14 = vpop.f32.mrf.mxu2 }
 0xa8b   :  { %v6528_v10 = vadd.f32 %v6527_v14, %v6415_v53  ;;  %v13527_v14 = vld [vmem:[#allocation39_spill] sm:$0xff] }
 0xa8d   :  { %v6603_v7 = vadd.f32 %v6528_v10, %v13519_v5  ;;  %v6450_v51 = vpop.f32.mrf.mxu1 }
 0xa8f   :  { %6577 = vmatmul.f32.gmra.mxu2 %v6198_v0  ;;  %7168 = vmatmul.msk.f32.gmra.mxu3 %vm76_vm0, %v6603_v7  ;;  %v6305_v0 = vpop.permute.xlu2 %6304 }
 0xa90   :  { %v6442_v62 = vadd.f32 %v6441_v40, %v6305_v0 }
 0xa92   :  { %v6530_v31 = vpop.f32.mrf.mxu2 }
 0xa93   :  { %v6531_v38 = vadd.f32 %v6530_v31, %v6418_v35  ;;  %v13528_v31 = vld [vmem:[#allocation40_spill] sm:$0xff] }
 0xa95   :  { %v6604_v34 = vadd.f32 %v6531_v38, %v13520_v60 }
 0xa97   :  { %6580 = vmatmul.f32.gmra.mxu2 %v6200_v22  ;;  %7169 = vmatmul.msk.f32.gmra.mxu3 %vm76_vm0, %v6604_v34  ;;  %v6310_v22 = vpop.permute.xlu0 %6309 }
 0xa98   :  { %v6445_v60 = vadd.f32 %v6444_v17, %v6310_v22 }
 0xa9a   :  { %v6533_v24 = vpop.f32.mrf.mxu2 }
 0xa9b   :  { %v6534_v25 = vadd.f32 %v6533_v24, %v6421_v42  ;;  %v6453_v42 = vpop.f32.mrf.mxu1  ;;  %v13529_v24 = vld [vmem:[#allocation41_spill] sm:$0xff] }
 0xa9d   :  { %v6605_v11 = vadd.f32 %v6534_v25, %v13521_v59 }
 0xa9f   :  { %6583 = vmatmul.f32.gmra.mxu2 %v6202_v63  ;;  %7170 = vmatmul.msk.f32.gmra.mxu3 %vm76_vm0, %v6605_v11  ;;  %v6315_v63 = vpop.permute.xlu1 %6314 }
 0xaa0   :  { %v6448_v59 = vadd.f32 %v6447_v23, %v6315_v63  ;;  %v13537_v63 = vld [vmem:[#allocation49_spill] sm:$0xff] }
 0xaa2   :  { %v6536_v20 = vpop.f32.mrf.mxu2 }
 0xaa3   :  { %v6537_v48 = vadd.f32 %v6536_v20, %v6424_v32 }
 0xaa5   :  { %v6606_v54 = vadd.f32 %v6537_v48, %v13522_v12  ;;  %v6456_v48 = vpop.f32.mrf.mxu1 }
 0xaa7   :  { %6586 = vmatmul.f32.gmra.mxu2 %v6204_v37  ;;  %7171 = vmatmul.msk.f32.gmra.mxu3 %vm76_vm0, %v6606_v54  ;;  %v6320_v37 = vpop.permute.xlu2 %6319  ;;  %v6330_v40 = vpop.permute.xlu1 %6329 }
 0xaa8   :  { %v6451_v12 = vadd.f32 %v6450_v51, %v6320_v37 }
 0xaaa   :  { %v6539_v39 = vpop.f32.mrf.mxu2 }
 0xaab   :  { %v6540_v50 = vadd.f32 %v6539_v39, %v6427_v43  ;;  %v13531_v39 = vld [vmem:[#allocation43_spill] sm:$0xff] }
 0xaad   :  { %v6607_v46 = vadd.f32 %v6540_v50, %v13523_v45  ;;  %v6325_v50 = vpop.permute.xlu0 %6324  ;;  %v6459_v45 = vpop.f32.mrf.mxu1 }
 0xaaf   :  { %6589 = vmatmul.f32.gmra.mxu2 %v6206_v9  ;;  %7172 = vmatmul.msk.f32.gmra.mxu3 %vm76_vm0, %v6607_v46  ;;  %v6454_v9 = vadd.f32 %v6453_v42, %v6325_v50 }
 0xab2   :  { %v6542_v16 = vpop.f32.mrf.mxu2 }
 0xab3   :  { %v6543_v47 = vadd.f32 %v6542_v16, %v6430_v52  ;;  %v13532_v16 = vld [vmem:[#allocation44_spill] sm:$0xff] }
 0xab5   :  { %v6608_v57 = vadd.f32 %v6543_v47, %v13524_v2  ;;  %v6457_v2 = vadd.f32 %v6456_v48, %v6330_v40  ;;  %v6340_v1 = vpop.permute.xlu0 %6339 }
 0xab7   :  { %7173 = vmatmul.msk.f32.gmra.mxu3 %vm76_vm0, %v6608_v57 }
 0xaba   :  { %v6545_v49 = vpop.f32.mrf.mxu2 }
 0xabb   :  { %v6546_v21 = vadd.f32 %v6545_v49, %v6433_v3  ;;  %v6462_v3 = vpop.f32.mrf.mxu1 }
 0xabd   :  { %v6609_v15 = vadd.f32 %v6546_v21, %v13525_v61  ;;  %v13533_v21 = vld [vmem:[#allocation45_spill] sm:$0xff] }
 0xabf   :  { %7174 = vmatmul.msk.f32.gmra.mxu3 %vm76_vm0, %v6609_v15  ;;  %v6335_v15 = vpop.permute.xlu2 %6334 }
 0xac0   :  { %v6460_v17 = vadd.f32 %v6459_v45, %v6335_v15  ;;  %v13539_v45 = vld [vmem:[#allocation51_spill] sm:$0xff] }
 0xac2   :  { %v6548_v33 = vpop.f32.mrf.mxu2  ;;  %v12919_v8 = vpop.f32.mrf.mxu3 }
 0xac3   :  { %v6549_v19 = vadd.f32 %v6548_v33, %v6436_v56 }
 0xac5   :  { %v6610_v6 = vadd.f32 %v6549_v19, %v13526_v36  ;;  %v6465_v19 = vpop.f32.mrf.mxu1  ;;  %v13534_v36 = vld [vmem:[#allocation46_spill] sm:$0xff] }
 0xac7   :  { %7175 = vmatmul.msk.f32.gmra.mxu3 %vm76_vm0, %v6610_v6 }
 0xaca   :  { %v6551_v30 = vpop.f32.mrf.mxu2  ;;  %v12923_v18 = vpop.f32.mrf.mxu3 }
 0xacb   :  { %v6552_v53 = vadd.f32 %v6551_v30, %v6439_v44  ;;  %v6463_v44 = vadd.f32 %v6462_v3, %v6340_v1  ;;  %v13540_v3 = vld [vmem:[#allocation52_spill] sm:$0xff] }
 0xacd   :  { %v6611_v10 = vadd.f32 %v6552_v53, %v13527_v14  ;;  %v13535_v14 = vld [vmem:[#allocation47_spill] sm:$0xff]  ;;  %v6468_v0 = vpop.f32.mrf.mxu1 }
 0xacf   :  { %7176 = vmatmul.msk.f32.gmra.mxu3 %vm76_vm0, %v6611_v10 }
 0xad2   :  { %v6554_v5 = vpop.f32.mrf.mxu2  ;;  %v12927_v7 = vpop.f32.mrf.mxu3 }
 0xad3   :  { %v6555_v35 = vadd.f32 %v6554_v5, %v6442_v62  ;;  %v6345_v62 = vpop.permute.xlu1 %6344 }
 0xad4   :  { %v6466_v5 = vadd.f32 %v6465_v19, %v6345_v62 }
 0xad5   :  { %v6612_v38 = vadd.f32 %v6555_v35, %v13528_v31 }
 0xad7   :  { %7177 = vmatmul.msk.f32.gmra.mxu3 %vm76_vm0, %v6612_v38  ;;  %v13536_v38 = vld [vmem:[#allocation48_spill] sm:$0xff] }
 0xada   :  { %v6557_v34 = vpop.f32.mrf.mxu2  ;;  %v12931_v55 = vpop.f32.mrf.mxu3 }
 0xadb   :  { %v6558_v27 = vadd.f32 %v6557_v34, %v6445_v60  ;;  %v6350_v60 = vpop.permute.xlu2 %6349 }
 0xadc   :  { %v6469_v34 = vadd.f32 %v6468_v0, %v6350_v60 }
 0xadd   :  { %v6613_v25 = vadd.f32 %v6558_v27, %v13529_v24  ;;  %v6471_v27 = vpop.f32.mrf.mxu1 }
 0xadf   :  { %7178 = vmatmul.msk.f32.gmra.mxu3 %vm76_vm0, %v6613_v25 }
 0xae2   :  { %v6560_v11 = vpop.f32.mrf.mxu2  ;;  %v12935_v26 = vpop.f32.mrf.mxu3 }
 0xae3   :  { %v6561_v32 = vadd.f32 %v6560_v11, %v6448_v59  ;;  %v6355_v11 = vpop.permute.xlu0 %6354 }
 0xae5   :  { %v6614_v20 = vadd.f32 %v6561_v32, %v13530_v13  ;;  %v6472_v32 = vadd.f32 %v6471_v27, %v6355_v11  ;;  %v6474_v37 = vpop.f32.mrf.mxu1 }
 0xae7   :  { %7179 = vmatmul.msk.f32.gmra.mxu3 %vm76_vm0, %v6614_v20 }
 0xaea   :  { %v6563_v54 = vpop.f32.mrf.mxu2  ;;  %v12939_v41 = vpop.f32.mrf.mxu3 }
 0xaeb   :  { %v6564_v43 = vadd.f32 %v6563_v54, %v6451_v12  ;;  %v13538_v12 = vld [vmem:[#allocation50_spill] sm:$0xff] }
 0xaed   :  { %v6615_v28 = vadd.f32 %v6564_v43, %v13531_v39  ;;  %v6360_v43 = vpop.permute.xlu1 %6359 }
 0xaee   :  { %v6475_v39 = vadd.f32 %v6474_v37, %v6360_v43 }
 0xaef   :  { %7180 = vmatmul.msk.f32.gmra.mxu3 %vm76_vm0, %v6615_v28 }
 0xaf2   :  { %v6566_v46 = vpop.f32.mrf.mxu2  ;;  %v12943_v4 = vpop.f32.mrf.mxu3 }
 0xaf3   :  { %v6567_v52 = vadd.f32 %v6566_v46, %v6454_v9 }
 0xaf5   :  { %v6616_v47 = vadd.f32 %v6567_v52, %v13532_v16  ;;  %v6477_v52 = vpop.f32.mrf.mxu1  ;;  %v6365_v16 = vpop.permute.xlu2 %6364 }
 0xaf7   :  { %7181 = vmatmul.msk.f32.gmra.mxu3 %vm76_vm0, %v6616_v47  ;;  %v6478_v47 = vadd.f32 %v6477_v52, %v6365_v16 }
 0xafa   :  { %v6569_v57 = vpop.f32.mrf.mxu2  ;;  %v12947_v29 = vpop.f32.mrf.mxu3 }
 0xafb   :  { %v6570_v49 = vadd.f32 %v6569_v57, %v6457_v2 }
 0xafd   :  { %v6617_v61 = vadd.f32 %v6570_v49, %v13533_v21 }
 0xaff   :  { %7182 = vmatmul.msk.f32.gmra.mxu3 %vm76_vm0, %v6617_v61 }
 0xb02   :  { %v6572_v58 = vpop.f32.mrf.mxu2  ;;  %v6764_v56 = vpop.f32.mrf.mxu3 }
 0xb03   :  { %v6573_v33 = vadd.f32 %v6572_v58, %v6460_v17 }
 0xb05   :  { %v6618_v6 = vadd.f32 %v6573_v33, %v13534_v36 }
 0xb07   :  { %7183 = vmatmul.msk.f32.gmra.mxu3 %vm76_vm0, %v6618_v6 }
 0xb0a   :  { %v6575_v23 = vpop.f32.mrf.mxu2  ;;  %v6767_v30 = vpop.f32.mrf.mxu3 }
 0xb0b   :  { %v6576_v53 = vadd.f32 %v6575_v23, %v6463_v44 }
 0xb0d   :  { %v6619_v10 = vadd.f32 %v6576_v53, %v13535_v14 }
 0xb0f   :  { %7184 = vmatmul.msk.f32.gmra.mxu3 %vm76_vm0, %v6619_v10  ;;  %v7202_v10 = vld [vmem:[%s13004_s16] ss:$0 sm:$0xff] }
 0xb12   :  { %v6578_v51 = vpop.f32.mrf.mxu2  ;;  %v6770_v35 = vpop.f32.mrf.mxu3 }
 0xb13   :  { %v6579_v31 = vadd.f32 %v6578_v51, %v6466_v5 }
 0xb15   :  { %v6620_v22 = vadd.f32 %v6579_v31, %v13536_v38 }
 0xb17   :  { %7185 = vmatmul.msk.f32.gmra.mxu3 %vm76_vm0, %v6620_v22 }
 0xb1a   :  { %v6581_v42 = vpop.f32.mrf.mxu2  ;;  %v6773_v24 = vpop.f32.mrf.mxu3 }
 0xb1b   :  { %v6582_v25 = vadd.f32 %v6581_v42, %v6469_v34  ;;  %v6885_v34 = vpop.permute.xlu1 %6884 }
 0xb1d   :  { %v6621_v59 = vadd.f32 %v6582_v25, %v13537_v63  ;;  %v13541_v25 = vld [vmem:[#allocation9_spill] sm:$0xff] }
 0xb1f   :  { %7186 = vmatmul.msk.f32.gmra.mxu3 %vm76_vm0, %v6621_v59  ;;  %v13542_v59 = vld [vmem:[#allocation8_spill] sm:$0xff] }
 0xb22   :  { %v6584_v13 = vpop.f32.mrf.mxu2  ;;  %v6776_v20 = vpop.f32.mrf.mxu3 }
 0xb23   :  { %v6585_v48 = vadd.f32 %v6584_v13, %v6472_v32 }
 0xb25   :  { %v6622_v54 = vadd.f32 %v6585_v48, %v13538_v12 }
 0xb27   :  { %7187 = vmatmul.msk.f32.gmra.mxu3 %vm76_vm0, %v6622_v54 }
 0xb2a   :  { %v6587_v28 = vpop.f32.mrf.mxu2  ;;  %v6779_v50 = vpop.f32.mrf.mxu3 }
 0xb2b   :  { %v6588_v9 = vadd.f32 %v6587_v28, %v6475_v39 }
 0xb2d   :  { %v6623_v46 = vadd.f32 %v6588_v9, %v13539_v45 }
 0xb2f   :  { %7188 = vmatmul.msk.f32.gmra.mxu3 %vm76_vm0, %v6623_v46 }
 0xb32   :  { %v6590_v40 = vpop.f32.mrf.mxu2  ;;  %v6782_v2 = vpop.f32.mrf.mxu3 }
 0xb33   :  { %v6591_v57 = vadd.f32 %v6590_v40, %v6478_v47 }
 0xb35   :  { %v6624_v49 = vadd.f32 %v6591_v57, %v13540_v3 }
 0xb37   :  { %7189 = vmatmul.msk.f32.gmra.mxu3 %vm76_vm0, %v6624_v49 }
 0xb3a   :  { %v6785_v21 = vpop.f32.mrf.mxu3 }
 0xb3b   :  { %6842 = vmatpush.msrb.mxu0 %v6785_v21 }
 0xb3d   :  { %6843 = vmatpush.msrb.mxu0 %v6782_v2 }
 0xb3f   :  { %6844 = vmatpush.msrb.mxu0 %v6779_v50 }
 0xb41   :  { %6845 = vmatpush.msrb.mxu0 %v6776_v20 }
 0xb42   :  { %v6788_v61 = vpop.f32.mrf.mxu3 }
 0xb43   :  { %6846 = vmatpush.msrb.mxu0 %v6773_v24 }
 0xb45   :  { %6847 = vmatpush.msrb.mxu0 %v6770_v35 }
 0xb47   :  { %6848 = vmatpush.msrb.mxu0 %v6767_v30 }
 0xb49   :  { %6849 = vmatpush.msrb.mxu0 %v6764_v56 }
 0xb4a   :  { %v6791_v15 = vpop.f32.mrf.mxu3 }
 0xb4b   :  { %6850 = vmatpush.msrb.mxu0 %v12947_v29 }
 0xb4d   :  { %6851 = vmatpush.msrb.mxu0 %v12943_v4 }
 0xb4f   :  { %6852 = vmatpush.msrb.mxu0 %v12939_v41 }
 0xb51   :  { %6853 = vmatpush.msrb.mxu0 %v12935_v26 }
 0xb52   :  { %v6794_v17 = vpop.f32.mrf.mxu3 }
 0xb53   :  { %6854 = vmatpush.msrb.mxu0 %v12931_v55  ;;  %v6892_v55 = vpop.permute.xlu0 %6891 }
 0xb54   :  { %7599 = vrcp.f32 %v6892_v55  ;;  %vm6899_vm0 = vweird.f32 %v6892_v55  ;;  %v6905_v62 = vand.u32 2147483648, %v6892_v55  ;;  %v6903_v51 = vand.u32 2147483647, %v6892_v55 }
 0xb55   :  { %6855 = vmatpush.msrb.mxu0 %v12927_v7  ;;  %v6836_v7 = vld [vmem:[%s13003_s15] sm:$0xff] }
 0xb56   :  { %v6906_v31 = vor.u32 1.1754944e-38, %v6905_v62  ;;  %vm6904_vm9 = vcmp.eq.f32.partialorder %v6903_v51, 8.507059e+37 }
 0xb57   :  { %6856 = vmatpush.msrb.mxu0 %v12923_v18 }
 0xb59   :  { %6857 = vmatpush.msrb.mxu0 %v12919_v8  ;;  %v6837_v8 = vld [vmem:[%s13003_s15 + $0x8] sm:$0xff]  ;;  %s7664_s15 = smov [#allocation5]  }
 0xb5a   :  { %v6797_v58 = vpop.f32.mrf.mxu3  ;;  %6858 = vmatmul.f32.vlgmr.msrb.gmra.mxu0 %v6836_v7  ;;  %v7600_v23 = vpop.eup %7599  ;;  %s6917_s1 = sshll.u32 %s7664_s15, 4  ;;  %s6918_s1 = int_to_ptr.vmem [resolvable:$true] %s6917_s1 }
 0xb5b   :  { %v6895_v30 = vmul.f32 %v7600_v23, %v6892_v55  ;;  %vm6900_vm8 = vweird.f32 %v7600_v23 }
 0xb5c   :  { %vm6901_vm4 = vmor %vm6899_vm0, %vm6900_vm8 }
 0xb5d   :  { %v6896_v53 = vsub.f32 1.0, %v6895_v30 }
 0xb5f   :  { %v6897_v14 = vmul.f32 %v7600_v23, %v6896_v53 }
 0xb61   :  { %v6898_v5 = vadd.f32 %v7600_v23, %v6897_v14 }
 0xb62   :  { %v6800_v56 = vpop.f32.mrf.mxu3 }
 0xb63   :  { %v6902_v60 = vsel %vm6901_vm4, %v7600_v23, %v6898_v5 }
 0xb64   :  { %v6907_v42 = vsel %vm6904_vm9, %v6906_v31, %v6902_v60 }
 0xb6a   :  { %v6803_v33 = vpop.f32.mrf.mxu3 }
 0xb72   :  { %v6806_v19 = vpop.f32.mrf.mxu3 }
 0xb7a   :  { %v6809_v29 = vpop.f32.mrf.mxu3 }
 0xb82   :  { %v6812_v36 = vpop.f32.mrf.mxu3 }
 0xb8a   :  { %v6815_v4 = vpop.f32.mrf.mxu3 }
 0xb92   :  { %v6818_v6 = vpop.f32.mrf.mxu3 }
 0xb9a   :  { %v6821_v41 = vpop.f32.mrf.mxu3 }
 0xba2   :  { %v6824_v1 = vpop.f32.mrf.mxu3 }
 0xbaa   :  { %v6827_v26 = vpop.f32.mrf.mxu3 }
 0xbb2   :  { %v6830_v44 = vpop.f32.mrf.mxu3 }
 0xbba   :  { %v6833_v18 = vpop.f32.mrf.mxu3 }
 0xbbb   :  { %6862 = vmatpush.msra.mxu1 %v6833_v18 }
 0xbbd   :  { %6863 = vmatpush.msra.mxu1 %v6830_v44 }
 0xbbf   :  { %6864 = vmatpush.msra.mxu1 %v6827_v26 }
 0xbc1   :  { %6865 = vmatpush.msra.mxu1 %v6824_v1 }
 0xbc3   :  { %6866 = vmatpush.msra.mxu1 %v6821_v41 }
 0xbc5   :  { %6867 = vmatpush.msra.mxu1 %v6818_v6 }
 0xbc7   :  { %6868 = vmatpush.msra.mxu1 %v6815_v4 }
 0xbc9   :  { %6869 = vmatpush.msra.mxu1 %v6812_v36 }
 0xbcb   :  { %6870 = vmatpush.msra.mxu1 %v6809_v29 }
 0xbcd   :  { %6871 = vmatpush.msra.mxu1 %v6806_v19 }
 0xbcf   :  { %6872 = vmatpush.msra.mxu1 %v6803_v33 }
 0xbd1   :  { %6873 = vmatpush.msra.mxu1 %v6800_v56 }
 0xbd3   :  { %6874 = vmatpush.msra.mxu1 %v6797_v58 }
 0xbd5   :  { %6875 = vmatpush.msra.mxu1 %v6794_v17 }
 0xbd7   :  { %6876 = vmatpush.msra.mxu1 %v6791_v15  ;;  %v6859_v0 = vpop.f32.mrf.mxu0 }
 0xbd8   :  { %v6860_v35 = vadd.f32 %v7202_v10, %v6859_v0 }
 0xbd9   :  { %6877 = vmatpush.msra.mxu1 %v6788_v61 }
 0xbda   :  { %6878 = vmatmul.f32.vlgmr.msra.gmra.mxu1 %v6837_v8 }
 0xc57   :  { %v6879_v38 = vpop.f32.mrf.mxu1 }
 0xc58   :  { %v6880_v22 = vadd.f32 %v6879_v38, %v6860_v35 }
 0xc5a   :  { %v6887_v27 = vsub.f32 %v6880_v22, %v6885_v34 }
 0xc5c   :  { %v6908_v24 = vmul.f32 %v6907_v42, %v6887_v27 }
 0xc5e   :  { %v6909_v63 = vmul.f32 %v6908_v24, %v13541_v25 }
 0xc60   :  { %v6910_v11 = vadd.f32 %v6909_v63, %v13542_v59 }
 0xc62   :  { %6911 = vst.msk [vmem:[#allocation5] sm:$0xff] %vm163_vm2, %v6910_v11 }
 0xc63   :  { %6922 = dma.vmem_to_hbm [thread:$0]  %s6918_s1, 128, %s6920_s19, [#allocation4]  }
 0xc64   :  { %7656 = dma.done.wait [#allocation4], 128  }
 0xc65   :  { %7657 = vsyncadd [#allocation4], 4294967168 }
 0xc66   :  { %6927 = vsyncpa [#allocation3], 1 }
 0xc67   :  { %6928 = vsyncpa [#allocation4], 1 }

</bundles_post_ra>
